<compile_context>
chip_gen: v7x
topology: tpu7x:2x2x1
jax: 0.10.0
libtpu: 0.0.40
codegen_flags: <defaults>
</compile_context>

<pallas_src>
import functools

import jax
import jax.numpy as jnp
from jax.experimental import pallas as pl
from jax.experimental.pallas import tpu as pltpu


_ACT_DTYPE = jnp.bfloat16           # intermediate activation dtype


def _round_up(x, m):
    return ((x + m - 1) // m) * m


def _vmem_limit_bytes():
    try:
        cap = pltpu.get_tpu_info().vmem_capacity_bytes
        if cap >= 96 * 1024 * 1024:          # v5e / v6e: 128 MiB physical VMEM
            return 64 * 1024 * 1024
    except Exception:
        pass
    return 32 * 1024 * 1024                  # v7x-safe (64 MiB physical)


_VMEM_LIMIT = _vmem_limit_bytes()


def _pick_tm(M, K):
    """M tile: multiple of 16 (bf16 sublane pack), >=4 grid steps for large M."""
    if M <= 64:
        return _round_up(max(M, 16), 16)
    tm = min(512, _round_up((M + 3) // 4, 16))          # >= 4 grid steps
    cap = max(16, ((4 * 1024 * 1024) // max(1, 2 * K)) // 16 * 16)
    tm = min(tm, cap)
    if tm >= 128:
        tm = (tm // 128) * 128                          # prefer multiples of 128
    return int(tm)


def _apply_act(x, act):
    if act == "relu":
        return jnp.maximum(x, 0.0)
    if act == "hardswish":
        return x * jnp.clip(x + 3.0, 0.0, 6.0) * (1.0 / 6.0)
    return x


# ---------------------------------------------------------------------------
# Pallas kernels
# ---------------------------------------------------------------------------
def _matmul_bias_act_kernel(a_ref, b_ref, t_ref, o_ref, *, act):
    """One M-tile of act(A @ B + bias); A/B bf16, f32 accumulation."""
    acc = jnp.dot(a_ref[...], b_ref[...], preferred_element_type=jnp.float32)
    o_ref[...] = _apply_act(acc + t_ref[...], act).astype(o_ref.dtype)


def _conv3x3_row_kernel(x_ref, w_ref, t_ref, o_ref, *, act, ow, dil):
    """3x3 (dilated) stride-1 conv on a W-im2col'd, per-batch VMEM-resident input.

    x_ref: (1, Hp*OW, 3C) bf16 (full per-batch block, reused across row tiles)
    w_ref: (3, 3C, N)     bf16 (per kernel-row weights, proj/BN already folded)
    t_ref: (1, N) f32 bias; o_ref: (1, tr*OW, N).
    The three kernel-row taps are contiguous dynamic row slices -> 2D MXU dots.
    """
    r = pl.program_id(1)
    m = o_ref.shape[1]
    tr = m // ow
    acc = jnp.zeros((m, o_ref.shape[2]), jnp.float32)
    for i in range(3):                                   # static unroll
        start = pl.multiple_of((r * tr + i * dil) * ow, ow)
        acc = acc + jnp.dot(x_ref[0, pl.ds(start, m), :], w_ref[i],
                            preferred_element_type=jnp.float32)
    o_ref[0] = _apply_act(acc + t_ref[...], act).astype(o_ref.dtype)


def _conv3x3_row_head_kernel(x_ref, w_ref, t_ref, hw_ref, ht_ref, o_ref,
                             *, act, ow, dil):
    """Same as _conv3x3_row_kernel plus a fused 1x1 head (dec2 + dec3 fusion)."""
    r = pl.program_id(1)
    m = o_ref.shape[1]
    tr = m // ow
    acc = jnp.zeros((m, w_ref.shape[2]), jnp.float32)
    for i in range(3):
        start = pl.multiple_of((r * tr + i * dil) * ow, ow)
        acc = acc + jnp.dot(x_ref[0, pl.ds(start, m), :], w_ref[i],
                            preferred_element_type=jnp.float32)
    mid = _apply_act(acc + t_ref[...], act).astype(jnp.bfloat16)
    out = jnp.dot(mid, hw_ref[...], preferred_element_type=jnp.float32) + ht_ref[...]
    o_ref[0] = out.astype(o_ref.dtype)


# ---------------------------------------------------------------------------
# Wrappers
# ---------------------------------------------------------------------------
def matmul_bias_act(a, w_pad, b_pad, act="none", out_dtype=_ACT_DTYPE):
    """a: (M, K) any float; w_pad: (K, N_pad) bf16; b_pad: (1, N_pad) f32."""
    M, K = a.shape
    Kw, n_pad = w_pad.shape
    assert K == Kw
    tm = _pick_tm(M, K)
    m_pad = _round_up(M, tm)
    if m_pad != M:
        a = jnp.pad(a, ((0, m_pad - M), (0, 0)))
    out = pl.pallas_call(
        functools.partial(_matmul_bias_act_kernel, act=act),
        out_shape=jax.ShapeDtypeStruct((m_pad, n_pad), out_dtype),
        grid_spec=pltpu.PrefetchScalarGridSpec(
            num_scalar_prefetch=0,
            grid=(m_pad // tm,),
            in_specs=[
                pl.BlockSpec((tm, K), lambda i: (i, 0)),
                pl.BlockSpec((K, n_pad), lambda i: (0, 0)),
                pl.BlockSpec((1, n_pad), lambda i: (0, 0)),
            ],
            out_specs=pl.BlockSpec((tm, n_pad), lambda i: (i, 0)),
        ),
        compiler_params=pltpu.CompilerParams(
            dimension_semantics=("parallel",),
            vmem_limit_bytes=_VMEM_LIMIT),
    )(a.astype(jnp.bfloat16), w_pad, b_pad)
    return out[:M]


def _extract_taps(x, kh, kw, stride, dilation, padding):
    B, H, W, C = x.shape
    OH = (H + 2 * padding - dilation * (kh - 1) - 1) // stride + 1
    OW = (W + 2 * padding - dilation * (kw - 1) - 1) // stride + 1
    xp = jnp.pad(x, ((0, 0), (padding, padding), (padding, padding), (0, 0)))
    taps = []
    for i in range(kh):
        for j in range(kw):
            hs, ws = i * dilation, j * dilation
            sl = jax.lax.slice(
                xp,
                (0, hs, ws, 0),
                (B, hs + (OH - 1) * stride + 1, ws + (OW - 1) * stride + 1, C),
                (1, stride, stride, 1),
            )
            taps.append(sl)
    return taps, OH, OW


def conv_im2col(x, w_pad, b_pad, act, stride, padding, n_out,
                kh=3, kw=3, dilation=1, out_dtype=_ACT_DTYPE):
    """Generic conv via im2col matmul (used for tiny-channel / strided convs)."""
    B, H, W, C = x.shape
    taps, OH, OW = _extract_taps(x, kh, kw, stride, dilation, padding)
    a = jnp.concatenate(taps, axis=-1).reshape(B * OH * OW, kh * kw * C)
    out = matmul_bias_act(a, w_pad, b_pad, act=act, out_dtype=out_dtype)
    return out[:, :n_out].reshape(B, OH, OW, n_out)


def _rows_im2col(x, dil, pad, oh_pad, ow):
    """W-direction im2col (3x input), flattened per-batch to (B, Hp*OW, 3C)."""
    B, H, W, C = x.shape
    xp = jnp.pad(x.astype(jnp.bfloat16),
                 ((0, 0), (pad, pad), (pad, pad), (0, 0)))
    cols = [xp[:, :, j * dil:j * dil + ow, :] for j in range(3)]
    xc = jnp.concatenate(cols, axis=-1)                    # (B, Hp, OW, 3C)
    hp_needed = oh_pad + 2 * dil
    if xc.shape[1] < hp_needed:
        xc = jnp.pad(xc, ((0, 0), (0, hp_needed - xc.shape[1]), (0, 0), (0, 0)))
    return xc.reshape(B, hp_needed * ow, 3 * C)


def conv3x3_rows(x, w_rows, bias, act, dil=1, pad=None,
                 head_w=None, head_b=None, out_dtype=_ACT_DTYPE):
    """Stride-1 3x3 (optionally dilated) conv; optional fused 1x1 head."""
    B, H, W, C = x.shape
    pad = dil if pad is None else pad
    OH = H + 2 * pad - 2 * dil
    OW = W + 2 * pad - 2 * dil
    n_pad = w_rows.shape[2]

    tr = max(1, min(OH, 256 // max(OW, 1)))
    oh_pad = _round_up(OH, tr)
    xc_bytes = (oh_pad + 2 * dil) * OW * 3 * C * 2
    if OW % 8 != 0 or xc_bytes > 6 * 1024 * 1024:
        # Fallback: classic im2col matmul (correct for any shape).
        taps, OH2, OW2 = _extract_taps(x, 3, 3, 1, dil, pad)
        a = jnp.concatenate(taps, axis=-1).reshape(B * OH2 * OW2, 9 * C)
        mid = matmul_bias_act(a, w_rows.reshape(9 * C, n_pad), bias, act=act,
                              out_dtype=_ACT_DTYPE if head_w is not None else out_dtype)
        if head_w is not None:
            mid = matmul_bias_act(mid, head_w, head_b, act="none", out_dtype=out_dtype)
        return mid.reshape(B, OH2, OW2, mid.shape[-1])

    xc = _rows_im2col(x, dil, pad, oh_pad, OW)             # (B, R, 3C)
    R = xc.shape[1]
    in_specs = [
        pl.BlockSpec((1, R, 3 * C), lambda b, r: (b, 0, 0)),
        pl.BlockSpec((3, 3 * C, n_pad), lambda b, r: (0, 0, 0)),
        pl.BlockSpec((1, n_pad), lambda b, r: (0, 0)),
    ]
    args = [xc, w_rows, bias]
    if head_w is not None:
        n_out = head_w.shape[1]
        in_specs += [
            pl.BlockSpec((head_w.shape[0], n_out), lambda b, r: (0, 0)),
            pl.BlockSpec((1, n_out), lambda b, r: (0, 0)),
        ]
        args += [head_w, head_b]
        kern = functools.partial(_conv3x3_row_head_kernel, act=act, ow=OW, dil=dil)
    else:
        n_out = n_pad
        kern = functools.partial(_conv3x3_row_kernel, act=act, ow=OW, dil=dil)

    out = pl.pallas_call(
        kern,
        out_shape=jax.ShapeDtypeStruct((B, oh_pad * OW, n_out), out_dtype),
        grid_spec=pltpu.PrefetchScalarGridSpec(
            num_scalar_prefetch=0,
            grid=(B, oh_pad // tr),
            in_specs=in_specs,
            out_specs=pl.BlockSpec((1, tr * OW, n_out), lambda b, r: (b, r, 0)),
        ),
        compiler_params=pltpu.CompilerParams(
            dimension_semantics=("parallel", "parallel"),
            vmem_limit_bytes=_VMEM_LIMIT),
    )(*args)
    return out[:, :OH * OW, :].reshape(B, OH, OW, n_out)


# ---------------------------------------------------------------------------
# Parameter prep (hoisted out of the jitted forward)
# ---------------------------------------------------------------------------
def prepare_params(params, eps=1e-5):
    def fold(bn):
        s = bn["gamma"] / jnp.sqrt(bn["var"] + eps)
        return s, bn["beta"] - bn["mean"] * s

    def pad_n(w, b):                                        # w (K,N), b (N,)
        n = w.shape[1]
        n_pad = _round_up(n, 128)
        if n_pad != n:
            w = jnp.pad(w, ((0, 0), (0, n_pad - n)))
            b = jnp.pad(b, ((0, n_pad - n),))
        return w.astype(jnp.bfloat16), b.astype(jnp.float32).reshape(1, n_pad)

    def im2col_w(w_oihw, s=None):                           # (O,C,kh,kw)->(kh*kw*C,O)
        O, C, kh, kw = w_oihw.shape
        m = jnp.transpose(w_oihw, (2, 3, 1, 0)).reshape(kh * kw * C, O)
        return m if s is None else m * s[None, :]

    def rows_w(w_oihw, s=None):                             # (O,C,3,3)->(3,3C,O)
        O, C, _, _ = w_oihw.shape
        r = jnp.transpose(w_oihw, (2, 3, 1, 0))
        if s is not None:
            r = r * s[None, None, None, :]
        return r.reshape(3, 3 * C, O).astype(jnp.bfloat16)

    pp = {}
    s, t = fold(params["stem_bn"])
    pp["stem_w"], pp["stem_b"] = pad_n(im2col_w(params["stem_w"], s), t)
    s, t = fold(params["body_bn"])
    pp["body_w"], pp["body_b"] = pad_n(im2col_w(params["body_w"], s), t)

    # ---- ASPP: fold the 1x1 projection + BN scale into every branch ----
    s, t = fold(params["aspp_bn"])
    P = params["aspp_proj_w"][:, :, 0, 0]                   # (128, 640)
    oc = P.shape[0]

    def pslice(i):                                          # (128_branch, 128_out)
        return jnp.transpose(P[:, i * oc:(i + 1) * oc])

    w1 = jnp.transpose(params["aspp1_w"][:, :, 0, 0])       # (576, 128)
    wp = jnp.transpose(params["aspp_pool_w"][:, :, 0, 0])
    main = (w1 @ pslice(0)) * s[None, :]
    pool = (wp @ pslice(4)) * s[None, :]
    centers = []
    for idx, key in enumerate(["aspp2_w", "aspp3_w", "aspp4_w"]):
        wb = params[key]                                     # (128, 576, 3, 3)
        pb = pslice(idx + 1)
        taps = jnp.einsum("mcij,mo->ijco", wb, pb) * s[None, None, None, :]
        centers.append(taps[1, 1])                           # (576, 128)
        pp[f"aspp{idx + 2}_rows"] = taps.reshape(3, 3 * wb.shape[1], oc).astype(jnp.bfloat16)
    # When dilation >= feature size the dilated 3x3s only see their centre tap,
    # so ASPP collapses to a single matmul with these combined weights.
    pp["aspp_comb_center"] = jnp.concatenate(
        [main + centers[0] + centers[1] + centers[2], pool], axis=1).astype(jnp.bfloat16)
    pp["aspp_comb_general"] = jnp.concatenate([main, pool], axis=1).astype(jnp.bfloat16)
    pp["aspp_comb_b"] = jnp.concatenate(
        [t.astype(jnp.float32), jnp.zeros((oc,), jnp.float32)]).reshape(1, 2 * oc)
    pp["zero_b"] = jnp.zeros((1, oc), jnp.float32)

    # ---- decoder ----
    s, t = fold(params["low_bn"])
    pp["low_w"], pp["low_b"] = pad_n(
        jnp.transpose(params["low_w"][:, :, 0, 0]) * s[None, :], t)
    s, t = fold(params["dec1_bn"])
    pp["dec1_rows"] = rows_w(params["dec1_w"], s)
    pp["dec1_b"] = t.astype(jnp.float32).reshape(1, -1)
    s, t = fold(params["dec2_bn"])
    pp["dec2_rows"] = rows_w(params["dec2_w"], s)
    pp["dec2_b"] = t.astype(jnp.float32).reshape(1, -1)
    pp["dec3_w"], pp["dec3_b"] = pad_n(
        jnp.transpose(params["dec3_w"][:, :, 0, 0]), params["dec3_b"])
    return pp


# ---------------------------------------------------------------------------
# Synthetic parameters (deterministic)
# ---------------------------------------------------------------------------
def init_params(key, num_classes):
    def conv_w(k, o, i, kh, kw):
        fan_in = i * kh * kw
        return jax.random.normal(k, (o, i, kh, kw), jnp.float32) / jnp.sqrt(fan_in)

    def bn_p(k, c):
        k1, k2, k3, k4 = jax.random.split(k, 4)
        return {
            "gamma": jax.random.uniform(k1, (c,), jnp.float32, 0.5, 1.5),
            "beta": 0.1 * jax.random.normal(k2, (c,), jnp.float32),
            "mean": 0.1 * jax.random.normal(k3, (c,), jnp.float32),
            "var": jax.random.uniform(k4, (c,), jnp.float32, 0.5, 1.5),
        }

    ks = iter(jax.random.split(key, 64))
    p = {}
    # backbone.features[0]: Conv2d(3,16,3,s2,p1)+BN+Hardswish
    p["stem_w"], p["stem_bn"] = conv_w(next(ks), 16, 3, 3, 3), bn_p(next(ks), 16)
    # TODO(synk): pretrained MobileNetV3-Small blocks features[1:] have no clean
    # in-script equivalent; replaced by a single strided 3x3 conv 16->576
    # (stride 16) + Hardswish so ASPP/decoder see the correct 1/32, 576-ch map.
    p["body_w"], p["body_bn"] = conv_w(next(ks), 576, 16, 3, 3), bn_p(next(ks), 576)
    # ASPP
    p["aspp1_w"] = conv_w(next(ks), 128, 576, 1, 1)
    p["aspp2_w"] = conv_w(next(ks), 128, 576, 3, 3)
    p["aspp3_w"] = conv_w(next(ks), 128, 576, 3, 3)
    p["aspp4_w"] = conv_w(next(ks), 128, 576, 3, 3)
    p["aspp_pool_w"] = conv_w(next(ks), 128, 576, 1, 1)
    p["aspp_proj_w"] = conv_w(next(ks), 128, 640, 1, 1)
    p["aspp_bn"] = bn_p(next(ks), 128)
    # DeepLab decoder
    p["low_w"], p["low_bn"] = conv_w(next(ks), 48, 16, 1, 1), bn_p(next(ks), 48)
    p["dec1_w"], p["dec1_bn"] = conv_w(next(ks), 128, 176, 3, 3), bn_p(next(ks), 128)
    p["dec2_w"], p["dec2_bn"] = conv_w(next(ks), 128, 128, 3, 3), bn_p(next(ks), 128)
    p["dec3_w"] = conv_w(next(ks), num_classes, 128, 1, 1)
    p["dec3_b"] = 0.01 * jax.random.normal(next(ks), (num_classes,), jnp.float32)
    return p


# ---------------------------------------------------------------------------
# Forward pass
# ---------------------------------------------------------------------------
def ultra_light_segmentation(pp, x_nchw, num_classes):
    x = jnp.transpose(x_nchw, (0, 2, 3, 1)).astype(jnp.float32)     # NHWC
    B, H, W, _ = x.shape

    # ---- backbone ----
    low = conv_im2col(x, pp["stem_w"], pp["stem_b"], act="hardswish",
                      stride=2, padding=1, n_out=16)                 # (B, H/2, W/2, 16)
    feat = conv_im2col(low, pp["body_w"], pp["body_b"], act="hardswish",
                       stride=16, padding=1, n_out=576)              # (B, H/32, W/32, 576)
    _, fh, fw, cin = feat.shape
    oc = 128

    # ---- ASPP (projection + BN folded into the branches) ----
    rates = (6, 12, 18)
    center_only = all(d >= fh and d >= fw for d in rates)
    comb_w = pp["aspp_comb_center"] if center_only else pp["aspp_comb_general"]
    comb = matmul_bias_act(feat.reshape(B * fh * fw, cin), comb_w,
                           pp["aspp_comb_b"], act="none",
                           out_dtype=jnp.float32)                    # (M, 256)
    main = comb[:, :oc].reshape(B, fh, fw, oc)
    pooled = jnp.mean(comb[:, oc:].reshape(B, fh * fw, oc), axis=1)
    z = main + pooled[:, None, None, :]
    if not center_only:
        for key, d in (("aspp2_rows", 6), ("aspp3_rows", 12), ("aspp4_rows", 18)):
            z = z + conv3x3_rows(feat, pp[key], pp["zero_b"], act="none",
                                 dil=d, pad=d, out_dtype=jnp.float32)
    aspp_out = jnp.maximum(z, 0.0).astype(_ACT_DTYPE)                # (B, fh, fw, 128)

    # ---- decoder ----
    lh, lw = low.shape[1], low.shape[2]
    up = jax.image.resize(aspp_out, (B, lh, lw, oc), method="bilinear")  # bf16
    low48 = matmul_bias_act(low.reshape(B * lh * lw, 16), pp["low_w"], pp["low_b"],
                            act="relu")[:, :48].reshape(B, lh, lw, 48)
    dcat = jnp.concatenate([up, low48], axis=-1)                     # (B, lh, lw, 176)
    d1 = conv3x3_rows(dcat, pp["dec1_rows"], pp["dec1_b"], act="relu",
                      dil=1, pad=1)                                  # (B, lh, lw, 128)
    logits = conv3x3_rows(d1, pp["dec2_rows"], pp["dec2_b"], act="relu",
                          dil=1, pad=1, head_w=pp["dec3_w"], head_b=pp["dec3_b"],
                          out_dtype=jnp.float32)                     # dec2+dec3 fused
    logits = logits[..., :num_classes]                               # (B, lh, lw, nc)

    out = jax.image.resize(logits, (B, H, W, num_classes), method="bilinear")
    return jnp.transpose(out, (0, 3, 1, 2))                          # NCHW


if __name__ == "__main__":
    num_classes = 4
    key = jax.random.PRNGKey(0)
    k_params, k_x = jax.random.split(key)
    params = init_params(k_params, num_classes)
    prepped = prepare_params(params)                    # weight prep outside jit
    x = jax.random.normal(k_x, (2, 3, 64, 64), jnp.float32)   # NCHW, like PyTorch

    fwd = jax.jit(lambda p, xx: ultra_light_segmentation(p, xx, num_classes))
    out = fwd(prepped, x)
    jax.block_until_ready(out)
    assert out.shape == (2, num_classes, 64, 64), out.shape
    assert bool(jnp.all(jnp.isfinite(out)))
    print("KERNEL_OK")
</pallas_src>

<mosaic_0001>
module attributes {stable_mosaic.version = 11 : i64} {
  func.func @_matmul_bias_act_kernel(%arg0: i32, %arg1: memref<512x27xbf16, #tpu.memory_space<vmem>>, %arg2: memref<27x128xbf16, #tpu.memory_space<vmem>>, %arg3: memref<1x128xf32, #tpu.memory_space<vmem>>, %arg4: memref<512x128xbf16, #tpu.memory_space<vmem>>) attributes {dimension_semantics = [#tpu.dimension_semantics<parallel>], iteration_bounds = array<i64: 4>, scalar_prefetch = 0 : i64, scratch_operands = 0 : i64, tpu.core_type = #tpu.core_type<tc>, window_params = [{transform_indices = @transform_0, window_bounds = array<i64: 512, 27>}, {pipeline_mode = #tpu.pipeline_mode<synchronous>, transform_indices = @transform_1, window_bounds = array<i64: 27, 128>}, {pipeline_mode = #tpu.pipeline_mode<synchronous>, transform_indices = @transform_2, window_bounds = array<i64: 1, 128>}, {transform_indices = @transform_3, window_bounds = array<i64: 512, 128>}]} {
    %c0 = arith.constant 0 : index
    %c0_0 = arith.constant 0 : index
    %0 = vector.load %arg1[%c0, %c0_0] : memref<512x27xbf16, #tpu.memory_space<vmem>>, vector<512x27xbf16>
    %c0_1 = arith.constant 0 : index
    %c0_2 = arith.constant 0 : index
    %1 = vector.load %arg2[%c0_1, %c0_2] : memref<27x128xbf16, #tpu.memory_space<vmem>>, vector<27x128xbf16>
    %cst = arith.constant dense<0.000000e+00> : vector<512x128xf32>
    %2 = tpu.matmul %0, %1, %cst {dimension_numbers = #tpu.dot_dimension_numbers<[1], [0], [0], [1], [0, 0, 1, 1], [], []>} : vector<512x27xbf16>, vector<27x128xbf16>, vector<512x128xf32> -> vector<512x128xf32>
    %c0_3 = arith.constant 0 : index
    %c0_4 = arith.constant 0 : index
    %3 = vector.load %arg3[%c0_3, %c0_4] : memref<1x128xf32, #tpu.memory_space<vmem>>, vector<1x128xf32>
    %4 = vector.broadcast %3 : vector<1x128xf32> to vector<512x128xf32>
    %5 = arith.addf %2, %4 : vector<512x128xf32>
    %cst_5 = arith.constant 3.000000e+00 : f32
    %6 = vector.broadcast %cst_5 : f32 to vector<512x128xf32>
    %7 = arith.addf %5, %6 : vector<512x128xf32>
    %cst_6 = arith.constant 0.000000e+00 : f32
    %cst_7 = arith.constant 6.000000e+00 : f32
    %8 = vector.broadcast %cst_6 : f32 to vector<512x128xf32>
    %9 = arith.maximumf %8, %7 : vector<512x128xf32>
    %10 = vector.broadcast %cst_7 : f32 to vector<512x128xf32>
    %11 = arith.minimumf %10, %9 : vector<512x128xf32>
    %12 = arith.mulf %5, %11 : vector<512x128xf32>
    %cst_8 = arith.constant 0.166666672 : f32
    %13 = vector.broadcast %cst_8 : f32 to vector<512x128xf32>
    %14 = arith.mulf %12, %13 : vector<512x128xf32>
    %15 = arith.truncf %14 : vector<512x128xf32> to vector<512x128xbf16>
    %c0_9 = arith.constant 0 : index
    %c0_10 = arith.constant 0 : index
    %16 = vector.load %arg4[%c0_9, %c0_10] : memref<512x128xbf16, #tpu.memory_space<vmem>>, vector<512x128xbf16>
    tpu.vector_store %arg4[%c0_9, %c0_10], %15 {strides = array<i32>} : memref<512x128xbf16, #tpu.memory_space<vmem>>, vector<512x128xbf16>,
    return
  }
  func.func @transform_0(%arg0: i32) -> (i32, i32) {
    %c0_i32 = arith.constant 0 : i32
    %c0_i32_0 = arith.constant 0 : i32
    return %arg0, %c0_i32 : i32, i32
  }
  func.func @transform_1(%arg0: i32) -> (i32, i32) {
    %c0_i32 = arith.constant 0 : i32
    %c0_i32_0 = arith.constant 0 : i32
    %c0_i32_1 = arith.constant 0 : i32
    return %c0_i32, %c0_i32_0 : i32, i32
  }
  func.func @transform_2(%arg0: i32) -> (i32, i32) {
    %c0_i32 = arith.constant 0 : i32
    %c0_i32_0 = arith.constant 0 : i32
    %c0_i32_1 = arith.constant 0 : i32
    return %c0_i32, %c0_i32_0 : i32, i32
  }
  func.func @transform_3(%arg0: i32) -> (i32, i32) {
    %c0_i32 = arith.constant 0 : i32
    %c0_i32_0 = arith.constant 0 : i32
    return %arg0, %c0_i32 : i32, i32
  }
}

module attributes {stable_mosaic.version = 11 : i64} {
  func.func @_matmul_bias_act_kernel(%arg0: i32, %arg1: memref<16x576xbf16, #tpu.memory_space<vmem>>, %arg2: memref<576x256xbf16, #tpu.memory_space<vmem>>, %arg3: memref<1x256xf32, #tpu.memory_space<vmem>>, %arg4: memref<16x256xf32, #tpu.memory_space<vmem>>) attributes {dimension_semantics = [#tpu.dimension_semantics<parallel>], iteration_bounds = array<i64: 1>, scalar_prefetch = 0 : i64, scratch_operands = 0 : i64, tpu.core_type = #tpu.core_type<tc>, window_params = [{transform_indices = @transform_0, window_bounds = array<i64: 16, 576>}, {pipeline_mode = #tpu.pipeline_mode<synchronous>, transform_indices = @transform_1, window_bounds = array<i64: 576, 256>}, {pipeline_mode = #tpu.pipeline_mode<synchronous>, transform_indices = @transform_2, window_bounds = array<i64: 1, 256>}, {transform_indices = @transform_3, window_bounds = array<i64: 16, 256>}]} {
    %c0 = arith.constant 0 : index
    %c0_0 = arith.constant 0 : index
    %0 = vector.load %arg1[%c0, %c0_0] : memref<16x576xbf16, #tpu.memory_space<vmem>>, vector<16x576xbf16>
    %c0_1 = arith.constant 0 : index
    %c0_2 = arith.constant 0 : index
    %1 = vector.load %arg2[%c0_1, %c0_2] : memref<576x256xbf16, #tpu.memory_space<vmem>>, vector<576x256xbf16>
    %cst = arith.constant dense<0.000000e+00> : vector<16x256xf32>
    %2 = tpu.matmul %0, %1, %cst {dimension_numbers = #tpu.dot_dimension_numbers<[1], [0], [0], [1], [0, 0, 1, 1], [], []>} : vector<16x576xbf16>, vector<576x256xbf16>, vector<16x256xf32> -> vector<16x256xf32>
    %c0_3 = arith.constant 0 : index
    %c0_4 = arith.constant 0 : index
    %3 = vector.load %arg3[%c0_3, %c0_4] : memref<1x256xf32, #tpu.memory_space<vmem>>, vector<1x256xf32>
    %4 = vector.broadcast %3 : vector<1x256xf32> to vector<16x256xf32>
    %5 = arith.addf %2, %4 : vector<16x256xf32>
    %c0_5 = arith.constant 0 : index
    %c0_6 = arith.constant 0 : index
    %6 = vector.load %arg4[%c0_5, %c0_6] : memref<16x256xf32, #tpu.memory_space<vmem>>, vector<16x256xf32>
    tpu.vector_store %arg4[%c0_5, %c0_6], %5 {strides = array<i32>} : memref<16x256xf32, #tpu.memory_space<vmem>>, vector<16x256xf32>,
    return
  }
  func.func @transform_0(%arg0: i32) -> (i32, i32) {
    %c0_i32 = arith.constant 0 : i32
    %c0_i32_0 = arith.constant 0 : i32
    return %arg0, %c0_i32 : i32, i32
  }
  func.func @transform_1(%arg0: i32) -> (i32, i32) {
    %c0_i32 = arith.constant 0 : i32
    %c0_i32_0 = arith.constant 0 : i32
    %c0_i32_1 = arith.constant 0 : i32
    return %c0_i32, %c0_i32_0 : i32, i32
  }
  func.func @transform_2(%arg0: i32) -> (i32, i32) {
    %c0_i32 = arith.constant 0 : i32
    %c0_i32_0 = arith.constant 0 : i32
    %c0_i32_1 = arith.constant 0 : i32
    return %c0_i32, %c0_i32_0 : i32, i32
  }
  func.func @transform_3(%arg0: i32) -> (i32, i32) {
    %c0_i32 = arith.constant 0 : i32
    %c0_i32_0 = arith.constant 0 : i32
    return %arg0, %c0_i32 : i32, i32
  }
}

module attributes {stable_mosaic.version = 11 : i64} {
  func.func @_matmul_bias_act_kernel(%arg0: i32, %arg1: memref<16x144xbf16, #tpu.memory_space<vmem>>, %arg2: memref<144x640xbf16, #tpu.memory_space<vmem>>, %arg3: memref<1x640xf32, #tpu.memory_space<vmem>>, %arg4: memref<16x640xbf16, #tpu.memory_space<vmem>>) attributes {dimension_semantics = [#tpu.dimension_semantics<parallel>], iteration_bounds = array<i64: 1>, scalar_prefetch = 0 : i64, scratch_operands = 0 : i64, tpu.core_type = #tpu.core_type<tc>, window_params = [{transform_indices = @transform_0, window_bounds = array<i64: 16, 144>}, {pipeline_mode = #tpu.pipeline_mode<synchronous>, transform_indices = @transform_1, window_bounds = array<i64: 144, 640>}, {pipeline_mode = #tpu.pipeline_mode<synchronous>, transform_indices = @transform_2, window_bounds = array<i64: 1, 640>}, {transform_indices = @transform_3, window_bounds = array<i64: 16, 640>}]} {
    %c0 = arith.constant 0 : index
    %c0_0 = arith.constant 0 : index
    %0 = vector.load %arg1[%c0, %c0_0] : memref<16x144xbf16, #tpu.memory_space<vmem>>, vector<16x144xbf16>
    %c0_1 = arith.constant 0 : index
    %c0_2 = arith.constant 0 : index
    %1 = vector.load %arg2[%c0_1, %c0_2] : memref<144x640xbf16, #tpu.memory_space<vmem>>, vector<144x640xbf16>
    %cst = arith.constant dense<0.000000e+00> : vector<16x640xf32>
    %2 = tpu.matmul %0, %1, %cst {dimension_numbers = #tpu.dot_dimension_numbers<[1], [0], [0], [1], [0, 0, 1, 1], [], []>} : vector<16x144xbf16>, vector<144x640xbf16>, vector<16x640xf32> -> vector<16x640xf32>
    %c0_3 = arith.constant 0 : index
    %c0_4 = arith.constant 0 : index
    %3 = vector.load %arg3[%c0_3, %c0_4] : memref<1x640xf32, #tpu.memory_space<vmem>>, vector<1x640xf32>
    %4 = vector.broadcast %3 : vector<1x640xf32> to vector<16x640xf32>
    %5 = arith.addf %2, %4 : vector<16x640xf32>
    %cst_5 = arith.constant 3.000000e+00 : f32
    %6 = vector.broadcast %cst_5 : f32 to vector<16x640xf32>
    %7 = arith.addf %5, %6 : vector<16x640xf32>
    %cst_6 = arith.constant 0.000000e+00 : f32
    %cst_7 = arith.constant 6.000000e+00 : f32
    %8 = vector.broadcast %cst_6 : f32 to vector<16x640xf32>
    %9 = arith.maximumf %8, %7 : vector<16x640xf32>
    %10 = vector.broadcast %cst_7 : f32 to vector<16x640xf32>
    %11 = arith.minimumf %10, %9 : vector<16x640xf32>
    %12 = arith.mulf %5, %11 : vector<16x640xf32>
    %cst_8 = arith.constant 0.166666672 : f32
    %13 = vector.broadcast %cst_8 : f32 to vector<16x640xf32>
    %14 = arith.mulf %12, %13 : vector<16x640xf32>
    %15 = arith.truncf %14 : vector<16x640xf32> to vector<16x640xbf16>
    %c0_9 = arith.constant 0 : index
    %c0_10 = arith.constant 0 : index
    %16 = vector.load %arg4[%c0_9, %c0_10] : memref<16x640xbf16, #tpu.memory_space<vmem>>, vector<16x640xbf16>
    tpu.vector_store %arg4[%c0_9, %c0_10], %15 {strides = array<i32>} : memref<16x640xbf16, #tpu.memory_space<vmem>>, vector<16x640xbf16>,
    return
  }
  func.func @transform_0(%arg0: i32) -> (i32, i32) {
    %c0_i32 = arith.constant 0 : i32
    %c0_i32_0 = arith.constant 0 : i32
    return %arg0, %c0_i32 : i32, i32
  }
  func.func @transform_1(%arg0: i32) -> (i32, i32) {
    %c0_i32 = arith.constant 0 : i32
    %c0_i32_0 = arith.constant 0 : i32
    %c0_i32_1 = arith.constant 0 : i32
    return %c0_i32, %c0_i32_0 : i32, i32
  }
  func.func @transform_2(%arg0: i32) -> (i32, i32) {
    %c0_i32 = arith.constant 0 : i32
    %c0_i32_0 = arith.constant 0 : i32
    %c0_i32_1 = arith.constant 0 : i32
    return %c0_i32, %c0_i32_0 : i32, i32
  }
  func.func @transform_3(%arg0: i32) -> (i32, i32) {
    %c0_i32 = arith.constant 0 : i32
    %c0_i32_0 = arith.constant 0 : i32
    return %arg0, %c0_i32 : i32, i32
  }
}

module attributes {stable_mosaic.version = 11 : i64} {
  func.func @_matmul_bias_act_kernel(%arg0: i32, %arg1: memref<512x16xbf16, #tpu.memory_space<vmem>>, %arg2: memref<16x128xbf16, #tpu.memory_space<vmem>>, %arg3: memref<1x128xf32, #tpu.memory_space<vmem>>, %arg4: memref<512x128xbf16, #tpu.memory_space<vmem>>) attributes {dimension_semantics = [#tpu.dimension_semantics<parallel>], iteration_bounds = array<i64: 4>, scalar_prefetch = 0 : i64, scratch_operands = 0 : i64, tpu.core_type = #tpu.core_type<tc>, window_params = [{transform_indices = @transform_0, window_bounds = array<i64: 512, 16>}, {pipeline_mode = #tpu.pipeline_mode<synchronous>, transform_indices = @transform_1, window_bounds = array<i64: 16, 128>}, {pipeline_mode = #tpu.pipeline_mode<synchronous>, transform_indices = @transform_2, window_bounds = array<i64: 1, 128>}, {transform_indices = @transform_3, window_bounds = array<i64: 512, 128>}]} {
    %c0 = arith.constant 0 : index
    %c0_0 = arith.constant 0 : index
    %0 = vector.load %arg1[%c0, %c0_0] : memref<512x16xbf16, #tpu.memory_space<vmem>>, vector<512x16xbf16>
    %c0_1 = arith.constant 0 : index
    %c0_2 = arith.constant 0 : index
    %1 = vector.load %arg2[%c0_1, %c0_2] : memref<16x128xbf16, #tpu.memory_space<vmem>>, vector<16x128xbf16>
    %cst = arith.constant dense<0.000000e+00> : vector<512x128xf32>
    %2 = tpu.matmul %0, %1, %cst {dimension_numbers = #tpu.dot_dimension_numbers<[1], [0], [0], [1], [0, 0, 1, 1], [], []>} : vector<512x16xbf16>, vector<16x128xbf16>, vector<512x128xf32> -> vector<512x128xf32>
    %c0_3 = arith.constant 0 : index
    %c0_4 = arith.constant 0 : index
    %3 = vector.load %arg3[%c0_3, %c0_4] : memref<1x128xf32, #tpu.memory_space<vmem>>, vector<1x128xf32>
    %4 = vector.broadcast %3 : vector<1x128xf32> to vector<512x128xf32>
    %5 = arith.addf %2, %4 : vector<512x128xf32>
    %cst_5 = arith.constant 0.000000e+00 : f32
    %6 = vector.broadcast %cst_5 : f32 to vector<512x128xf32>
    %7 = arith.maximumf %5, %6 : vector<512x128xf32>
    %8 = arith.truncf %7 : vector<512x128xf32> to vector<512x128xbf16>
    %c0_6 = arith.constant 0 : index
    %c0_7 = arith.constant 0 : index
    %9 = vector.load %arg4[%c0_6, %c0_7] : memref<512x128xbf16, #tpu.memory_space<vmem>>, vector<512x128xbf16>
    tpu.vector_store %arg4[%c0_6, %c0_7], %8 {strides = array<i32>} : memref<512x128xbf16, #tpu.memory_space<vmem>>, vector<512x128xbf16>,
    return
  }
  func.func @transform_0(%arg0: i32) -> (i32, i32) {
    %c0_i32 = arith.constant 0 : i32
    %c0_i32_0 = arith.constant 0 : i32
    return %arg0, %c0_i32 : i32, i32
  }
  func.func @transform_1(%arg0: i32) -> (i32, i32) {
    %c0_i32 = arith.constant 0 : i32
    %c0_i32_0 = arith.constant 0 : i32
    %c0_i32_1 = arith.constant 0 : i32
    return %c0_i32, %c0_i32_0 : i32, i32
  }
  func.func @transform_2(%arg0: i32) -> (i32, i32) {
    %c0_i32 = arith.constant 0 : i32
    %c0_i32_0 = arith.constant 0 : i32
    %c0_i32_1 = arith.constant 0 : i32
    return %c0_i32, %c0_i32_0 : i32, i32
  }
  func.func @transform_3(%arg0: i32) -> (i32, i32) {
    %c0_i32 = arith.constant 0 : i32
    %c0_i32_0 = arith.constant 0 : i32
    return %arg0, %c0_i32 : i32, i32
  }
}

module attributes {stable_mosaic.version = 11 : i64} {
  func.func @_conv3x3_row_kernel(%arg0: i32, %arg1: i32, %arg2: memref<1x1088x528xbf16, #tpu.memory_space<vmem>>, %arg3: memref<3x528x128xbf16, #tpu.memory_space<vmem>>, %arg4: memref<1x128xf32, #tpu.memory_space<vmem>>, %arg5: memref<1x256x128xbf16, #tpu.memory_space<vmem>>) attributes {dimension_semantics = [#tpu.dimension_semantics<parallel>, #tpu.dimension_semantics<parallel>], iteration_bounds = array<i64: 2, 4>, scalar_prefetch = 0 : i64, scratch_operands = 0 : i64, tpu.core_type = #tpu.core_type<tc>, window_params = [{transform_indices = @transform_0, window_bounds = array<i64: 1, 1088, 528>}, {pipeline_mode = #tpu.pipeline_mode<synchronous>, transform_indices = @transform_1, window_bounds = array<i64: 3, 528, 128>}, {pipeline_mode = #tpu.pipeline_mode<synchronous>, transform_indices = @transform_2, window_bounds = array<i64: 1, 128>}, {transform_indices = @transform_3, window_bounds = array<i64: 1, 256, 128>}]} {
    %cst = arith.constant 0.000000e+00 : f32
    %0 = vector.broadcast %cst : f32 to vector<256x128xf32>
    %c8_i32 = arith.constant 8 : i32
    %1 = arith.muli %arg1, %c8_i32 : i32
    %c0_i32 = arith.constant 0 : i32
    %2 = arith.addi %1, %c0_i32 : i32
    %c32_i32 = arith.constant 32 : i32
    %3 = arith.muli %2, %c32_i32 : i32
    %4 = tpu.assume_multiple %3, 32 : i32
    %c0 = arith.constant 0 : index
    %5 = arith.index_cast %4 : i32 to index
    %c0_0 = arith.constant 0 : index
    %6 = vector.load %arg2[%c0, %5, %c0_0] : memref<1x1088x528xbf16, #tpu.memory_space<vmem>>, vector<1x256x528xbf16>
    %7 = vector.shape_cast %6 : vector<1x256x528xbf16> to vector<256x528xbf16>
    %c0_1 = arith.constant 0 : index
    %c0_2 = arith.constant 0 : index
    %c0_3 = arith.constant 0 : index
    %8 = vector.load %arg3[%c0_1, %c0_2, %c0_3] : memref<3x528x128xbf16, #tpu.memory_space<vmem>>, vector<1x528x128xbf16>
    %9 = vector.shape_cast %8 : vector<1x528x128xbf16> to vector<528x128xbf16>
    %cst_4 = arith.constant dense<0.000000e+00> : vector<256x128xf32>
    %10 = tpu.matmul %7, %9, %cst_4 {dimension_numbers = #tpu.dot_dimension_numbers<[1], [0], [0], [1], [0, 0, 1, 1], [], []>} : vector<256x528xbf16>, vector<528x128xbf16>, vector<256x128xf32> -> vector<256x128xf32>
    %11 = arith.addf %0, %10 : vector<256x128xf32>
    %c8_i32_5 = arith.constant 8 : i32
    %12 = arith.muli %arg1, %c8_i32_5 : i32
    %c1_i32 = arith.constant 1 : i32
    %13 = arith.addi %12, %c1_i32 : i32
    %c32_i32_6 = arith.constant 32 : i32
    %14 = arith.muli %13, %c32_i32_6 : i32
    %15 = tpu.assume_multiple %14, 32 : i32
    %c0_7 = arith.constant 0 : index
    %16 = arith.index_cast %15 : i32 to index
    %c0_8 = arith.constant 0 : index
    %17 = vector.load %arg2[%c0_7, %16, %c0_8] : memref<1x1088x528xbf16, #tpu.memory_space<vmem>>, vector<1x256x528xbf16>
    %18 = vector.shape_cast %17 : vector<1x256x528xbf16> to vector<256x528xbf16>
    %c1 = arith.constant 1 : index
    %c0_9 = arith.constant 0 : index
    %c0_10 = arith.constant 0 : index
    %19 = vector.load %arg3[%c1, %c0_9, %c0_10] : memref<3x528x128xbf16, #tpu.memory_space<vmem>>, vector<1x528x128xbf16>
    %20 = vector.shape_cast %19 : vector<1x528x128xbf16> to vector<528x128xbf16>
    %cst_11 = arith.constant dense<0.000000e+00> : vector<256x128xf32>
    %21 = tpu.matmul %18, %20, %cst_11 {dimension_numbers = #tpu.dot_dimension_numbers<[1], [0], [0], [1], [0, 0, 1, 1], [], []>} : vector<256x528xbf16>, vector<528x128xbf16>, vector<256x128xf32> -> vector<256x128xf32>
    %22 = arith.addf %11, %21 : vector<256x128xf32>
    %c8_i32_12 = arith.constant 8 : i32
    %23 = arith.muli %arg1, %c8_i32_12 : i32
    %c2_i32 = arith.constant 2 : i32
    %24 = arith.addi %23, %c2_i32 : i32
    %c32_i32_13 = arith.constant 32 : i32
    %25 = arith.muli %24, %c32_i32_13 : i32
    %26 = tpu.assume_multiple %25, 32 : i32
    %c0_14 = arith.constant 0 : index
    %27 = arith.index_cast %26 : i32 to index
    %c0_15 = arith.constant 0 : index
    %28 = vector.load %arg2[%c0_14, %27, %c0_15] : memref<1x1088x528xbf16, #tpu.memory_space<vmem>>, vector<1x256x528xbf16>
    %29 = vector.shape_cast %28 : vector<1x256x528xbf16> to vector<256x528xbf16>
    %c2 = arith.constant 2 : index
    %c0_16 = arith.constant 0 : index
    %c0_17 = arith.constant 0 : index
    %30 = vector.load %arg3[%c2, %c0_16, %c0_17] : memref<3x528x128xbf16, #tpu.memory_space<vmem>>, vector<1x528x128xbf16>
    %31 = vector.shape_cast %30 : vector<1x528x128xbf16> to vector<528x128xbf16>
    %cst_18 = arith.constant dense<0.000000e+00> : vector<256x128xf32>
    %32 = tpu.matmul %29, %31, %cst_18 {dimension_numbers = #tpu.dot_dimension_numbers<[1], [0], [0], [1], [0, 0, 1, 1], [], []>} : vector<256x528xbf16>, vector<528x128xbf16>, vector<256x128xf32> -> vector<256x128xf32>
    %33 = arith.addf %22, %32 : vector<256x128xf32>
    %c0_19 = arith.constant 0 : index
    %c0_20 = arith.constant 0 : index
    %34 = vector.load %arg4[%c0_19, %c0_20] : memref<1x128xf32, #tpu.memory_space<vmem>>, vector<1x128xf32>
    %35 = vector.broadcast %34 : vector<1x128xf32> to vector<256x128xf32>
    %36 = arith.addf %33, %35 : vector<256x128xf32>
    %cst_21 = arith.constant 0.000000e+00 : f32
    %37 = vector.broadcast %cst_21 : f32 to vector<256x128xf32>
    %38 = arith.maximumf %36, %37 : vector<256x128xf32>
    %39 = arith.truncf %38 : vector<256x128xf32> to vector<256x128xbf16>
    %c0_22 = arith.constant 0 : index
    %c0_23 = arith.constant 0 : index
    %c0_24 = arith.constant 0 : index
    %40 = vector.load %arg5[%c0_22, %c0_23, %c0_24] : memref<1x256x128xbf16, #tpu.memory_space<vmem>>, vector<1x256x128xbf16>
    %41 = vector.shape_cast %40 : vector<1x256x128xbf16> to vector<256x128xbf16>
    %42 = vector.shape_cast %39 : vector<256x128xbf16> to vector<1x256x128xbf16>
    tpu.vector_store %arg5[%c0_22, %c0_23, %c0_24], %42 {strides = array<i32>} : memref<1x256x128xbf16, #tpu.memory_space<vmem>>, vector<1x256x128xbf16>,
    return
  }
  func.func @transform_0(%arg0: i32, %arg1: i32) -> (i32, i32, i32) {
    %c0_i32 = arith.constant 0 : i32
    %c0_i32_0 = arith.constant 0 : i32
    %c0_i32_1 = arith.constant 0 : i32
    return %arg0, %c0_i32, %c0_i32_0 : i32, i32, i32
  }
  func.func @transform_1(%arg0: i32, %arg1: i32) -> (i32, i32, i32) {
    %c0_i32 = arith.constant 0 : i32
    %c0_i32_0 = arith.constant 0 : i32
    %c0_i32_1 = arith.constant 0 : i32
    %c0_i32_2 = arith.constant 0 : i32
    return %c0_i32, %c0_i32_0, %c0_i32_1 : i32, i32, i32
  }
  func.func @transform_2(%arg0: i32, %arg1: i32) -> (i32, i32) {
    %c0_i32 = arith.constant 0 : i32
    %c0_i32_0 = arith.constant 0 : i32
    %c0_i32_1 = arith.constant 0 : i32
    return %c0_i32, %c0_i32_0 : i32, i32
  }
  func.func @transform_3(%arg0: i32, %arg1: i32) -> (i32, i32, i32) {
    %c0_i32 = arith.constant 0 : i32
    %c0_i32_0 = arith.constant 0 : i32
    return %arg0, %arg1, %c0_i32 : i32, i32, i32
  }
}

module attributes {stable_mosaic.version = 11 : i64} {
  func.func @_conv3x3_row_head_kernel(%arg0: i32, %arg1: i32, %arg2: memref<1x1088x384xbf16, #tpu.memory_space<vmem>>, %arg3: memref<3x384x128xbf16, #tpu.memory_space<vmem>>, %arg4: memref<1x128xf32, #tpu.memory_space<vmem>>, %arg5: memref<128x128xbf16, #tpu.memory_space<vmem>>, %arg6: memref<1x128xf32, #tpu.memory_space<vmem>>, %arg7: memref<1x256x128xf32, #tpu.memory_space<vmem>>) attributes {dimension_semantics = [#tpu.dimension_semantics<parallel>, #tpu.dimension_semantics<parallel>], iteration_bounds = array<i64: 2, 4>, scalar_prefetch = 0 : i64, scratch_operands = 0 : i64, tpu.core_type = #tpu.core_type<tc>, window_params = [{transform_indices = @transform_0, window_bounds = array<i64: 1, 1088, 384>}, {pipeline_mode = #tpu.pipeline_mode<synchronous>, transform_indices = @transform_1, window_bounds = array<i64: 3, 384, 128>}, {pipeline_mode = #tpu.pipeline_mode<synchronous>, transform_indices = @transform_2, window_bounds = array<i64: 1, 128>}, {pipeline_mode = #tpu.pipeline_mode<synchronous>, transform_indices = @transform_3, window_bounds = array<i64: 128, 128>}, {pipeline_mode = #tpu.pipeline_mode<synchronous>, transform_indices = @transform_4, window_bounds = array<i64: 1, 128>}, {transform_indices = @transform_5, window_bounds = array<i64: 1, 256, 128>}]} {
    %cst = arith.constant 0.000000e+00 : f32
    %0 = vector.broadcast %cst : f32 to vector<256x128xf32>
    %c8_i32 = arith.constant 8 : i32
    %1 = arith.muli %arg1, %c8_i32 : i32
    %c0_i32 = arith.constant 0 : i32
    %2 = arith.addi %1, %c0_i32 : i32
    %c32_i32 = arith.constant 32 : i32
    %3 = arith.muli %2, %c32_i32 : i32
    %4 = tpu.assume_multiple %3, 32 : i32
    %c0 = arith.constant 0 : index
    %5 = arith.index_cast %4 : i32 to index
    %c0_0 = arith.constant 0 : index
    %6 = vector.load %arg2[%c0, %5, %c0_0] : memref<1x1088x384xbf16, #tpu.memory_space<vmem>>, vector<1x256x384xbf16>
    %7 = vector.shape_cast %6 : vector<1x256x384xbf16> to vector<256x384xbf16>
    %c0_1 = arith.constant 0 : index
    %c0_2 = arith.constant 0 : index
    %c0_3 = arith.constant 0 : index
    %8 = vector.load %arg3[%c0_1, %c0_2, %c0_3] : memref<3x384x128xbf16, #tpu.memory_space<vmem>>, vector<1x384x128xbf16>
    %9 = vector.shape_cast %8 : vector<1x384x128xbf16> to vector<384x128xbf16>
    %cst_4 = arith.constant dense<0.000000e+00> : vector<256x128xf32>
    %10 = tpu.matmul %7, %9, %cst_4 {dimension_numbers = #tpu.dot_dimension_numbers<[1], [0], [0], [1], [0, 0, 1, 1], [], []>} : vector<256x384xbf16>, vector<384x128xbf16>, vector<256x128xf32> -> vector<256x128xf32>
    %11 = arith.addf %0, %10 : vector<256x128xf32>
    %c8_i32_5 = arith.constant 8 : i32
    %12 = arith.muli %arg1, %c8_i32_5 : i32
    %c1_i32 = arith.constant 1 : i32
    %13 = arith.addi %12, %c1_i32 : i32
    %c32_i32_6 = arith.constant 32 : i32
    %14 = arith.muli %13, %c32_i32_6 : i32
    %15 = tpu.assume_multiple %14, 32 : i32
    %c0_7 = arith.constant 0 : index
    %16 = arith.index_cast %15 : i32 to index
    %c0_8 = arith.constant 0 : index
    %17 = vector.load %arg2[%c0_7, %16, %c0_8] : memref<1x1088x384xbf16, #tpu.memory_space<vmem>>, vector<1x256x384xbf16>
    %18 = vector.shape_cast %17 : vector<1x256x384xbf16> to vector<256x384xbf16>
    %c1 = arith.constant 1 : index
    %c0_9 = arith.constant 0 : index
    %c0_10 = arith.constant 0 : index
    %19 = vector.load %arg3[%c1, %c0_9, %c0_10] : memref<3x384x128xbf16, #tpu.memory_space<vmem>>, vector<1x384x128xbf16>
    %20 = vector.shape_cast %19 : vector<1x384x128xbf16> to vector<384x128xbf16>
    %cst_11 = arith.constant dense<0.000000e+00> : vector<256x128xf32>
    %21 = tpu.matmul %18, %20, %cst_11 {dimension_numbers = #tpu.dot_dimension_numbers<[1], [0], [0], [1], [0, 0, 1, 1], [], []>} : vector<256x384xbf16>, vector<384x128xbf16>, vector<256x128xf32> -> vector<256x128xf32>
    %22 = arith.addf %11, %21 : vector<256x128xf32>
    %c8_i32_12 = arith.constant 8 : i32
    %23 = arith.muli %arg1, %c8_i32_12 : i32
    %c2_i32 = arith.constant 2 : i32
    %24 = arith.addi %23, %c2_i32 : i32
    %c32_i32_13 = arith.constant 32 : i32
    %25 = arith.muli %24, %c32_i32_13 : i32
    %26 = tpu.assume_multiple %25, 32 : i32
    %c0_14 = arith.constant 0 : index
    %27 = arith.index_cast %26 : i32 to index
    %c0_15 = arith.constant 0 : index
    %28 = vector.load %arg2[%c0_14, %27, %c0_15] : memref<1x1088x384xbf16, #tpu.memory_space<vmem>>, vector<1x256x384xbf16>
    %29 = vector.shape_cast %28 : vector<1x256x384xbf16> to vector<256x384xbf16>
    %c2 = arith.constant 2 : index
    %c0_16 = arith.constant 0 : index
    %c0_17 = arith.constant 0 : index
    %30 = vector.load %arg3[%c2, %c0_16, %c0_17] : memref<3x384x128xbf16, #tpu.memory_space<vmem>>, vector<1x384x128xbf16>
    %31 = vector.shape_cast %30 : vector<1x384x128xbf16> to vector<384x128xbf16>
    %cst_18 = arith.constant dense<0.000000e+00> : vector<256x128xf32>
    %32 = tpu.matmul %29, %31, %cst_18 {dimension_numbers = #tpu.dot_dimension_numbers<[1], [0], [0], [1], [0, 0, 1, 1], [], []>} : vector<256x384xbf16>, vector<384x128xbf16>, vector<256x128xf32> -> vector<256x128xf32>
    %33 = arith.addf %22, %32 : vector<256x128xf32>
    %c0_19 = arith.constant 0 : index
    %c0_20 = arith.constant 0 : index
    %34 = vector.load %arg4[%c0_19, %c0_20] : memref<1x128xf32, #tpu.memory_space<vmem>>, vector<1x128xf32>
    %35 = vector.broadcast %34 : vector<1x128xf32> to vector<256x128xf32>
    %36 = arith.addf %33, %35 : vector<256x128xf32>
    %cst_21 = arith.constant 0.000000e+00 : f32
    %37 = vector.broadcast %cst_21 : f32 to vector<256x128xf32>
    %38 = arith.maximumf %36, %37 : vector<256x128xf32>
    %39 = arith.truncf %38 : vector<256x128xf32> to vector<256x128xbf16>
    %c0_22 = arith.constant 0 : index
    %c0_23 = arith.constant 0 : index
    %40 = vector.load %arg5[%c0_22, %c0_23] : memref<128x128xbf16, #tpu.memory_space<vmem>>, vector<128x128xbf16>
    %cst_24 = arith.constant dense<0.000000e+00> : vector<256x128xf32>
    %41 = tpu.matmul %39, %40, %cst_24 {dimension_numbers = #tpu.dot_dimension_numbers<[1], [0], [0], [1], [0, 0, 1, 1], [], []>} : vector<256x128xbf16>, vector<128x128xbf16>, vector<256x128xf32> -> vector<256x128xf32>
    %c0_25 = arith.constant 0 : index
    %c0_26 = arith.constant 0 : index
    %42 = vector.load %arg6[%c0_25, %c0_26] : memref<1x128xf32, #tpu.memory_space<vmem>>, vector<1x128xf32>
    %43 = vector.broadcast %42 : vector<1x128xf32> to vector<256x128xf32>
    %44 = arith.addf %41, %43 : vector<256x128xf32>
    %c0_27 = arith.constant 0 : index
    %c0_28 = arith.constant 0 : index
    %c0_29 = arith.constant 0 : index
    %45 = vector.load %arg7[%c0_27, %c0_28, %c0_29] : memref<1x256x128xf32, #tpu.memory_space<vmem>>, vector<1x256x128xf32>
    %46 = vector.shape_cast %45 : vector<1x256x128xf32> to vector<256x128xf32>
    %47 = vector.shape_cast %44 : vector<256x128xf32> to vector<1x256x128xf32>
    tpu.vector_store %arg7[%c0_27, %c0_28, %c0_29], %47 {strides = array<i32>} : memref<1x256x128xf32, #tpu.memory_space<vmem>>, vector<1x256x128xf32>,
    return
  }
  func.func @transform_0(%arg0: i32, %arg1: i32) -> (i32, i32, i32) {
    %c0_i32 = arith.constant 0 : i32
    %c0_i32_0 = arith.constant 0 : i32
    %c0_i32_1 = arith.constant 0 : i32
    return %arg0, %c0_i32, %c0_i32_0 : i32, i32, i32
  }
  func.func @transform_1(%arg0: i32, %arg1: i32) -> (i32, i32, i32) {
    %c0_i32 = arith.constant 0 : i32
    %c0_i32_0 = arith.constant 0 : i32
    %c0_i32_1 = arith.constant 0 : i32
    %c0_i32_2 = arith.constant 0 : i32
    return %c0_i32, %c0_i32_0, %c0_i32_1 : i32, i32, i32
  }
  func.func @transform_2(%arg0: i32, %arg1: i32) -> (i32, i32) {
    %c0_i32 = arith.constant 0 : i32
    %c0_i32_0 = arith.constant 0 : i32
    %c0_i32_1 = arith.constant 0 : i32
    return %c0_i32, %c0_i32_0 : i32, i32
  }
  func.func @transform_3(%arg0: i32, %arg1: i32) -> (i32, i32) {
    %c0_i32 = arith.constant 0 : i32
    %c0_i32_0 = arith.constant 0 : i32
    %c0_i32_1 = arith.constant 0 : i32
    return %c0_i32, %c0_i32_0 : i32, i32
  }
  func.func @transform_4(%arg0: i32, %arg1: i32) -> (i32, i32) {
    %c0_i32 = arith.constant 0 : i32
    %c0_i32_0 = arith.constant 0 : i32
    %c0_i32_1 = arith.constant 0 : i32
    return %c0_i32, %c0_i32_0 : i32, i32
  }
  func.func @transform_5(%arg0: i32, %arg1: i32) -> (i32, i32, i32) {
    %c0_i32 = arith.constant 0 : i32
    %c0_i32_0 = arith.constant 0 : i32
    return %arg0, %arg1, %c0_i32 : i32, i32, i32
  }
}

</mosaic_0001>

<bundles_post_ra>
// kernel: _lambda_.6
= control target key start
LH: loop header
LB: loop body
LE: loop exit
PB: predicated region body
PF: predicated region fallthrough
CT: control target
= control target key end

     0   :  { %s2085_s12 = smov 0   ;;  %s2436_s0 = inlined_call_operand.vmem [shape: bf16[2048,27], index: 0, kind: input, shape index: {}]   ;;  %s2437_s1 = inlined_call_operand.vmem [shape: bf16[27,128], index: 1, kind: input, shape index: {}]   ;;  %s2438_s2 = inlined_call_operand.vmem [shape: f32[1,128], index: 2, kind: input, shape index: {}]   ;;  %s2439_s3 = inlined_call_operand.vmem [shape: bf16[2048,128], index: 3, kind: output, shape index: {}]  }
   0x1 LB: > { %s1510_s13 = sadd.s32 4294967295, %s2062_s12   ;;  %p1514_p0 = scmp.ge.s32.totalorder %s2062_s12, 1  ;;  %s2062_s12 = sphi %s2085_s12, %s13_s12  }
   0x2   : > { %p138_p1 = scmp.lt.s32.totalorder %s2062_s12, 5 }
   0x4   : > { %p139_p2 = pnand %p1514_p0, %p138_p1 }
   0x5   : > { %v2022_v0 = vld [vmem:[%s2437_s1] sm:$0xff] (!%p139_p2)   ;;  %vm518_vm0 = vcmask (!%p139_p2), 1044480   ;;  %v2023_v1 = vld [vmem:[%s2437_s1 + $0x8] sm:$0x3f] (!%p139_p2)   ;;  %vm519_vm1 = vcmask (!%p139_p2), 1045504   ;;  %s1515_s18 = sshll.u32 (!%p139_p2), %s1510_s13, 6 }
   0x6   : > { %142 = sbr.rel (%p139_p2) target bundleno = 341 (0x155), region = 32  ;;  %1941 = vmatprep.subr.bf16.mxu0 (!%p139_p2), %v2022_v0  ;;  %2009 = vmatprep.subr.bf16.mxu1 (!%p139_p2), %v2022_v0  ;;  %v2064_v2 = vmov (!%p139_p2), 65535   ;;  %p163_p3 = scmp.lt.s32.totalorder (!%p139_p2), %s1515_s18, 255  ;;  %vm421_vm2 = vcmask (!%p139_p2), 220160   ;;  %v2176_v38 = vld [vmem:[%s2438_s2] ss:$0 sm:$0xff] (!%p139_p2) }
   0x7   : > { %1942 = vmatpush3.bf16.msra.mxu0 (!%p139_p2), %v2022_v0  ;;  %2011 = vmatpush3.bf16.msra.mxu1 (!%p139_p2), %v2022_v0  ;;  %v520_v3 = vsel (!%p139_p2), %vm518_vm0, 4294967295, %v2064_v2 }
   0x8   : > { %v521_v4 = vsel (!%p139_p2), %vm519_vm1, %v520_v3, 0 }
   0x9   : > { %v523_v5 = vand.u32 (!%p139_p2), %v2023_v1, %v521_v4 }
   0xb   : > { %1943 = vmatprep.subr.bf16.mxu0 (!%p139_p2), %v523_v5  ;;  %2010 = vmatprep.subr.bf16.mxu1 (!%p139_p2), %v523_v5 }
   0xc   : > { %1944 = vmatpush3.bf16.msra.mxu0 (!%p139_p2), %v523_v5  ;;  %2012 = vmatpush3.bf16.msra.mxu1 (!%p139_p2), %v523_v5 }
   0xd   : > { %s2441_s18 = smov (!%p163_p3, %s1515_s18), 255 }
   0xe   : > { %s1516_s19 = sshll.u32 %s2441_s18, 2 }
   0xf   : > { %s2107_s22 = scalar_lea.vmem %s2436_s0, %s1516_s19  ;;  %s2192_s27 = scalar_lea.vmem %s2439_s3, %s1516_s19 }
  0x10   : > { %v2024_v6 = vld [vmem:[%s2107_s22] sm:$0xff]   ;;  %v2026_v8 = vld [vmem:[%s2107_s22 + $0x8] sm:$0xff]   ;;  %v2028_v10 = vld [vmem:[%s2107_s22 + $0x10] sm:$0xff]  }
  0x11   : > { %v2025_v7 = vld [vmem:[%s2107_s22 + $0x80] sm:$0xff]   ;;  %1945 = vmatprep.mubr.msk.bf16.mxu0 %vm421_vm2, %v2024_v6  ;;  %v2027_v9 = vld [vmem:[%s2107_s22 + $0x88] sm:$0xff]   ;;  %v2029_v11 = vld [vmem:[%s2107_s22 + $0x90] sm:$0xff]  }
  0x12   : > { %1977 = vmatprep.mubr.msk.bf16.mxu1 %vm421_vm2, %v2025_v7  ;;  %1946 = vmatmul.mubr.msk.bf16.vlgmr.msra.gmra.mrb[0].mxu0 %vm421_vm2, %v2026_v8  ;;  %v2030_v12 = vld [vmem:[%s2107_s22 + $0x18] sm:$0xff]   ;;  %v2032_v14 = vld [vmem:[%s2107_s22 + $0x20] sm:$0xff]   ;;  %v2034_v16 = vld [vmem:[%s2107_s22 + $0x28] sm:$0xff]  }
  0x13   : > { %1978 = vmatmul.mubr.msk.bf16.vlgmr.msra.gmra.mrb[0].mxu1 %vm421_vm2, %v2027_v9  ;;  %1949 = vmatprep.mubr.msk.bf16.mxu0 %vm421_vm2, %v2028_v10  ;;  %v2031_v13 = vld [vmem:[%s2107_s22 + $0x98] sm:$0xff]   ;;  %v2033_v15 = vld [vmem:[%s2107_s22 + $0xa0] sm:$0xff]   ;;  %v2035_v17 = vld [vmem:[%s2107_s22 + $0xa8] sm:$0xff]  }
  0x14   : > { %1981 = vmatprep.mubr.msk.bf16.mxu1 %vm421_vm2, %v2029_v11  ;;  %v2036_v18 = vld [vmem:[%s2107_s22 + $0x30] sm:$0xff]   ;;  %v2038_v20 = vld [vmem:[%s2107_s22 + $0x38] sm:$0xff]   ;;  %v2040_v22 = vld [vmem:[%s2107_s22 + $0x40] sm:$0xff]  }
  0x15   : > { %v2037_v19 = vld [vmem:[%s2107_s22 + $0xb0] sm:$0xff]   ;;  %v2039_v21 = vld [vmem:[%s2107_s22 + $0xb8] sm:$0xff]   ;;  %v2041_v23 = vld [vmem:[%s2107_s22 + $0xc0] sm:$0xff]  }
  0x16   : > { %v2042_v24 = vld [vmem:[%s2107_s22 + $0x48] sm:$0xff]   ;;  %v2044_v26 = vld [vmem:[%s2107_s22 + $0x50] sm:$0xff]   ;;  %v2046_v28 = vld [vmem:[%s2107_s22 + $0x58] sm:$0xff]  }
  0x17   : > { %v2043_v25 = vld [vmem:[%s2107_s22 + $0xc8] sm:$0xff]   ;;  %v2045_v27 = vld [vmem:[%s2107_s22 + $0xd0] sm:$0xff]   ;;  %v2047_v29 = vld [vmem:[%s2107_s22 + $0xd8] sm:$0xff]  }
  0x18   : > { %v2048_v30 = vld [vmem:[%s2107_s22 + $0x60] sm:$0xff]   ;;  %v2050_v32 = vld [vmem:[%s2107_s22 + $0x68] sm:$0xff]   ;;  %v2052_v34 = vld [vmem:[%s2107_s22 + $0x70] sm:$0xff]  }
  0x19   : > { %v2049_v31 = vld [vmem:[%s2107_s22 + $0xe0] sm:$0xff]   ;;  %v2051_v33 = vld [vmem:[%s2107_s22 + $0xe8] sm:$0xff]   ;;  %v2053_v35 = vld [vmem:[%s2107_s22 + $0xf0] sm:$0xff]  }
  0x1a   : > { %1950 = vmatmul.mubr.msk.bf16.gmra.mrb[4].mxu0 %vm421_vm2, %v2030_v12  ;;  %v2054_v36 = vld [vmem:[%s2107_s22 + $0x78] sm:$0xff]  }
  0x1b   : > { %1982 = vmatmul.mubr.msk.bf16.gmra.mrb[4].mxu1 %vm421_vm2, %v2031_v13  ;;  %1953 = vmatprep.mubr.msk.bf16.mxu0 %vm421_vm2, %v2032_v14  ;;  %v2055_v37 = vld [vmem:[%s2107_s22 + $0xf8] sm:$0xff]  }
  0x1c   : > { %1985 = vmatprep.mubr.msk.bf16.mxu1 %vm421_vm2, %v2033_v15 }
  0x22   : > { %1954 = vmatmul.mubr.msk.bf16.gmra.mrb[8].mxu0 %vm421_vm2, %v2034_v16 }
  0x23   : > { %1986 = vmatmul.mubr.msk.bf16.gmra.mrb[8].mxu1 %vm421_vm2, %v2035_v17  ;;  %1957 = vmatprep.mubr.msk.bf16.mxu0 %vm421_vm2, %v2036_v18 }
  0x24   : > { %1989 = vmatprep.mubr.msk.bf16.mxu1 %vm421_vm2, %v2037_v19 }
  0x2a   : > { %1958 = vmatmul.mubr.msk.bf16.gmra.mrb[12].mxu0 %vm421_vm2, %v2038_v20 }
  0x2b   : > { %1990 = vmatmul.mubr.msk.bf16.gmra.mrb[12].mxu1 %vm421_vm2, %v2039_v21  ;;  %1961 = vmatprep.mubr.msk.bf16.mxu0 %vm421_vm2, %v2040_v22 }
  0x2c   : > { %1993 = vmatprep.mubr.msk.bf16.mxu1 %vm421_vm2, %v2041_v23 }
  0x32   : > { %1962 = vmatmul.mubr.msk.bf16.gmra.mrb[16].mxu0 %vm421_vm2, %v2042_v24 }
  0x33   : > { %1994 = vmatmul.mubr.msk.bf16.gmra.mrb[16].mxu1 %vm421_vm2, %v2043_v25  ;;  %1965 = vmatprep.mubr.msk.bf16.mxu0 %vm421_vm2, %v2044_v26 }
  0x34   : > { %1997 = vmatprep.mubr.msk.bf16.mxu1 %vm421_vm2, %v2045_v27 }
  0x3a   : > { %1966 = vmatmul.mubr.msk.bf16.gmra.mrb[20].mxu0 %vm421_vm2, %v2046_v28 }
  0x3b   : > { %1998 = vmatmul.mubr.msk.bf16.gmra.mrb[20].mxu1 %vm421_vm2, %v2047_v29  ;;  %1969 = vmatprep.mubr.msk.bf16.mxu0 %vm421_vm2, %v2048_v30 }
  0x3c   : > { %2001 = vmatprep.mubr.msk.bf16.mxu1 %vm421_vm2, %v2049_v31 }
  0x42   : > { %1970 = vmatmul.mubr.msk.bf16.gmra.mrb[24].mxu0 %vm421_vm2, %v2050_v32 }
  0x43   : > { %2002 = vmatmul.mubr.msk.bf16.gmra.mrb[24].mxu1 %vm421_vm2, %v2051_v33  ;;  %1973 = vmatprep.mubr.msk.bf16.mxu0 %vm421_vm2, %v2052_v34 }
  0x44   : > { %2005 = vmatprep.mubr.msk.bf16.mxu1 %vm421_vm2, %v2053_v35 }
  0x4a   : > { %1974 = vmatmul.mubr.msk.bf16.gmra.mrb[28].mxu0 %vm421_vm2, %v2054_v36 }
  0x4b   : > { %2006 = vmatmul.mubr.msk.bf16.gmra.mrb[28].mxu1 %vm421_vm2, %v2055_v37 }
  0xe5   : > { %v1947_v39 = vpop.f32.mrb[0].mxu0 }
  0xe6   : > { %v568_v40 = vadd.f32 %v1947_v39, %v2176_v38  ;;  %v1979_v41 = vpop.f32.mrb[0].mxu1  ;;  %v559_v42 = vpop.f32.mrb[1].mxu0 }
  0xe7   : > { %v696_v43 = vadd.f32 %v1979_v41, %v2176_v38  ;;  %v560_v44 = vadd.f32 %v2176_v38, %v559_v42  ;;  %v687_v45 = vpop.f32.mrb[1].mxu1  ;;  %v1948_v46 = vpop.f32.mrb[2].mxu0 }
  0xe8   : > { %v816_v47 = vadd.f32 3.0, %v568_v40  ;;  %v688_v48 = vadd.f32 %v2176_v38, %v687_v45  ;;  %v571_v49 = vadd.f32 %v1948_v46, %v2176_v38  ;;  %v1980_v50 = vpop.f32.mrb[2].mxu1  ;;  %v562_v51 = vpop.f32.mrb[3].mxu0 }
  0xe9   : > { %v848_v52 = vadd.f32 3.0, %v696_v43  ;;  %v814_v53 = vadd.f32 3.0, %v560_v44  ;;  %v699_v54 = vadd.f32 %v1980_v50, %v2176_v38  ;;  %v563_v55 = vadd.f32 %v2176_v38, %v562_v51  ;;  %v690_v56 = vpop.f32.mrb[3].mxu1 }
  0xea   : > { %v880_v57 = vmax.f32 %v816_v47, 0.0  ;;  %v846_v58 = vadd.f32 3.0, %v688_v48  ;;  %v817_v59 = vadd.f32 3.0, %v571_v49  ;;  %v691_v60 = vadd.f32 %v2176_v38, %v690_v56 }
  0xeb   : > { %v912_v61 = vmax.f32 %v848_v52, 0.0  ;;  %v878_v62 = vmax.f32 %v814_v53, 0.0  ;;  %v849_v63 = vadd.f32 3.0, %v699_v54  ;;  %v815_v0 = vadd.f32 3.0, %v563_v55 }
  0xec   : > { %v944_v1 = vmin.f32 %v880_v57, 6.0  ;;  %v910_v2 = vmax.f32 %v846_v58, 0.0  ;;  %v881_v3 = vmax.f32 %v817_v59, 0.0  ;;  %v847_v4 = vadd.f32 3.0, %v691_v60 }
  0xed   : > { %v976_v5 = vmin.f32 %v912_v61, 6.0  ;;  %v942_v6 = vmin.f32 %v878_v62, 6.0  ;;  %v913_v7 = vmax.f32 %v849_v63, 0.0  ;;  %v879_v8 = vmax.f32 %v815_v0, 0.0  ;;  %v1951_v9 = vpop.f32.mrb[4].mxu0 }
  0xee   : > { %v1008_v10 = vmul.f32 %v944_v1, %v568_v40  ;;  %v974_v11 = vmin.f32 %v910_v2, 6.0  ;;  %v945_v12 = vmin.f32 %v881_v3, 6.0  ;;  %v911_v13 = vmax.f32 %v847_v4, 0.0  ;;  %v1983_v14 = vpop.f32.mrb[4].mxu1  ;;  %v575_v15 = vpop.f32.mrb[5].mxu0 }
  0xef   : > { %v1040_v16 = vmul.f32 %v976_v5, %v696_v43  ;;  %v1006_v17 = vmul.f32 %v942_v6, %v560_v44  ;;  %v977_v18 = vmin.f32 %v913_v7, 6.0  ;;  %v943_v19 = vmin.f32 %v879_v8, 6.0  ;;  %v703_v20 = vpop.f32.mrb[5].mxu1  ;;  %v1952_v21 = vpop.f32.mrb[6].mxu0 }
  0xf0   : > { %v1072_v22 = vmul.f32 0.16666667, %v1008_v10  ;;  %v1038_v23 = vmul.f32 %v974_v11, %v688_v48  ;;  %v1009_v24 = vmul.f32 %v945_v12, %v571_v49  ;;  %v975_v25 = vmin.f32 %v911_v13, 6.0  ;;  %v1984_v26 = vpop.f32.mrb[6].mxu1  ;;  %v578_v27 = vpop.f32.mrb[7].mxu0 }
  0xf1   : > { %v1104_v28 = vmul.f32 0.16666667, %v1040_v16  ;;  %v1070_v29 = vmul.f32 0.16666667, %v1006_v17  ;;  %v1041_v30 = vmul.f32 %v977_v18, %v699_v54  ;;  %v1007_v31 = vmul.f32 %v943_v19, %v563_v55  ;;  %v706_v32 = vpop.f32.mrb[7].mxu1 }
  0xf2   : > { %v1102_v33 = vmul.f32 0.16666667, %v1038_v23  ;;  %v1073_v34 = vmul.f32 0.16666667, %v1009_v24  ;;  %v1039_v35 = vmul.f32 %v975_v25, %v691_v60  ;;  %v584_v36 = vadd.f32 %v1951_v9, %v2176_v38 }
  0xf3   : > { %v1105_v37 = vmul.f32 0.16666667, %v1041_v30  ;;  %v1071_v39 = vmul.f32 0.16666667, %v1007_v31  ;;  %v712_v40 = vadd.f32 %v1983_v14, %v2176_v38  ;;  %v576_v41 = vadd.f32 %v2176_v38, %v575_v15 }
  0xf4   : > { %v1724_v42 = vpack.c.bf16 %v1073_v34, %v1072_v22  ;;  %v1103_v43 = vmul.f32 0.16666667, %v1039_v35  ;;  %v820_v44 = vadd.f32 3.0, %v584_v36  ;;  %v704_v45 = vadd.f32 %v2176_v38, %v703_v20 }
  0xf5   : > { %v1804_v46 = vpack.c.bf16 %v1105_v37, %v1104_v28  ;;  %v1719_v47 = vpack.c.bf16 %v1071_v39, %v1070_v29  ;;  %v852_v48 = vadd.f32 3.0, %v712_v40  ;;  %v818_v49 = vadd.f32 3.0, %v576_v41  ;;  %v1955_v50 = vpop.f32.mrb[8].mxu0 }
  0xf6   : > { %1876 = vst [vmem:[%s2192_s27 + $0x8] sm:$0xff] %v1724_v42   ;;  %v1799_v51 = vpack.c.bf16 %v1103_v43, %v1102_v33  ;;  %v884_v52 = vmax.f32 %v820_v44, 0.0  ;;  %v850_v53 = vadd.f32 3.0, %v704_v45  ;;  %v587_v54 = vadd.f32 %v1952_v21, %v2176_v38  ;;  %v1987_v55 = vpop.f32.mrb[8].mxu1  ;;  %v591_v56 = vpop.f32.mrb[9].mxu0 }
  0xf7   : > { %1892 = vst [vmem:[%s2192_s27 + $0x88] sm:$0xff] %v1804_v46   ;;  %1720 = vst [vmem:[%s2192_s27] sm:$0xff] %v1719_v47   ;;  %v916_v57 = vmax.f32 %v852_v48, 0.0  ;;  %v882_v58 = vmax.f32 %v818_v49, 0.0  ;;  %v715_v59 = vadd.f32 %v1984_v26, %v2176_v38  ;;  %v579_v60 = vadd.f32 %v2176_v38, %v578_v27  ;;  %v719_v61 = vpop.f32.mrb[9].mxu1  ;;  %v2203_v62 = vpop.f32.mrb[10].mxu0 }
  0xf8   : > { %1891 = vst [vmem:[%s2192_s27 + $0x80] sm:$0xff] %v1799_v51   ;;  %v948_v63 = vmin.f32 %v884_v52, 6.0  ;;  %v914_v0 = vmax.f32 %v850_v53, 0.0  ;;  %v821_v1 = vadd.f32 3.0, %v587_v54  ;;  %v707_v2 = vadd.f32 %v2176_v38, %v706_v32  ;;  %v2207_v3 = vpop.f32.mrb[10].mxu1  ;;  %v2209_v4 = vpop.f32.mrb[11].mxu0 }
  0xf9   : > { %v980_v5 = vmin.f32 %v916_v57, 6.0  ;;  %v946_v6 = vmin.f32 %v882_v58, 6.0  ;;  %v853_v7 = vadd.f32 3.0, %v715_v59  ;;  %v819_v8 = vadd.f32 3.0, %v579_v60  ;;  %v2211_v9 = vpop.f32.mrb[11].mxu1 }
  0xfa   : > { %v1012_v10 = vmul.f32 %v948_v63, %v584_v36  ;;  %v978_v11 = vmin.f32 %v914_v0, 6.0  ;;  %v885_v12 = vmax.f32 %v821_v1, 0.0  ;;  %v851_v13 = vadd.f32 3.0, %v707_v2 }
  0xfb   : > { %v1044_v14 = vmul.f32 %v980_v5, %v712_v40  ;;  %v1010_v15 = vmul.f32 %v946_v6, %v576_v41  ;;  %v917_v16 = vmax.f32 %v853_v7, 0.0  ;;  %v883_v17 = vmax.f32 %v819_v8, 0.0 }
  0xfc   : > { %v1076_v18 = vmul.f32 0.16666667, %v1012_v10  ;;  %v1042_v19 = vmul.f32 %v978_v11, %v704_v45  ;;  %v949_v20 = vmin.f32 %v885_v12, 6.0  ;;  %v915_v21 = vmax.f32 %v851_v13, 0.0 }
  0xfd   : > { %v1108_v22 = vmul.f32 0.16666667, %v1044_v14  ;;  %v1074_v23 = vmul.f32 0.16666667, %v1010_v15  ;;  %v981_v24 = vmin.f32 %v917_v16, 6.0  ;;  %v947_v25 = vmin.f32 %v883_v17, 6.0 }
  0xfe   : > { %v1106_v26 = vmul.f32 0.16666667, %v1042_v19  ;;  %v1013_v27 = vmul.f32 %v949_v20, %v587_v54  ;;  %v979_v28 = vmin.f32 %v915_v21, 6.0  ;;  %v600_v29 = vadd.f32 %v1955_v50, %v2176_v38  ;;  %v2214_v30 = vpop.f32.mrb[12].mxu0  ;;  %v2216_v31 = vpop.f32.mrb[12].mxu1 }
  0xff   : > { %v1045_v32 = vmul.f32 %v981_v24, %v715_v59  ;;  %v1011_v33 = vmul.f32 %v947_v25, %v579_v60  ;;  %v728_v34 = vadd.f32 %v1987_v55, %v2176_v38  ;;  %v592_v35 = vadd.f32 %v2176_v38, %v591_v56  ;;  %v2220_v36 = vpop.f32.mrb[13].mxu0  ;;  %v2222_v37 = vpop.f32.mrb[13].mxu1 }
 0x100   : > { %v1077_v39 = vmul.f32 0.16666667, %v1013_v27  ;;  %v1043_v40 = vmul.f32 %v979_v28, %v707_v2  ;;  %v824_v41 = vadd.f32 3.0, %v600_v29  ;;  %v720_v42 = vadd.f32 %v2176_v38, %v719_v61  ;;  %v2225_v43 = vpop.f32.mrb[14].mxu0  ;;  %v2227_v44 = vpop.f32.mrb[14].mxu1 }
 0x101   : > { %v1109_v45 = vmul.f32 0.16666667, %v1045_v32  ;;  %v1075_v46 = vmul.f32 0.16666667, %v1011_v33  ;;  %v856_v47 = vadd.f32 3.0, %v728_v34  ;;  %v822_v48 = vadd.f32 3.0, %v592_v35 }
 0x102   : > { %v1734_v49 = vpack.c.bf16 %v1077_v39, %v1076_v18  ;;  %v1107_v50 = vmul.f32 0.16666667, %v1043_v40  ;;  %v888_v51 = vmax.f32 %v824_v41, 0.0  ;;  %v854_v52 = vadd.f32 3.0, %v720_v42  ;;  %v2229_v53 = vpop.f32.mrb[15].mxu0  ;;  %v2231_v54 = vpop.f32.mrb[15].mxu1 }
 0x103   : > { %v1814_v55 = vpack.c.bf16 %v1109_v45, %v1108_v22  ;;  %v1729_v56 = vpack.c.bf16 %v1075_v46, %v1074_v23  ;;  %v920_v57 = vmax.f32 %v856_v47, 0.0  ;;  %v886_v58 = vmax.f32 %v822_v48, 0.0 }
 0x104   : > { %1878 = vst [vmem:[%s2192_s27 + $0x18] sm:$0xff] %v1734_v49   ;;  %v1809_v59 = vpack.c.bf16 %v1107_v50, %v1106_v26  ;;  %v952_v60 = vmin.f32 %v888_v51, 6.0  ;;  %v918_v61 = vmax.f32 %v854_v52, 0.0  ;;  %v603_v63 = vadd.f32 %v2203_v62, %v2176_v38 }
 0x105   : > { %1894 = vst [vmem:[%s2192_s27 + $0x98] sm:$0xff] %v1814_v55   ;;  %1877 = vst [vmem:[%s2192_s27 + $0x10] sm:$0xff] %v1729_v56   ;;  %v984_v0 = vmin.f32 %v920_v57, 6.0  ;;  %v950_v1 = vmin.f32 %v886_v58, 6.0  ;;  %v731_v2 = vadd.f32 %v2207_v3, %v2176_v38  ;;  %v595_v5 = vadd.f32 %v2176_v38, %v2209_v4  ;;  %v2242_v6 = vpop.f32.mrb[16].mxu0 }
 0x106   : > { %1893 = vst [vmem:[%s2192_s27 + $0x90] sm:$0xff] %v1809_v59   ;;  %v1016_v7 = vmul.f32 %v952_v60, %v600_v29  ;;  %v982_v8 = vmin.f32 %v918_v61, 6.0  ;;  %v825_v10 = vadd.f32 3.0, %v603_v63  ;;  %v723_v11 = vadd.f32 %v2176_v38, %v2211_v9  ;;  %v2247_v62 = vpop.f32.mrb[16].mxu1  ;;  %v2249_v12 = vpop.f32.mrb[17].mxu0 }
 0x107   : > { %v1048_v13 = vmul.f32 %v984_v0, %v728_v34  ;;  %v1014_v14 = vmul.f32 %v950_v1, %v592_v35  ;;  %v857_v15 = vadd.f32 3.0, %v731_v2  ;;  %v823_v3 = vadd.f32 3.0, %v595_v5  ;;  %v2251_v16 = vpop.f32.mrb[17].mxu1  ;;  %v2253_v4 = vpop.f32.mrb[18].mxu0 }
 0x108   : > { %v1080_v17 = vmul.f32 0.16666667, %v1016_v7  ;;  %v1046_v18 = vmul.f32 %v982_v8, %v720_v42  ;;  %v889_v19 = vmax.f32 %v825_v10, 0.0  ;;  %v855_v20 = vadd.f32 3.0, %v723_v11  ;;  %v2255_v21 = vpop.f32.mrb[18].mxu1  ;;  %v2257_v22 = vpop.f32.mrb[19].mxu0 }
 0x109   : > { %v1112_v9 = vmul.f32 0.16666667, %v1048_v13  ;;  %v1078_v23 = vmul.f32 0.16666667, %v1014_v14  ;;  %v921_v24 = vmax.f32 %v857_v15, 0.0  ;;  %v887_v25 = vmax.f32 %v823_v3, 0.0 }
 0x10a   : > { %v1110_v26 = vmul.f32 0.16666667, %v1046_v18  ;;  %v953_v27 = vmin.f32 %v889_v19, 6.0  ;;  %v919_v28 = vmax.f32 %v855_v20, 0.0  ;;  %v616_v29 = vadd.f32 %v2214_v30, %v2176_v38  ;;  %v2261_v32 = vpop.f32.mrb[19].mxu1 }
 0x10b   : > { %v985_v33 = vmin.f32 %v921_v24, 6.0  ;;  %v951_v34 = vmin.f32 %v887_v25, 6.0  ;;  %v744_v35 = vadd.f32 %v2216_v31, %v2176_v38  ;;  %v608_v39 = vadd.f32 %v2176_v38, %v2220_v36 }
 0x10c   : > { %v1017_v40 = vmul.f32 %v953_v27, %v603_v63  ;;  %v983_v41 = vmin.f32 %v919_v28, 6.0  ;;  %v828_v42 = vadd.f32 3.0, %v616_v29  ;;  %v736_v45 = vadd.f32 %v2176_v38, %v2222_v37 }
 0x10d   : > { %v1049_v46 = vmul.f32 %v985_v33, %v731_v2  ;;  %v1015_v47 = vmul.f32 %v951_v34, %v595_v5  ;;  %v860_v48 = vadd.f32 3.0, %v744_v35  ;;  %v826_v30 = vadd.f32 3.0, %v608_v39  ;;  %v2269_v49 = vpop.f32.mrb[20].mxu0 }
 0x10e   : > { %v1081_v50 = vmul.f32 0.16666667, %v1017_v40  ;;  %v1047_v51 = vmul.f32 %v983_v41, %v723_v11  ;;  %v892_v52 = vmax.f32 %v828_v42, 0.0  ;;  %v858_v55 = vadd.f32 3.0, %v736_v45  ;;  %v2271_v31 = vpop.f32.mrb[20].mxu1  ;;  %v2273_v56 = vpop.f32.mrb[21].mxu0 }
 0x10f   : > { %v1113_v36 = vmul.f32 0.16666667, %v1049_v46  ;;  %v1079_v57 = vmul.f32 0.16666667, %v1015_v47  ;;  %v924_v58 = vmax.f32 %v860_v48, 0.0  ;;  %v890_v59 = vmax.f32 %v826_v30, 0.0 }
 0x110   : > { %v1744_v37 = vpack.c.bf16 %v1081_v50, %v1080_v17  ;;  %v1111_v60 = vmul.f32 0.16666667, %v1047_v51  ;;  %v956_v61 = vmin.f32 %v892_v52, 6.0  ;;  %v922_v63 = vmax.f32 %v858_v55, 0.0  ;;  %v2275_v0 = vpop.f32.mrb[21].mxu1  ;;  %v2277_v1 = vpop.f32.mrb[22].mxu0 }
 0x111   : > { %v1824_v2 = vpack.c.bf16 %v1113_v36, %v1112_v9  ;;  %v1739_v5 = vpack.c.bf16 %v1079_v57, %v1078_v23  ;;  %v988_v7 = vmin.f32 %v924_v58, 6.0  ;;  %v954_v8 = vmin.f32 %v890_v59, 6.0  ;;  %v2279_v10 = vpop.f32.mrb[22].mxu1  ;;  %v2281_v11 = vpop.f32.mrb[23].mxu0 }
 0x112   : > { %1880 = vst [vmem:[%s2192_s27 + $0x28] sm:$0xff] %v1744_v37   ;;  %v1819_v13 = vpack.c.bf16 %v1111_v60, %v1110_v26  ;;  %v1020_v14 = vmul.f32 %v956_v61, %v616_v29  ;;  %v986_v15 = vmin.f32 %v922_v63, 6.0  ;;  %v619_v3 = vadd.f32 %v2225_v43, %v2176_v38  ;;  %v2286_v17 = vpop.f32.mrb[23].mxu1 }
 0x113   : > { %1896 = vst [vmem:[%s2192_s27 + $0xa8] sm:$0xff] %v1824_v2   ;;  %1879 = vst [vmem:[%s2192_s27 + $0x20] sm:$0xff] %v1739_v5   ;;  %v1052_v18 = vmul.f32 %v988_v7, %v744_v35  ;;  %v1018_v19 = vmul.f32 %v954_v8, %v608_v39  ;;  %v747_v20 = vadd.f32 %v2227_v44, %v2176_v38 }
 0x114   : > { %v611_v9 = vadd.f32 %v2176_v38, %v2229_v53  ;;  %1895 = vst [vmem:[%s2192_s27 + $0xa0] sm:$0xff] %v1819_v13   ;;  %v1084_v23 = vmul.f32 0.16666667, %v1020_v14  ;;  %v829_v24 = vadd.f32 3.0, %v619_v3  ;;  %v739_v25 = vadd.f32 %v2176_v38, %v2231_v54 }
 0x115   : > { %v1116_v26 = vmul.f32 0.16666667, %v1052_v18  ;;  %v1050_v43 = vmul.f32 %v986_v15, %v736_v45  ;;  %v861_v27 = vadd.f32 3.0, %v747_v20  ;;  %v1082_v29 = vmul.f32 0.16666667, %v1018_v19  ;;  %v2299_v44 = vpop.f32.mrb[24].mxu0 }
 0x116   : > { %v827_v28 = vadd.f32 3.0, %v611_v9  ;;  %v893_v33 = vmax.f32 %v829_v24, 0.0  ;;  %v859_v34 = vadd.f32 3.0, %v739_v25  ;;  %v632_v35 = vadd.f32 %v2242_v6, %v2176_v38  ;;  %v2301_v39 = vpop.f32.mrb[24].mxu1  ;;  %v2307_v42 = vpop.f32.mrb[25].mxu0 }
 0x117   : > { %v925_v53 = vmax.f32 %v861_v27, 0.0  ;;  %v760_v41 = vadd.f32 %v2247_v62, %v2176_v38  ;;  %v624_v54 = vadd.f32 %v2176_v38, %v2249_v12  ;;  %v2309_v45 = vpop.f32.mrb[25].mxu1  ;;  %v2313_v6 = vadd.f32 %v2176_v38, %v2251_v16  ;;  %v2315_v30 = vpop.f32.mrb[26].mxu0 }
 0x118   : > { %v891_v40 = vmax.f32 %v827_v28, 0.0  ;;  %v957_v46 = vmin.f32 %v893_v33, 6.0  ;;  %v923_v47 = vmax.f32 %v859_v34, 0.0  ;;  %v832_v48 = vadd.f32 3.0, %v632_v35  ;;  %v2317_v50 = vpop.f32.mrb[26].mxu1  ;;  %v2319_v12 = vpop.f32.mrb[27].mxu0 }
 0x119   : > { %v989_v51 = vmin.f32 %v925_v53, 6.0  ;;  %v864_v52 = vadd.f32 3.0, %v760_v41  ;;  %v830_v55 = vadd.f32 3.0, %v624_v54  ;;  %v2321_v36 = vpop.f32.mrb[27].mxu1  ;;  %v862_v37 = vadd.f32 3.0, %v2313_v6 }
 0x11a   : > { %v955_v62 = vmin.f32 %v891_v40, 6.0  ;;  %v1021_v57 = vmul.f32 %v957_v46, %v619_v3  ;;  %v987_v58 = vmin.f32 %v923_v47, 6.0  ;;  %v896_v59 = vmax.f32 %v832_v48, 0.0 }
 0x11b   : > { %v1053_v60 = vmul.f32 %v989_v51, %v747_v20  ;;  %v928_v61 = vmax.f32 %v864_v52, 0.0  ;;  %v894_v63 = vmax.f32 %v830_v55, 0.0  ;;  %v1114_v2 = vmul.f32 0.16666667, %v1050_v43 }
 0x11c   : > { %v1019_v16 = vmul.f32 %v955_v62, %v611_v9  ;;  %v1085_v5 = vmul.f32 0.16666667, %v1021_v57  ;;  %v1051_v7 = vmul.f32 %v987_v58, %v739_v25  ;;  %v960_v8 = vmin.f32 %v896_v59, 6.0 }
 0x11d   : > { %v1117_v13 = vmul.f32 0.16666667, %v1053_v60  ;;  %v992_v15 = vmin.f32 %v928_v61, 6.0  ;;  %v926_v18 = vmax.f32 %v862_v37, 0.0  ;;  %v958_v24 = vmin.f32 %v894_v63, 6.0  ;;  %v2324_v27 = vpop.f32.mrb[28].mxu0 }
 0x11e   : > { %v1083_v14 = vmul.f32 0.16666667, %v1019_v16  ;;  %v1754_v19 = vpack.c.bf16 %v1085_v5, %v1084_v23  ;;  %v1115_v3 = vmul.f32 0.16666667, %v1051_v7  ;;  %v2326_v20 = vpop.f32.mrb[28].mxu1  ;;  %v2328_v43 = vpop.f32.mrb[29].mxu0  ;;  %v1024_v34 = vmul.f32 %v960_v8, %v632_v35 }
 0x11f   : > { %v1834_v9 = vpack.c.bf16 %v1117_v13, %v1116_v26  ;;  %v2330_v25 = vpop.f32.mrb[29].mxu1  ;;  %v635_v23 = vadd.f32 %v2253_v4, %v2176_v38  ;;  %v2335_v53 = vpop.f32.mrb[30].mxu0  ;;  %v1056_v46 = vmul.f32 %v992_v15, %v760_v41  ;;  %v990_v26 = vmin.f32 %v926_v18, 6.0 }
 0x120   : > { %v1749_v28 = vpack.c.bf16 %v1083_v14, %v1082_v29  ;;  %1882 = vst [vmem:[%s2192_s27 + $0x38] sm:$0xff] %v1754_v19   ;;  %v1829_v33 = vpack.c.bf16 %v1115_v3, %v1114_v2  ;;  %v2337_v40 = vpop.f32.mrb[30].mxu1  ;;  %v763_v29 = vadd.f32 %v2255_v21, %v2176_v38  ;;  %v627_v47 = vadd.f32 %v2176_v38, %v2257_v22  ;;  %v2345_v48 = vpop.f32.mrb[31].mxu0 }
 0x121   : > { %1898 = vst [vmem:[%s2192_s27 + $0xb8] sm:$0xff] %v1834_v9   ;;  %v2347_v35 = vpop.f32.mrb[31].mxu1  ;;  %v1022_v4 = vmul.f32 %v958_v24, %v624_v54  ;;  %v833_v51 = vadd.f32 3.0, %v635_v23  ;;  %v755_v62 = vadd.f32 %v2176_v38, %v2261_v32  ;;  %v648_v41 = vadd.f32 %v2269_v49, %v2176_v38 }
 0x122   : > { %1881 = vst [vmem:[%s2192_s27 + $0x30] sm:$0xff] %v1749_v28   ;;  %1897 = vst [vmem:[%s2192_s27 + $0xb0] sm:$0xff] %v1829_v33   ;;  %v865_v52 = vadd.f32 3.0, %v763_v29  ;;  %v831_v55 = vadd.f32 3.0, %v627_v47  ;;  %v776_v21 = vadd.f32 %v2271_v31, %v2176_v38  ;;  %v2358_v22 = vadd.f32 %v2176_v38, %v2273_v56 }
 0x123   : > { %v897_v57 = vmax.f32 %v833_v51, 0.0  ;;  %v863_v58 = vadd.f32 3.0, %v755_v62  ;;  %v836_v59 = vadd.f32 3.0, %v648_v41  ;;  %v2362_v54 = vadd.f32 %v2176_v38, %v2275_v0 }
 0x124   : > { %v929_v32 = vmax.f32 %v865_v52, 0.0  ;;  %v895_v37 = vmax.f32 %v831_v55, 0.0  ;;  %v868_v60 = vadd.f32 3.0, %v776_v21  ;;  %v834_v49 = vadd.f32 3.0, %v2358_v22 }
 0x125   : > { %v961_v16 = vmin.f32 %v897_v57, 6.0  ;;  %v927_v61 = vmax.f32 %v863_v58, 0.0  ;;  %v900_v63 = vmax.f32 %v836_v59, 0.0  ;;  %v866_v31 = vadd.f32 3.0, %v2362_v54 }
 0x126   : > { %v1088_v2 = vmul.f32 0.16666667, %v1024_v34  ;;  %v993_v56 = vmin.f32 %v929_v32, 6.0  ;;  %v959_v5 = vmin.f32 %v895_v37, 6.0  ;;  %v932_v7 = vmax.f32 %v868_v60, 0.0 }
 0x127   : > { %v1054_v8 = vmul.f32 %v990_v26, %v2313_v6  ;;  %v1025_v13 = vmul.f32 %v961_v16, %v635_v23  ;;  %v991_v14 = vmin.f32 %v927_v61, 6.0  ;;  %v898_v0 = vmax.f32 %v834_v49, 0.0 }
 0x128   : > { %v1057_v15 = vmul.f32 %v993_v56, %v763_v29  ;;  %v1023_v18 = vmul.f32 %v959_v5, %v627_v47  ;;  %v964_v19 = vmin.f32 %v900_v63, 6.0  ;;  %v930_v3 = vmax.f32 %v866_v31, 0.0 }
 0x129   : > { %v1120_v24 = vmul.f32 0.16666667, %v1056_v46  ;;  %v1089_v9 = vmul.f32 0.16666667, %v1025_v13  ;;  %v1055_v28 = vmul.f32 %v991_v14, %v755_v62  ;;  %v996_v33 = vmin.f32 %v932_v7, 6.0 }
 0x12a   : > { %v1086_v51 = vmul.f32 0.16666667, %v1022_v4  ;;  %v1121_v34 = vmul.f32 0.16666667, %v1057_v15  ;;  %v1087_v52 = vmul.f32 0.16666667, %v1023_v18  ;;  %v1028_v47 = vmul.f32 %v964_v19, %v648_v41 }
 0x12b   : > { %v1118_v55 = vmul.f32 0.16666667, %v1054_v8  ;;  %v1764_v57 = vpack.c.bf16 %v1089_v9, %v1088_v2  ;;  %v1119_v6 = vmul.f32 0.16666667, %v1055_v28  ;;  %v962_v23 = vmin.f32 %v898_v0, 6.0 }
 0x12c   : > { %v1844_v26 = vpack.c.bf16 %v1121_v34, %v1120_v24  ;;  %v1759_v29 = vpack.c.bf16 %v1087_v52, %v1086_v51  ;;  %v994_v58 = vmin.f32 %v930_v3, 6.0  ;;  %v1060_v46 = vmul.f32 %v996_v33, %v776_v21 }
 0x12d   : > { %1884 = vst [vmem:[%s2192_s27 + $0x48] sm:$0xff] %v1764_v57   ;;  %v1839_v59 = vpack.c.bf16 %v1119_v6, %v1118_v55  ;;  %v651_v62 = vadd.f32 %v2277_v1, %v2176_v38  ;;  %v779_v4 = vadd.f32 %v2279_v10, %v2176_v38  ;;  %v643_v32 = vadd.f32 %v2176_v38, %v2281_v11 }
 0x12e   : > { %1900 = vst [vmem:[%s2192_s27 + $0xc8] sm:$0xff] %v1844_v26   ;;  %1883 = vst [vmem:[%s2192_s27 + $0x40] sm:$0xff] %v1759_v29   ;;  %v771_v37 = vadd.f32 %v2176_v38, %v2286_v17  ;;  %v664_v41 = vadd.f32 %v2299_v44, %v2176_v38  ;;  %v792_v21 = vadd.f32 %v2301_v39, %v2176_v38  ;;  %v1092_v8 = vmul.f32 0.16666667, %v1028_v47 }
 0x12f   : > { %1899 = vst [vmem:[%s2192_s27 + $0xc0] sm:$0xff] %v1839_v59   ;;  %v837_v60 = vadd.f32 3.0, %v651_v62  ;;  %v869_v1 = vadd.f32 3.0, %v779_v4  ;;  %v656_v10 = vadd.f32 %v2176_v38, %v2307_v42  ;;  %v784_v49 = vadd.f32 %v2176_v38, %v2309_v45 }
 0x130   : > { %v835_v16 = vadd.f32 3.0, %v643_v32  ;;  %v867_v11 = vadd.f32 3.0, %v771_v37  ;;  %v840_v61 = vadd.f32 3.0, %v664_v41  ;;  %v872_v63 = vadd.f32 3.0, %v792_v21 }
 0x131   : > { %v901_v17 = vmax.f32 %v837_v60, 0.0  ;;  %v933_v31 = vmax.f32 %v869_v1, 0.0  ;;  %v838_v2 = vadd.f32 3.0, %v656_v10  ;;  %v870_v44 = vadd.f32 3.0, %v784_v49 }
 0x132   : > { %v1026_v56 = vmul.f32 %v962_v23, %v2358_v22  ;;  %v899_v39 = vmax.f32 %v835_v16, 0.0  ;;  %v931_v5 = vmax.f32 %v867_v11, 0.0  ;;  %v904_v7 = vmax.f32 %v840_v61, 0.0 }
 0x133   : > { %v1058_v13 = vmul.f32 %v994_v58, %v2362_v54  ;;  %v965_v42 = vmin.f32 %v901_v17, 6.0  ;;  %v997_v14 = vmin.f32 %v933_v31, 6.0  ;;  %v1124_v0 = vmul.f32 0.16666667, %v1060_v46 }
 0x134   : > { %v963_v45 = vmin.f32 %v899_v39, 6.0  ;;  %v995_v15 = vmin.f32 %v931_v5, 6.0  ;;  %v936_v18 = vmax.f32 %v872_v63, 0.0  ;;  %v902_v24 = vmax.f32 %v838_v2, 0.0 }
 0x135   : > { %v1029_v19 = vmul.f32 %v965_v42, %v651_v62  ;;  %v1061_v3 = vmul.f32 %v997_v14, %v779_v4  ;;  %v934_v9 = vmax.f32 %v870_v44, 0.0  ;;  %v1090_v28 = vmul.f32 0.16666667, %v1026_v56 }
 0x136   : > { %v1027_v33 = vmul.f32 %v963_v45, %v643_v32  ;;  %v1059_v51 = vmul.f32 %v995_v15, %v771_v37  ;;  %v968_v22 = vmin.f32 %v904_v7, 6.0  ;;  %v1122_v34 = vmul.f32 0.16666667, %v1058_v13 }
 0x137   : > { %v1093_v52 = vmul.f32 0.16666667, %v1029_v19  ;;  %v1125_v55 = vmul.f32 0.16666667, %v1061_v3  ;;  %v1000_v6 = vmin.f32 %v936_v18, 6.0  ;;  %v667_v23 = vadd.f32 %v2315_v30, %v2176_v38 }
 0x138   : > { %v1091_v54 = vmul.f32 0.16666667, %v1027_v33  ;;  %v1123_v57 = vmul.f32 0.16666667, %v1059_v51  ;;  %v966_v47 = vmin.f32 %v902_v24, 6.0  ;;  %v998_v58 = vmin.f32 %v934_v9, 6.0 }
 0x139   : > { %v1774_v26 = vpack.c.bf16 %v1093_v52, %v1092_v8  ;;  %v1854_v29 = vpack.c.bf16 %v1125_v55, %v1124_v0  ;;  %v1032_v62 = vmul.f32 %v968_v22, %v664_v41  ;;  %v841_v4 = vadd.f32 3.0, %v667_v23 }
 0x13a   : > { %v1769_v59 = vpack.c.bf16 %v1091_v54, %v1090_v28  ;;  %v1849_v46 = vpack.c.bf16 %v1123_v57, %v1122_v34  ;;  %v795_v32 = vadd.f32 %v2317_v50, %v2176_v38  ;;  %v659_v37 = vadd.f32 %v2176_v38, %v2319_v12 }
 0x13b   : > { %1886 = vst [vmem:[%s2192_s27 + $0x58] sm:$0xff] %v1774_v26   ;;  %1902 = vst [vmem:[%s2192_s27 + $0xd8] sm:$0xff] %v1854_v29   ;;  %v787_v30 = vadd.f32 %v2176_v38, %v2321_v36  ;;  %v680_v60 = vadd.f32 %v2324_v27, %v2176_v38  ;;  %v905_v1 = vmax.f32 %v841_v4, 0.0  ;;  %v808_v41 = vadd.f32 %v2326_v20, %v2176_v38 }
 0x13c   : > { %1885 = vst [vmem:[%s2192_s27 + $0x50] sm:$0xff] %v1769_v59   ;;  %1901 = vst [vmem:[%s2192_s27 + $0xd0] sm:$0xff] %v1849_v46   ;;  %v2407_v16 = vadd.f32 %v2176_v38, %v2328_v43  ;;  %v2411_v50 = vadd.f32 %v2176_v38, %v2330_v25  ;;  %v1064_v12 = vmul.f32 %v1000_v6, %v792_v21  ;;  %v873_v11 = vadd.f32 3.0, %v795_v32 }
 0x13d   : > { %v839_v36 = vadd.f32 3.0, %v659_v37  ;;  %v871_v61 = vadd.f32 3.0, %v787_v30  ;;  %v1030_v63 = vmul.f32 %v966_v47, %v656_v10  ;;  %v1062_v27 = vmul.f32 %v998_v58, %v784_v49 }
 0x13e   : > { %v969_v17 = vmin.f32 %v905_v1, 6.0  ;;  %v844_v31 = vadd.f32 3.0, %v680_v60  ;;  %v937_v2 = vmax.f32 %v873_v11, 0.0  ;;  %v876_v20 = vadd.f32 3.0, %v808_v41 }
 0x13f   : > { %v903_v44 = vmax.f32 %v839_v36, 0.0  ;;  %v935_v56 = vmax.f32 %v871_v61, 0.0  ;;  %v1096_v39 = vmul.f32 0.16666667, %v1032_v62  ;;  %v842_v43 = vadd.f32 3.0, %v2407_v16 }
 0x140   : > { %v1033_v5 = vmul.f32 %v969_v17, %v667_v23  ;;  %v874_v7 = vadd.f32 3.0, %v2411_v50  ;;  %v1128_v25 = vmul.f32 0.16666667, %v1064_v12  ;;  %v1001_v8 = vmin.f32 %v937_v2, 6.0 }
 0x141   : > { %v967_v21 = vmin.f32 %v903_v44, 6.0  ;;  %v999_v13 = vmin.f32 %v935_v56, 6.0  ;;  %v1094_v42 = vmul.f32 0.16666667, %v1030_v63  ;;  %v908_v49 = vmax.f32 %v844_v31, 0.0 }
 0x142   : > { %v1097_v10 = vmul.f32 0.16666667, %v1033_v5  ;;  %v1065_v14 = vmul.f32 %v1001_v8, %v795_v32  ;;  %v940_v15 = vmax.f32 %v876_v20, 0.0  ;;  %v1126_v18 = vmul.f32 0.16666667, %v1062_v27 }
 0x143   : > { %v1031_v0 = vmul.f32 %v967_v21, %v659_v37  ;;  %v1063_v45 = vmul.f32 %v999_v13, %v787_v30  ;;  %v906_v3 = vmax.f32 %v842_v43, 0.0  ;;  %v938_v24 = vmax.f32 %v874_v7, 0.0 }
 0x144   : > { %v1784_v19 = vpack.c.bf16 %v1097_v10, %v1096_v39  ;;  %v1129_v9 = vmul.f32 0.16666667, %v1065_v14  ;;  %v683_v51 = vadd.f32 %v2335_v53, %v2176_v38  ;;  %v972_v22 = vmin.f32 %v908_v49, 6.0 }
 0x145   : > { %v1095_v28 = vmul.f32 0.16666667, %v1031_v0  ;;  %v1127_v33 = vmul.f32 0.16666667, %v1063_v45  ;;  %v811_v34 = vadd.f32 %v2337_v40, %v2176_v38  ;;  %v1004_v57 = vmin.f32 %v940_v15, 6.0 }
 0x146   : > { %1888 = vst [vmem:[%s2192_s27 + $0x68] sm:$0xff] %v1784_v19   ;;  %v1864_v52 = vpack.c.bf16 %v1129_v9, %v1128_v25  ;;  %v845_v6 = vadd.f32 3.0, %v683_v51  ;;  %v675_v26 = vadd.f32 %v2176_v38, %v2345_v48  ;;  %v803_v29 = vadd.f32 %v2176_v38, %v2347_v35 }
 0x147   : > { %v1779_v55 = vpack.c.bf16 %v1095_v28, %v1094_v42  ;;  %v1859_v54 = vpack.c.bf16 %v1127_v33, %v1126_v18  ;;  %v877_v23 = vadd.f32 3.0, %v811_v34  ;;  %v970_v53 = vmin.f32 %v906_v3, 6.0 }
 0x148   : > { %1904 = vst [vmem:[%s2192_s27 + $0xe8] sm:$0xff] %v1864_v52   ;;  %v1002_v47 = vmin.f32 %v938_v24, 6.0  ;;  %v909_v58 = vmax.f32 %v845_v6, 0.0  ;;  %v843_v40 = vadd.f32 3.0, %v675_v26  ;;  %v875_v46 = vadd.f32 3.0, %v803_v29 }
 0x149   : > { %1887 = vst [vmem:[%s2192_s27 + $0x60] sm:$0xff] %v1779_v55   ;;  %1903 = vst [vmem:[%s2192_s27 + $0xe0] sm:$0xff] %v1859_v54   ;;  %v941_v59 = vmax.f32 %v877_v23, 0.0  ;;  %v1036_v62 = vmul.f32 %v972_v22, %v680_v60  ;;  %v1068_v4 = vmul.f32 %v1004_v57, %v808_v41  ;;  %v1034_v48 = vmul.f32 %v970_v53, %v2407_v16 }
 0x14a   : > { %v973_v32 = vmin.f32 %v909_v58, 6.0  ;;  %v907_v30 = vmax.f32 %v843_v40, 0.0  ;;  %v939_v1 = vmax.f32 %v875_v46, 0.0  ;;  %v1066_v12 = vmul.f32 %v1002_v47, %v2411_v50 }
 0x14b   : > { %v1005_v37 = vmin.f32 %v941_v59, 6.0  ;;  %v1100_v61 = vmul.f32 0.16666667, %v1036_v62  ;;  %v1132_v63 = vmul.f32 0.16666667, %v1068_v4 }
 0x14c   : > { %v1037_v38 = vmul.f32 %v973_v32, %v683_v51  ;;  %v971_v11 = vmin.f32 %v907_v30, 6.0  ;;  %v1003_v36 = vmin.f32 %v939_v1, 6.0  ;;  %v1098_v31 = vmul.f32 0.16666667, %v1034_v48 }
 0x14d   : > { %v1069_v35 = vmul.f32 %v1005_v37, %v811_v34  ;;  %v1130_v2 = vmul.f32 0.16666667, %v1066_v12 }
 0x14e   : > { %v1101_v60 = vmul.f32 0.16666667, %v1037_v38  ;;  %v1035_v27 = vmul.f32 %v971_v11, %v675_v26  ;;  %v1067_v17 = vmul.f32 %v1003_v36, %v803_v29 }
 0x14f   : > { %v1133_v41 = vmul.f32 0.16666667, %v1069_v35 }
 0x150   : > { %v1794_v44 = vpack.c.bf16 %v1101_v60, %v1100_v61  ;;  %v1099_v56 = vmul.f32 0.16666667, %v1035_v27  ;;  %v1131_v50 = vmul.f32 0.16666667, %v1067_v17 }
 0x151   : > { %v1874_v16 = vpack.c.bf16 %v1133_v41, %v1132_v63 }
 0x152   : > { %1890 = vst [vmem:[%s2192_s27 + $0x78] sm:$0xff] %v1794_v44   ;;  %v1789_v20 = vpack.c.bf16 %v1099_v56, %v1098_v31  ;;  %v1869_v39 = vpack.c.bf16 %v1131_v50, %v1130_v2 }
 0x153   : > { %1906 = vst [vmem:[%s2192_s27 + $0xf8] sm:$0xff] %v1874_v16  }
 0x154   : > { %1889 = vst [vmem:[%s2192_s27 + $0x70] sm:$0xff] %v1789_v20   ;;  %1905 = vst [vmem:[%s2192_s27 + $0xf0] sm:$0xff] %v1869_v39  }
 0x155 PF: > { %s13_s12 = sadd.s32 1, %s2062_s12  }
 0x156   : > { %p10_p4 = scmp.ge.s32.totalorder %s13_s12, 6  }
 0x158   :  { %12 = sbr.rel (!%p10_p4) target bundleno = 1 (0x1), region = 62 }

// kernel: _lambda_.8
= control target key start
LH: loop header
LB: loop body
LE: loop exit
PB: predicated region body
PF: predicated region fallthrough
CT: control target
= control target key end

     0   :  { %vm490_vm0 = vcmask 523264   ;;  %s1104_s1 = inlined_call_operand.vmem [shape: bf16[576,256], index: 1, kind: input, shape index: {}]   ;;  %s1105_s0 = inlined_call_operand.vmem [shape: bf16[16,576], index: 0, kind: input, shape index: {}]   ;;  %s1106_s2 = inlined_call_operand.vmem [shape: f32[1,256], index: 2, kind: input, shape index: {}]   ;;  %s1107_s3 = inlined_call_operand.vmem [shape: f32[16,256], index: 3, kind: output, shape index: {}]  }
   0x1   :  { %v722_v0 = vld [vmem:[%s1104_s1 + $0x104] ss:$8 sps:$4 sm:$0xff]   ;;  %v724_v1 = vld [vmem:[%s1104_s1 + $0x100] ss:$8 sps:$4 sm:$0xff]   ;;  %v725_v2 = vld [vmem:[%s1104_s1 + $0x114] ss:$8 sps:$4 sm:$0xff]  }
   0x2   :  { %537 = vmatprep.subr.bf16.mxu0 %v722_v0  ;;  %v727_v3 = vld [vmem:[%s1104_s1 + $0x110] ss:$8 sps:$4 sm:$0xff]   ;;  %v728_v4 = vld [vmem:[%s1104_s1 + $0x124] ss:$8 sps:$4 sm:$0xff]   ;;  %v733_v6 = vld [vmem:[%s1104_s1] ss:$8 sps:$4 sm:$0xff]  }
   0x3   :  { %538 = vmatpush1.bf16.msra.mxu0 %v724_v1  ;;  %v731_v5 = vld [vmem:[%s1104_s1 + $0x4] ss:$8 sps:$4 sm:$0xff]   ;;  %v730_v7 = vld [vmem:[%s1104_s1 + $0x120] ss:$8 sps:$4 sm:$0xff]   ;;  %v737_v8 = vld [vmem:[%s1104_s1 + $0x14] ss:$8 sps:$4 sm:$0xff]  }
   0x4   :  { %539 = vmatprep.subr.bf16.mxu0 %v725_v2  ;;  %494 = vmatprep.subr.bf16.mxu1 %v731_v5  ;;  %v739_v9 = vld [vmem:[%s1104_s1 + $0x10] ss:$8 sps:$4 sm:$0xff]   ;;  %v734_v10 = vld [vmem:[%s1104_s1 + $0x134] ss:$8 sps:$4 sm:$0xff]   ;;  %v743_v12 = vld [vmem:[%s1104_s1 + $0x24] ss:$8 sps:$4 sm:$0xff]  }
   0x5   :  { %495 = vmatpush1.bf16.msra.mxu1 %v733_v6  ;;  %v736_v11 = vld [vmem:[%s1104_s1 + $0x130] ss:$8 sps:$4 sm:$0xff]   ;;  %v740_v13 = vld [vmem:[%s1104_s1 + $0x144] ss:$8 sps:$4 sm:$0xff]   ;;  %v745_v14 = vld [vmem:[%s1104_s1 + $0x20] ss:$8 sps:$4 sm:$0xff]  }
   0x6   :  { %496 = vmatprep.subr.bf16.mxu1 %v737_v8  ;;  %v749_v15 = vld [vmem:[%s1104_s1 + $0x34] ss:$8 sps:$4 sm:$0xff]   ;;  %v742_v16 = vld [vmem:[%s1104_s1 + $0x140] ss:$8 sps:$4 sm:$0xff]   ;;  %v751_v18 = vld [vmem:[%s1104_s1 + $0x30] ss:$8 sps:$4 sm:$0xff]  }
   0x7   :  { %540 = vmatpush1.bf16.msra.mxu0 %v727_v3  ;;  %v746_v17 = vld [vmem:[%s1104_s1 + $0x154] ss:$8 sps:$4 sm:$0xff]   ;;  %v755_v19 = vld [vmem:[%s1104_s1 + $0x44] ss:$8 sps:$4 sm:$0xff]   ;;  %v748_v20 = vld [vmem:[%s1104_s1 + $0x150] ss:$8 sps:$4 sm:$0xff]  }
   0x8   :  { %541 = vmatprep.subr.bf16.mxu0 %v728_v4  ;;  %v752_v21 = vld [vmem:[%s1104_s1 + $0x164] ss:$8 sps:$4 sm:$0xff]   ;;  %v757_v22 = vld [vmem:[%s1104_s1 + $0x40] ss:$8 sps:$4 sm:$0xff]   ;;  %v761_v23 = vld [vmem:[%s1104_s1 + $0x54] ss:$8 sps:$4 sm:$0xff]  }
   0x9   :  { %497 = vmatpush1.bf16.msra.mxu1 %v739_v9  ;;  %v754_v24 = vld [vmem:[%s1104_s1 + $0x160] ss:$8 sps:$4 sm:$0xff]   ;;  %v758_v25 = vld [vmem:[%s1104_s1 + $0x174] ss:$8 sps:$4 sm:$0xff]   ;;  %v763_v26 = vld [vmem:[%s1104_s1 + $0x50] ss:$8 sps:$4 sm:$0xff]  }
   0xa   :  { %498 = vmatprep.subr.bf16.mxu1 %v743_v12  ;;  %v767_v27 = vld [vmem:[%s1104_s1 + $0x64] ss:$8 sps:$4 sm:$0xff]   ;;  %v760_v28 = vld [vmem:[%s1104_s1 + $0x170] ss:$8 sps:$4 sm:$0xff]   ;;  %v769_v30 = vld [vmem:[%s1104_s1 + $0x60] ss:$8 sps:$4 sm:$0xff]  }
   0xb   :  { %542 = vmatpush1.bf16.msra.mxu0 %v730_v7  ;;  %v764_v29 = vld [vmem:[%s1104_s1 + $0x184] ss:$8 sps:$4 sm:$0xff]   ;;  %v773_v31 = vld [vmem:[%s1104_s1 + $0x74] ss:$8 sps:$4 sm:$0xff]   ;;  %v766_v32 = vld [vmem:[%s1104_s1 + $0x180] ss:$8 sps:$4 sm:$0xff]  }
   0xc   :  { %543 = vmatprep.subr.bf16.mxu0 %v734_v10  ;;  %v770_v33 = vld [vmem:[%s1104_s1 + $0x194] ss:$8 sps:$4 sm:$0xff]   ;;  %v775_v34 = vld [vmem:[%s1104_s1 + $0x70] ss:$8 sps:$4 sm:$0xff]   ;;  %v779_v35 = vld [vmem:[%s1104_s1 + $0x84] ss:$8 sps:$4 sm:$0xff]  }
   0xd   :  { %499 = vmatpush1.bf16.msra.mxu1 %v745_v14  ;;  %v772_v36 = vld [vmem:[%s1104_s1 + $0x190] ss:$8 sps:$4 sm:$0xff]   ;;  %v776_v37 = vld [vmem:[%s1104_s1 + $0x1a4] ss:$8 sps:$4 sm:$0xff]   ;;  %v781_v38 = vld [vmem:[%s1104_s1 + $0x80] ss:$8 sps:$4 sm:$0xff]   ;;  %v95_v14 = vlaneseq }
   0xe   :  { %500 = vmatprep.subr.bf16.mxu1 %v749_v15  ;;  %v785_v39 = vld [vmem:[%s1104_s1 + $0x94] ss:$8 sps:$4 sm:$0xff]   ;;  %v778_v40 = vld [vmem:[%s1104_s1 + $0x1a0] ss:$8 sps:$4 sm:$0xff]   ;;  %v787_v42 = vld [vmem:[%s1104_s1 + $0x90] ss:$8 sps:$4 sm:$0xff]  }
   0xf   :  { %544 = vmatpush1.bf16.msra.mxu0 %v736_v11  ;;  %v782_v41 = vld [vmem:[%s1104_s1 + $0x1b4] ss:$8 sps:$4 sm:$0xff]   ;;  %v791_v43 = vld [vmem:[%s1104_s1 + $0xa4] ss:$8 sps:$4 sm:$0xff]   ;;  %v784_v45 = vld [vmem:[%s1104_s1 + $0x1b0] ss:$8 sps:$4 sm:$0xff]  }
  0x10   :  { %545 = vmatprep.subr.bf16.mxu0 %v740_v13  ;;  %v814_v44 = vld [vmem:[%s1105_s0 + $0xc] ss:$20 sps:$4 sm:$0xff]   ;;  %v797_v48 = vld [vmem:[%s1104_s1 + $0xb4] ss:$8 sps:$4 sm:$0xff]   ;;  %v799_v51 = vld [vmem:[%s1104_s1 + $0xb0] ss:$8 sps:$4 sm:$0xff]  }
  0x11   :  { %501 = vmatpush1.bf16.msra.mxu1 %v751_v18  ;;  %v788_v46 = vld [vmem:[%s1104_s1 + $0x1c4] ss:$8 sps:$4 sm:$0xff]   ;;  %v793_v47 = vld [vmem:[%s1104_s1 + $0xa0] ss:$8 sps:$4 sm:$0xff]   ;;  %569 = vmatprep.mubr.bf16.mxu0 %v814_v44  ;;  %v794_v50 = vld [vmem:[%s1104_s1 + $0x1d4] ss:$8 sps:$4 sm:$0xff]  }
  0x12   :  { %502 = vmatprep.subr.bf16.mxu1 %v755_v19  ;;  %v790_v49 = vld [vmem:[%s1104_s1 + $0x1c0] ss:$8 sps:$4 sm:$0xff]   ;;  %v803_v52 = vld [vmem:[%s1104_s1 + $0xc4] ss:$8 sps:$4 sm:$0xff]   ;;  %v796_v54 = vld [vmem:[%s1104_s1 + $0x1d0] ss:$8 sps:$4 sm:$0xff]  }
  0x13   :  { %546 = vmatpush1.bf16.msra.mxu0 %v742_v16  ;;  %v832_v53 = vld [vmem:[%s1105_s0 + $0x4] ss:$20 sps:$4 sm:$0xff]   ;;  %v805_v55 = vld [vmem:[%s1104_s1 + $0xc0] ss:$8 sps:$4 sm:$0xff]   ;;  %v809_v57 = vld [vmem:[%s1104_s1 + $0xd4] ss:$8 sps:$4 sm:$0xff]  }
  0x14   :  { %547 = vmatprep.subr.bf16.mxu0 %v746_v17  ;;  %v800_v56 = vld [vmem:[%s1104_s1 + $0x1e4] ss:$8 sps:$4 sm:$0xff]   ;;  %526 = vmatprep.mubr.bf16.mxu1 %v832_v53  ;;  %v802_v58 = vld [vmem:[%s1104_s1 + $0x1e0] ss:$8 sps:$4 sm:$0xff]   ;;  %v811_v59 = vld [vmem:[%s1104_s1 + $0xd0] ss:$8 sps:$4 sm:$0xff]  }
  0x15   :  { %503 = vmatpush1.bf16.msra.mxu1 %v757_v22  ;;  %v806_v60 = vld [vmem:[%s1104_s1 + $0x1f4] ss:$8 sps:$4 sm:$0xff]   ;;  %v818_v61 = vld [vmem:[%s1104_s1 + $0xe4] ss:$8 sps:$4 sm:$0xff]   ;;  %v808_v62 = vld [vmem:[%s1104_s1 + $0x1f0] ss:$8 sps:$4 sm:$0xff]  }
  0x16   :  { %504 = vmatprep.subr.bf16.mxu1 %v761_v23  ;;  %v820_v63 = vld [vmem:[%s1104_s1 + $0xe0] ss:$8 sps:$4 sm:$0xff]   ;;  %v817_v0 = vld [vmem:[%s1104_s1 + $0x204] ss:$8 sps:$4 sm:$0xff]   ;;  %v824_v1 = vld [vmem:[%s1104_s1 + $0xf4] ss:$8 sps:$4 sm:$0xff]  }
  0x17   :  { %548 = vmatpush1.bf16.msra.mxu0 %v748_v20  ;;  %v812_v2 = vld [vmem:[%s1105_s0 + $0x8] ss:$20 sps:$4 sm:$0xff]   ;;  %v826_v4 = vld [vmem:[%s1104_s1 + $0xf0] ss:$8 sps:$4 sm:$0xff]   ;;  %v830_v6 = vld [vmem:[%s1105_s0] ss:$20 sps:$4 sm:$0xff]  }
  0x18   :  { %549 = vmatprep.subr.bf16.mxu0 %v752_v21  ;;  %v815_v3 = vld [vmem:[%s1104_s1 + $0x200] ss:$8 sps:$4 sm:$0xff]   ;;  %v823_v5 = vld [vmem:[%s1104_s1 + $0x214] ss:$8 sps:$4 sm:$0xff]   ;;  %v821_v7 = vld [vmem:[%s1104_s1 + $0x210] ss:$8 sps:$4 sm:$0xff]  }
  0x19   :  { %505 = vmatpush1.bf16.msra.mxu1 %v763_v26  ;;  %v829_v8 = vld [vmem:[%s1104_s1 + $0x224] ss:$8 sps:$4 sm:$0xff]   ;;  %v837_v9 = vmov 0   ;;  %v827_v10 = vld [vmem:[%s1104_s1 + $0x220] ss:$8 sps:$4 sm:$0xff]   ;;  %v96_v15 = vshrl.u32 %v95_v14, 7 }
  0x1a   :  { %506 = vmatprep.subr.bf16.mxu1 %v767_v27  ;;  %v835_v11 = vld [vmem:[%s1104_s1 + $0x234] ss:$8 sps:$4 sm:$0xff]   ;;  %v833_v12 = vld [vmem:[%s1104_s1 + $0x230] ss:$8 sps:$4 sm:$0xff]   ;;  %v93_v19 = vld [vmem:[%s1106_s2] sm:$0x3] }
  0x1b   :  { %550 = vmatpush1.bf16.msra.mxu0 %v754_v24  ;;  %v836_v13 = vld [vmem:[%s1105_s0 + $0x10] ss:$20 sps:$4 sm:$0xff]   ;;  %v97_v17 = vsub.s32 0, %v96_v15  ;;  %v101_v20 = vsub.s32 1, %v96_v15 }
  0x1c   :  { %551 = vmatprep.subr.bf16.mxu0 %v758_v25 }
  0x1d   :  { %507 = vmatpush1.bf16.msra.mxu1 %v769_v30  ;;  %v98_v23 = vrot.slane %v93_v19, %v97_v17  ;;  %v102_v24 = vrot.slane %v93_v19, %v101_v20 }
  0x1e   :  { %508 = vmatprep.subr.bf16.mxu1 %v773_v31 }
  0x1f   :  { %552 = vmatpush1.bf16.msra.mxu0 %v760_v28 }
  0x20   :  { %553 = vmatprep.subr.bf16.mxu0 %v764_v29 }
  0x21   :  { %509 = vmatpush1.bf16.msra.mxu1 %v775_v34 }
  0x22   :  { %510 = vmatprep.subr.bf16.mxu1 %v779_v35 }
  0x23   :  { %554 = vmatpush1.bf16.msra.mxu0 %v766_v32 }
  0x24   :  { %555 = vmatprep.subr.bf16.mxu0 %v770_v33 }
  0x25   :  { %511 = vmatpush1.bf16.msra.mxu1 %v781_v38 }
  0x26   :  { %512 = vmatprep.subr.bf16.mxu1 %v785_v39 }
  0x27   :  { %556 = vmatpush1.bf16.msra.mxu0 %v772_v36 }
  0x28   :  { %557 = vmatprep.subr.bf16.mxu0 %v776_v37 }
  0x29   :  { %513 = vmatpush1.bf16.msra.mxu1 %v787_v42 }
  0x2a   :  { %514 = vmatprep.subr.bf16.mxu1 %v791_v43 }
  0x2b   :  { %558 = vmatpush1.bf16.msra.mxu0 %v778_v40 }
  0x2c   :  { %559 = vmatprep.subr.bf16.mxu0 %v782_v41 }
  0x2d   :  { %515 = vmatpush1.bf16.msra.mxu1 %v793_v47 }
  0x2e   :  { %516 = vmatprep.subr.bf16.mxu1 %v797_v48 }
  0x2f   :  { %560 = vmatpush1.bf16.msra.mxu0 %v784_v45 }
  0x30   :  { %561 = vmatprep.subr.bf16.mxu0 %v788_v46 }
  0x31   :  { %517 = vmatpush1.bf16.msra.mxu1 %v799_v51 }
  0x32   :  { %518 = vmatprep.subr.bf16.mxu1 %v803_v52 }
  0x33   :  { %562 = vmatpush1.bf16.msra.mxu0 %v790_v49 }
  0x34   :  { %563 = vmatprep.subr.bf16.mxu0 %v794_v50 }
  0x35   :  { %519 = vmatpush1.bf16.msra.mxu1 %v805_v55 }
  0x36   :  { %520 = vmatprep.subr.bf16.mxu1 %v809_v57 }
  0x37   :  { %564 = vmatpush1.bf16.msra.mxu0 %v796_v54 }
  0x38   :  { %565 = vmatprep.subr.bf16.mxu0 %v800_v56 }
  0x39   :  { %521 = vmatpush1.bf16.msra.mxu1 %v811_v59 }
  0x3a   :  { %522 = vmatprep.subr.bf16.mxu1 %v818_v61 }
  0x3b   :  { %566 = vmatpush1.bf16.msra.mxu0 %v802_v58 }
  0x3c   :  { %567 = vmatprep.subr.bf16.mxu0 %v806_v60 }
  0x3d   :  { %523 = vmatpush1.bf16.msra.mxu1 %v820_v63 }
  0x3e   :  { %524 = vmatprep.subr.bf16.mxu1 %v824_v1 }
  0x3f   :  { %568 = vmatpush1.bf16.msra.mxu0 %v808_v62 }
  0x40   :  { %580 = vmatprep.subr.bf16.mxu0 %v817_v0 }
  0x41   :  { %525 = vmatpush1.bf16.msra.mxu1 %v826_v4 }
  0x42   :  { %570 = vmatmul.mubr.bf16.vlgmr.msra.gmra.mrb[0].mxu0 %v812_v2 }
  0x43   :  { %581 = vmatpush1.bf16.msra.mxu0 %v815_v3  ;;  %612 = vmatprep.mubr.bf16.mxu0 %v837_v9 }
  0x44   :  { %582 = vmatprep.subr.bf16.mxu0 %v823_v5  ;;  %527 = vmatmul.mubr.bf16.vlgmr.msra.gmra.mrb[0].mxu1 %v830_v6 }
  0x47   :  { %583 = vmatpush1.bf16.msra.mxu0 %v821_v7 }
  0x48   :  { %584 = vmatprep.subr.bf16.mxu0 %v829_v8 }
  0x4b   :  { %585 = vmatpush1.bf16.msra.mxu0 %v827_v10 }
  0x4c   :  { %586 = vmatprep.subr.bf16.mxu0 %v835_v11 }
  0x4f   :  { %587 = vmatpush1.bf16.msra.mxu0 %v833_v12 }
  0x52   :  { %708 = vmatmul.mubr.msk.bf16.vlgmr.msra.gmra.mrb[0].mxu0 %vm490_vm0, %v836_v13 }
 0x117   :  { %v528_v16 = vpop.f32.mrb[0].mxu1 }
 0x118   :  { %v530_v18 = vpop.f32.mrb[1].mxu1  ;;  %v529_v25 = vadd.f32 %v528_v16, %v98_v23 }
 0x119   :  { %v532_v21 = vpop.f32.mrb[2].mxu1  ;;  %v531_v26 = vadd.f32 %v530_v18, %v102_v24 }
 0x11a   :  { %v534_v22 = vpop.f32.mrb[3].mxu1  ;;  %v533_v28 = vadd.f32 %v532_v21, %v98_v23 }
 0x11b   :  { %v535_v31 = vadd.f32 %v534_v22, %v102_v24 }
 0x125   :  { %v614_v27 = vpop.f32.mrb[0].mxu0 }
 0x126   :  { %v710_v29 = vadd.f32 %v614_v27, %v529_v25  ;;  %v616_v30 = vpop.f32.mrb[1].mxu0 }
 0x127   :  { %v712_v32 = vadd.f32 %v616_v30, %v531_v26  ;;  %v618_v33 = vpop.f32.mrb[2].mxu0 }
 0x128   :  { %623 = vst [vmem:[%s1107_s3] sm:$0xff] %v710_v29  ;;  %v714_v34 = vadd.f32 %v618_v33, %v533_v28  ;;  %v620_v35 = vpop.f32.mrb[3].mxu0 }
 0x129   :  { %624 = vst [vmem:[%s1107_s3 + $0x8] sm:$0xff] %v712_v32  ;;  %v716_v36 = vadd.f32 %v620_v35, %v535_v31 }
 0x12a   :  { %625 = vst [vmem:[%s1107_s3 + $0x10] sm:$0xff] %v714_v34 }
 0x12b   :  { %626 = vst [vmem:[%s1107_s3 + $0x18] sm:$0xff] %v716_v36 }

// kernel: _lambda_.7
= control target key start
LH: loop header
LB: loop body
LE: loop exit
PB: predicated region body
PF: predicated region fallthrough
CT: control target
= control target key end

     0   :  { %vm341_vm0 = vcmask 130048   ;;  %v693_v36 = vmov 0   ;;  %v73_v48 = vlaneseq  ;;  %s893_s1 = inlined_call_operand.vmem [shape: bf16[144,640], index: 1, kind: input, shape index: {}]   ;;  %s894_s0 = inlined_call_operand.vmem [shape: bf16[16,144], index: 0, kind: input, shape index: {}]   ;;  %s895_s2 = inlined_call_operand.vmem [shape: f32[1,640], index: 2, kind: input, shape index: {}]   ;;  %s896_s3 = inlined_call_operand.vmem [shape: bf16[16,640], index: 3, kind: output, shape index: {}]  }
   0x1   :  { %v627_v0 = vld [vmem:[%s893_s1 + $0x4] ss:$20 sps:$4 sm:$0xff]   ;;  %v629_v1 = vld [vmem:[%s893_s1] ss:$20 sps:$4 sm:$0xff]   ;;  %v632_v3 = vld [vmem:[%s893_s1 + $0x28] ss:$20 sps:$4 sm:$0xff]  }
   0x2   :  { %345 = vmatprep.subr.bf16.mxu0 %v627_v0  ;;  %v630_v2 = vld [vmem:[%s893_s1 + $0x2c] ss:$20 sps:$4 sm:$0xff]   ;;  %v633_v4 = vld [vmem:[%s893_s1 + $0x54] ss:$20 sps:$4 sm:$0xff]   ;;  %v635_v5 = vld [vmem:[%s893_s1 + $0x50] ss:$20 sps:$4 sm:$0xff]  }
   0x3   :  { %346 = vmatpush1.bf16.msra.mxu0 %v629_v1  ;;  %v636_v6 = vld [vmem:[%s893_s1 + $0x7c] ss:$20 sps:$4 sm:$0xff]   ;;  %v648_v7 = vld [vmem:[%s893_s1 + $0xc] ss:$20 sps:$4 sm:$0xff]   ;;  %v639_v10 = vld [vmem:[%s893_s1 + $0xa4] ss:$20 sps:$4 sm:$0xff]  }
   0x4   :  { %347 = vmatprep.subr.bf16.mxu0 %v630_v2  ;;  %v650_v8 = vld [vmem:[%s893_s1 + $0x8] ss:$20 sps:$4 sm:$0xff]   ;;  %v638_v9 = vld [vmem:[%s893_s1 + $0x78] ss:$20 sps:$4 sm:$0xff]   ;;  %388 = vmatprep.subr.bf16.mxu1 %v648_v7  ;;  %v656_v12 = vld [vmem:[%s893_s1 + $0x30] ss:$20 sps:$4 sm:$0xff]  }
   0x5   :  { %v654_v11 = vld [vmem:[%s893_s1 + $0x34] ss:$20 sps:$4 sm:$0xff]   ;;  %389 = vmatpush1.bf16.msra.mxu1 %v650_v8  ;;  %v660_v14 = vld [vmem:[%s893_s1 + $0x5c] ss:$20 sps:$4 sm:$0xff]   ;;  %v642_v15 = vld [vmem:[%s893_s1 + $0xcc] ss:$20 sps:$4 sm:$0xff]  }
   0x6   :  { %v641_v13 = vld [vmem:[%s893_s1 + $0xa0] ss:$20 sps:$4 sm:$0xff]   ;;  %390 = vmatprep.subr.bf16.mxu1 %v654_v11  ;;  %v662_v16 = vld [vmem:[%s894_s0 + $0x4] ss:$8 sps:$4 sm:$0xff]   ;;  %v644_v18 = vld [vmem:[%s893_s1 + $0xc8] ss:$20 sps:$4 sm:$0xff]  }
   0x7   :  { %348 = vmatpush1.bf16.msra.mxu0 %v632_v3  ;;  %v664_v17 = vld [vmem:[%s893_s1 + $0x58] ss:$20 sps:$4 sm:$0xff]   ;;  %611 = vmatprep.mubr.msk.bf16.mxu0 %vm341_vm0, %v662_v16  ;;  %v645_v20 = vld [vmem:[%s893_s1 + $0xf4] ss:$20 sps:$4 sm:$0xff]   ;;  %v647_v23 = vld [vmem:[%s893_s1 + $0xf0] ss:$20 sps:$4 sm:$0xff]  }
   0x8   :  { %349 = vmatprep.subr.bf16.mxu0 %v633_v4  ;;  %v667_v19 = vld [vmem:[%s893_s1 + $0x84] ss:$20 sps:$4 sm:$0xff]   ;;  %612 = vmatprep.mubr.msk.bf16.mxu1 %vm341_vm0, %v662_v16  ;;  %v669_v21 = vld [vmem:[%s893_s1 + $0x80] ss:$20 sps:$4 sm:$0xff]   ;;  %v651_v24 = vld [vmem:[%s893_s1 + $0x11c] ss:$20 sps:$4 sm:$0xff]  }
   0x9   :  { %391 = vmatpush1.bf16.msra.mxu1 %v656_v12  ;;  %v671_v22 = vld [vmem:[%s893_s1 + $0xac] ss:$20 sps:$4 sm:$0xff]   ;;  %v673_v25 = vld [vmem:[%s893_s1 + $0xa8] ss:$20 sps:$4 sm:$0xff]   ;;  %v657_v28 = vld [vmem:[%s893_s1 + $0x144] ss:$20 sps:$4 sm:$0xff]  }
   0xa   :  { %392 = vmatprep.subr.bf16.mxu1 %v660_v14  ;;  %v675_v26 = vld [vmem:[%s893_s1 + $0xd4] ss:$20 sps:$4 sm:$0xff]   ;;  %v653_v27 = vld [vmem:[%s893_s1 + $0x118] ss:$20 sps:$4 sm:$0xff]   ;;  %v677_v29 = vld [vmem:[%s893_s1 + $0xd0] ss:$20 sps:$4 sm:$0xff]  }
   0xb   :  { %350 = vmatpush1.bf16.msra.mxu0 %v635_v5  ;;  %v679_v30 = vld [vmem:[%s893_s1 + $0xfc] ss:$20 sps:$4 sm:$0xff]   ;;  %v659_v31 = vld [vmem:[%s893_s1 + $0x140] ss:$20 sps:$4 sm:$0xff]   ;;  %v681_v32 = vld [vmem:[%s893_s1 + $0xf8] ss:$20 sps:$4 sm:$0xff]  }
   0xc   :  { %351 = vmatprep.subr.bf16.mxu0 %v636_v6  ;;  %v665_v33 = vld [vmem:[%s894_s0] ss:$8 sps:$4 sm:$0xff]   ;;  %v683_v34 = vld [vmem:[%s893_s1 + $0x124] ss:$20 sps:$4 sm:$0xff]   ;;  %v858_v49 = vshrl.u32 %v73_v48, 7 }
   0xd   :  { %393 = vmatpush1.bf16.msra.mxu1 %v664_v17  ;;  %v666_v35 = vld [vmem:[%s893_s1 + $0x10] ss:$20 sps:$4 sm:$0xff]   ;;  %v685_v37 = vld [vmem:[%s893_s1 + $0x120] ss:$20 sps:$4 sm:$0xff]   ;;  %v670_v39 = vld [vmem:[%s893_s1 + $0x38] ss:$20 sps:$4 sm:$0xff]  }
   0xe   :  { %394 = vmatprep.subr.bf16.mxu1 %v667_v19  ;;  %v687_v38 = vld [vmem:[%s893_s1 + $0x14c] ss:$20 sps:$4 sm:$0xff]   ;;  %v689_v40 = vld [vmem:[%s893_s1 + $0x148] ss:$20 sps:$4 sm:$0xff]   ;;  %v682_v43 = vld [vmem:[%s893_s1 + $0xb0] ss:$20 sps:$4 sm:$0xff]  }
   0xf   :  { %352 = vmatpush1.bf16.msra.mxu0 %v638_v9  ;;  %v674_v41 = vld [vmem:[%s893_s1 + $0x60] ss:$20 sps:$4 sm:$0xff]   ;;  %v678_v42 = vld [vmem:[%s893_s1 + $0x88] ss:$20 sps:$4 sm:$0xff]   ;;  %v686_v44 = vld [vmem:[%s893_s1 + $0xd8] ss:$20 sps:$4 sm:$0xff]  }
  0x10   :  { %353 = vmatprep.subr.bf16.mxu0 %v639_v10  ;;  %v690_v45 = vld [vmem:[%s893_s1 + $0x100] ss:$20 sps:$4 sm:$0xff]   ;;  %v691_v46 = vld [vmem:[%s893_s1 + $0x128] ss:$20 sps:$4 sm:$0xff]   ;;  %v692_v47 = vld [vmem:[%s893_s1 + $0x150] ss:$20 sps:$4 sm:$0xff]  }
  0x11   :  { %395 = vmatpush1.bf16.msra.mxu1 %v669_v21  ;;  %v75_v50 = vsub.s32 0, %v858_v49  ;;  %v864_v51 = vld [vmem:[%s895_s2] sm:$0x1f]  ;;  %v79_v52 = vsub.s32 1, %v858_v49  ;;  %v83_v63 = vsub.s32 2, %v858_v49  ;;  %v87_v2 = vsub.s32 3, %v858_v49 }
  0x12   :  { %396 = vmatprep.subr.bf16.mxu1 %v671_v22 }
  0x13   :  { %354 = vmatpush1.bf16.msra.mxu0 %v641_v13  ;;  %v76_v53 = vrot.slane %v864_v51, %v75_v50  ;;  %v80_v54 = vrot.slane %v864_v51, %v79_v52  ;;  %v84_v9 = vrot.slane %v864_v51, %v83_v63  ;;  %v88_v12 = vrot.slane %v864_v51, %v87_v2 }
  0x14   :  { %355 = vmatprep.subr.bf16.mxu0 %v642_v15 }
  0x15   :  { %397 = vmatpush1.bf16.msra.mxu1 %v673_v25 }
  0x16   :  { %398 = vmatprep.subr.bf16.mxu1 %v675_v26 }
  0x17   :  { %356 = vmatpush1.bf16.msra.mxu0 %v644_v18 }
  0x18   :  { %357 = vmatprep.subr.bf16.mxu0 %v645_v20 }
  0x19   :  { %399 = vmatpush1.bf16.msra.mxu1 %v677_v29 }
  0x1a   :  { %400 = vmatprep.subr.bf16.mxu1 %v679_v30 }
  0x1b   :  { %358 = vmatpush1.bf16.msra.mxu0 %v647_v23 }
  0x1c   :  { %359 = vmatprep.subr.bf16.mxu0 %v651_v24 }
  0x1d   :  { %401 = vmatpush1.bf16.msra.mxu1 %v681_v32 }
  0x1e   :  { %402 = vmatprep.subr.bf16.mxu1 %v683_v34 }
  0x1f   :  { %360 = vmatpush1.bf16.msra.mxu0 %v653_v27 }
  0x20   :  { %361 = vmatprep.subr.bf16.mxu0 %v657_v28 }
  0x21   :  { %403 = vmatpush1.bf16.msra.mxu1 %v685_v37 }
  0x22   :  { %404 = vmatprep.subr.bf16.mxu1 %v687_v38 }
  0x23   :  { %362 = vmatpush1.bf16.msra.mxu0 %v659_v31 }
  0x24   :  { %431 = vmatprep.subr.bf16.mxu0 %v693_v36 }
  0x25   :  { %405 = vmatpush1.bf16.msra.mxu1 %v689_v40 }
  0x26   :  { %378 = vmatmul.mubr.bf16.vlgmr.msra.gmra.mrb[0].mxu0 %v665_v33 }
  0x27   :  { %432 = vmatpush1.bf16.msra.mxu0 %v666_v35  ;;  %613 = vmatprep.mubr.msk.bf16.mxu0 %vm341_vm0, %v662_v16 }
  0x28   :  { %433 = vmatprep.subr.bf16.mxu0 %v693_v36  ;;  %421 = vmatmul.mubr.bf16.vlgmr.msra.gmra.mrb[0].mxu1 %v665_v33 }
  0x2b   :  { %434 = vmatpush1.bf16.msra.mxu0 %v670_v39 }
  0x2c   :  { %435 = vmatprep.subr.bf16.mxu0 %v693_v36 }
  0x2f   :  { %436 = vmatpush1.bf16.msra.mxu0 %v674_v41 }
  0x30   :  { %437 = vmatprep.subr.bf16.mxu0 %v693_v36 }
  0x33   :  { %438 = vmatpush1.bf16.msra.mxu0 %v678_v42 }
  0x34   :  { %439 = vmatprep.subr.bf16.mxu0 %v693_v36 }
  0x37   :  { %440 = vmatpush1.bf16.msra.mxu0 %v682_v43 }
  0x38   :  { %441 = vmatprep.subr.bf16.mxu0 %v693_v36 }
  0x3b   :  { %442 = vmatpush1.bf16.msra.mxu0 %v686_v44 }
  0x3c   :  { %443 = vmatprep.subr.bf16.mxu0 %v693_v36 }
  0x3f   :  { %444 = vmatpush1.bf16.msra.mxu0 %v690_v45 }
  0x40   :  { %445 = vmatprep.subr.bf16.mxu0 %v693_v36 }
  0x43   :  { %446 = vmatpush1.bf16.msra.mxu0 %v691_v46 }
  0x44   :  { %447 = vmatprep.subr.bf16.mxu0 %v693_v36 }
  0x47   :  { %448 = vmatpush1.bf16.msra.mxu0 %v692_v47 }
  0x4a   :  { %464 = vmatmul.mubr.bf16.vlgmr.msra.gmra.mrb[4].mxu0 %v665_v33 }
  0xf9   :  { %v379_v55 = vpop.f32.mrb[0].mxu0 }
  0xfa   :  { %v380_v56 = vadd.f32 %v379_v55, %v76_v53  ;;  %v381_v57 = vpop.f32.mrb[1].mxu0 }
  0xfb   :  { %v382_v58 = vadd.f32 %v381_v57, %v80_v54  ;;  %v383_v59 = vpop.f32.mrb[2].mxu0  ;;  %v422_v17 = vpop.f32.mrb[0].mxu1  ;;  %v91_v57 = vsub.s32 4, %v858_v49 }
  0xfc   :  { %v472_v60 = vadd.f32 3.0, %v380_v56  ;;  %v384_v61 = vadd.f32 %v383_v59, %v76_v53  ;;  %v385_v62 = vpop.f32.mrb[3].mxu0  ;;  %v423_v20 = vadd.f32 %v422_v17, %v84_v9  ;;  %v424_v21 = vpop.f32.mrb[1].mxu1 }
  0xfd   :  { %v473_v0 = vadd.f32 3.0, %v382_v58  ;;  %v386_v1 = vadd.f32 %v385_v62, %v80_v54  ;;  %v425_v24 = vadd.f32 %v424_v21, %v88_v12  ;;  %v426_v25 = vpop.f32.mrb[2].mxu1 }
  0xfe   :  { %v482_v3 = vmax.f32 %v472_v60, 0.0  ;;  %v477_v4 = vadd.f32 3.0, %v384_v61  ;;  %v474_v27 = vadd.f32 3.0, %v423_v20  ;;  %v427_v28 = vadd.f32 %v426_v25, %v84_v9  ;;  %v428_v29 = vpop.f32.mrb[3].mxu1 }
  0xff   :  { %v483_v5 = vmax.f32 %v473_v0, 0.0  ;;  %v478_v6 = vadd.f32 3.0, %v386_v1  ;;  %v475_v32 = vadd.f32 3.0, %v425_v24  ;;  %v429_v33 = vadd.f32 %v428_v29, %v88_v12 }
 0x100   :  { %v492_v7 = vmin.f32 %v482_v3, 6.0  ;;  %v487_v8 = vmax.f32 %v477_v4, 0.0  ;;  %v484_v34 = vmax.f32 %v474_v27, 0.0  ;;  %v479_v35 = vadd.f32 3.0, %v427_v28 }
 0x101   :  { %v493_v10 = vmin.f32 %v483_v5, 6.0  ;;  %v488_v11 = vmax.f32 %v478_v6, 0.0  ;;  %v485_v37 = vmax.f32 %v475_v32, 0.0  ;;  %v480_v38 = vadd.f32 3.0, %v429_v33 }
 0x102   :  { %v502_v13 = vmul.f32 %v492_v7, %v380_v56  ;;  %v497_v14 = vmin.f32 %v487_v8, 6.0  ;;  %v494_v39 = vmin.f32 %v484_v34, 6.0  ;;  %v489_v40 = vmax.f32 %v479_v35, 0.0 }
 0x103   :  { %v503_v15 = vmul.f32 %v493_v10, %v382_v58  ;;  %v498_v16 = vmin.f32 %v488_v11, 6.0  ;;  %v495_v41 = vmin.f32 %v485_v37, 6.0  ;;  %v490_v42 = vmax.f32 %v480_v38, 0.0 }
 0x104   :  { %v512_v18 = vmul.f32 0.16666667, %v502_v13  ;;  %v507_v19 = vmul.f32 %v497_v14, %v384_v61  ;;  %v504_v43 = vmul.f32 %v494_v39, %v423_v20  ;;  %v499_v44 = vmin.f32 %v489_v40, 6.0 }
 0x105   :  { %v513_v22 = vmul.f32 0.16666667, %v503_v15  ;;  %v508_v23 = vmul.f32 %v498_v16, %v386_v1  ;;  %v505_v45 = vmul.f32 %v495_v41, %v425_v24  ;;  %v500_v46 = vmin.f32 %v490_v42, 6.0 }
 0x106   :  { %v517_v26 = vmul.f32 0.16666667, %v507_v19  ;;  %v514_v47 = vmul.f32 0.16666667, %v504_v43  ;;  %v509_v48 = vmul.f32 %v499_v44, %v427_v28  ;;  %v92_v58 = vrot.slane %v864_v51, %v91_v57 }
 0x107   :  { %v620_v30 = vpack.c.bf16 %v513_v22, %v512_v18  ;;  %v518_v31 = vmul.f32 0.16666667, %v508_v23  ;;  %v515_v50 = vmul.f32 0.16666667, %v505_v45  ;;  %v510_v52 = vmul.f32 %v500_v46, %v429_v33 }
 0x108   :  { %v519_v53 = vmul.f32 0.16666667, %v509_v48 }
 0x109   :  { %554 = vst [vmem:[%s896_s3] sm:$0xff] %v620_v30  ;;  %v623_v36 = vpack.c.bf16 %v518_v31, %v517_v26  ;;  %v621_v54 = vpack.c.bf16 %v515_v50, %v514_v47  ;;  %v520_v55 = vmul.f32 0.16666667, %v510_v52 }
 0x10b   :  { %557 = vst [vmem:[%s896_s3 + $0x14] sm:$0xff] %v623_v36  ;;  %555 = vst [vmem:[%s896_s3 + $0x8] sm:$0xff] %v621_v54  ;;  %v624_v56 = vpack.c.bf16 %v520_v55, %v519_v53 }
 0x10d   :  { %558 = vst [vmem:[%s896_s3 + $0x1c] sm:$0xff] %v624_v56 }
 0x11d   :  { %v465_v59 = vpop.f32.mrb[4].mxu0 }
 0x11e   :  { %v466_v60 = vadd.f32 %v465_v59, %v92_v58  ;;  %v467_v61 = vpop.f32.mrb[5].mxu0 }
 0x11f   :  { %v468_v62 = vpop.f32.mrb[6].mxu0 }
 0x120   :  { %v476_v63 = vadd.f32 3.0, %v466_v60  ;;  %v469_v0 = vadd.f32 %v468_v62, %v92_v58  ;;  %v470_v1 = vpop.f32.mrb[7].mxu0 }
 0x122   :  { %v486_v2 = vmax.f32 %v476_v63, 0.0  ;;  %v481_v3 = vadd.f32 3.0, %v469_v0 }
 0x124   :  { %v496_v4 = vmin.f32 %v486_v2, 6.0  ;;  %v491_v5 = vmax.f32 %v481_v3, 0.0 }
 0x126   :  { %v506_v6 = vmul.f32 %v496_v4, %v466_v60  ;;  %v501_v7 = vmin.f32 %v491_v5, 6.0 }
 0x128   :  { %v516_v8 = vmul.f32 0.16666667, %v506_v6  ;;  %v511_v9 = vmul.f32 %v501_v7, %v469_v0 }
 0x12a   :  { %v622_v10 = vpack.c.bf16 %v516_v8, %v516_v8  ;;  %v521_v11 = vmul.f32 0.16666667, %v511_v9 }
 0x12c   :  { %556 = vst [vmem:[%s896_s3 + $0x10] sm:$0xf] %v622_v10  ;;  %v625_v49 = vpack.c.bf16 %v521_v11, %v521_v11 }
 0x12e   :  { %559 = vst [vmem:[%s896_s3 + $0x24] sm:$0xf] %v625_v49 }

// kernel: _lambda_.9
= control target key start
LH: loop header
LB: loop body
LE: loop exit
PB: predicated region body
PF: predicated region fallthrough
CT: control target
= control target key end

     0   :  { %s1806_s12 = smov 0   ;;  %s2002_s0 = inlined_call_operand.vmem [shape: bf16[2048,16], index: 0, kind: input, shape index: {}]   ;;  %s2003_s1 = inlined_call_operand.vmem [shape: bf16[16,128], index: 1, kind: input, shape index: {}]   ;;  %s2004_s2 = inlined_call_operand.vmem [shape: f32[1,128], index: 2, kind: input, shape index: {}]   ;;  %s2005_s3 = inlined_call_operand.vmem [shape: bf16[2048,128], index: 3, kind: output, shape index: {}]  }
   0x1 LB: > { %s1240_s13 = sadd.s32 4294967295, %s1784_s12   ;;  %p1244_p0 = scmp.ge.s32.totalorder %s1784_s12, 1  ;;  %s1784_s12 = sphi %s1806_s12, %s13_s12  }
   0x2   : > { %p138_p1 = scmp.lt.s32.totalorder %s1784_s12, 5 }
   0x4   : > { %p139_p2 = pnand %p1244_p0, %p138_p1 }
   0x5   : > { %v1745_v0 = vld [vmem:[%s2003_s1] sm:$0xff] (!%p139_p2)   ;;  %s1245_s16 = sshll.u32 (!%p139_p2), %s1240_s13, 6  ;;  %vm414_vm0 = vcmask (!%p139_p2), 130048  }
   0x6   : > { %142 = sbr.rel (%p139_p2) target bundleno = 297 (0x129), region = 32  ;;  %p163_p3 = scmp.lt.s32.totalorder (!%p139_p2), %s1245_s16, 255  ;;  %1669 = vmatprep.subr.bf16.mxu0 (!%p139_p2), %v1745_v0  ;;  %1735 = vmatprep.subr.bf16.mxu1 (!%p139_p2), %v1745_v0  ;;  %v1894_v33 = vld [vmem:[%s2004_s2] ss:$0 sm:$0xff] (!%p139_p2) }
   0x7   : > { %1670 = vmatpush3.bf16.msra.mxu0 (!%p139_p2), %v1745_v0  ;;  %1736 = vmatpush3.bf16.msra.mxu1 (!%p139_p2), %v1745_v0 }
   0xd   : > { %s2007_s16 = smov (!%p163_p3, %s1245_s16), 255 }
   0xe   : > { %s1246_s17 = sshll.u32 %s2007_s16, 2 }
   0xf   : > { %s1825_s20 = scalar_lea.vmem %s2002_s0, %s1246_s17  ;;  %s1909_s25 = scalar_lea.vmem %s2005_s3, %s1246_s17 }
  0x10   : > { %v1746_v1 = vld [vmem:[%s1825_s20] sm:$0xff]   ;;  %v1748_v3 = vld [vmem:[%s1825_s20 + $0x8] sm:$0xff]   ;;  %v1750_v5 = vld [vmem:[%s1825_s20 + $0x10] sm:$0xff]  }
  0x11   : > { %v1747_v2 = vld [vmem:[%s1825_s20 + $0x80] sm:$0xff]   ;;  %1671 = vmatprep.mubr.msk.bf16.mxu0 %vm414_vm0, %v1746_v1  ;;  %v1749_v4 = vld [vmem:[%s1825_s20 + $0x88] sm:$0xff]   ;;  %v1751_v6 = vld [vmem:[%s1825_s20 + $0x90] sm:$0xff]  }
  0x12   : > { %1703 = vmatprep.mubr.msk.bf16.mxu1 %vm414_vm0, %v1747_v2  ;;  %1672 = vmatmul.mubr.msk.bf16.vlgmr.msra.gmra.mrb[0].mxu0 %vm414_vm0, %v1748_v3  ;;  %v1752_v7 = vld [vmem:[%s1825_s20 + $0x18] sm:$0xff]   ;;  %v1754_v9 = vld [vmem:[%s1825_s20 + $0x20] sm:$0xff]   ;;  %v1756_v11 = vld [vmem:[%s1825_s20 + $0x28] sm:$0xff]  }
  0x13   : > { %1704 = vmatmul.mubr.msk.bf16.vlgmr.msra.gmra.mrb[0].mxu1 %vm414_vm0, %v1749_v4  ;;  %1675 = vmatprep.mubr.msk.bf16.mxu0 %vm414_vm0, %v1750_v5  ;;  %v1753_v8 = vld [vmem:[%s1825_s20 + $0x98] sm:$0xff]   ;;  %v1755_v10 = vld [vmem:[%s1825_s20 + $0xa0] sm:$0xff]   ;;  %v1757_v12 = vld [vmem:[%s1825_s20 + $0xa8] sm:$0xff]  }
  0x14   : > { %1707 = vmatprep.mubr.msk.bf16.mxu1 %vm414_vm0, %v1751_v6  ;;  %v1758_v13 = vld [vmem:[%s1825_s20 + $0x30] sm:$0xff]   ;;  %v1760_v15 = vld [vmem:[%s1825_s20 + $0x38] sm:$0xff]   ;;  %v1762_v17 = vld [vmem:[%s1825_s20 + $0x40] sm:$0xff]  }
  0x15   : > { %v1759_v14 = vld [vmem:[%s1825_s20 + $0xb0] sm:$0xff]   ;;  %v1761_v16 = vld [vmem:[%s1825_s20 + $0xb8] sm:$0xff]   ;;  %v1763_v18 = vld [vmem:[%s1825_s20 + $0xc0] sm:$0xff]  }
  0x16   : > { %v1764_v19 = vld [vmem:[%s1825_s20 + $0x48] sm:$0xff]   ;;  %v1766_v21 = vld [vmem:[%s1825_s20 + $0x50] sm:$0xff]   ;;  %v1768_v23 = vld [vmem:[%s1825_s20 + $0x58] sm:$0xff]  }
  0x17   : > { %v1765_v20 = vld [vmem:[%s1825_s20 + $0xc8] sm:$0xff]   ;;  %v1767_v22 = vld [vmem:[%s1825_s20 + $0xd0] sm:$0xff]   ;;  %v1769_v24 = vld [vmem:[%s1825_s20 + $0xd8] sm:$0xff]  }
  0x18   : > { %v1770_v25 = vld [vmem:[%s1825_s20 + $0x60] sm:$0xff]   ;;  %v1772_v27 = vld [vmem:[%s1825_s20 + $0x68] sm:$0xff]   ;;  %v1774_v29 = vld [vmem:[%s1825_s20 + $0x70] sm:$0xff]  }
  0x19   : > { %v1771_v26 = vld [vmem:[%s1825_s20 + $0xe0] sm:$0xff]   ;;  %v1773_v28 = vld [vmem:[%s1825_s20 + $0xe8] sm:$0xff]   ;;  %v1775_v30 = vld [vmem:[%s1825_s20 + $0xf0] sm:$0xff]  }
  0x1a   : > { %1676 = vmatmul.mubr.msk.bf16.gmra.mrb[4].mxu0 %vm414_vm0, %v1752_v7  ;;  %v1776_v31 = vld [vmem:[%s1825_s20 + $0x78] sm:$0xff]  }
  0x1b   : > { %1708 = vmatmul.mubr.msk.bf16.gmra.mrb[4].mxu1 %vm414_vm0, %v1753_v8  ;;  %1679 = vmatprep.mubr.msk.bf16.mxu0 %vm414_vm0, %v1754_v9  ;;  %v1777_v32 = vld [vmem:[%s1825_s20 + $0xf8] sm:$0xff]  }
  0x1c   : > { %1711 = vmatprep.mubr.msk.bf16.mxu1 %vm414_vm0, %v1755_v10 }
  0x22   : > { %1680 = vmatmul.mubr.msk.bf16.gmra.mrb[8].mxu0 %vm414_vm0, %v1756_v11 }
  0x23   : > { %1712 = vmatmul.mubr.msk.bf16.gmra.mrb[8].mxu1 %vm414_vm0, %v1757_v12  ;;  %1683 = vmatprep.mubr.msk.bf16.mxu0 %vm414_vm0, %v1758_v13 }
  0x24   : > { %1715 = vmatprep.mubr.msk.bf16.mxu1 %vm414_vm0, %v1759_v14 }
  0x2a   : > { %1684 = vmatmul.mubr.msk.bf16.gmra.mrb[12].mxu0 %vm414_vm0, %v1760_v15 }
  0x2b   : > { %1716 = vmatmul.mubr.msk.bf16.gmra.mrb[12].mxu1 %vm414_vm0, %v1761_v16  ;;  %1687 = vmatprep.mubr.msk.bf16.mxu0 %vm414_vm0, %v1762_v17 }
  0x2c   : > { %1719 = vmatprep.mubr.msk.bf16.mxu1 %vm414_vm0, %v1763_v18 }
  0x32   : > { %1688 = vmatmul.mubr.msk.bf16.gmra.mrb[16].mxu0 %vm414_vm0, %v1764_v19 }
  0x33   : > { %1720 = vmatmul.mubr.msk.bf16.gmra.mrb[16].mxu1 %vm414_vm0, %v1765_v20  ;;  %1691 = vmatprep.mubr.msk.bf16.mxu0 %vm414_vm0, %v1766_v21 }
  0x34   : > { %1723 = vmatprep.mubr.msk.bf16.mxu1 %vm414_vm0, %v1767_v22 }
  0x3a   : > { %1692 = vmatmul.mubr.msk.bf16.gmra.mrb[20].mxu0 %vm414_vm0, %v1768_v23 }
  0x3b   : > { %1724 = vmatmul.mubr.msk.bf16.gmra.mrb[20].mxu1 %vm414_vm0, %v1769_v24  ;;  %1695 = vmatprep.mubr.msk.bf16.mxu0 %vm414_vm0, %v1770_v25 }
  0x3c   : > { %1727 = vmatprep.mubr.msk.bf16.mxu1 %vm414_vm0, %v1771_v26 }
  0x42   : > { %1696 = vmatmul.mubr.msk.bf16.gmra.mrb[24].mxu0 %vm414_vm0, %v1772_v27 }
  0x43   : > { %1728 = vmatmul.mubr.msk.bf16.gmra.mrb[24].mxu1 %vm414_vm0, %v1773_v28  ;;  %1699 = vmatprep.mubr.msk.bf16.mxu0 %vm414_vm0, %v1774_v29 }
  0x44   : > { %1731 = vmatprep.mubr.msk.bf16.mxu1 %vm414_vm0, %v1775_v30 }
  0x4a   : > { %1700 = vmatmul.mubr.msk.bf16.gmra.mrb[28].mxu0 %vm414_vm0, %v1776_v31 }
  0x4b   : > { %1732 = vmatmul.mubr.msk.bf16.gmra.mrb[28].mxu1 %vm414_vm0, %v1777_v32 }
  0xe5   : > { %v1673_v34 = vpop.f32.mrb[0].mxu0 }
  0xe6   : > { %v554_v35 = vadd.f32 %v1673_v34, %v1894_v33  ;;  %v1705_v36 = vpop.f32.mrb[0].mxu1  ;;  %v545_v37 = vpop.f32.mrb[1].mxu0 }
  0xe7   : > { %v682_v38 = vadd.f32 %v1705_v36, %v1894_v33  ;;  %v546_v39 = vadd.f32 %v1894_v33, %v545_v37  ;;  %v673_v40 = vpop.f32.mrb[1].mxu1  ;;  %v1674_v41 = vpop.f32.mrb[2].mxu0 }
  0xe8   : > { %v674_v42 = vadd.f32 %v1894_v33, %v673_v40  ;;  %v557_v43 = vadd.f32 %v1674_v41, %v1894_v33  ;;  %v1706_v44 = vpop.f32.mrb[2].mxu1  ;;  %v548_v45 = vpop.f32.mrb[3].mxu0  ;;  %v802_v49 = vmax.f32 %v554_v35, 0.0 }
  0xe9   : > { %v685_v46 = vadd.f32 %v1706_v44, %v1894_v33  ;;  %v549_v47 = vadd.f32 %v1894_v33, %v548_v45  ;;  %v676_v48 = vpop.f32.mrb[3].mxu1  ;;  %v834_v52 = vmax.f32 %v682_v38, 0.0  ;;  %v800_v53 = vmax.f32 %v546_v39, 0.0 }
  0xea   : > { %v803_v50 = vmax.f32 %v557_v43, 0.0  ;;  %v677_v51 = vadd.f32 %v1894_v33, %v676_v48  ;;  %v832_v56 = vmax.f32 %v674_v42, 0.0 }
  0xeb   : > { %v835_v54 = vmax.f32 %v685_v46, 0.0  ;;  %v801_v55 = vmax.f32 %v549_v47, 0.0 }
  0xec   : > { %v1453_v57 = vpack.c.bf16 %v803_v50, %v802_v49  ;;  %v833_v58 = vmax.f32 %v677_v51, 0.0 }
  0xed   : > { %v1533_v59 = vpack.c.bf16 %v835_v54, %v834_v52  ;;  %v1448_v60 = vpack.c.bf16 %v801_v55, %v800_v53  ;;  %v1677_v61 = vpop.f32.mrb[4].mxu0 }
  0xee   : > { %1605 = vst [vmem:[%s1909_s25 + $0x8] sm:$0xff] %v1453_v57   ;;  %v1528_v62 = vpack.c.bf16 %v833_v58, %v832_v56  ;;  %v570_v63 = vadd.f32 %v1677_v61, %v1894_v33  ;;  %v1709_v0 = vpop.f32.mrb[4].mxu1  ;;  %v561_v1 = vpop.f32.mrb[5].mxu0 }
  0xef   : > { %1621 = vst [vmem:[%s1909_s25 + $0x88] sm:$0xff] %v1533_v59   ;;  %1449 = vst [vmem:[%s1909_s25] sm:$0xff] %v1448_v60   ;;  %v698_v2 = vadd.f32 %v1709_v0, %v1894_v33  ;;  %v562_v3 = vadd.f32 %v1894_v33, %v561_v1  ;;  %v689_v4 = vpop.f32.mrb[5].mxu1  ;;  %v1678_v5 = vpop.f32.mrb[6].mxu0 }
  0xf0   : > { %1620 = vst [vmem:[%s1909_s25 + $0x80] sm:$0xff] %v1528_v62   ;;  %v690_v6 = vadd.f32 %v1894_v33, %v689_v4  ;;  %v573_v7 = vadd.f32 %v1678_v5, %v1894_v33  ;;  %v1710_v8 = vpop.f32.mrb[6].mxu1  ;;  %v564_v9 = vpop.f32.mrb[7].mxu0  ;;  %v806_v13 = vmax.f32 %v570_v63, 0.0 }
  0xf1   : > { %v701_v10 = vadd.f32 %v1710_v8, %v1894_v33  ;;  %v565_v11 = vadd.f32 %v1894_v33, %v564_v9  ;;  %v692_v12 = vpop.f32.mrb[7].mxu1  ;;  %v838_v16 = vmax.f32 %v698_v2, 0.0  ;;  %v804_v17 = vmax.f32 %v562_v3, 0.0 }
  0xf2   : > { %v807_v14 = vmax.f32 %v573_v7, 0.0  ;;  %v693_v15 = vadd.f32 %v1894_v33, %v692_v12  ;;  %v836_v20 = vmax.f32 %v690_v6, 0.0 }
  0xf3   : > { %v839_v18 = vmax.f32 %v701_v10, 0.0  ;;  %v805_v19 = vmax.f32 %v565_v11, 0.0 }
  0xf4   : > { %v1463_v21 = vpack.c.bf16 %v807_v14, %v806_v13  ;;  %v837_v22 = vmax.f32 %v693_v15, 0.0 }
  0xf5   : > { %v1543_v23 = vpack.c.bf16 %v839_v18, %v838_v16  ;;  %v1458_v24 = vpack.c.bf16 %v805_v19, %v804_v17  ;;  %v1681_v25 = vpop.f32.mrb[8].mxu0 }
  0xf6   : > { %1607 = vst [vmem:[%s1909_s25 + $0x18] sm:$0xff] %v1463_v21   ;;  %v1538_v26 = vpack.c.bf16 %v837_v22, %v836_v20  ;;  %v586_v27 = vadd.f32 %v1681_v25, %v1894_v33  ;;  %v1713_v28 = vpop.f32.mrb[8].mxu1  ;;  %v577_v29 = vpop.f32.mrb[9].mxu0 }
  0xf7   : > { %1623 = vst [vmem:[%s1909_s25 + $0x98] sm:$0xff] %v1543_v23   ;;  %1606 = vst [vmem:[%s1909_s25 + $0x10] sm:$0xff] %v1458_v24   ;;  %v714_v30 = vadd.f32 %v1713_v28, %v1894_v33  ;;  %v578_v31 = vadd.f32 %v1894_v33, %v577_v29  ;;  %v705_v32 = vpop.f32.mrb[9].mxu1  ;;  %v1682_v34 = vpop.f32.mrb[10].mxu0 }
  0xf8   : > { %1622 = vst [vmem:[%s1909_s25 + $0x90] sm:$0xff] %v1538_v26   ;;  %v706_v35 = vadd.f32 %v1894_v33, %v705_v32  ;;  %v589_v36 = vadd.f32 %v1682_v34, %v1894_v33  ;;  %v1714_v37 = vpop.f32.mrb[10].mxu1  ;;  %v580_v38 = vpop.f32.mrb[11].mxu0  ;;  %v810_v42 = vmax.f32 %v586_v27, 0.0 }
  0xf9   : > { %v717_v39 = vadd.f32 %v1714_v37, %v1894_v33  ;;  %v581_v40 = vadd.f32 %v1894_v33, %v580_v38  ;;  %v708_v41 = vpop.f32.mrb[11].mxu1  ;;  %v842_v45 = vmax.f32 %v714_v30, 0.0  ;;  %v808_v46 = vmax.f32 %v578_v31, 0.0 }
  0xfa   : > { %v811_v43 = vmax.f32 %v589_v36, 0.0  ;;  %v709_v44 = vadd.f32 %v1894_v33, %v708_v41  ;;  %v840_v49 = vmax.f32 %v706_v35, 0.0 }
  0xfb   : > { %v843_v47 = vmax.f32 %v717_v39, 0.0  ;;  %v809_v48 = vmax.f32 %v581_v40, 0.0 }
  0xfc   : > { %v1473_v50 = vpack.c.bf16 %v811_v43, %v810_v42  ;;  %v841_v51 = vmax.f32 %v709_v44, 0.0 }
  0xfd   : > { %v1553_v52 = vpack.c.bf16 %v843_v47, %v842_v45  ;;  %v1468_v53 = vpack.c.bf16 %v809_v48, %v808_v46  ;;  %v1685_v54 = vpop.f32.mrb[12].mxu0 }
  0xfe   : > { %1609 = vst [vmem:[%s1909_s25 + $0x28] sm:$0xff] %v1473_v50   ;;  %v1548_v55 = vpack.c.bf16 %v841_v51, %v840_v49  ;;  %v602_v56 = vadd.f32 %v1685_v54, %v1894_v33  ;;  %v1717_v57 = vpop.f32.mrb[12].mxu1  ;;  %v593_v58 = vpop.f32.mrb[13].mxu0 }
  0xff   : > { %1625 = vst [vmem:[%s1909_s25 + $0xa8] sm:$0xff] %v1553_v52   ;;  %1608 = vst [vmem:[%s1909_s25 + $0x20] sm:$0xff] %v1468_v53   ;;  %v730_v59 = vadd.f32 %v1717_v57, %v1894_v33  ;;  %v594_v60 = vadd.f32 %v1894_v33, %v593_v58  ;;  %v721_v61 = vpop.f32.mrb[13].mxu1  ;;  %v1686_v62 = vpop.f32.mrb[14].mxu0 }
 0x100   : > { %1624 = vst [vmem:[%s1909_s25 + $0xa0] sm:$0xff] %v1548_v55   ;;  %v722_v63 = vadd.f32 %v1894_v33, %v721_v61  ;;  %v605_v0 = vadd.f32 %v1686_v62, %v1894_v33  ;;  %v1718_v1 = vpop.f32.mrb[14].mxu1  ;;  %v596_v2 = vpop.f32.mrb[15].mxu0  ;;  %v814_v6 = vmax.f32 %v602_v56, 0.0 }
 0x101   : > { %v733_v3 = vadd.f32 %v1718_v1, %v1894_v33  ;;  %v597_v4 = vadd.f32 %v1894_v33, %v596_v2  ;;  %v724_v5 = vpop.f32.mrb[15].mxu1  ;;  %v846_v9 = vmax.f32 %v730_v59, 0.0  ;;  %v812_v10 = vmax.f32 %v594_v60, 0.0 }
 0x102   : > { %v815_v7 = vmax.f32 %v605_v0, 0.0  ;;  %v725_v8 = vadd.f32 %v1894_v33, %v724_v5  ;;  %v844_v13 = vmax.f32 %v722_v63, 0.0 }
 0x103   : > { %v847_v11 = vmax.f32 %v733_v3, 0.0  ;;  %v813_v12 = vmax.f32 %v597_v4, 0.0 }
 0x104   : > { %v1483_v14 = vpack.c.bf16 %v815_v7, %v814_v6  ;;  %v845_v15 = vmax.f32 %v725_v8, 0.0 }
 0x105   : > { %v1563_v16 = vpack.c.bf16 %v847_v11, %v846_v9  ;;  %v1478_v17 = vpack.c.bf16 %v813_v12, %v812_v10  ;;  %v1689_v18 = vpop.f32.mrb[16].mxu0 }
 0x106   : > { %1611 = vst [vmem:[%s1909_s25 + $0x38] sm:$0xff] %v1483_v14   ;;  %v1558_v19 = vpack.c.bf16 %v845_v15, %v844_v13  ;;  %v618_v20 = vadd.f32 %v1689_v18, %v1894_v33  ;;  %v1721_v21 = vpop.f32.mrb[16].mxu1  ;;  %v609_v22 = vpop.f32.mrb[17].mxu0 }
 0x107   : > { %1627 = vst [vmem:[%s1909_s25 + $0xb8] sm:$0xff] %v1563_v16   ;;  %1610 = vst [vmem:[%s1909_s25 + $0x30] sm:$0xff] %v1478_v17   ;;  %v746_v23 = vadd.f32 %v1721_v21, %v1894_v33  ;;  %v610_v24 = vadd.f32 %v1894_v33, %v609_v22  ;;  %v737_v25 = vpop.f32.mrb[17].mxu1  ;;  %v1690_v26 = vpop.f32.mrb[18].mxu0 }
 0x108   : > { %1626 = vst [vmem:[%s1909_s25 + $0xb0] sm:$0xff] %v1558_v19   ;;  %v738_v27 = vadd.f32 %v1894_v33, %v737_v25  ;;  %v621_v28 = vadd.f32 %v1690_v26, %v1894_v33  ;;  %v1722_v29 = vpop.f32.mrb[18].mxu1  ;;  %v612_v30 = vpop.f32.mrb[19].mxu0  ;;  %v818_v35 = vmax.f32 %v618_v20, 0.0 }
 0x109   : > { %v749_v31 = vadd.f32 %v1722_v29, %v1894_v33  ;;  %v613_v32 = vadd.f32 %v1894_v33, %v612_v30  ;;  %v740_v34 = vpop.f32.mrb[19].mxu1  ;;  %v850_v38 = vmax.f32 %v746_v23, 0.0  ;;  %v816_v39 = vmax.f32 %v610_v24, 0.0 }
 0x10a   : > { %v819_v36 = vmax.f32 %v621_v28, 0.0  ;;  %v741_v37 = vadd.f32 %v1894_v33, %v740_v34  ;;  %v848_v42 = vmax.f32 %v738_v27, 0.0 }
 0x10b   : > { %v851_v40 = vmax.f32 %v749_v31, 0.0  ;;  %v817_v41 = vmax.f32 %v613_v32, 0.0 }
 0x10c   : > { %v1493_v43 = vpack.c.bf16 %v819_v36, %v818_v35  ;;  %v849_v44 = vmax.f32 %v741_v37, 0.0 }
 0x10d   : > { %v1573_v45 = vpack.c.bf16 %v851_v40, %v850_v38  ;;  %v1488_v46 = vpack.c.bf16 %v817_v41, %v816_v39  ;;  %v1693_v47 = vpop.f32.mrb[20].mxu0 }
 0x10e   : > { %1613 = vst [vmem:[%s1909_s25 + $0x48] sm:$0xff] %v1493_v43   ;;  %v1568_v48 = vpack.c.bf16 %v849_v44, %v848_v42  ;;  %v634_v49 = vadd.f32 %v1693_v47, %v1894_v33  ;;  %v1725_v50 = vpop.f32.mrb[20].mxu1  ;;  %v625_v51 = vpop.f32.mrb[21].mxu0 }
 0x10f   : > { %1629 = vst [vmem:[%s1909_s25 + $0xc8] sm:$0xff] %v1573_v45   ;;  %1612 = vst [vmem:[%s1909_s25 + $0x40] sm:$0xff] %v1488_v46   ;;  %v762_v52 = vadd.f32 %v1725_v50, %v1894_v33  ;;  %v626_v53 = vadd.f32 %v1894_v33, %v625_v51  ;;  %v753_v54 = vpop.f32.mrb[21].mxu1  ;;  %v1694_v55 = vpop.f32.mrb[22].mxu0 }
 0x110   : > { %1628 = vst [vmem:[%s1909_s25 + $0xc0] sm:$0xff] %v1568_v48   ;;  %v754_v56 = vadd.f32 %v1894_v33, %v753_v54  ;;  %v637_v57 = vadd.f32 %v1694_v55, %v1894_v33  ;;  %v1726_v58 = vpop.f32.mrb[22].mxu1  ;;  %v628_v59 = vpop.f32.mrb[23].mxu0  ;;  %v822_v63 = vmax.f32 %v634_v49, 0.0 }
 0x111   : > { %v765_v60 = vadd.f32 %v1726_v58, %v1894_v33  ;;  %v629_v61 = vadd.f32 %v1894_v33, %v628_v59  ;;  %v756_v62 = vpop.f32.mrb[23].mxu1  ;;  %v854_v2 = vmax.f32 %v762_v52, 0.0  ;;  %v820_v3 = vmax.f32 %v626_v53, 0.0 }
 0x112   : > { %v823_v0 = vmax.f32 %v637_v57, 0.0  ;;  %v757_v1 = vadd.f32 %v1894_v33, %v756_v62  ;;  %v852_v6 = vmax.f32 %v754_v56, 0.0 }
 0x113   : > { %v855_v4 = vmax.f32 %v765_v60, 0.0  ;;  %v821_v5 = vmax.f32 %v629_v61, 0.0 }
 0x114   : > { %v1503_v7 = vpack.c.bf16 %v823_v0, %v822_v63  ;;  %v853_v8 = vmax.f32 %v757_v1, 0.0 }
 0x115   : > { %v1583_v9 = vpack.c.bf16 %v855_v4, %v854_v2  ;;  %v1498_v10 = vpack.c.bf16 %v821_v5, %v820_v3  ;;  %v1697_v11 = vpop.f32.mrb[24].mxu0 }
 0x116   : > { %1615 = vst [vmem:[%s1909_s25 + $0x58] sm:$0xff] %v1503_v7   ;;  %v1578_v12 = vpack.c.bf16 %v853_v8, %v852_v6  ;;  %v650_v13 = vadd.f32 %v1697_v11, %v1894_v33  ;;  %v1729_v14 = vpop.f32.mrb[24].mxu1  ;;  %v641_v15 = vpop.f32.mrb[25].mxu0 }
 0x117   : > { %1631 = vst [vmem:[%s1909_s25 + $0xd8] sm:$0xff] %v1583_v9   ;;  %1614 = vst [vmem:[%s1909_s25 + $0x50] sm:$0xff] %v1498_v10   ;;  %v778_v16 = vadd.f32 %v1729_v14, %v1894_v33  ;;  %v642_v17 = vadd.f32 %v1894_v33, %v641_v15  ;;  %v769_v18 = vpop.f32.mrb[25].mxu1  ;;  %v1698_v19 = vpop.f32.mrb[26].mxu0 }
 0x118   : > { %1630 = vst [vmem:[%s1909_s25 + $0xd0] sm:$0xff] %v1578_v12   ;;  %v770_v20 = vadd.f32 %v1894_v33, %v769_v18  ;;  %v653_v21 = vadd.f32 %v1698_v19, %v1894_v33  ;;  %v1730_v22 = vpop.f32.mrb[26].mxu1  ;;  %v644_v23 = vpop.f32.mrb[27].mxu0  ;;  %v826_v27 = vmax.f32 %v650_v13, 0.0 }
 0x119   : > { %v781_v24 = vadd.f32 %v1730_v22, %v1894_v33  ;;  %v645_v25 = vadd.f32 %v1894_v33, %v644_v23  ;;  %v772_v26 = vpop.f32.mrb[27].mxu1  ;;  %v858_v30 = vmax.f32 %v778_v16, 0.0  ;;  %v824_v31 = vmax.f32 %v642_v17, 0.0 }
 0x11a   : > { %v827_v28 = vmax.f32 %v653_v21, 0.0  ;;  %v773_v29 = vadd.f32 %v1894_v33, %v772_v26  ;;  %v856_v35 = vmax.f32 %v770_v20, 0.0 }
 0x11b   : > { %v859_v32 = vmax.f32 %v781_v24, 0.0  ;;  %v825_v34 = vmax.f32 %v645_v25, 0.0 }
 0x11c   : > { %v1513_v36 = vpack.c.bf16 %v827_v28, %v826_v27  ;;  %v857_v37 = vmax.f32 %v773_v29, 0.0 }
 0x11d   : > { %v1593_v38 = vpack.c.bf16 %v859_v32, %v858_v30  ;;  %v1508_v39 = vpack.c.bf16 %v825_v34, %v824_v31  ;;  %v1701_v40 = vpop.f32.mrb[28].mxu0 }
 0x11e   : > { %1617 = vst [vmem:[%s1909_s25 + $0x68] sm:$0xff] %v1513_v36   ;;  %v1588_v41 = vpack.c.bf16 %v857_v37, %v856_v35  ;;  %v666_v42 = vadd.f32 %v1701_v40, %v1894_v33  ;;  %v1733_v43 = vpop.f32.mrb[28].mxu1  ;;  %v657_v44 = vpop.f32.mrb[29].mxu0 }
 0x11f   : > { %1633 = vst [vmem:[%s1909_s25 + $0xe8] sm:$0xff] %v1593_v38   ;;  %1616 = vst [vmem:[%s1909_s25 + $0x60] sm:$0xff] %v1508_v39   ;;  %v794_v45 = vadd.f32 %v1733_v43, %v1894_v33  ;;  %v658_v46 = vadd.f32 %v1894_v33, %v657_v44  ;;  %v785_v47 = vpop.f32.mrb[29].mxu1  ;;  %v1702_v48 = vpop.f32.mrb[30].mxu0 }
 0x120   : > { %1632 = vst [vmem:[%s1909_s25 + $0xe0] sm:$0xff] %v1588_v41   ;;  %v786_v49 = vadd.f32 %v1894_v33, %v785_v47  ;;  %v669_v50 = vadd.f32 %v1702_v48, %v1894_v33  ;;  %v1734_v51 = vpop.f32.mrb[30].mxu1  ;;  %v660_v52 = vpop.f32.mrb[31].mxu0  ;;  %v830_v56 = vmax.f32 %v666_v42, 0.0 }
 0x121   : > { %v797_v53 = vadd.f32 %v1734_v51, %v1894_v33  ;;  %v661_v54 = vadd.f32 %v1894_v33, %v660_v52  ;;  %v788_v55 = vpop.f32.mrb[31].mxu1  ;;  %v862_v59 = vmax.f32 %v794_v45, 0.0  ;;  %v828_v60 = vmax.f32 %v658_v46, 0.0 }
 0x122   : > { %v831_v57 = vmax.f32 %v669_v50, 0.0  ;;  %v789_v58 = vadd.f32 %v1894_v33, %v788_v55  ;;  %v860_v63 = vmax.f32 %v786_v49, 0.0 }
 0x123   : > { %v863_v61 = vmax.f32 %v797_v53, 0.0  ;;  %v829_v62 = vmax.f32 %v661_v54, 0.0 }
 0x124   : > { %v1523_v0 = vpack.c.bf16 %v831_v57, %v830_v56  ;;  %v861_v1 = vmax.f32 %v789_v58, 0.0 }
 0x125   : > { %v1603_v2 = vpack.c.bf16 %v863_v61, %v862_v59  ;;  %v1518_v3 = vpack.c.bf16 %v829_v62, %v828_v60 }
 0x126   : > { %1619 = vst [vmem:[%s1909_s25 + $0x78] sm:$0xff] %v1523_v0   ;;  %v1598_v4 = vpack.c.bf16 %v861_v1, %v860_v63 }
 0x127   : > { %1635 = vst [vmem:[%s1909_s25 + $0xf8] sm:$0xff] %v1603_v2   ;;  %1618 = vst [vmem:[%s1909_s25 + $0x70] sm:$0xff] %v1518_v3  }
 0x128   : > { %1634 = vst [vmem:[%s1909_s25 + $0xf0] sm:$0xff] %v1598_v4  }
 0x129 PF: > { %s13_s12 = sadd.s32 1, %s1784_s12  }
 0x12a   : > { %p10_p4 = scmp.ge.s32.totalorder %s13_s12, 6  }
 0x12c   :  { %12 = sbr.rel (!%p10_p4) target bundleno = 1 (0x1), region = 62 }

// kernel: _lambda_.10
= control target key start
LH: loop header
LB: loop body
LE: loop exit
PB: predicated region body
PF: predicated region fallthrough
CT: control target
= control target key end

     0   :  { %s6720_s12 = smov 0   ;;  %s6722_s13 = smov 0   ;;  %s7985_s0 = inlined_call_operand.vmem [shape: bf16[2,1088,528], index: 0, kind: input, shape index: {}]   ;;  %s7986_s1 = inlined_call_operand.vmem [shape: bf16[3,528,128], index: 1, kind: input, shape index: {}]   ;;  %s7987_s2 = inlined_call_operand.vmem [shape: f32[1,128], index: 2, kind: input, shape index: {}]   ;;  %s7988_s3 = inlined_call_operand.vmem [shape: bf16[2,1024,128], index: 3, kind: output, shape index: {}]  }
   0x1   :  { %s6724_s14 = smov 0   ;;  %s6726_s15 = smov 0  }
   0x2   :  { %s6728_s16 = smov 0  }
   0x3 LB: > { %s22_s17 = sadd.s32 1, %s6690_s14  ;;  %s25_s18 = sadd.s32 1, %s6694_s15  ;;  %s6698_s16 = sphi %s6728_s16, %s13_s16   ;;  %s6694_s15 = sphi %s6726_s15, %s8032_s15   ;;  %s6690_s14 = sphi %s6724_s14, %s8031_s14   ;;  %s6686_s13 = sphi %s6722_s13, %s8030_s13   ;;  %s6682_s12 = sphi %s6720_s12, %s8029_s12  }
   0x4   : > { %p23_p0 = scmp.ge.s32.totalorder %s22_s17, 4  ;;  %p4449_p1 = scmp.ge.s32.totalorder %s6698_s16, 1 }
   0x5   : > { %p151_p2 = scmp.lt.s32.totalorder %s6698_s16, 9 }
   0x6   : > { %s8034_s17 = smov (%p23_p0, %s22_s17), 0  ;;  %s8036_s18 = smov (!%p23_p0, %s25_s18), %s6694_s15 }
   0x7   : > { %p152_p3 = pnand %p4449_p1, %p151_p2  ;;  %p27_p4 = scmp.ge.s32.totalorder %s8036_s18, 2 }
   0x9   : > { %s8038_s18 = smov (%p27_p4, %s8036_s18), 0  ;;  %155 = sbr.rel (%p152_p3) target bundleno = 751 (0x2ef), region = 32 }
  0x10   : > { %v6225_v0 = vld [vmem:[%s7986_s1 + $0x148] sm:$0xff]   ;;  %p179_p5 = scmp.lt.s32.totalorder %s6686_s13, 1  ;;  %s6759_s23 = sshll.u32 %s6682_s12, 8  ;;  %v6227_v2 = vld [vmem:[%s7986_s1 + $0x150] sm:$0xff]   ;;  %v6229_v4 = vld [vmem:[%s7986_s1 + $0x158] sm:$0xff]   ;;  %vm1132_vm0 = vcmask 130048  }
  0x11   : > { %v6226_v1 = vld [vmem:[%s7986_s1 + $0x108] sm:$0xff]   ;;  %5151 = vmatprep.subr.bf16.mxu0 %v6225_v0  ;;  %5976 = vmatprep.subr.bf16.mxu1 %v6225_v0  ;;  %v6228_v3 = vld [vmem:[%s7986_s1 + $0x110] sm:$0xff]   ;;  %s5017_s30 = sadd.s32 32, %s6759_s23  ;;  %v6230_v5 = vld [vmem:[%s7986_s1 + $0x118] sm:$0xff]   ;;  %s196_s24 = sshra.s32 %s6759_s23, 3 }
  0x12   : > { %s8040_s13 = smov (!%p179_p5, %s6686_s13), 1  ;;  %5152 = vmatpush3.bf16.msra.mxu0 %v6226_v1  ;;  %5984 = vmatpush3.bf16.msra.mxu1 %v6226_v1  ;;  %s366_s7 = sshra.s32 %s5017_s30, 3  ;;  %v6231_v6 = vld [vmem:[%s7986_s1 + $0x160] sm:$0xff]   ;;  %v6233_v8 = vld [vmem:[%s7986_s1 + $0x168] sm:$0xff]   ;;  %v6235_v10 = vld [vmem:[%s7986_s1 + $0x170] sm:$0xff]  }
  0x13   : > { %5153 = vmatprep.subr.bf16.mxu0 %v6227_v2  ;;  %5977 = vmatprep.subr.bf16.mxu1 %v6227_v2  ;;  %s6184_s4 = smul.u32 2720, %s8040_s13  ;;  %v6232_v7 = vld [vmem:[%s7986_s1 + $0x120] sm:$0xff]   ;;  %v6234_v9 = vld [vmem:[%s7986_s1 + $0x128] sm:$0xff]   ;;  %v6236_v13 = vld [vmem:[%s7986_s1 + $0x130] sm:$0xff]  }
  0x14   : > { %s5018_s10 = smul.u32 20, %s366_s7  ;;  %v6237_v14 = vld [vmem:[%s7986_s1 + $0x178] sm:$0xff]   ;;  %v6239_v16 = vld [vmem:[%s7986_s1 + $0x180] sm:$0xff]   ;;  %v6247_v18 = vld [vmem:[%s7986_s1 + $0x1c8] sm:$0xff]  }
  0x15   : > { %s6786_s22 = scalar_lea.vmem %s7985_s0, %s6184_s4  ;;  %v6238_v15 = vld [vmem:[%s7986_s1 + $0x138] sm:$0xff]   ;;  %v6240_v17 = vld [vmem:[%s7986_s1 + $0x140] sm:$0xff]   ;;  %v6249_v19 = vld [vmem:[%s7986_s1 + $0x208] sm:$0xff]   ;;  %s5015_s30 = smul.u32 20, %s196_s24 }
  0x16   : > { %5154 = vmatpush3.bf16.msra.mxu0 %v6228_v3  ;;  %5985 = vmatpush3.bf16.msra.mxu1 %v6228_v3  ;;  %s6792_s26 = scalar_lea.vmem %s6786_s22, %s5018_s10  ;;  %v6248_v22 = vld [vmem:[%s7986_s1 + $0x188] sm:$0xff]   ;;  %v6256_v25 = vld [vmem:[%s7986_s1 + $0x1d0] sm:$0xff]   ;;  %v6270_v29 = vld [vmem:[%s7986_s1 + $0x1d8] sm:$0xff]   ;;  %s5020_s4 = sadd.s32 64, %s6759_s23 }
  0x17   : > { %5155 = vmatprep.subr.bf16.mxu0 %v6229_v4  ;;  %5978 = vmatprep.subr.bf16.mxu1 %v6229_v4  ;;  %v6243_v11 = vld [vmem:[%s6792_s26 + $0x4] ss:$20 sps:$4 sm:$0xff]   ;;  %v6241_v20 = vld [vmem:[%s6792_s26] ss:$20 sps:$4 sm:$0xff]   ;;  %v6254_v27 = vld [vmem:[%s6792_s26 + $0x28] ss:$20 sps:$4 sm:$0xff]   ;;  %s6946_s8 = scalar_lea.vmem %s6786_s22, %s5015_s30 }
  0x18   : > { %v6246_v12 = vld [vmem:[%s6792_s26 + $0xa4] ss:$20 sps:$4 sm:$0xff]   ;;  %1213 = vmatprep.mubr.bf16.mxu0 %v6243_v11  ;;  %v6244_v21 = vld [vmem:[%s6792_s26 + $0xa0] ss:$20 sps:$4 sm:$0xff]   ;;  %v6255_v28 = vld [vmem:[%s6792_s26 + $0xc8] ss:$20 sps:$4 sm:$0xff]  }
  0x19   : > { %1245 = vmatprep.mubr.bf16.mxu1 %v6246_v12  ;;  %v6250_v23 = vld [vmem:[%s6792_s26 + $0x2c] ss:$20 sps:$4 sm:$0xff]   ;;  %v6257_v26 = vld [vmem:[%s7986_s1 + $0x190] sm:$0xff]   ;;  %v6271_v33 = vld [vmem:[%s7986_s1 + $0x198] sm:$0xff]   ;;  %s2795_s5 = sshra.s32 %s5020_s4, 3 }
  0x1a   : > { %5156 = vmatpush3.bf16.msra.mxu0 %v6230_v5  ;;  %5986 = vmatpush3.bf16.msra.mxu1 %v6230_v5  ;;  %v6252_v24 = vld [vmem:[%s6792_s26 + $0xcc] ss:$20 sps:$4 sm:$0xff]   ;;  %v6258_v30 = vld [vmem:[%s6792_s26 + $0x54] ss:$20 sps:$4 sm:$0xff]   ;;  %v6262_v35 = vld [vmem:[%s6792_s26 + $0x50] ss:$20 sps:$4 sm:$0xff]  }
  0x1b   : > { %5157 = vmatprep.subr.bf16.mxu0 %v6231_v6  ;;  %5979 = vmatprep.subr.bf16.mxu1 %v6231_v6  ;;  %v6260_v31 = vld [vmem:[%s6792_s26 + $0xf4] ss:$20 sps:$4 sm:$0xff]   ;;  %v6279_v32 = vld [vmem:[%s7986_s1 + $0xc0] sm:$0xff]   ;;  %v6264_v38 = vld [vmem:[%s6792_s26 + $0x7c] ss:$20 sps:$4 sm:$0xff]   ;;  %s5021_s6 = smul.u32 20, %s2795_s5 }
  0x1c   : > { %v6277_v34 = vld [vmem:[%s7986_s1 + $0x1e0] sm:$0xff]   ;;  %v6266_v39 = vld [vmem:[%s6792_s26 + $0x11c] ss:$20 sps:$4 sm:$0xff]   ;;  %v6292_v40 = vld [vmem:[%s7986_s1 + $0x1e8] sm:$0xff]  }
  0x1d   : > { %v6278_v36 = vld [vmem:[%s7986_s1 + $0x1a0] sm:$0xff]   ;;  %v6294_v41 = vld [vmem:[%s7986_s1 + $0x1a8] sm:$0xff]   ;;  %v6302_v46 = vld [vmem:[%s7986_s1 + $0x1f0] sm:$0xff]   ;;  %s7079_s7 = scalar_lea.vmem %s6786_s22, %s5021_s6 }
  0x1e   : > { %5158 = vmatpush3.bf16.msra.mxu0 %v6232_v7  ;;  %5987 = vmatpush3.bf16.msra.mxu1 %v6232_v7  ;;  %v6263_v37 = vld [vmem:[%s6792_s26 + $0xf0] ss:$20 sps:$4 sm:$0xff]   ;;  %v6268_v42 = vld [vmem:[%s6792_s26 + $0x78] ss:$20 sps:$4 sm:$0xff]   ;;  %v6275_v48 = vld [vmem:[%s6792_s26 + $0x140] ss:$20 sps:$4 sm:$0xff]  }
  0x1f   : > { %5159 = vmatprep.subr.bf16.mxu0 %v6233_v8  ;;  %5980 = vmatprep.subr.bf16.mxu1 %v6233_v8  ;;  %v6269_v43 = vld [vmem:[%s6792_s26 + $0x118] ss:$20 sps:$4 sm:$0xff]   ;;  %v6274_v45 = vld [vmem:[%s6792_s26 + $0x10] ss:$20 sps:$4 sm:$0xff]   ;;  %v6282_v51 = vld [vmem:[%s6792_s26 + $0x60] ss:$20 sps:$4 sm:$0xff]  }
  0x20   : > { %v6272_v44 = vld [vmem:[%s6792_s26 + $0x144] ss:$20 sps:$4 sm:$0xff]   ;;  %v6303_v47 = vld [vmem:[%s7986_s1 + $0x1b0] sm:$0xff]   ;;  %v6280_v50 = vld [vmem:[%s6792_s26 + $0x16c] ss:$20 sps:$4 sm:$0xff]  }
  0x21   : > { %v6276_v49 = vld [vmem:[%s6792_s26 + $0x38] ss:$20 sps:$4 sm:$0xff]   ;;  %v6283_v52 = vld [vmem:[%s7986_s1 + $0x80] sm:$0xff]   ;;  %v6284_v54 = vld [vmem:[%s6792_s26 + $0x168] ss:$20 sps:$4 sm:$0xff]  }
  0x22   : > { %5160 = vmatpush3.bf16.msra.mxu0 %v6234_v9  ;;  %5988 = vmatpush3.bf16.msra.mxu1 %v6234_v9  ;;  %v6286_v53 = vld [vmem:[%s7986_s1 + $0xc8] sm:$0xff]   ;;  %v6295_v57 = vld [vmem:[%s7986_s1 + $0xd0] sm:$0xff]   ;;  %v6317_v59 = vld [vmem:[%s7986_s1 + $0x1f8] sm:$0xff]  }
  0x23   : > { %5161 = vmatprep.subr.bf16.mxu0 %v6235_v10  ;;  %5981 = vmatprep.subr.bf16.mxu1 %v6235_v10  ;;  %v6285_v55 = vld [vmem:[%s6792_s26 + $0x88] ss:$20 sps:$4 sm:$0xff]   ;;  %v6289_v60 = vld [vmem:[%s6792_s26 + $0xb0] ss:$20 sps:$4 sm:$0xff]   ;;  %v6293_v2 = vld [vmem:[%s6792_s26 + $0xd8] ss:$20 sps:$4 sm:$0xff]  }
  0x24   : > { %v6290_v56 = vld [vmem:[%s7986_s1 + $0x88] sm:$0xff]   ;;  %v6319_v61 = vld [vmem:[%s7986_s1 + $0x1b8] sm:$0xff]   ;;  %v6299_v62 = vld [vmem:[%s7986_s1 + $0x90] sm:$0xff]  }
  0x25   : > { %v6287_v58 = vld [vmem:[%s6792_s26 + $0x194] ss:$20 sps:$4 sm:$0xff]   ;;  %v6304_v63 = vld [vmem:[%s7986_s1 + $0xd8] sm:$0xff]   ;;  %v6291_v1 = vld [vmem:[%s6792_s26 + $0x190] ss:$20 sps:$4 sm:$0xff]  }
  0x26   : > { %5162 = vmatpush3.bf16.msra.mxu0 %v6236_v13  ;;  %5989 = vmatpush3.bf16.msra.mxu1 %v6236_v13  ;;  %v6308_v0 = vld [vmem:[%s7986_s1 + $0x98] sm:$0xff]   ;;  %v6311_v3 = vld [vmem:[%s7986_s1 + $0xe0] sm:$0xff]   ;;  %v6320_v9 = vld [vmem:[%s7986_s1 + $0xe8] sm:$0xff]  }
  0x27   : > { %5163 = vmatprep.subr.bf16.mxu0 %v6237_v14  ;;  %5982 = vmatprep.subr.bf16.mxu1 %v6237_v14  ;;  %v6296_v4 = vld [vmem:[%s6792_s26 + $0x1bc] ss:$20 sps:$4 sm:$0xff]   ;;  %v6327_v5 = vld [vmem:[%s7986_s1 + $0x200] sm:$0xff]   ;;  %v6300_v10 = vld [vmem:[%s6792_s26 + $0x1b8] ss:$20 sps:$4 sm:$0xff]  }
  0x28   : > { %v6328_v6 = vld [vmem:[%s7986_s1 + $0x1c0] sm:$0xff]   ;;  %v6324_v11 = vld [vmem:[%s7986_s1 + $0xa8] sm:$0xff]   ;;  %v6329_v12 = vld [vmem:[%s7986_s1 + $0xf0] sm:$0xff]  }
  0x29   : > { %v6298_v7 = vld [vmem:[%s6792_s26 + $0x100] ss:$20 sps:$4 sm:$0xff]   ;;  %v6301_v13 = vld [vmem:[%s6792_s26 + $0x128] ss:$20 sps:$4 sm:$0xff]   ;;  %v6305_v14 = vld [vmem:[%s6792_s26 + $0x1e4] ss:$20 sps:$4 sm:$0xff]  }
  0x2a   : > { %5164 = vmatpush3.bf16.msra.mxu0 %v6238_v15  ;;  %5990 = vmatpush3.bf16.msra.mxu1 %v6238_v15  ;;  %v6315_v8 = vld [vmem:[%s7986_s1 + $0xa0] sm:$0xff]  }
  0x2b   : > { %5165 = vmatprep.subr.bf16.mxu0 %v6239_v16  ;;  %5983 = vmatprep.subr.bf16.mxu1 %v6239_v16  ;;  %v6307_v15 = vld [vmem:[%s6792_s26 + $0x150] ss:$20 sps:$4 sm:$0xff]  }
  0x2c   : > { %v6333_v16 = vld [vmem:[%s7986_s1 + $0xb0] sm:$0xff]  }
  0x2e   : > { %5166 = vmatpush3.bf16.msra.mxu0 %v6240_v17  ;;  %5991 = vmatpush3.bf16.msra.mxu1 %v6240_v17  ;;  %v6336_v17 = vld [vmem:[%s7986_s1 + $0xf8] sm:$0xff]  }
  0x2f   : > { %5263 = vmatprep.subr.bf16.mxu1 %v6247_v18  ;;  %5874 = vmatprep.subr.bf16.mxu0 %v6249_v19  ;;  %v6344_v18 = vld [vmem:[%s7986_s1 + $0x40] sm:$0xff]  }
  0x31   : > { %1214 = vmatmul.mubr.bf16.vlgmr.msra.gmra.mrb[0].mxu0 %v6241_v20  ;;  %1246 = vmatmul.mubr.bf16.vlgmr.msra.gmra.mrb[0].mxu1 %v6244_v21  ;;  %v6337_v20 = vld [vmem:[%s7986_s1 + $0xb8] sm:$0xff]   ;;  %v6346_v21 = vld [vmem:[%s7986_s1 + $0x100] sm:$0xff]  }
  0x32   : > { %5264 = vmatpush3.bf16.msra.mxu1 %v6248_v22  ;;  %1221 = vmatprep.mubr.bf16.mxu0 %v6250_v23  ;;  %v6310_v22 = vld [vmem:[%s6792_s26 + $0x178] ss:$20 sps:$4 sm:$0xff]  }
  0x33   : > { %1253 = vmatprep.mubr.bf16.mxu1 %v6252_v24  ;;  %5875 = vmatpush3.bf16.msra.mxu0 %v6249_v19  ;;  %v6309_v19 = vld [vmem:[%s6792_s26 + $0x1e0] ss:$20 sps:$4 sm:$0xff]  }
  0x34   : > { %5265 = vmatprep.subr.bf16.mxu1 %v6256_v25  ;;  %5504 = vmatprep.subr.bf16.mxu0 %v6279_v32  ;;  %v6312_v23 = vld [vmem:[%s6792_s26 + $0x20c] ss:$20 sps:$4 sm:$0xff]   ;;  %v6316_v25 = vld [vmem:[%s6792_s26 + $0x208] ss:$20 sps:$4 sm:$0xff]  }
  0x35   : > { %v6314_v24 = vld [vmem:[%s6792_s26 + $0x1a0] ss:$20 sps:$4 sm:$0xff]  }
  0x36   : > { %5266 = vmatpush3.bf16.msra.mxu1 %v6257_v26  ;;  %v6318_v26 = vld [vmem:[%s6792_s26 + $0x1c8] ss:$20 sps:$4 sm:$0xff]   ;;  %v6332_v32 = vld [vmem:[%s6792_s26 + $0x240] ss:$20 sps:$4 sm:$0xff]  }
  0x37   : > { %5267 = vmatprep.subr.bf16.mxu1 %v6270_v29  ;;  %v6325_v29 = vld [vmem:[%s6792_s26 + $0x230] ss:$20 sps:$4 sm:$0xff]  }
  0x39   : > { %1222 = vmatmul.mubr.bf16.gmra.mrb[4].mxu0 %v6254_v27  ;;  %1254 = vmatmul.mubr.bf16.gmra.mrb[4].mxu1 %v6255_v28  ;;  %v6321_v27 = vld [vmem:[%s6792_s26 + $0x234] ss:$20 sps:$4 sm:$0xff]   ;;  %v6323_v28 = vld [vmem:[%s6792_s26 + $0x1f0] ss:$20 sps:$4 sm:$0xff]  }
  0x3a   : > { %1229 = vmatprep.mubr.bf16.mxu0 %v6258_v30  ;;  %1261 = vmatprep.mubr.bf16.mxu1 %v6260_v31  ;;  %v6326_v30 = vld [vmem:[%s6792_s26 + $0x218] ss:$20 sps:$4 sm:$0xff]   ;;  %v6330_v31 = vld [vmem:[%s6792_s26 + $0x25c] ss:$20 sps:$4 sm:$0xff]  }
  0x3b   : > { %5268 = vmatpush3.bf16.msra.mxu1 %v6271_v33  ;;  %v6334_v33 = vld [vmem:[%s6792_s26 + $0x258] ss:$20 sps:$4 sm:$0xff]  }
  0x3c   : > { %5269 = vmatprep.subr.bf16.mxu1 %v6277_v34  ;;  %v6335_v34 = vld [vmem:[%s6792_s26 + $0x268] ss:$20 sps:$4 sm:$0xff]  }
  0x3f   : > { %5270 = vmatpush3.bf16.msra.mxu1 %v6278_v36  ;;  %v6343_v36 = vld [vmem:[%s6946_s8 + $0xc] ss:$20 sps:$4 sm:$0xff]  }
  0x40   : > { %5271 = vmatprep.subr.bf16.mxu1 %v6292_v40  ;;  %v6347_v40 = vld [vmem:[%s6792_s26 + $0x34] ss:$20 sps:$4 sm:$0xff]  }
  0x41   : > { %1230 = vmatmul.mubr.bf16.gmra.mrb[8].mxu0 %v6262_v35  ;;  %1262 = vmatmul.mubr.bf16.gmra.mrb[8].mxu1 %v6263_v37  ;;  %v6340_v35 = vld [vmem:[%s6792_s26 + $0xc] ss:$20 sps:$4 sm:$0xff]   ;;  %v6338_v37 = vld [vmem:[%s6792_s26 + $0x8] ss:$20 sps:$4 sm:$0xff]  }
  0x42   : > { %1237 = vmatprep.mubr.bf16.mxu0 %v6264_v38  ;;  %1269 = vmatprep.mubr.bf16.mxu1 %v6266_v39  ;;  %v6341_v38 = vld [vmem:[%s6946_s8 + $0x8] ss:$20 sps:$4 sm:$0xff]   ;;  %v6345_v39 = vld [vmem:[%s7986_s1] sm:$0xff]  }
  0x43   : > { %5272 = vmatpush3.bf16.msra.mxu1 %v6294_v41  ;;  %v6349_v41 = vld [vmem:[%s6946_s8 + $0x34] ss:$20 sps:$4 sm:$0xff]  }
  0x44   : > { %5273 = vmatprep.subr.bf16.mxu1 %v6302_v46  ;;  %v6352_v46 = vld [vmem:[%s6946_s8 + $0x30] ss:$20 sps:$4 sm:$0xff]  }
  0x47   : > { %5274 = vmatpush3.bf16.msra.mxu1 %v6303_v47  ;;  %v6353_v47 = vld [vmem:[%s6792_s26 + $0x5c] ss:$20 sps:$4 sm:$0xff]  }
  0x48   : > { %5275 = vmatprep.subr.bf16.mxu1 %v6317_v59  ;;  %v6365_v59 = vld [vmem:[%s6792_s26 + $0x80] ss:$20 sps:$4 sm:$0xff]  }
  0x49   : > { %1238 = vmatmul.mubr.bf16.gmra.mrb[12].mxu0 %v6268_v42  ;;  %1270 = vmatmul.mubr.bf16.gmra.mrb[12].mxu1 %v6269_v43  ;;  %v6358_v42 = vld [vmem:[%s7986_s1 + $0x48] sm:$0xff]  }
  0x4a   : > { %1277 = vmatprep.mubr.bf16.mxu1 %v6272_v44  ;;  %5876 = vmatprep.mubr.msk.bf16.mxu0 %vm1132_vm0, %v6274_v45  ;;  %v6360_v43 = vld [vmem:[%s7986_s1 + $0x8] sm:$0xff]   ;;  %v6372_v44 = vld [vmem:[%s7986_s1 + $0x50] sm:$0xff]  }
  0x4b   : > { %5276 = vmatpush3.bf16.msra.mxu1 %v6319_v61  ;;  %v6351_v45 = vld [vmem:[%s6792_s26 + $0x30] ss:$20 sps:$4 sm:$0xff]   ;;  %v6416_v61 = vld [vmem:[%s7986_s1 + $0x28] sm:$0xff]  }
  0x4c   : > { %5277 = vmatprep.subr.bf16.mxu1 %v6327_v5  ;;  %v6373_v5 = vld [vmem:[%s6946_s8 + $0xa8] ss:$20 sps:$4 sm:$0xff]  }
  0x4f   : > { %5278 = vmatpush3.bf16.msra.mxu1 %v6328_v6  ;;  %v6444_v6 = vld [vmem:[%s7986_s1 + $0x38] sm:$0xff]  }
  0x50   : > { %5392 = vmatprep.subr.bf16.mxu1 %v6344_v18  ;;  %v6393_v18 = vld [vmem:[%s6792_s26 + $0x120] ss:$20 sps:$4 sm:$0xff]  }
  0x51   : > { %1278 = vmatmul.mubr.bf16.gmra.mrb[16].mxu1 %v6275_v48  ;;  %5877 = vmatmul.mubr.msk.bf16.vlgmr.msra.gmra.mrb[16].mxu0 %vm1132_vm0, %v6276_v49  ;;  %v6355_v48 = vld [vmem:[%s6946_s8 + $0x5c] ss:$20 sps:$4 sm:$0xff]  }
  0x52   : > { %1285 = vmatprep.mubr.bf16.mxu1 %v6280_v50  ;;  %5880 = vmatprep.mubr.msk.bf16.mxu0 %vm1132_vm0, %v6282_v51  ;;  %v6374_v49 = vld [vmem:[%s7986_s1 + $0x10] sm:$0xff]   ;;  %v6386_v50 = vld [vmem:[%s7986_s1 + $0x58] sm:$0xff]  }
  0x53   : > { %5505 = vmatpush3.bf16.msra.mxu0 %v6283_v52  ;;  %v6357_v51 = vld [vmem:[%s6792_s26 + $0x58] ss:$20 sps:$4 sm:$0xff]  }
  0x54   : > { %5506 = vmatprep.subr.bf16.mxu0 %v6286_v53  ;;  %v6359_v52 = vld [vmem:[%s6946_s8 + $0x58] ss:$20 sps:$4 sm:$0xff]  }
  0x55   : > { %v6388_v53 = vld [vmem:[%s7986_s1 + $0x18] sm:$0xff]  }
  0x57   : > { %5507 = vmatpush3.bf16.msra.mxu0 %v6290_v56  ;;  %v6363_v56 = vld [vmem:[%s6946_s8 + $0x84] ss:$20 sps:$4 sm:$0xff]  }
  0x58   : > { %5508 = vmatprep.subr.bf16.mxu0 %v6295_v57  ;;  %v6402_v57 = vld [vmem:[%s7986_s1 + $0x20] sm:$0xff]  }
  0x59   : > { %1286 = vmatmul.mubr.bf16.gmra.mrb[20].mxu1 %v6284_v54  ;;  %5881 = vmatmul.mubr.msk.bf16.gmra.mrb[20].mxu0 %vm1132_vm0, %v6285_v55  ;;  %v6400_v54 = vld [vmem:[%s7986_s1 + $0x60] sm:$0xff]  }
  0x5a   : > { %1293 = vmatprep.mubr.bf16.mxu1 %v6287_v58  ;;  %5884 = vmatprep.mubr.msk.bf16.mxu0 %vm1132_vm0, %v6289_v60  ;;  %v6361_v55 = vld [vmem:[%s6792_s26 + $0x84] ss:$20 sps:$4 sm:$0xff]   ;;  %v6414_v58 = vld [vmem:[%s7986_s1 + $0x68] sm:$0xff]   ;;  %v6366_v60 = vld [vmem:[%s6946_s8 + $0x80] ss:$20 sps:$4 sm:$0xff]  }
  0x5b   : > { %5509 = vmatpush3.bf16.msra.mxu0 %v6299_v62  ;;  %v6367_v62 = vld [vmem:[%s6792_s26 + $0xac] ss:$20 sps:$4 sm:$0xff]  }
  0x5c   : > { %5510 = vmatprep.subr.bf16.mxu0 %v6304_v63  ;;  %v6428_v63 = vld [vmem:[%s7986_s1 + $0x70] sm:$0xff]  }
  0x5f   : > { %5511 = vmatpush3.bf16.msra.mxu0 %v6308_v0  ;;  %v6369_v0 = vld [vmem:[%s6946_s8 + $0xac] ss:$20 sps:$4 sm:$0xff]  }
  0x60   : > { %5512 = vmatprep.subr.bf16.mxu0 %v6311_v3  ;;  %v6442_v3 = vld [vmem:[%s7986_s1 + $0x78] sm:$0xff]  }
  0x61   : > { %1294 = vmatmul.mubr.bf16.gmra.mrb[24].mxu1 %v6291_v1  ;;  %5885 = vmatmul.mubr.msk.bf16.gmra.mrb[24].mxu0 %vm1132_vm0, %v6293_v2  ;;  %v6430_v1 = vld [vmem:[%s7986_s1 + $0x30] sm:$0xff]  }
  0x62   : > { %1301 = vmatprep.mubr.bf16.mxu1 %v6296_v4  ;;  %5888 = vmatprep.mubr.msk.bf16.mxu0 %vm1132_vm0, %v6298_v7  ;;  %v6458_v2 = vld [vmem:[%s7986_s1 + $0x2d0] sm:$0xff]   ;;  %v6371_v4 = vld [vmem:[%s6792_s26 + $0xa8] ss:$20 sps:$4 sm:$0xff]  }
  0x63   : > { %5513 = vmatpush3.bf16.msra.mxu0 %v6315_v8  ;;  %v6456_v7 = vld [vmem:[%s7986_s1 + $0x250] sm:$0xff]  }
  0x64   : > { %5514 = vmatprep.subr.bf16.mxu0 %v6320_v9  ;;  %v6375_v8 = vld [vmem:[%s6792_s26 + $0xd4] ss:$20 sps:$4 sm:$0xff]  }
  0x65   : > { %v6377_v9 = vld [vmem:[%s6946_s8 + $0xd4] ss:$20 sps:$4 sm:$0xff]  }
  0x67   : > { %5515 = vmatpush3.bf16.msra.mxu0 %v6324_v11  ;;  %v6380_v11 = vld [vmem:[%s6946_s8 + $0xd0] ss:$20 sps:$4 sm:$0xff]  }
  0x68   : > { %5516 = vmatprep.subr.bf16.mxu0 %v6329_v12  ;;  %v6381_v12 = vld [vmem:[%s6792_s26 + $0xfc] ss:$20 sps:$4 sm:$0xff]  }
  0x69   : > { %1302 = vmatmul.mubr.bf16.gmra.mrb[28].mxu1 %v6300_v10  ;;  %5889 = vmatmul.mubr.msk.bf16.gmra.mrb[28].mxu0 %vm1132_vm0, %v6301_v13  ;;  %v6379_v10 = vld [vmem:[%s6792_s26 + $0xd0] ss:$20 sps:$4 sm:$0xff]  }
  0x6a   : > { %1309 = vmatprep.mubr.bf16.mxu1 %v6305_v14  ;;  %5892 = vmatprep.mubr.msk.bf16.mxu0 %vm1132_vm0, %v6307_v15  ;;  %v6383_v13 = vld [vmem:[%s6946_s8 + $0xfc] ss:$20 sps:$4 sm:$0xff]   ;;  %v6385_v14 = vld [vmem:[%s6792_s26 + $0xf8] ss:$20 sps:$4 sm:$0xff]  }
  0x6b   : > { %5517 = vmatpush3.bf16.msra.mxu0 %v6333_v16  ;;  %v6387_v15 = vld [vmem:[%s6946_s8 + $0xf8] ss:$20 sps:$4 sm:$0xff]  }
  0x6c   : > { %5518 = vmatprep.subr.bf16.mxu0 %v6336_v17  ;;  %v6389_v16 = vld [vmem:[%s6792_s26 + $0x124] ss:$20 sps:$4 sm:$0xff]  }
  0x6d   : > { %v6391_v17 = vld [vmem:[%s6946_s8 + $0x124] ss:$20 sps:$4 sm:$0xff]  }
  0x6f   : > { %5519 = vmatpush3.bf16.msra.mxu0 %v6337_v20  ;;  %v6395_v20 = vld [vmem:[%s6792_s26 + $0x14c] ss:$20 sps:$4 sm:$0xff]  }
  0x70   : > { %5908 = vmatprep.subr.bf16.mxu0 %v6346_v21 }
  0x71   : > { %1310 = vmatmul.mubr.bf16.gmra.mrb[32].mxu1 %v6309_v19  ;;  %5893 = vmatmul.mubr.msk.bf16.gmra.mrb[32].mxu0 %vm1132_vm0, %v6310_v22  ;;  %v6394_v19 = vld [vmem:[%s6946_s8 + $0x120] ss:$20 sps:$4 sm:$0xff]   ;;  %v6399_v22 = vld [vmem:[%s6792_s26 + $0x148] ss:$20 sps:$4 sm:$0xff]  }
  0x72   : > { %1317 = vmatprep.mubr.bf16.mxu1 %v6312_v23  ;;  %5896 = vmatprep.mubr.msk.bf16.mxu0 %vm1132_vm0, %v6314_v24  ;;  %v6401_v23 = vld [vmem:[%s6946_s8 + $0x148] ss:$20 sps:$4 sm:$0xff]  }
  0x73   : > { %v6403_v24 = vld [vmem:[%s6792_s26 + $0x174] ss:$20 sps:$4 sm:$0xff]  }
  0x79   : > { %1318 = vmatmul.mubr.bf16.gmra.mrb[36].mxu1 %v6316_v25  ;;  %5897 = vmatmul.mubr.msk.bf16.gmra.mrb[36].mxu0 %vm1132_vm0, %v6318_v26  ;;  %v6405_v25 = vld [vmem:[%s6946_s8 + $0x174] ss:$20 sps:$4 sm:$0xff]   ;;  %v6407_v26 = vld [vmem:[%s6792_s26 + $0x170] ss:$20 sps:$4 sm:$0xff]  }
  0x7a   : > { %1325 = vmatprep.mubr.bf16.mxu1 %v6321_v27  ;;  %5900 = vmatprep.mubr.msk.bf16.mxu0 %vm1132_vm0, %v6323_v28  ;;  %v6408_v27 = vld [vmem:[%s6946_s8 + $0x170] ss:$20 sps:$4 sm:$0xff]  }
  0x7b   : > { %v6409_v28 = vld [vmem:[%s6792_s26 + $0x19c] ss:$20 sps:$4 sm:$0xff]  }
  0x81   : > { %1326 = vmatmul.mubr.bf16.gmra.mrb[40].mxu1 %v6325_v29  ;;  %5901 = vmatmul.mubr.msk.bf16.gmra.mrb[40].mxu0 %vm1132_vm0, %v6326_v30  ;;  %v6411_v29 = vld [vmem:[%s6946_s8 + $0x19c] ss:$20 sps:$4 sm:$0xff]   ;;  %v6413_v30 = vld [vmem:[%s6792_s26 + $0x198] ss:$20 sps:$4 sm:$0xff]  }
  0x82   : > { %1333 = vmatprep.mubr.bf16.mxu1 %v6330_v31  ;;  %5904 = vmatprep.mubr.msk.bf16.mxu0 %vm1132_vm0, %v6332_v32  ;;  %v6415_v31 = vld [vmem:[%s6946_s8 + $0x198] ss:$20 sps:$4 sm:$0xff]  }
  0x83   : > { %v6417_v32 = vld [vmem:[%s6792_s26 + $0x1c4] ss:$20 sps:$4 sm:$0xff]  }
  0x89   : > { %1334 = vmatmul.mubr.bf16.gmra.mrb[44].mxu1 %v6334_v33  ;;  %5905 = vmatmul.mubr.msk.bf16.gmra.mrb[44].mxu0 %vm1132_vm0, %v6335_v34  ;;  %v6419_v33 = vld [vmem:[%s6946_s8 + $0x1c4] ss:$20 sps:$4 sm:$0xff]   ;;  %v6421_v34 = vld [vmem:[%s6792_s26 + $0x1c0] ss:$20 sps:$4 sm:$0xff]  }
  0x8a   : > { %1374 = vmatprep.mubr.bf16.mxu1 %v6340_v35  ;;  %2503 = vmatprep.mubr.bf16.mxu0 %v6343_v36  ;;  %v6422_v35 = vld [vmem:[%s6946_s8 + $0x1c0] ss:$20 sps:$4 sm:$0xff]  }
  0x8b   : > { %v6423_v36 = vld [vmem:[%s6792_s26 + $0x1ec] ss:$20 sps:$4 sm:$0xff]  }
  0x91   : > { %1375 = vmatmul.mubr.bf16.vlgmr.msra.gmra.mrb[48].mxu1 %v6338_v37  ;;  %2504 = vmatmul.mubr.bf16.vlgmr.msra.gmra.mrb[48].mxu0 %v6341_v38  ;;  %v6425_v37 = vld [vmem:[%s6946_s8 + $0x1ec] ss:$20 sps:$4 sm:$0xff]   ;;  %v6427_v38 = vld [vmem:[%s6792_s26 + $0x1e8] ss:$20 sps:$4 sm:$0xff]  }
  0x92   : > { %5393 = vmatpush3.bf16.msra.mxu1 %v6345_v39  ;;  %1382 = vmatprep.mubr.bf16.mxu1 %v6347_v40  ;;  %v6429_v39 = vld [vmem:[%s6946_s8 + $0x1e8] ss:$20 sps:$4 sm:$0xff]  }
  0x93   : > { %2511 = vmatprep.mubr.bf16.mxu0 %v6349_v41  ;;  %5909 = vmatpush3.bf16.msra.mxu0 %v6346_v21  ;;  %v6397_v21 = vld [vmem:[%s6946_s8 + $0x14c] ss:$20 sps:$4 sm:$0xff]   ;;  %v6431_v40 = vld [vmem:[%s6792_s26 + $0x214] ss:$20 sps:$4 sm:$0xff]  }
  0x94   : > { %5394 = vmatprep.subr.bf16.mxu1 %v6358_v42  ;;  %5745 = vmatprep.subr.bf16.mxu0 %v6458_v2  ;;  %v6433_v41 = vld [vmem:[%s6946_s8 + $0x214] ss:$20 sps:$4 sm:$0xff]   ;;  %v6435_v42 = vld [vmem:[%s6792_s26 + $0x210] ss:$20 sps:$4 sm:$0xff]  }
  0x95   : > { %v6451_v2 = vld [vmem:[%s6946_s8] ss:$20 sps:$4 sm:$0xff]  }
  0x96   : > { %5395 = vmatpush3.bf16.msra.mxu1 %v6360_v43  ;;  %v6436_v43 = vld [vmem:[%s6946_s8 + $0x210] ss:$20 sps:$4 sm:$0xff]  }
  0x97   : > { %5396 = vmatprep.subr.bf16.mxu1 %v6372_v44  ;;  %v6437_v44 = vld [vmem:[%s6792_s26 + $0x23c] ss:$20 sps:$4 sm:$0xff]  }
  0x99   : > { %1383 = vmatmul.mubr.bf16.gmra.mrb[52].mxu1 %v6351_v45  ;;  %2512 = vmatmul.mubr.bf16.gmra.mrb[52].mxu0 %v6352_v46  ;;  %v6439_v45 = vld [vmem:[%s6946_s8 + $0x23c] ss:$20 sps:$4 sm:$0xff]   ;;  %v6441_v46 = vld [vmem:[%s6792_s26 + $0x238] ss:$20 sps:$4 sm:$0xff]  }
  0x9a   : > { %1390 = vmatprep.mubr.bf16.mxu1 %v6353_v47  ;;  %2519 = vmatprep.mubr.bf16.mxu0 %v6355_v48  ;;  %v6443_v47 = vld [vmem:[%s6946_s8 + $0x238] ss:$20 sps:$4 sm:$0xff]  }
  0x9b   : > { %5397 = vmatpush3.bf16.msra.mxu1 %v6374_v49  ;;  %v6445_v48 = vld [vmem:[%s6792_s26 + $0x264] ss:$20 sps:$4 sm:$0xff]  }
  0x9c   : > { %5398 = vmatprep.subr.bf16.mxu1 %v6386_v50  ;;  %v6447_v49 = vld [vmem:[%s6946_s8 + $0x264] ss:$20 sps:$4 sm:$0xff]   ;;  %v6449_v50 = vld [vmem:[%s6792_s26 + $0x260] ss:$20 sps:$4 sm:$0xff]  }
  0x9f   : > { %5399 = vmatpush3.bf16.msra.mxu1 %v6388_v53 }
  0xa0   : > { %5400 = vmatprep.subr.bf16.mxu1 %v6400_v54 }
  0xa1   : > { %1391 = vmatmul.mubr.bf16.gmra.mrb[56].mxu1 %v6357_v51  ;;  %2520 = vmatmul.mubr.bf16.gmra.mrb[56].mxu0 %v6359_v52  ;;  %v6450_v51 = vld [vmem:[%s6946_s8 + $0x260] ss:$20 sps:$4 sm:$0xff]  }
  0xa2   : > { %1398 = vmatprep.mubr.bf16.mxu1 %v6361_v55  ;;  %2527 = vmatprep.mubr.bf16.mxu0 %v6363_v56 }
  0xa3   : > { %5401 = vmatpush3.bf16.msra.mxu1 %v6402_v57 }
  0xa4   : > { %5402 = vmatprep.subr.bf16.mxu1 %v6414_v58 }
  0xa7   : > { %5403 = vmatpush3.bf16.msra.mxu1 %v6416_v61  ;;  %v6454_v61 = vld [vmem:[%s6946_s8 + $0x10] ss:$20 sps:$4 sm:$0xff]  }
  0xa8   : > { %5404 = vmatprep.subr.bf16.mxu1 %v6428_v63 }
  0xa9   : > { %1399 = vmatmul.mubr.bf16.gmra.mrb[60].mxu1 %v6365_v59  ;;  %2528 = vmatmul.mubr.bf16.gmra.mrb[60].mxu0 %v6366_v60  ;;  %v6453_v60 = vld [vmem:[%s6946_s8 + $0x4] ss:$20 sps:$4 sm:$0xff]  }
  0xaa   : > { %1406 = vmatprep.mubr.bf16.mxu1 %v6367_v62  ;;  %2535 = vmatprep.mubr.bf16.mxu0 %v6369_v0 }
  0xab   : > { %5405 = vmatpush3.bf16.msra.mxu1 %v6430_v1 }
  0xac   : > { %5406 = vmatprep.subr.bf16.mxu1 %v6442_v3  ;;  %v6455_v3 = vld [vmem:[%s6946_s8 + $0x38] ss:$20 sps:$4 sm:$0xff]  }
  0xaf   : > { %5407 = vmatpush3.bf16.msra.mxu1 %v6444_v6 }
  0xb0   : > { %5633 = vmatprep.subr.bf16.mxu1 %v6456_v7 }
  0xb1   : > { %1407 = vmatmul.mubr.bf16.gmra.mrb[64].mxu1 %v6371_v4  ;;  %2536 = vmatmul.mubr.bf16.gmra.mrb[64].mxu0 %v6373_v5 }
  0xb2   : > { %1414 = vmatprep.mubr.bf16.mxu1 %v6375_v8  ;;  %2543 = vmatprep.mubr.bf16.mxu0 %v6377_v9 }
  0xb9   : > { %1415 = vmatmul.mubr.bf16.gmra.mrb[68].mxu1 %v6379_v10  ;;  %2544 = vmatmul.mubr.bf16.gmra.mrb[68].mxu0 %v6380_v11 }
  0xba   : > { %1422 = vmatprep.mubr.bf16.mxu1 %v6381_v12  ;;  %2551 = vmatprep.mubr.bf16.mxu0 %v6383_v13  ;;  %v6457_v12 = vld [vmem:[%s7986_s1 + $0x210] sm:$0xff]   ;;  %v6459_v13 = vld [vmem:[%s6946_s8 + $0x2c] ss:$20 sps:$4 sm:$0xff]  }
  0xc1   : > { %1423 = vmatmul.mubr.bf16.gmra.mrb[72].mxu1 %v6385_v14  ;;  %2552 = vmatmul.mubr.bf16.gmra.mrb[72].mxu0 %v6387_v15 }
  0xc2   : > { %1430 = vmatprep.mubr.bf16.mxu1 %v6389_v16  ;;  %2559 = vmatprep.mubr.bf16.mxu0 %v6391_v17  ;;  %v6461_v16 = vld [vmem:[%s6946_s8 + $0x60] ss:$20 sps:$4 sm:$0xff]  }
  0xc3   : > { %v6462_v17 = vld [vmem:[%s7986_s1 + $0x290] sm:$0xff]  }
  0xc9   : > { %1431 = vmatmul.mubr.bf16.gmra.mrb[76].mxu1 %v6393_v18  ;;  %2560 = vmatmul.mubr.bf16.gmra.mrb[76].mxu0 %v6394_v19 }
  0xca   : > { %1438 = vmatprep.mubr.bf16.mxu1 %v6395_v20  ;;  %2567 = vmatprep.mubr.bf16.mxu0 %v6397_v21  ;;  %v6465_v20 = vld [vmem:[%s7986_s1 + $0x2d8] sm:$0xff]  }
  0xcb   : > { %v6472_v21 = vld [vmem:[%s7986_s1 + $0x258] sm:$0xff]  }
  0xd1   : > { %1439 = vmatmul.mubr.bf16.gmra.mrb[80].mxu1 %v6399_v22  ;;  %2568 = vmatmul.mubr.bf16.gmra.mrb[80].mxu0 %v6401_v23  ;;  %v6473_v22 = vld [vmem:[%s7986_s1 + $0x218] sm:$0xff]  }
  0xd2   : > { %1446 = vmatprep.mubr.bf16.mxu1 %v6403_v24  ;;  %2575 = vmatprep.mubr.bf16.mxu0 %v6405_v25  ;;  %v6469_v23 = vld [vmem:[%s7986_s1 + $0x298] sm:$0xff]   ;;  %v6488_v24 = vld [vmem:[%s7986_s1 + $0x260] sm:$0xff]  }
  0xd9   : > { %1447 = vmatmul.mubr.bf16.gmra.mrb[84].mxu1 %v6407_v26  ;;  %2576 = vmatmul.mubr.bf16.gmra.mrb[84].mxu0 %v6408_v27  ;;  %v6474_v27 = vld [vmem:[%s7986_s1 + $0x2e0] sm:$0xff]  }
  0xda   : > { %1454 = vmatprep.mubr.bf16.mxu1 %v6409_v28  ;;  %2583 = vmatprep.mubr.bf16.mxu0 %v6411_v29 }
  0xe1   : > { %1455 = vmatmul.mubr.bf16.gmra.mrb[88].mxu1 %v6413_v30  ;;  %2584 = vmatmul.mubr.bf16.gmra.mrb[88].mxu0 %v6415_v31  ;;  %v6463_v30 = vld [vmem:[%s6946_s8 + $0x28] ss:$20 sps:$4 sm:$0xff]  }
  0xe2   : > { %1462 = vmatprep.mubr.bf16.mxu1 %v6417_v32  ;;  %2591 = vmatprep.mubr.bf16.mxu0 %v6419_v33  ;;  %v6464_v31 = vld [vmem:[%s6946_s8 + $0x88] ss:$20 sps:$4 sm:$0xff]  }
  0xe9   : > { %1463 = vmatmul.mubr.bf16.gmra.mrb[92].mxu1 %v6421_v34  ;;  %2592 = vmatmul.mubr.bf16.gmra.mrb[92].mxu0 %v6422_v35 }
  0xea   : > { %1470 = vmatprep.mubr.bf16.mxu1 %v6423_v36  ;;  %2599 = vmatprep.mubr.bf16.mxu0 %v6425_v37  ;;  %v6466_v36 = vld [vmem:[%s6946_s8 + $0x54] ss:$20 sps:$4 sm:$0xff]   ;;  %v6468_v37 = vld [vmem:[%s6946_s8 + $0xb0] ss:$20 sps:$4 sm:$0xff]  }
  0xf1   : > { %1471 = vmatmul.mubr.bf16.gmra.mrb[96].mxu1 %v6427_v38  ;;  %2600 = vmatmul.mubr.bf16.gmra.mrb[96].mxu0 %v6429_v39 }
  0xf2   : > { %1478 = vmatprep.mubr.bf16.mxu1 %v6431_v40  ;;  %2607 = vmatprep.mubr.bf16.mxu0 %v6433_v41  ;;  %v6478_v40 = vld [vmem:[%s7986_s1 + $0x2a0] sm:$0xff]  }
  0xf3   : > { %v6489_v41 = vld [vmem:[%s7986_s1 + $0x220] sm:$0xff]  }
  0xf9   : > { %1479 = vmatmul.mubr.bf16.gmra.mrb[100].mxu1 %v6435_v42  ;;  %2608 = vmatmul.mubr.bf16.gmra.mrb[100].mxu0 %v6436_v43 }
  0xfa   : > { %1486 = vmatprep.mubr.bf16.mxu1 %v6437_v44  ;;  %2615 = vmatprep.mubr.bf16.mxu0 %v6439_v45  ;;  %v6481_v44 = vld [vmem:[%s7986_s1 + $0x2e8] sm:$0xff]  }
  0xfb   : > { %v6504_v45 = vld [vmem:[%s7986_s1 + $0x268] sm:$0xff]  }
 0x101   : > { %1487 = vmatmul.mubr.bf16.gmra.mrb[104].mxu1 %v6441_v46  ;;  %2616 = vmatmul.mubr.bf16.gmra.mrb[104].mxu0 %v6443_v47  ;;  %v6485_v46 = vld [vmem:[%s7986_s1 + $0x2a8] sm:$0xff]  }
 0x102   : > { %1494 = vmatprep.mubr.bf16.mxu1 %v6445_v48  ;;  %2623 = vmatprep.mubr.bf16.mxu0 %v6447_v49  ;;  %v6505_v47 = vld [vmem:[%s7986_s1 + $0x228] sm:$0xff]  }
 0x104   : > { %v5191_v52 = vpop.f32.mrb[0].mxu1  ;;  %v5167_v53 = vpop.f32.mrb[0].mxu0 }
 0x105   : > { %v5192_v54 = vpop.f32.mrb[1].mxu1  ;;  %v5168_v55 = vpop.f32.mrb[1].mxu0 }
 0x106   : > { %v7107_v56 = vadd.f32 %v5192_v54, %v5191_v52  ;;  %v5194_v57 = vpop.f32.mrb[2].mxu1  ;;  %v7109_v58 = vadd.f32 %v5168_v55, %v5167_v53  ;;  %v5170_v59 = vpop.f32.mrb[2].mxu0  ;;  %v6470_v54 = vld [vmem:[%s6946_s8 + $0x50] ss:$20 sps:$4 sm:$0xff]   ;;  %v6471_v55 = vld [vmem:[%s6946_s8 + $0xd8] ss:$20 sps:$4 sm:$0xff]  }
 0x107   : > { %v5195_v62 = vpop.f32.mrb[3].mxu1  ;;  %v5171_v63 = vpop.f32.mrb[3].mxu0 }
 0x108   : > { %v7113_v0 = vadd.f32 %v5195_v62, %v5194_v57  ;;  %v7115_v1 = vadd.f32 %v5171_v63, %v5170_v59  ;;  %v6475_v62 = vld [vmem:[%s6946_s8 + $0x7c] ss:$20 sps:$4 sm:$0xff]   ;;  %v6477_v63 = vld [vmem:[%s6946_s8 + $0x100] ss:$20 sps:$4 sm:$0xff]  }
 0x109   : > { %1495 = vmatmul.mubr.bf16.gmra.mrb[108].mxu1 %v6449_v50  ;;  %2624 = vmatmul.mubr.bf16.gmra.mrb[108].mxu0 %v6450_v51  ;;  %v6490_v50 = vld [vmem:[%s7986_s1 + $0x2f0] sm:$0xff]  }
 0x10a   : > { %2342 = vmatprep.mubr.bf16.mxu1 %v6453_v60  ;;  %5910 = vmatprep.mubr.msk.bf16.mxu0 %vm1132_vm0, %v6454_v61  ;;  %v6521_v51 = vld [vmem:[%s7986_s1 + $0x270] sm:$0xff]  }
 0x10c   : > { %v5197_v4 = vpop.f32.mrb[4].mxu1  ;;  %v5173_v5 = vpop.f32.mrb[4].mxu0 }
 0x10d   : > { %v5198_v6 = vpop.f32.mrb[5].mxu1  ;;  %v5174_v7 = vpop.f32.mrb[5].mxu0 }
 0x10e   : > { %v7120_v8 = vadd.f32 %v5198_v6, %v5197_v4  ;;  %v5200_v9 = vpop.f32.mrb[6].mxu1  ;;  %v7122_v10 = vadd.f32 %v5174_v7, %v5173_v5  ;;  %v5176_v11 = vpop.f32.mrb[6].mxu0  ;;  %v6494_v4 = vld [vmem:[%s7986_s1 + $0x2b0] sm:$0xff]  }
 0x10f   : > { %v5201_v14 = vpop.f32.mrb[7].mxu1  ;;  %v5177_v15 = vpop.f32.mrb[7].mxu0  ;;  %v6522_v5 = vld [vmem:[%s7986_s1 + $0x230] sm:$0xff]  }
 0x110   : > { %v7132_v18 = vadd.f32 %v5201_v14, %v5200_v9  ;;  %v7134_v19 = vadd.f32 %v5177_v15, %v5176_v11  ;;  %v6497_v9 = vld [vmem:[%s7986_s1 + $0x2f8] sm:$0xff]   ;;  %v6506_v15 = vld [vmem:[%s7986_s1 + $0x300] sm:$0xff]  }
 0x111   : > { %2343 = vmatmul.mubr.bf16.vlgmr.msra.gmra.mrb[112].mxu1 %v6451_v2  ;;  %5911 = vmatmul.mubr.msk.bf16.vlgmr.msra.gmra.mrb[16].mxu0 %vm1132_vm0, %v6455_v3  ;;  %v6535_v11 = vld [vmem:[%s7986_s1 + $0x278] sm:$0xff]  }
 0x112   : > { %5634 = vmatpush3.bf16.msra.mxu1 %v6457_v12  ;;  %2350 = vmatprep.mubr.bf16.mxu1 %v6459_v13  ;;  %v6501_v12 = vld [vmem:[%s7986_s1 + $0x2b8] sm:$0xff]  }
 0x113   : > { %5914 = vmatprep.mubr.msk.bf16.mxu0 %vm1132_vm0, %v6461_v16  ;;  %5746 = vmatpush3.bf16.msra.mxu0 %v6462_v17  ;;  %v6537_v13 = vld [vmem:[%s7986_s1 + $0x238] sm:$0xff]   ;;  %v6549_v16 = vld [vmem:[%s7986_s1 + $0x280] sm:$0xff]  }
 0x114   : > { %v5203_v25 = vpop.f32.mrb[8].mxu1  ;;  %v5179_v26 = vpop.f32.mrb[8].mxu0  ;;  %5747 = vmatprep.subr.bf16.mxu0 %v6465_v20  ;;  %5635 = vmatprep.subr.bf16.mxu1 %v6472_v21  ;;  %v6479_v20 = vld [vmem:[%s6946_s8 + $0x78] ss:$20 sps:$4 sm:$0xff]   ;;  %v6480_v21 = vld [vmem:[%s6946_s8 + $0x128] ss:$20 sps:$4 sm:$0xff]  }
 0x115   : > { %v5204_v28 = vpop.f32.mrb[9].mxu1  ;;  %v5180_v29 = vpop.f32.mrb[9].mxu0 }
 0x116   : > { %v7158_v32 = vadd.f32 %v5204_v28, %v5203_v25  ;;  %v5206_v33 = vpop.f32.mrb[10].mxu1  ;;  %v7160_v34 = vadd.f32 %v5180_v29, %v5179_v26  ;;  %v5182_v35 = vpop.f32.mrb[10].mxu0  ;;  %5636 = vmatpush3.bf16.msra.mxu1 %v6473_v22  ;;  %v6484_v25 = vld [vmem:[%s6946_s8 + $0x150] ss:$20 sps:$4 sm:$0xff]  }
 0x117   : > { %v5207_v38 = vpop.f32.mrb[11].mxu1  ;;  %v5183_v39 = vpop.f32.mrb[11].mxu0  ;;  %5748 = vmatpush3.bf16.msra.mxu0 %v6469_v23  ;;  %5637 = vmatprep.subr.bf16.mxu1 %v6488_v24  ;;  %v6482_v24 = vld [vmem:[%s6946_s8 + $0xa4] ss:$20 sps:$4 sm:$0xff]  }
 0x118   : > { %v7170_v42 = vadd.f32 %v5207_v38, %v5206_v33  ;;  %v7172_v43 = vadd.f32 %v5183_v39, %v5182_v35  ;;  %5749 = vmatprep.subr.bf16.mxu0 %v6474_v27  ;;  %v6510_v27 = vld [vmem:[%s7986_s1 + $0x2c0] sm:$0xff]   ;;  %v6514_v33 = vld [vmem:[%s7986_s1 + $0x2c8] sm:$0xff]  }
 0x119   : > { %2351 = vmatmul.mubr.bf16.gmra.mrb[116].mxu1 %v6463_v30  ;;  %5915 = vmatmul.mubr.msk.bf16.gmra.mrb[20].mxu0 %vm1132_vm0, %v6464_v31  ;;  %v6551_v28 = vld [vmem:[%s7986_s1 + $0x240] sm:$0xff]   ;;  %v6513_v30 = vld [vmem:[%s7986_s1 + $0x308] sm:$0xff]  }
 0x11a   : > { %2358 = vmatprep.mubr.bf16.mxu1 %v6466_v36  ;;  %5918 = vmatprep.mubr.msk.bf16.mxu0 %vm1132_vm0, %v6468_v37  ;;  %v6563_v31 = vld [vmem:[%s7986_s1 + $0x288] sm:$0xff]   ;;  %v7263_v37 = vld [vmem:[%s7986_s1 + $0x310] sm:$0xff]  }
 0x11b   : > { %5750 = vmatpush3.bf16.msra.mxu0 %v6478_v40  ;;  %5638 = vmatpush3.bf16.msra.mxu1 %v6489_v41  ;;  %v6565_v35 = vld [vmem:[%s7986_s1 + $0x248] sm:$0xff]   ;;  %v6486_v39 = vld [vmem:[%s6946_s8 + $0xa0] ss:$20 sps:$4 sm:$0xff]  }
 0x11c   : > { %v5209_v48 = vpop.f32.mrb[12].mxu1  ;;  %v5185_v49 = vpop.f32.mrb[12].mxu0  ;;  %5751 = vmatprep.subr.bf16.mxu0 %v6481_v44  ;;  %5639 = vmatprep.subr.bf16.mxu1 %v6504_v45  ;;  %v6487_v40 = vld [vmem:[%s6946_s8 + $0x178] ss:$20 sps:$4 sm:$0xff]  }
 0x11d   : > { %v5210_v52 = vpop.f32.mrb[13].mxu1  ;;  %v5186_v53 = vpop.f32.mrb[13].mxu0  ;;  %v6491_v45 = vld [vmem:[%s6946_s8 + $0xcc] ss:$20 sps:$4 sm:$0xff]  }
 0x11e   : > { %v7196_v57 = vadd.f32 %v5210_v52, %v5209_v48  ;;  %v5212_v59 = vpop.f32.mrb[14].mxu1  ;;  %v7198_v60 = vadd.f32 %v5186_v53, %v5185_v49  ;;  %v5188_v61 = vpop.f32.mrb[14].mxu0  ;;  %v6496_v52 = vld [vmem:[%s6946_s8 + $0x1c8] ss:$20 sps:$4 sm:$0xff]  }
 0x11f   : > { %v5213_v2 = vpop.f32.mrb[15].mxu1  ;;  %v5189_v3 = vpop.f32.mrb[15].mxu0  ;;  %5752 = vmatpush3.bf16.msra.mxu0 %v6485_v46  ;;  %5640 = vmatpush3.bf16.msra.mxu1 %v6505_v47  ;;  %v6493_v46 = vld [vmem:[%s6946_s8 + $0x1a0] ss:$20 sps:$4 sm:$0xff]  }
 0x120   : > { %v7208_v6 = vadd.f32 %v5213_v2, %v5212_v59  ;;  %v7210_v7 = vadd.f32 %v5189_v3, %v5188_v61  ;;  %5753 = vmatprep.subr.bf16.mxu0 %v6490_v50  ;;  %5641 = vmatprep.subr.bf16.mxu1 %v6521_v51  ;;  %v6495_v51 = vld [vmem:[%s6946_s8 + $0xc8] ss:$20 sps:$4 sm:$0xff]   ;;  %v6500_v59 = vld [vmem:[%s6946_s8 + $0x1f0] ss:$20 sps:$4 sm:$0xff]  }
 0x121   : > { %2359 = vmatmul.mubr.bf16.gmra.mrb[120].mxu1 %v6470_v54  ;;  %5919 = vmatmul.mubr.msk.bf16.gmra.mrb[24].mxu0 %vm1132_vm0, %v6471_v55  ;;  %v6498_v55 = vld [vmem:[%s6946_s8 + $0xf4] ss:$20 sps:$4 sm:$0xff]   ;;  %v6502_v3 = vld [vmem:[%s6946_s8 + $0xf0] ss:$20 sps:$4 sm:$0xff]  }
 0x122   : > { %2366 = vmatprep.mubr.bf16.mxu1 %v6475_v62  ;;  %5922 = vmatprep.mubr.msk.bf16.mxu0 %vm1132_vm0, %v6477_v63 }
 0x123   : > { %5754 = vmatpush3.bf16.msra.mxu0 %v6494_v4  ;;  %5642 = vmatpush3.bf16.msra.mxu1 %v6522_v5  ;;  %v6503_v4 = vld [vmem:[%s6946_s8 + $0x218] ss:$20 sps:$4 sm:$0xff]  }
 0x124   : > { %v5215_v14 = vpop.f32.mrb[16].mxu1  ;;  %5755 = vmatprep.subr.bf16.mxu0 %v6497_v9  ;;  %5643 = vmatprep.subr.bf16.mxu1 %v6535_v11  ;;  %v6507_v11 = vld [vmem:[%s6946_s8 + $0x11c] ss:$20 sps:$4 sm:$0xff]  }
 0x125   : > { %v5216_v17 = vpop.f32.mrb[17].mxu1 }
 0x126   : > { %v7234_v22 = vadd.f32 %v5216_v17, %v5215_v14  ;;  %v5218_v23 = vpop.f32.mrb[18].mxu1  ;;  %v6511_v17 = vld [vmem:[%s6946_s8 + $0x118] ss:$20 sps:$4 sm:$0xff]  }
 0x127   : > { %v5219_v26 = vpop.f32.mrb[19].mxu1  ;;  %5756 = vmatpush3.bf16.msra.mxu0 %v6501_v12  ;;  %5644 = vmatpush3.bf16.msra.mxu1 %v6537_v13  ;;  %v6509_v12 = vld [vmem:[%s6946_s8 + $0x240] ss:$20 sps:$4 sm:$0xff]  }
 0x128   : > { %v7244_v29 = vadd.f32 %v5219_v26, %v5218_v23  ;;  %5757 = vmatprep.subr.bf16.mxu0 %v6506_v15  ;;  %5645 = vmatprep.subr.bf16.mxu1 %v6549_v16 }
 0x129   : > { %2367 = vmatmul.mubr.bf16.gmra.mrb[124].mxu1 %v6479_v20  ;;  %5923 = vmatmul.mubr.msk.bf16.gmra.mrb[28].mxu0 %vm1132_vm0, %v6480_v21  ;;  %v6512_v20 = vld [vmem:[%s6946_s8 + $0x268] ss:$20 sps:$4 sm:$0xff]  }
 0x12a   : > { %2374 = vmatprep.mubr.bf16.mxu1 %v6482_v24  ;;  %5926 = vmatprep.mubr.msk.bf16.mxu0 %vm1132_vm0, %v6484_v25  ;;  %v6515_v24 = vld [vmem:[%s6946_s8 + $0x144] ss:$20 sps:$4 sm:$0xff]   ;;  %v6519_v25 = vld [vmem:[%s7079_s7 + $0xc] ss:$20 sps:$4 sm:$0xff]  }
 0x12b   : > { %5758 = vmatpush3.bf16.msra.mxu0 %v6510_v27  ;;  %5646 = vmatpush3.bf16.msra.mxu1 %v6551_v28 }
 0x12c   : > { %v5221_v36 = vpop.f32.mrb[20].mxu1  ;;  %5759 = vmatprep.subr.bf16.mxu0 %v6513_v30  ;;  %5647 = vmatprep.subr.bf16.mxu1 %v6563_v31  ;;  %v6517_v31 = vld [vmem:[%s7079_s7 + $0x8] ss:$20 sps:$4 sm:$0xff]  }
 0x12d   : > { %v5222_v38 = vpop.f32.mrb[21].mxu1 }
 0x12e   : > { %v7267_v41 = vadd.f32 %v5222_v38, %v5221_v36  ;;  %v5224_v44 = vpop.f32.mrb[22].mxu1  ;;  %v6524_v38 = vld [vmem:[%s6946_s8 + $0x16c] ss:$20 sps:$4 sm:$0xff]  }
 0x12f   : > { %v5225_v47 = vpop.f32.mrb[23].mxu1  ;;  %5760 = vmatpush3.bf16.msra.mxu0 %v6514_v33  ;;  %5648 = vmatpush3.bf16.msra.mxu1 %v6565_v35  ;;  %v6520_v33 = vld [vmem:[%s6946_s8 + $0x140] ss:$20 sps:$4 sm:$0xff]  }
 0x130   : > { %v7271_v48 = vadd.f32 %v5225_v47, %v5224_v44  ;;  %5942 = vmatprep.subr.bf16.mxu0 %v7263_v37  ;;  %v6528_v47 = vld [vmem:[%s6946_s8 + $0x168] ss:$20 sps:$4 sm:$0xff]  }
 0x131   : > { %2375 = vmatmul.mubr.bf16.gmra.mrb[128].mxu1 %v6486_v39  ;;  %5927 = vmatmul.mubr.msk.bf16.gmra.mrb[32].mxu0 %vm1132_vm0, %v6487_v40  ;;  %v6526_v39 = vld [vmem:[%s7079_s7 + $0x34] ss:$20 sps:$4 sm:$0xff]  }
 0x132   : > { %2382 = vmatprep.mubr.bf16.mxu1 %v6491_v45  ;;  %5930 = vmatprep.mubr.msk.bf16.mxu0 %vm1132_vm0, %v6493_v46 }
 0x134   : > { %v5227_v49 = vpop.f32.mrb[24].mxu1 }
 0x135   : > { %v5228_v50 = vpop.f32.mrb[25].mxu1 }
 0x136   : > { %v7278_v53 = vadd.f32 %v5228_v50, %v5227_v49  ;;  %v5230_v54 = vpop.f32.mrb[26].mxu1  ;;  %v6529_v49 = vld [vmem:[%s7079_s7 + $0x30] ss:$20 sps:$4 sm:$0xff]  }
 0x137   : > { %v5231_v61 = vpop.f32.mrb[27].mxu1 }
 0x138   : > { %v7282_v62 = vadd.f32 %v5231_v61, %v5230_v54  ;;  %v6532_v54 = vld [vmem:[%s7079_s7 + $0x5c] ss:$20 sps:$4 sm:$0xff]  }
 0x139   : > { %2383 = vmatmul.mubr.bf16.gmra.mrb[132].mxu1 %v6495_v51  ;;  %5931 = vmatmul.mubr.msk.bf16.gmra.mrb[36].mxu0 %vm1132_vm0, %v6496_v52  ;;  %v6530_v52 = vld [vmem:[%s6946_s8 + $0x194] ss:$20 sps:$4 sm:$0xff]  }
 0x13a   : > { %2390 = vmatprep.mubr.bf16.mxu1 %v6498_v55  ;;  %5934 = vmatprep.mubr.msk.bf16.mxu0 %vm1132_vm0, %v6500_v59 }
 0x13c   : > { %v5233_v63 = vpop.f32.mrb[28].mxu1 }
 0x13d   : > { %v5234_v2 = vpop.f32.mrb[29].mxu1 }
 0x13e   : > { %v7288_v5 = vadd.f32 %v5234_v2, %v5233_v63  ;;  %v5236_v9 = vpop.f32.mrb[30].mxu1  ;;  %v6534_v63 = vld [vmem:[%s6946_s8 + $0x190] ss:$20 sps:$4 sm:$0xff]   ;;  %v6536_v2 = vld [vmem:[%s7079_s7 + $0x58] ss:$20 sps:$4 sm:$0xff]  }
 0x13f   : > { %v5237_v13 = vpop.f32.mrb[31].mxu1 }
 0x140   : > { %v7292_v14 = vadd.f32 %v5237_v13, %v5236_v9  ;;  %v6538_v9 = vld [vmem:[%s6946_s8 + $0x1bc] ss:$20 sps:$4 sm:$0xff]  }
 0x141   : > { %2391 = vmatmul.mubr.bf16.gmra.mrb[136].mxu1 %v6502_v3  ;;  %5935 = vmatmul.mubr.msk.bf16.gmra.mrb[40].mxu0 %vm1132_vm0, %v6503_v4 }
 0x142   : > { %2398 = vmatprep.mubr.bf16.mxu1 %v6507_v11  ;;  %5938 = vmatprep.mubr.msk.bf16.mxu0 %vm1132_vm0, %v6509_v12  ;;  %v6540_v11 = vld [vmem:[%s7079_s7 + $0x84] ss:$20 sps:$4 sm:$0xff]  }
 0x144   : > { %v5239_v15 = vpop.f32.mrb[32].mxu1 }
 0x145   : > { %v5240_v16 = vpop.f32.mrb[33].mxu1 }
 0x146   : > { %v7298_v21 = vadd.f32 %v5240_v16, %v5239_v15  ;;  %v5242_v23 = vpop.f32.mrb[34].mxu1 }
 0x147   : > { %v5243_v26 = vpop.f32.mrb[35].mxu1 }
 0x148   : > { %v7302_v27 = vadd.f32 %v5243_v26, %v5242_v23 }
 0x149   : > { %2399 = vmatmul.mubr.bf16.gmra.mrb[140].mxu1 %v6511_v17  ;;  %5939 = vmatmul.mubr.msk.bf16.gmra.mrb[44].mxu0 %vm1132_vm0, %v6512_v20  ;;  %v6542_v20 = vld [vmem:[%s6946_s8 + $0x1b8] ss:$20 sps:$4 sm:$0xff]  }
 0x14a   : > { %2406 = vmatprep.mubr.bf16.mxu1 %v6515_v24  ;;  %3802 = vmatprep.mubr.bf16.mxu0 %v6519_v25  ;;  %v6543_v24 = vld [vmem:[%s7079_s7 + $0x80] ss:$20 sps:$4 sm:$0xff]  }
 0x14c   : > { %v5245_v28 = vpop.f32.mrb[36].mxu1 }
 0x14d   : > { %v5246_v30 = vpop.f32.mrb[37].mxu1 }
 0x14e   : > { %v7307_v35 = vadd.f32 %v5246_v30, %v5245_v28  ;;  %v5248_v36 = vpop.f32.mrb[38].mxu1 }
 0x14f   : > { %v5249_v40 = vpop.f32.mrb[39].mxu1 }
 0x150   : > { %v7311_v44 = vadd.f32 %v5249_v40, %v5248_v36 }
 0x151   : > { %2407 = vmatmul.mubr.bf16.gmra.mrb[144].mxu1 %v6520_v33  ;;  %3803 = vmatmul.mubr.bf16.vlgmr.msra.gmra.mrb[112].mxu0 %v6517_v31  ;;  %v6544_v31 = vld [vmem:[%s6946_s8 + $0x1e4] ss:$20 sps:$4 sm:$0xff]   ;;  %v6546_v33 = vld [vmem:[%s7079_s7 + $0xac] ss:$20 sps:$4 sm:$0xff]  }
 0x152   : > { %2414 = vmatprep.mubr.bf16.mxu1 %v6524_v38  ;;  %3810 = vmatprep.mubr.bf16.mxu0 %v6526_v39 }
 0x153   : > { %5943 = vmatpush3.bf16.msra.mxu0 %v7263_v37 }
 0x154   : > { %v5251_v45 = vpop.f32.mrb[40].mxu1 }
 0x155   : > { %v5252_v46 = vpop.f32.mrb[41].mxu1 }
 0x156   : > { %v7316_v50 = vadd.f32 %v5252_v46, %v5251_v45  ;;  %v5254_v51 = vpop.f32.mrb[42].mxu1 }
 0x157   : > { %v5255_v55 = vpop.f32.mrb[43].mxu1 }
 0x158   : > { %v7320_v59 = vadd.f32 %v5255_v55, %v5254_v51  ;;  %v6550_v55 = vld [vmem:[%s7079_s7 + $0xa8] ss:$20 sps:$4 sm:$0xff]  }
 0x159   : > { %2415 = vmatmul.mubr.bf16.gmra.mrb[148].mxu1 %v6528_v47  ;;  %3811 = vmatmul.mubr.bf16.gmra.mrb[116].mxu0 %v6529_v49 }
 0x15a   : > { %2422 = vmatprep.mubr.bf16.mxu1 %v6530_v52  ;;  %3818 = vmatprep.mubr.bf16.mxu0 %v6532_v54  ;;  %v6548_v52 = vld [vmem:[%s6946_s8 + $0x1e0] ss:$20 sps:$4 sm:$0xff]  }
 0x15c   : > { %v5257_v37 = vpop.f32.mrb[44].mxu1 }
 0x15d   : > { %v5258_v61 = vpop.f32.mrb[45].mxu1 }
 0x15e   : > { %v7324_v3 = vadd.f32 %v5258_v61, %v5257_v37  ;;  %v5260_v4 = vpop.f32.mrb[46].mxu1 }
 0x15f   : > { %v5261_v12 = vpop.f32.mrb[47].mxu1 }
 0x160   : > { %v7328_v13 = vadd.f32 %v5261_v12, %v5260_v4  ;;  %v6554_v4 = vld [vmem:[%s7079_s7 + $0xd4] ss:$20 sps:$4 sm:$0xff]  }
 0x161   : > { %2423 = vmatmul.mubr.bf16.gmra.mrb[152].mxu1 %v6534_v63  ;;  %3819 = vmatmul.mubr.bf16.gmra.mrb[120].mxu0 %v6536_v2  ;;  %v6552_v2 = vld [vmem:[%s6946_s8 + $0x20c] ss:$20 sps:$4 sm:$0xff]  }
 0x162   : > { %2430 = vmatprep.mubr.bf16.mxu1 %v6538_v9  ;;  %3826 = vmatprep.mubr.bf16.mxu0 %v6540_v11 }
 0x164   : > { %v5279_v15 = vpop.f32.mrb[48].mxu1  ;;  %v5520_v16 = vpop.f32.mrb[48].mxu0 }
 0x165   : > { %v5280_v17 = vpop.f32.mrb[49].mxu1  ;;  %v5521_v23 = vpop.f32.mrb[49].mxu0 }
 0x166   : > { %v5281_v25 = vadd.f32 %v5280_v17, %v5279_v15  ;;  %v5282_v26 = vpop.f32.mrb[50].mxu1  ;;  %v7332_v28 = vadd.f32 %v5521_v23, %v5520_v16  ;;  %v5523_v30 = vpop.f32.mrb[50].mxu0 }
 0x167   : > { %v5283_v36 = vpop.f32.mrb[51].mxu1  ;;  %v5524_v38 = vpop.f32.mrb[51].mxu0 }
 0x168   : > { %v7337_v39 = vadd.f32 %v5281_v25, %v7109_v58  ;;  %v5284_v40 = vadd.f32 %v5283_v36, %v5282_v26  ;;  %v7339_v45 = vadd.f32 %v5524_v38, %v5523_v30  ;;  %v6557_v26 = vld [vmem:[%s7079_s7 + $0xd0] ss:$20 sps:$4 sm:$0xff]   ;;  %v6558_v36 = vld [vmem:[%s6946_s8 + $0x234] ss:$20 sps:$4 sm:$0xff]  }
 0x169   : > { %2431 = vmatmul.mubr.bf16.gmra.mrb[156].mxu1 %v6542_v20  ;;  %3827 = vmatmul.mubr.bf16.gmra.mrb[124].mxu0 %v6543_v24  ;;  %v6556_v24 = vld [vmem:[%s6946_s8 + $0x208] ss:$20 sps:$4 sm:$0xff]  }
 0x16a   : > { %v7342_v46 = vadd.f32 %v5284_v40, %v7115_v1  ;;  %2438 = vmatprep.mubr.bf16.mxu1 %v6544_v31  ;;  %3834 = vmatprep.mubr.bf16.mxu0 %v6546_v33  ;;  %v6560_v38 = vld [vmem:[%s7079_s7 + $0xfc] ss:$20 sps:$4 sm:$0xff]  }
 0x16c   : > { %v5285_v47 = vpop.f32.mrb[52].mxu1  ;;  %v5526_v49 = vpop.f32.mrb[52].mxu0 }
 0x16d   : > { %v5286_v51 = vpop.f32.mrb[53].mxu1  ;;  %v5527_v54 = vpop.f32.mrb[53].mxu0 }
 0x16e   : > { %v5287_v58 = vadd.f32 %v5286_v51, %v5285_v47  ;;  %v5288_v37 = vpop.f32.mrb[54].mxu1  ;;  %v7346_v61 = vadd.f32 %v5527_v54, %v5526_v49  ;;  %v5529_v63 = vpop.f32.mrb[54].mxu0 }
 0x16f   : > { %v5289_v9 = vpop.f32.mrb[55].mxu1  ;;  %v5530_v1 = vpop.f32.mrb[55].mxu0 }
 0x170   : > { %v7351_v11 = vadd.f32 %v5287_v58, %v7122_v10  ;;  %v5290_v12 = vadd.f32 %v5289_v9, %v5288_v37  ;;  %v7353_v15 = vadd.f32 %v5530_v1, %v5529_v63  ;;  %v6562_v37 = vld [vmem:[%s6946_s8 + $0x230] ss:$20 sps:$4 sm:$0xff]  }
 0x171   : > { %2439 = vmatmul.mubr.bf16.gmra.mrb[160].mxu1 %v6548_v52  ;;  %3835 = vmatmul.mubr.bf16.gmra.mrb[128].mxu0 %v6550_v55 }
 0x172   : > { %v7356_v16 = vadd.f32 %v5290_v12, %v7134_v19  ;;  %2446 = vmatprep.mubr.bf16.mxu1 %v6552_v2  ;;  %3842 = vmatprep.mubr.bf16.mxu0 %v6554_v4  ;;  %v6564_v2 = vld [vmem:[%s7079_s7 + $0xf8] ss:$20 sps:$4 sm:$0xff]   ;;  %v6566_v12 = vld [vmem:[%s6946_s8 + $0x25c] ss:$20 sps:$4 sm:$0xff]  }
 0x174   : > { %v5291_v17 = vpop.f32.mrb[56].mxu1  ;;  %v5532_v20 = vpop.f32.mrb[56].mxu0 }
 0x175   : > { %v5292_v23 = vpop.f32.mrb[57].mxu1  ;;  %v5533_v25 = vpop.f32.mrb[57].mxu0 }
 0x176   : > { %v5293_v10 = vadd.f32 %v5292_v23, %v5291_v17  ;;  %v5294_v30 = vpop.f32.mrb[58].mxu1  ;;  %v7360_v31 = vadd.f32 %v5533_v25, %v5532_v20  ;;  %v5535_v33 = vpop.f32.mrb[58].mxu0  ;;  %v6568_v17 = vld [vmem:[%s7079_s7 + $0x124] ss:$20 sps:$4 sm:$0xff]  }
 0x177   : > { %v5295_v40 = vpop.f32.mrb[59].mxu1  ;;  %v5536_v19 = vpop.f32.mrb[59].mxu0 }
 0x178   : > { %v7365_v47 = vadd.f32 %v5293_v10, %v7160_v34  ;;  %v5296_v49 = vadd.f32 %v5295_v40, %v5294_v30  ;;  %v7367_v51 = vadd.f32 %v5536_v19, %v5535_v33  ;;  %v6571_v40 = vld [vmem:[%s7079_s7 + $0x120] ss:$20 sps:$4 sm:$0xff]  }
 0x179   : > { %2447 = vmatmul.mubr.bf16.gmra.mrb[164].mxu1 %v6556_v24  ;;  %3843 = vmatmul.mubr.bf16.gmra.mrb[132].mxu0 %v6557_v26 }
 0x17a   : > { %v7370_v52 = vadd.f32 %v5296_v49, %v7172_v43  ;;  %2454 = vmatprep.mubr.bf16.mxu1 %v6558_v36  ;;  %3850 = vmatprep.mubr.bf16.mxu0 %v6560_v38  ;;  %v6570_v36 = vld [vmem:[%s6946_s8 + $0x258] ss:$20 sps:$4 sm:$0xff]   ;;  %s4451_s8 = sshll.u32 %s6682_s12, 5  ;;  %s4452_s12 = sshll.u32 %s8040_s13, 7 }
 0x17b   : > { %p187_p6 = scmp.lt.s32.totalorder %s4451_s8, 127 }
 0x17c   : > { %v5297_v54 = vpop.f32.mrb[60].mxu1  ;;  %v5538_v55 = vpop.f32.mrb[60].mxu0 }
 0x17d   : > { %v5298_v58 = vpop.f32.mrb[61].mxu1  ;;  %v5539_v63 = vpop.f32.mrb[61].mxu0  ;;  %s8042_s8 = smov (!%p187_p6, %s4451_s8), 127 }
 0x17e   : > { %v5299_v34 = vadd.f32 %v5298_v58, %v5297_v54  ;;  %v5300_v4 = vpop.f32.mrb[62].mxu1  ;;  %v7374_v9 = vadd.f32 %v5539_v63, %v5538_v55  ;;  %v5541_v1 = vpop.f32.mrb[62].mxu0  ;;  %v6574_v55 = vld [vmem:[%s7079_s7 + $0x4] ss:$20 sps:$4 sm:$0xff]   ;;  %v6575_v58 = vld [vmem:[%s7079_s7 + $0x14c] ss:$20 sps:$4 sm:$0xff]   ;;  %s190_s24 = sadd.s32 %s4452_s12, %s8042_s8 }
 0x17f   : > { %v5301_v20 = vpop.f32.mrb[63].mxu1  ;;  %v5542_v43 = vpop.f32.mrb[63].mxu0  ;;  %s4453_s13 = sshll.u32 %s190_s24, 2 }
 0x180   : > { %v7379_v23 = vadd.f32 %v5299_v34, %v7198_v60  ;;  %v5302_v24 = vadd.f32 %v5301_v20, %v5300_v4  ;;  %v7381_v25 = vadd.f32 %v5542_v43, %v5541_v1  ;;  %v6572_v20 = vld [vmem:[%s7079_s7] ss:$20 sps:$4 sm:$0xff]   ;;  %s7867_s28 = scalar_lea.vmem %s7988_s3, %s4453_s13 }
 0x181   : > { %2455 = vmatmul.mubr.bf16.gmra.mrb[168].mxu1 %v6562_v37  ;;  %3851 = vmatmul.mubr.bf16.gmra.mrb[136].mxu0 %v6564_v2 }
 0x182   : > { %v7384_v26 = vadd.f32 %v5302_v24, %v7210_v7  ;;  %2462 = vmatprep.mubr.bf16.mxu1 %v6566_v12  ;;  %3858 = vmatprep.mubr.bf16.mxu0 %v6568_v17  ;;  %v6577_v24 = vld [vmem:[%s7079_s7 + $0x148] ss:$20 sps:$4 sm:$0xff]  }
 0x184   : > { %v5303_v10 = vpop.f32.mrb[64].mxu1  ;;  %v5544_v30 = vpop.f32.mrb[64].mxu0 }
 0x185   : > { %v5304_v33 = vpop.f32.mrb[65].mxu1  ;;  %v5545_v38 = vpop.f32.mrb[65].mxu0 }
 0x186   : > { %v5305_v60 = vadd.f32 %v5304_v33, %v5303_v10  ;;  %v5306_v19 = vpop.f32.mrb[66].mxu1  ;;  %v7388_v49 = vadd.f32 %v5545_v38, %v5544_v30  ;;  %v5547_v54 = vpop.f32.mrb[66].mxu0  ;;  %v6578_v38 = vld [vmem:[%s7079_s7 + $0x2c] ss:$20 sps:$4 sm:$0xff]  }
 0x187   : > { %v5307_v37 = vpop.f32.mrb[67].mxu1  ;;  %v5548_v7 = vpop.f32.mrb[67].mxu0 }
 0x188   : > { %v7393_v63 = vadd.f32 %v5305_v60, %v7107_v56  ;;  %v5308_v2 = vadd.f32 %v5307_v37, %v5306_v19  ;;  %v7395_v34 = vadd.f32 %v5548_v7, %v5547_v54 }
 0x189   : > { %2463 = vmatmul.mubr.bf16.gmra.mrb[172].mxu1 %v6570_v36  ;;  %3859 = vmatmul.mubr.bf16.gmra.mrb[140].mxu0 %v6571_v40  ;;  %v6580_v36 = vld [vmem:[%s7079_s7 + $0x174] ss:$20 sps:$4 sm:$0xff]  }
 0x18a   : > { %v7398_v4 = vadd.f32 %v5308_v2, %v7113_v0  ;;  %3641 = vmatprep.mubr.bf16.mxu1 %v6574_v55  ;;  %3866 = vmatprep.mubr.bf16.mxu0 %v6575_v58 }
 0x18c   : > { %v5309_v1 = vpop.f32.mrb[68].mxu1  ;;  %v5550_v12 = vpop.f32.mrb[68].mxu0 }
 0x18d   : > { %v5310_v17 = vpop.f32.mrb[69].mxu1  ;;  %v5551_v43 = vpop.f32.mrb[69].mxu0 }
 0x18e   : > { %v5311_v56 = vadd.f32 %v5310_v17, %v5309_v1  ;;  %v5312_v10 = vpop.f32.mrb[70].mxu1  ;;  %v7402_v30 = vadd.f32 %v5551_v43, %v5550_v12  ;;  %v5553_v33 = vpop.f32.mrb[70].mxu0  ;;  %v6582_v1 = vld [vmem:[%s7079_s7 + $0x28] ss:$20 sps:$4 sm:$0xff]   ;;  %v6583_v12 = vld [vmem:[%s7079_s7 + $0x170] ss:$20 sps:$4 sm:$0xff]  }
 0x18f   : > { %v5313_v40 = vpop.f32.mrb[71].mxu1  ;;  %v5554_v0 = vpop.f32.mrb[71].mxu0 }
 0x190   : > { %v7407_v60 = vadd.f32 %v5311_v56, %v7120_v8  ;;  %v5314_v19 = vadd.f32 %v5313_v40, %v5312_v10  ;;  %v7409_v54 = vadd.f32 %v5554_v0, %v5553_v33  ;;  %v6584_v10 = vld [vmem:[%s7079_s7 + $0x54] ss:$20 sps:$4 sm:$0xff]  }
 0x191   : > { %3642 = vmatmul.mubr.bf16.vlgmr.msra.gmra.mrb[176].mxu1 %v6572_v20  ;;  %3867 = vmatmul.mubr.bf16.gmra.mrb[144].mxu0 %v6577_v24  ;;  %v6586_v20 = vld [vmem:[%s7079_s7 + $0x19c] ss:$20 sps:$4 sm:$0xff]  }
 0x192   : > { %v7412_v55 = vadd.f32 %v5314_v19, %v7132_v18  ;;  %3649 = vmatprep.mubr.bf16.mxu1 %v6578_v38  ;;  %3874 = vmatprep.mubr.bf16.mxu0 %v6580_v36 }
 0x194   : > { %v5315_v58 = vpop.f32.mrb[72].mxu1  ;;  %v5556_v37 = vpop.f32.mrb[72].mxu0 }
 0x195   : > { %v5316_v7 = vpop.f32.mrb[73].mxu1  ;;  %v5557_v2 = vpop.f32.mrb[73].mxu0 }
 0x196   : > { %v5317_v8 = vadd.f32 %v5316_v7, %v5315_v58  ;;  %v5318_v17 = vpop.f32.mrb[74].mxu1  ;;  %v7416_v43 = vadd.f32 %v5557_v2, %v5556_v37  ;;  %v5559_v56 = vpop.f32.mrb[74].mxu0  ;;  %v6588_v7 = vld [vmem:[%s7079_s7 + $0x50] ss:$20 sps:$4 sm:$0xff]   ;;  %v6589_v2 = vld [vmem:[%s7079_s7 + $0x198] ss:$20 sps:$4 sm:$0xff]  }
 0x197   : > { %v5319_v24 = vpop.f32.mrb[75].mxu1  ;;  %v5560_v18 = vpop.f32.mrb[75].mxu0 }
 0x198   : > { %v7421_v33 = vadd.f32 %v5317_v8, %v7158_v32  ;;  %v5320_v38 = vadd.f32 %v5319_v24, %v5318_v17  ;;  %v7423_v36 = vadd.f32 %v5560_v18, %v5559_v56  ;;  %v6590_v24 = vld [vmem:[%s7079_s7 + $0x7c] ss:$20 sps:$4 sm:$0xff]  }
 0x199   : > { %3650 = vmatmul.mubr.bf16.gmra.mrb[180].mxu1 %v6582_v1  ;;  %3875 = vmatmul.mubr.bf16.gmra.mrb[148].mxu0 %v6583_v12  ;;  %v6592_v1 = vld [vmem:[%s7079_s7 + $0x1c4] ss:$20 sps:$4 sm:$0xff]  }
 0x19a   : > { %7989 = vst [vmem:[#allocation2_spill] sm:$0xff] %v7423_v36  ;;  %v7426_v40 = vadd.f32 %v5320_v38, %v7170_v42  ;;  %3657 = vmatprep.mubr.bf16.mxu1 %v6584_v10  ;;  %3882 = vmatprep.mubr.bf16.mxu0 %v6586_v20  ;;  %v6595_v36 = vld [vmem:[%s7079_s7 + $0x1c0] ss:$20 sps:$4 sm:$0xff]  }
 0x19c   : > { %v5321_v0 = vpop.f32.mrb[76].mxu1  ;;  %v5562_v19 = vpop.f32.mrb[76].mxu0 }
 0x19d   : > { %v5322_v58 = vpop.f32.mrb[77].mxu1  ;;  %v5563_v37 = vpop.f32.mrb[77].mxu0 }
 0x19e   : > { %v5323_v32 = vadd.f32 %v5322_v58, %v5321_v0  ;;  %v5324_v8 = vpop.f32.mrb[78].mxu1  ;;  %v7430_v17 = vadd.f32 %v5563_v37, %v5562_v19  ;;  %v5565_v56 = vpop.f32.mrb[78].mxu0 }
 0x19f   : > { %v5325_v12 = vpop.f32.mrb[79].mxu1  ;;  %v5566_v42 = vpop.f32.mrb[79].mxu0 }
 0x1a0   : > { %7990 = vst [vmem:[#allocation3_spill] sm:$0xff] %v7430_v17  ;;  %v7435_v10 = vadd.f32 %v5323_v32, %v7196_v57  ;;  %v5326_v20 = vadd.f32 %v5325_v12, %v5324_v8  ;;  %v7437_v18 = vadd.f32 %v5566_v42, %v5565_v56  ;;  %v6594_v17 = vld [vmem:[%s7079_s7 + $0x78] ss:$20 sps:$4 sm:$0xff]  }
 0x1a1   : > { %3658 = vmatmul.mubr.bf16.gmra.mrb[184].mxu1 %v6588_v7  ;;  %3883 = vmatmul.mubr.bf16.gmra.mrb[152].mxu0 %v6589_v2  ;;  %v6596_v12 = vld [vmem:[%s7079_s7 + $0xa4] ss:$20 sps:$4 sm:$0xff]   ;;  %v6598_v7 = vld [vmem:[%s7079_s7 + $0x1ec] ss:$20 sps:$4 sm:$0xff]  }
 0x1a2   : > { %7991 = vst [vmem:[#allocation4_spill] sm:$0xff] %v7437_v18  ;;  %v7440_v38 = vadd.f32 %v5326_v20, %v7208_v6  ;;  %3665 = vmatprep.mubr.bf16.mxu1 %v6590_v24  ;;  %3890 = vmatprep.mubr.bf16.mxu0 %v6592_v1  ;;  %v6601_v18 = vld [vmem:[%s7079_s7 + $0x1e8] ss:$20 sps:$4 sm:$0xff]  }
 0x1a4   : > { %v5327_v0 = vpop.f32.mrb[80].mxu1  ;;  %v5568_v19 = vpop.f32.mrb[80].mxu0 }
 0x1a5   : > { %v5328_v58 = vpop.f32.mrb[81].mxu1  ;;  %v5569_v37 = vpop.f32.mrb[81].mxu0 }
 0x1a6   : > { %v5329_v57 = vadd.f32 %v5328_v58, %v5327_v0  ;;  %v5330_v32 = vpop.f32.mrb[82].mxu1  ;;  %v7444_v8 = vadd.f32 %v5569_v37, %v5568_v19  ;;  %v5571_v56 = vpop.f32.mrb[82].mxu0 }
 0x1a7   : > { %v5331_v2 = vpop.f32.mrb[83].mxu1  ;;  %v5572_v6 = vpop.f32.mrb[83].mxu0 }
 0x1a8   : > { %7992 = vst [vmem:[#allocation5_spill] sm:$0xff] %v7444_v8  ;;  %v7449_v24 = vadd.f32 %v5329_v57, %v7234_v22  ;;  %v5332_v1 = vadd.f32 %v5331_v2, %v5330_v32  ;;  %v7451_v42 = vadd.f32 %v5572_v6, %v5571_v56  ;;  %v6600_v8 = vld [vmem:[%s7079_s7 + $0xa0] ss:$20 sps:$4 sm:$0xff]  }
 0x1a9   : > { %3666 = vmatmul.mubr.bf16.gmra.mrb[188].mxu1 %v6594_v17  ;;  %3891 = vmatmul.mubr.bf16.gmra.mrb[156].mxu0 %v6595_v36  ;;  %v6602_v2 = vld [vmem:[%s7079_s7 + $0xcc] ss:$20 sps:$4 sm:$0xff]   ;;  %v6604_v17 = vld [vmem:[%s7079_s7 + $0x214] ss:$20 sps:$4 sm:$0xff]  }
 0x1aa   : > { %7993 = vst [vmem:[#allocation6_spill] sm:$0xff] %v7451_v42  ;;  %v7454_v20 = vadd.f32 %v5332_v1, %v7244_v29  ;;  %3673 = vmatprep.mubr.bf16.mxu1 %v6596_v12  ;;  %3898 = vmatprep.mubr.bf16.mxu0 %v6598_v7  ;;  %v6607_v42 = vld [vmem:[%s7079_s7 + $0x210] ss:$20 sps:$4 sm:$0xff]  }
 0x1ac   : > { %v5333_v0 = vpop.f32.mrb[84].mxu1  ;;  %v5574_v19 = vpop.f32.mrb[84].mxu0 }
 0x1ad   : > { %v5334_v58 = vpop.f32.mrb[85].mxu1  ;;  %v5575_v37 = vpop.f32.mrb[85].mxu0 }
 0x1ae   : > { %v5335_v22 = vadd.f32 %v5334_v58, %v5333_v0  ;;  %v5336_v57 = vpop.f32.mrb[86].mxu1  ;;  %v7458_v32 = vadd.f32 %v5575_v37, %v5574_v19  ;;  %v5577_v56 = vpop.f32.mrb[86].mxu0 }
 0x1af   : > { %v5337_v36 = vpop.f32.mrb[87].mxu1  ;;  %v5578_v29 = vpop.f32.mrb[87].mxu0 }
 0x1b0   : > { %7994 = vst [vmem:[#allocation7_spill] sm:$0xff] %v7458_v32  ;;  %v7463_v12 = vadd.f32 %v5335_v22, %v7267_v41  ;;  %v5338_v7 = vadd.f32 %v5337_v36, %v5336_v57  ;;  %v7465_v6 = vadd.f32 %v5578_v29, %v5577_v56  ;;  %v6606_v32 = vld [vmem:[%s7079_s7 + $0xc8] ss:$20 sps:$4 sm:$0xff]  }
 0x1b1   : > { %3674 = vmatmul.mubr.bf16.gmra.mrb[192].mxu1 %v6600_v8  ;;  %3899 = vmatmul.mubr.bf16.gmra.mrb[160].mxu0 %v6601_v18  ;;  %v6608_v36 = vld [vmem:[%s7079_s7 + $0xf4] ss:$20 sps:$4 sm:$0xff]   ;;  %v6610_v8 = vld [vmem:[%s7079_s7 + $0x23c] ss:$20 sps:$4 sm:$0xff]  }
 0x1b2   : > { %7995 = vst [vmem:[#allocation8_spill] sm:$0xff] %v7465_v6  ;;  %v7468_v1 = vadd.f32 %v5338_v7, %v7271_v48  ;;  %3681 = vmatprep.mubr.bf16.mxu1 %v6602_v2  ;;  %3906 = vmatprep.mubr.bf16.mxu0 %v6604_v17  ;;  %v6613_v6 = vld [vmem:[%s7079_s7 + $0x238] ss:$20 sps:$4 sm:$0xff]  }
 0x1b4   : > { %v5339_v0 = vpop.f32.mrb[88].mxu1  ;;  %v5580_v19 = vpop.f32.mrb[88].mxu0 }
 0x1b5   : > { %v5340_v58 = vpop.f32.mrb[89].mxu1  ;;  %v5581_v37 = vpop.f32.mrb[89].mxu0 }
 0x1b6   : > { %v5341_v41 = vadd.f32 %v5340_v58, %v5339_v0  ;;  %v5342_v22 = vpop.f32.mrb[90].mxu1  ;;  %v7472_v57 = vadd.f32 %v5581_v37, %v5580_v19  ;;  %v5583_v56 = vpop.f32.mrb[90].mxu0 }
 0x1b7   : > { %v5343_v18 = vpop.f32.mrb[91].mxu1  ;;  %v5584_v48 = vpop.f32.mrb[91].mxu0 }
 0x1b8   : > { %7996 = vst [vmem:[#allocation9_spill] sm:$0xff] %v7472_v57  ;;  %v7477_v2 = vadd.f32 %v5341_v41, %v7278_v53  ;;  %v5344_v17 = vadd.f32 %v5343_v18, %v5342_v22  ;;  %v7479_v29 = vadd.f32 %v5584_v48, %v5583_v56  ;;  %v6612_v57 = vld [vmem:[%s7079_s7 + $0xf0] ss:$20 sps:$4 sm:$0xff]  }
 0x1b9   : > { %3682 = vmatmul.mubr.bf16.gmra.mrb[196].mxu1 %v6606_v32  ;;  %3907 = vmatmul.mubr.bf16.gmra.mrb[164].mxu0 %v6607_v42  ;;  %v6614_v18 = vld [vmem:[%s7079_s7 + $0x11c] ss:$20 sps:$4 sm:$0xff]   ;;  %v6616_v32 = vld [vmem:[%s7079_s7 + $0x264] ss:$20 sps:$4 sm:$0xff]  }
 0x1ba   : > { %7997 = vst [vmem:[#allocation10_spill] sm:$0xff] %v7479_v29  ;;  %v7482_v7 = vadd.f32 %v5344_v17, %v7282_v62  ;;  %3689 = vmatprep.mubr.bf16.mxu1 %v6608_v36  ;;  %3914 = vmatprep.mubr.bf16.mxu0 %v6610_v8  ;;  %v6619_v29 = vld [vmem:[%s7079_s7 + $0x260] ss:$20 sps:$4 sm:$0xff]  }
 0x1bc   : > { %v5345_v0 = vpop.f32.mrb[92].mxu1  ;;  %v5586_v19 = vpop.f32.mrb[92].mxu0 }
 0x1bd   : > { %v5346_v58 = vpop.f32.mrb[93].mxu1  ;;  %v5587_v37 = vpop.f32.mrb[93].mxu0 }
 0x1be   : > { %v5347_v53 = vadd.f32 %v5346_v58, %v5345_v0  ;;  %v5348_v41 = vpop.f32.mrb[94].mxu1  ;;  %v7486_v22 = vadd.f32 %v5587_v37, %v5586_v19  ;;  %v5589_v56 = vpop.f32.mrb[94].mxu0 }
 0x1bf   : > { %v5349_v42 = vpop.f32.mrb[95].mxu1  ;;  %v5590_v62 = vpop.f32.mrb[95].mxu0 }
 0x1c0   : > { %7998 = vst [vmem:[#allocation11_spill] sm:$0xff] %v7486_v22  ;;  %v7491_v36 = vadd.f32 %v5347_v53, %v7288_v5  ;;  %v5350_v8 = vadd.f32 %v5349_v42, %v5348_v41  ;;  %v7493_v48 = vadd.f32 %v5590_v62, %v5589_v56  ;;  %v6618_v22 = vld [vmem:[%s7079_s7 + $0x118] ss:$20 sps:$4 sm:$0xff]  }
 0x1c1   : > { %3690 = vmatmul.mubr.bf16.gmra.mrb[200].mxu1 %v6612_v57  ;;  %3915 = vmatmul.mubr.bf16.gmra.mrb[168].mxu0 %v6613_v6  ;;  %v6620_v42 = vld [vmem:[%s7079_s7 + $0x144] ss:$20 sps:$4 sm:$0xff]  }
 0x1c2   : > { %v7496_v17 = vadd.f32 %v5350_v8, %v7292_v14  ;;  %3697 = vmatprep.mubr.bf16.mxu1 %v6614_v18  ;;  %3922 = vmatprep.mubr.bf16.mxu0 %v6616_v32  ;;  %v6622_v57 = vld [vmem:[%s7079_s7 + $0x10] ss:$20 sps:$4 sm:$0xff]  }
 0x1c4   : > { %v5351_v0 = vpop.f32.mrb[96].mxu1  ;;  %v5592_v19 = vpop.f32.mrb[96].mxu0 }
 0x1c5   : > { %v5352_v58 = vpop.f32.mrb[97].mxu1  ;;  %v5593_v37 = vpop.f32.mrb[97].mxu0 }
 0x1c6   : > { %v5353_v5 = vadd.f32 %v5352_v58, %v5351_v0  ;;  %v5354_v53 = vpop.f32.mrb[98].mxu1  ;;  %v7500_v41 = vadd.f32 %v5593_v37, %v5592_v19  ;;  %v5595_v56 = vpop.f32.mrb[98].mxu0 }
 0x1c7   : > { %v5355_v6 = vpop.f32.mrb[99].mxu1  ;;  %v5596_v14 = vpop.f32.mrb[99].mxu0 }
 0x1c8   : > { %7999 = vst [vmem:[#allocation12_spill] sm:$0xff] %v7500_v41  ;;  %v7505_v18 = vadd.f32 %v5353_v5, %v7298_v21  ;;  %v5356_v32 = vadd.f32 %v5355_v6, %v5354_v53  ;;  %v7507_v62 = vadd.f32 %v5596_v14, %v5595_v56  ;;  %v6623_v41 = vld [vmem:[%s7079_s7 + $0x140] ss:$20 sps:$4 sm:$0xff]   ;;  %v6624_v21 = vld [vmem:[%s7079_s7 + $0x38] ss:$20 sps:$4 sm:$0xff]  }
 0x1c9   : > { %3698 = vmatmul.mubr.bf16.gmra.mrb[204].mxu1 %v6618_v22  ;;  %3923 = vmatmul.mubr.bf16.gmra.mrb[172].mxu0 %v6619_v29  ;;  %v6625_v22 = vld [vmem:[%s7079_s7 + $0x16c] ss:$20 sps:$4 sm:$0xff]  }
 0x1ca   : > { %v7510_v8 = vadd.f32 %v5356_v32, %v7302_v27  ;;  %3705 = vmatprep.mubr.bf16.mxu1 %v6620_v42  ;;  %5944 = vmatprep.mubr.msk.bf16.mxu0 %vm1132_vm0, %v6622_v57  ;;  %v6627_v29 = vld [vmem:[%s7079_s7 + $0x60] ss:$20 sps:$4 sm:$0xff]  }
 0x1cc   : > { %v5357_v0 = vpop.f32.mrb[100].mxu1  ;;  %v5598_v19 = vpop.f32.mrb[100].mxu0 }
 0x1cd   : > { %v5358_v58 = vpop.f32.mrb[101].mxu1  ;;  %v5599_v37 = vpop.f32.mrb[101].mxu0 }
 0x1ce   : > { %v5359_v5 = vadd.f32 %v5358_v58, %v5357_v0  ;;  %v5360_v53 = vpop.f32.mrb[102].mxu1  ;;  %v7515_v56 = vadd.f32 %v5599_v37, %v5598_v19  ;;  %v5601_v6 = vpop.f32.mrb[102].mxu0 }
 0x1cf   : > { %v5361_v27 = vpop.f32.mrb[103].mxu1  ;;  %v5602_v14 = vpop.f32.mrb[103].mxu0 }
 0x1d0   : > { %8000 = vst [vmem:[#allocation13_spill] sm:$0xff] %v7515_v56  ;;  %v7520_v42 = vadd.f32 %v5359_v5, %v7307_v35  ;;  %v5362_v57 = vadd.f32 %v5361_v27, %v5360_v53  ;;  %v7522_v32 = vadd.f32 %v5602_v14, %v5601_v6  ;;  %v6628_v35 = vld [vmem:[%s7079_s7 + $0x168] ss:$20 sps:$4 sm:$0xff]  }
 0x1d1   : > { %3706 = vmatmul.mubr.bf16.gmra.mrb[208].mxu1 %v6623_v41  ;;  %5945 = vmatmul.mubr.msk.bf16.vlgmr.msra.gmra.mrb[16].mxu0 %vm1132_vm0, %v6624_v21  ;;  %v6629_v5 = vld [vmem:[%s7079_s7 + $0x88] ss:$20 sps:$4 sm:$0xff]   ;;  %v6632_v21 = vld [vmem:[%s7079_s7 + $0xb0] ss:$20 sps:$4 sm:$0xff]  }
 0x1d2   : > { %8001 = vst [vmem:[#allocation14_spill] sm:$0xff] %v7522_v32  ;;  %v7526_v0 = vadd.f32 %v5362_v57, %v7311_v44  ;;  %3713 = vmatprep.mubr.bf16.mxu1 %v6625_v22  ;;  %5948 = vmatprep.mubr.msk.bf16.mxu0 %vm1132_vm0, %v6627_v29  ;;  %v6630_v14 = vld [vmem:[%s7079_s7 + $0x194] ss:$20 sps:$4 sm:$0xff]  }
 0x1d4   : > { %v5363_v19 = vpop.f32.mrb[104].mxu1  ;;  %v5604_v58 = vpop.f32.mrb[104].mxu0 }
 0x1d5   : > { %v5364_v37 = vpop.f32.mrb[105].mxu1  ;;  %v5605_v56 = vpop.f32.mrb[105].mxu0 }
 0x1d6   : > { %v5365_v53 = vadd.f32 %v5364_v37, %v5363_v19  ;;  %v5366_v6 = vpop.f32.mrb[106].mxu1  ;;  %v7531_v27 = vadd.f32 %v5605_v56, %v5604_v58  ;;  %v5607_v41 = vpop.f32.mrb[106].mxu0 }
 0x1d7   : > { %v5367_v44 = vpop.f32.mrb[107].mxu1  ;;  %v5608_v57 = vpop.f32.mrb[107].mxu0 }
 0x1d8   : > { %8002 = vst [vmem:[#allocation15_spill] sm:$0xff] %v7531_v27  ;;  %v7536_v22 = vadd.f32 %v5365_v53, %v7316_v50  ;;  %v5368_v29 = vadd.f32 %v5367_v44, %v5366_v6  ;;  %v7538_v32 = vadd.f32 %v5608_v57, %v5607_v41  ;;  %v6633_v50 = vld [vmem:[%s7079_s7 + $0x190] ss:$20 sps:$4 sm:$0xff]   ;;  %v6634_v53 = vld [vmem:[%s7079_s7 + $0xd8] ss:$20 sps:$4 sm:$0xff]  }
 0x1d9   : > { %3714 = vmatmul.mubr.bf16.gmra.mrb[212].mxu1 %v6628_v35  ;;  %5949 = vmatmul.mubr.msk.bf16.gmra.mrb[20].mxu0 %vm1132_vm0, %v6629_v5  ;;  %v6635_v5 = vld [vmem:[%s7079_s7 + $0x1bc] ss:$20 sps:$4 sm:$0xff]   ;;  %v6637_v57 = vld [vmem:[%s7079_s7 + $0x100] ss:$20 sps:$4 sm:$0xff]  }
 0x1da   : > { %8003 = vst [vmem:[#allocation16_spill] sm:$0xff] %v7538_v32  ;;  %v7542_v56 = vadd.f32 %v5368_v29, %v7320_v59  ;;  %3721 = vmatprep.mubr.bf16.mxu1 %v6630_v14  ;;  %5952 = vmatprep.mubr.msk.bf16.mxu0 %vm1132_vm0, %v6632_v21 }
 0x1dc   : > { %8004 = vst [vmem:[#allocation17_spill] sm:$0xff] %v7542_v56  ;;  %v5369_v19 = vpop.f32.mrb[108].mxu1  ;;  %v5610_v58 = vpop.f32.mrb[108].mxu0 }
 0x1dd   : > { %v5370_v37 = vpop.f32.mrb[109].mxu1  ;;  %v5611_v27 = vpop.f32.mrb[109].mxu0 }
 0x1de   : > { %v5371_v6 = vadd.f32 %v5370_v37, %v5369_v19  ;;  %v5372_v41 = vpop.f32.mrb[110].mxu1  ;;  %v7547_v44 = vadd.f32 %v5611_v27, %v5610_v58  ;;  %v5613_v35 = vpop.f32.mrb[110].mxu0  ;;  %v6638_v37 = vld [vmem:[%s7079_s7 + $0x1b8] ss:$20 sps:$4 sm:$0xff]  }
 0x1df   : > { %v5373_v59 = vpop.f32.mrb[111].mxu1  ;;  %v5614_v14 = vpop.f32.mrb[111].mxu0 }
 0x1e0   : > { %8005 = vst [vmem:[#allocation18_spill] sm:$0xff] %v7547_v44  ;;  %v7552_v21 = vadd.f32 %v5371_v6, %v7324_v3  ;;  %v5374_v29 = vadd.f32 %v5373_v59, %v5372_v41  ;;  %v7554_v32 = vadd.f32 %v5614_v14, %v5613_v35  ;;  %v6639_v44 = vld [vmem:[%s7079_s7 + $0x128] ss:$20 sps:$4 sm:$0xff]   ;;  %v6640_v6 = vld [vmem:[%s7079_s7 + $0x1e4] ss:$20 sps:$4 sm:$0xff]  }
 0x1e1   : > { %3722 = vmatmul.mubr.bf16.gmra.mrb[216].mxu1 %v6633_v50  ;;  %5953 = vmatmul.mubr.msk.bf16.gmra.mrb[24].mxu0 %vm1132_vm0, %v6634_v53  ;;  %v6642_v41 = vld [vmem:[%s7079_s7 + $0x150] ss:$20 sps:$4 sm:$0xff]  }
 0x1e2   : > { %v7558_v27 = vadd.f32 %v5374_v29, %v7328_v13  ;;  %3729 = vmatprep.mubr.bf16.mxu1 %v6635_v5  ;;  %5956 = vmatprep.mubr.msk.bf16.mxu0 %vm1132_vm0, %v6637_v57  ;;  %v6643_v29 = vld [vmem:[%s7079_s7 + $0x1e0] ss:$20 sps:$4 sm:$0xff]  }
 0x1e4   : > { %v5408_v19 = vpop.f32.mrb[112].mxu1 }
 0x1e5   : > { %v5409_v58 = vpop.f32.mrb[113].mxu1 }
 0x1e6   : > { %v5410_v56 = vadd.f32 %v5409_v58, %v5408_v19  ;;  %v5411_v3 = vpop.f32.mrb[114].mxu1  ;;  %v6647_v58 = vld [vmem:[%s7079_s7 + $0x1a0] ss:$20 sps:$4 sm:$0xff]  }
 0x1e7   : > { %v5412_v35 = vpop.f32.mrb[115].mxu1 }
 0x1e8   : > { %v5996_v50 = vadd.f32 %v5410_v56, %v7337_v39  ;;  %v5413_v13 = vadd.f32 %v5412_v35, %v5411_v3  ;;  %v6644_v39 = vld [vmem:[%s7079_s7 + $0x178] ss:$20 sps:$4 sm:$0xff]  }
 0x1e9   : > { %3730 = vmatmul.mubr.bf16.gmra.mrb[220].mxu1 %v6638_v37  ;;  %5957 = vmatmul.mubr.msk.bf16.gmra.mrb[28].mxu0 %vm1132_vm0, %v6639_v44  ;;  %v6645_v44 = vld [vmem:[%s7079_s7 + $0x20c] ss:$20 sps:$4 sm:$0xff]  }
 0x1ea   : > { %v6004_v53 = vadd.f32 %v5413_v13, %v7342_v46  ;;  %3737 = vmatprep.mubr.bf16.mxu1 %v6640_v6  ;;  %5960 = vmatprep.mubr.msk.bf16.mxu0 %vm1132_vm0, %v6642_v41  ;;  %v7570_v5 = vadd.f32 %v5996_v50, %v7332_v28  ;;  %v6648_v50 = vld [vmem:[%s7079_s7 + $0x208] ss:$20 sps:$4 sm:$0xff]  }
 0x1ec   : > { %v5414_v57 = vpop.f32.mrb[116].mxu1  ;;  %v7573_v59 = vadd.f32 %v6004_v53, %v7339_v45 }
 0x1ed   : > { %v5415_v14 = vpop.f32.mrb[117].mxu1 }
 0x1ee   : > { %v5416_v56 = vadd.f32 %v5415_v14, %v5414_v57  ;;  %v5417_v19 = vpop.f32.mrb[118].mxu1  ;;  %v6650_v57 = vld [vmem:[%s7079_s7 + $0x234] ss:$20 sps:$4 sm:$0xff]   ;;  %v6652_v14 = vld [vmem:[%s7079_s7 + $0x1f0] ss:$20 sps:$4 sm:$0xff]  }
 0x1ef   : > { %v5418_v46 = vpop.f32.mrb[119].mxu1 }
 0x1f0   : > { %v5992_v37 = vadd.f32 %v5416_v56, %v7351_v11  ;;  %v5419_v28 = vadd.f32 %v5418_v46, %v5417_v19  ;;  %v6649_v11 = vld [vmem:[%s7079_s7 + $0x1c8] ss:$20 sps:$4 sm:$0xff]  }
 0x1f1   : > { %3738 = vmatmul.mubr.bf16.gmra.mrb[224].mxu1 %v6643_v29  ;;  %5961 = vmatmul.mubr.msk.bf16.gmra.mrb[32].mxu0 %vm1132_vm0, %v6644_v39 }
 0x1f2   : > { %v6000_v45 = vadd.f32 %v5419_v28, %v7356_v16  ;;  %3745 = vmatprep.mubr.bf16.mxu1 %v6645_v44  ;;  %5964 = vmatprep.mubr.msk.bf16.mxu0 %vm1132_vm0, %v6647_v58  ;;  %v7584_v3 = vadd.f32 %v5992_v37, %v7346_v61  ;;  %v6653_v58 = vld [vmem:[%s7079_s7 + $0x230] ss:$20 sps:$4 sm:$0xff]  }
 0x1f3   : > { %v6655_v28 = vld [vmem:[%s7079_s7 + $0x25c] ss:$20 sps:$4 sm:$0xff]  }
 0x1f4   : > { %v5420_v6 = vpop.f32.mrb[120].mxu1  ;;  %v7587_v41 = vadd.f32 %v6000_v45, %v7353_v15  ;;  %v6657_v45 = vld [vmem:[%s7079_s7 + $0x240] ss:$20 sps:$4 sm:$0xff]  }
 0x1f5   : > { %v5421_v35 = vpop.f32.mrb[121].mxu1 }
 0x1f6   : > { %v5422_v13 = vadd.f32 %v5421_v35, %v5420_v6  ;;  %v5423_v53 = vpop.f32.mrb[122].mxu1 }
 0x1f7   : > { %v5424_v16 = vpop.f32.mrb[123].mxu1 }
 0x1f8   : > { %v6012_v29 = vadd.f32 %v5422_v13, %v7365_v47  ;;  %v5425_v61 = vadd.f32 %v5424_v16, %v5423_v53  ;;  %v6654_v47 = vld [vmem:[%s7079_s7 + $0x218] ss:$20 sps:$4 sm:$0xff]  }
 0x1f9   : > { %3746 = vmatmul.mubr.bf16.gmra.mrb[228].mxu1 %v6648_v50  ;;  %5965 = vmatmul.mubr.msk.bf16.gmra.mrb[36].mxu0 %vm1132_vm0, %v6649_v11  ;;  %v6658_v53 = vld [vmem:[%s7079_s7 + $0x258] ss:$20 sps:$4 sm:$0xff]  }
 0x1fa   : > { %v6020_v15 = vadd.f32 %v5425_v61, %v7370_v52  ;;  %3753 = vmatprep.mubr.bf16.mxu1 %v6650_v57  ;;  %5968 = vmatprep.mubr.msk.bf16.mxu0 %vm1132_vm0, %v6652_v14  ;;  %v7598_v39 = vadd.f32 %v6012_v29, %v7360_v31  ;;  %v6659_v57 = vld [vmem:[%s7079_s7 + $0x268] ss:$20 sps:$4 sm:$0xff]  }
 0x1fc   : > { %v5426_v56 = vpop.f32.mrb[124].mxu1  ;;  %v7601_v19 = vadd.f32 %v6020_v15, %v7367_v51 }
 0x1fd   : > { %v5427_v44 = vpop.f32.mrb[125].mxu1 }
 0x1fe   : > { %v5428_v46 = vadd.f32 %v5427_v44, %v5426_v56  ;;  %v5429_v37 = vpop.f32.mrb[126].mxu1 }
 0x1ff   : > { %v5430_v52 = vpop.f32.mrb[127].mxu1 }
 0x200   : > { %v6008_v6 = vadd.f32 %v5428_v46, %v7379_v23  ;;  %v5431_v35 = vadd.f32 %v5430_v52, %v5429_v37 }
 0x201   : > { %3754 = vmatmul.mubr.bf16.gmra.mrb[232].mxu1 %v6653_v58  ;;  %5969 = vmatmul.mubr.msk.bf16.gmra.mrb[40].mxu0 %vm1132_vm0, %v6654_v47 }
 0x202   : > { %v6016_v31 = vadd.f32 %v5431_v35, %v7384_v26  ;;  %3761 = vmatprep.mubr.bf16.mxu1 %v6655_v28  ;;  %5972 = vmatprep.mubr.msk.bf16.mxu0 %vm1132_vm0, %v6657_v45  ;;  %v7612_v51 = vadd.f32 %v6008_v6, %v7374_v9 }
 0x204   : > { %v5432_v50 = vpop.f32.mrb[128].mxu1  ;;  %v7615_v11 = vadd.f32 %v6016_v31, %v7381_v25 }
 0x205   : > { %v5433_v13 = vpop.f32.mrb[129].mxu1 }
 0x206   : > { %v5434_v23 = vadd.f32 %v5433_v13, %v5432_v50  ;;  %v5435_v14 = vpop.f32.mrb[130].mxu1  ;;  %v8006_v13 = vld [vmem:[#allocation2_spill] sm:$0xff] }
 0x207   : > { %v5436_v16 = vpop.f32.mrb[131].mxu1 }
 0x208   : > { %v6028_v29 = vadd.f32 %v5434_v23, %v7393_v63  ;;  %v5437_v61 = vadd.f32 %v5436_v16, %v5435_v14 }
 0x209   : > { %3762 = vmatmul.mubr.bf16.gmra.mrb[236].mxu1 %v6658_v53  ;;  %5973 = vmatmul.mubr.msk.bf16.gmra.mrb[44].mxu0 %vm1132_vm0, %v6659_v57 }
 0x20a   : > { %v6036_v26 = vadd.f32 %v5437_v61, %v7398_v4  ;;  %v7623_v9 = vadd.f32 %v6028_v29, %v7388_v49 }
 0x20c   : > { %v5438_v15 = vpop.f32.mrb[132].mxu1  ;;  %v7626_v25 = vadd.f32 %v6036_v26, %v7395_v34 }
 0x20d   : > { %v5439_v56 = vpop.f32.mrb[133].mxu1 }
 0x20e   : > { %v5440_v44 = vadd.f32 %v5439_v56, %v5438_v15  ;;  %v5441_v58 = vpop.f32.mrb[134].mxu1 }
 0x20f   : > { %v5442_v47 = vpop.f32.mrb[135].mxu1 }
 0x210   : > { %v6024_v46 = vadd.f32 %v5440_v44, %v7407_v60  ;;  %v5443_v63 = vadd.f32 %v5442_v47, %v5441_v58 }
 0x212   : > { %v6032_v37 = vadd.f32 %v5443_v63, %v7412_v55  ;;  %v7631_v28 = vadd.f32 %v6024_v46, %v7402_v30 }
 0x214   : > { %v5444_v4 = vpop.f32.mrb[136].mxu1  ;;  %v7634_v49 = vadd.f32 %v6032_v37, %v7409_v54 }
 0x215   : > { %v5445_v45 = vpop.f32.mrb[137].mxu1 }
 0x216   : > { %v5446_v52 = vadd.f32 %v5445_v45, %v5444_v4  ;;  %v5447_v34 = vpop.f32.mrb[138].mxu1 }
 0x217   : > { %v5448_v6 = vpop.f32.mrb[139].mxu1 }
 0x218   : > { %v6044_v35 = vadd.f32 %v5446_v52, %v7421_v33  ;;  %v5449_v31 = vadd.f32 %v5448_v6, %v5447_v34  ;;  %v8007_v33 = vld [vmem:[#allocation3_spill] sm:$0xff]  ;;  %v8009_v34 = vld [vmem:[#allocation5_spill] sm:$0xff] }
 0x21a   : > { %v6052_v50 = vadd.f32 %v5449_v31, %v7426_v40  ;;  %v7639_v60 = vadd.f32 %v6044_v35, %v7416_v43  ;;  %v8008_v43 = vld [vmem:[#allocation4_spill] sm:$0xff] }
 0x21c   : > { %v5450_v55 = vpop.f32.mrb[140].mxu1  ;;  %v7642_v30 = vadd.f32 %v6052_v50, %v8006_v13  ;;  %v8010_v50 = vld [vmem:[#allocation6_spill] sm:$0xff] }
 0x21d   : > { %v5451_v53 = vpop.f32.mrb[141].mxu1 }
 0x21e   : > { %v5452_v57 = vadd.f32 %v5451_v53, %v5450_v55  ;;  %v5453_v54 = vpop.f32.mrb[142].mxu1 }
 0x21f   : > { %v5454_v23 = vpop.f32.mrb[143].mxu1 }
 0x220   : > { %v6040_v14 = vadd.f32 %v5452_v57, %v7435_v10  ;;  %v5455_v16 = vadd.f32 %v5454_v23, %v5453_v54 }
 0x222   : > { %v6048_v29 = vadd.f32 %v5455_v16, %v7440_v38  ;;  %v7647_v61 = vadd.f32 %v6040_v14, %v8007_v33 }
 0x224   : > { %v5456_v40 = vpop.f32.mrb[144].mxu1  ;;  %v5761_v26 = vpop.f32.mrb[112].mxu0  ;;  %v7650_v15 = vadd.f32 %v6048_v29, %v8008_v43 }
 0x225   : > { %v5457_v56 = vpop.f32.mrb[145].mxu1  ;;  %v5762_v44 = vpop.f32.mrb[113].mxu0 }
 0x226   : > { %v5458_v58 = vadd.f32 %v5457_v56, %v5456_v40  ;;  %v5459_v47 = vpop.f32.mrb[146].mxu1  ;;  %v7652_v46 = vadd.f32 %v5762_v44, %v5761_v26  ;;  %v5764_v63 = vpop.f32.mrb[114].mxu0  ;;  %v8011_v26 = vld [vmem:[#allocation7_spill] sm:$0xff] }
 0x227   : > { %v5460_v37 = vpop.f32.mrb[147].mxu1  ;;  %v5765_v10 = vpop.f32.mrb[115].mxu0 }
 0x228   : > { %v6060_v4 = vadd.f32 %v5458_v58, %v7449_v24  ;;  %v5461_v38 = vadd.f32 %v5460_v37, %v5459_v47  ;;  %v7655_v45 = vadd.f32 %v5765_v10, %v5764_v63  ;;  %v8012_v58 = vld [vmem:[#allocation8_spill] sm:$0xff] }
 0x22a   : > { %v6068_v52 = vadd.f32 %v5461_v38, %v7454_v20  ;;  %v7659_v6 = vadd.f32 %v6060_v4, %v8009_v34 }
 0x22c   : > { %v5462_v35 = vpop.f32.mrb[148].mxu1  ;;  %v5767_v31 = vpop.f32.mrb[116].mxu0  ;;  %v7662_v55 = vadd.f32 %v6068_v52, %v8010_v50 }
 0x22d   : > { %v5463_v13 = vpop.f32.mrb[149].mxu1  ;;  %v5768_v53 = vpop.f32.mrb[117].mxu0 }
 0x22e   : > { %v5464_v57 = vadd.f32 %v5463_v13, %v5462_v35  ;;  %v5465_v54 = vpop.f32.mrb[150].mxu1  ;;  %v7664_v23 = vadd.f32 %v5768_v53, %v5767_v31  ;;  %v5770_v24 = vpop.f32.mrb[118].mxu0  ;;  %v8013_v13 = vld [vmem:[#allocation9_spill] sm:$0xff] }
 0x22f   : > { %v5466_v14 = vpop.f32.mrb[151].mxu1  ;;  %v5771_v16 = vpop.f32.mrb[119].mxu0 }
 0x230   : > { %v6056_v29 = vadd.f32 %v5464_v57, %v7463_v12  ;;  %v5467_v20 = vadd.f32 %v5466_v14, %v5465_v54  ;;  %v7667_v33 = vadd.f32 %v5771_v16, %v5770_v24  ;;  %v8014_v24 = vld [vmem:[#allocation10_spill] sm:$0xff] }
 0x232   : > { %v6064_v40 = vadd.f32 %v5467_v20, %v7468_v1  ;;  %v7671_v43 = vadd.f32 %v6056_v29, %v8011_v26 }
 0x234   : > { %v5468_v56 = vpop.f32.mrb[152].mxu1  ;;  %v5773_v44 = vpop.f32.mrb[120].mxu0  ;;  %v7674_v47 = vadd.f32 %v6064_v40, %v8012_v58 }
 0x235   : > { %v5469_v63 = vpop.f32.mrb[153].mxu1  ;;  %v5774_v37 = vpop.f32.mrb[121].mxu0 }
 0x236   : > { %v5470_v10 = vadd.f32 %v5469_v63, %v5468_v56  ;;  %v5471_v4 = vpop.f32.mrb[154].mxu1  ;;  %v7676_v38 = vadd.f32 %v5774_v37, %v5773_v44  ;;  %v5776_v12 = vpop.f32.mrb[122].mxu0 }
 0x237   : > { %v5472_v52 = vpop.f32.mrb[155].mxu1  ;;  %v5777_v34 = vpop.f32.mrb[123].mxu0 }
 0x238   : > { %v6076_v35 = vadd.f32 %v5470_v10, %v7477_v2  ;;  %v5473_v1 = vadd.f32 %v5472_v52, %v5471_v4  ;;  %v7679_v31 = vadd.f32 %v5777_v34, %v5776_v12  ;;  %v8015_v10 = vld [vmem:[#allocation11_spill] sm:$0xff] }
 0x23a   : > { %v6084_v50 = vadd.f32 %v5473_v1, %v7482_v7  ;;  %v7683_v53 = vadd.f32 %v6076_v35, %v8013_v13 }
 0x23c   : > { %v5474_v57 = vpop.f32.mrb[156].mxu1  ;;  %v5779_v54 = vpop.f32.mrb[124].mxu0  ;;  %v7686_v14 = vadd.f32 %v6084_v50, %v8014_v24 }
 0x23d   : > { %v5475_v16 = vpop.f32.mrb[157].mxu1  ;;  %v5780_v29 = vpop.f32.mrb[125].mxu0 }
 0x23e   : > { %v5476_v20 = vadd.f32 %v5475_v16, %v5474_v57  ;;  %v5477_v40 = vpop.f32.mrb[158].mxu1  ;;  %v7688_v26 = vadd.f32 %v5780_v29, %v5779_v54  ;;  %v5782_v2 = vpop.f32.mrb[126].mxu0 }
 0x23f   : > { %v5478_v56 = vpop.f32.mrb[159].mxu1  ;;  %v5783_v44 = vpop.f32.mrb[127].mxu0 }
 0x240   : > { %v6072_v58 = vadd.f32 %v5476_v20, %v7491_v36  ;;  %v5479_v7 = vadd.f32 %v5478_v56, %v5477_v40  ;;  %v7691_v63 = vadd.f32 %v5783_v44, %v5782_v2  ;;  %v8016_v40 = vld [vmem:[#allocation12_spill] sm:$0xff] }
 0x242   : > { %v6080_v37 = vadd.f32 %v5479_v7, %v7496_v17  ;;  %v7695_v4 = vadd.f32 %v6072_v58, %v8015_v10 }
 0x244   : > { %v5480_v12 = vpop.f32.mrb[160].mxu1  ;;  %v5785_v52 = vpop.f32.mrb[128].mxu0  ;;  %v7698_v34 = vadd.f32 %v6080_v37, %v7493_v48 }
 0x245   : > { %v5481_v35 = vpop.f32.mrb[161].mxu1  ;;  %v5786_v1 = vpop.f32.mrb[129].mxu0 }
 0x246   : > { %v5482_v50 = vadd.f32 %v5481_v35, %v5480_v12  ;;  %v5483_v13 = vpop.f32.mrb[162].mxu1  ;;  %v7700_v57 = vadd.f32 %v5786_v1, %v5785_v52  ;;  %v5788_v36 = vpop.f32.mrb[130].mxu0 }
 0x247   : > { %v5484_v54 = vpop.f32.mrb[163].mxu1  ;;  %v5789_v24 = vpop.f32.mrb[131].mxu0 }
 0x248   : > { %v6092_v16 = vadd.f32 %v5482_v50, %v7505_v18  ;;  %v5485_v17 = vadd.f32 %v5484_v54, %v5483_v13  ;;  %v7703_v29 = vadd.f32 %v5789_v24, %v5788_v36  ;;  %v8017_v36 = vld [vmem:[#allocation13_spill] sm:$0xff] }
 0x24a   : > { %v6100_v20 = vadd.f32 %v5485_v17, %v7510_v8  ;;  %v7707_v2 = vadd.f32 %v6092_v16, %v8016_v40  ;;  %v8019_v16 = vld [vmem:[#allocation14_spill] sm:$0xff] }
 0x24c   : > { %v5486_v48 = vpop.f32.mrb[164].mxu1  ;;  %v5791_v56 = vpop.f32.mrb[132].mxu0  ;;  %v7710_v44 = vadd.f32 %v6100_v20, %v7507_v62 }
 0x24d   : > { %v5487_v58 = vpop.f32.mrb[165].mxu1  ;;  %v5792_v7 = vpop.f32.mrb[133].mxu0 }
 0x24e   : > { %v5488_v37 = vadd.f32 %v5487_v58, %v5486_v48  ;;  %v5489_v10 = vpop.f32.mrb[166].mxu1  ;;  %v7712_v12 = vadd.f32 %v5792_v7, %v5791_v56  ;;  %v5794_v18 = vpop.f32.mrb[134].mxu0 }
 0x24f   : > { %v5490_v52 = vpop.f32.mrb[167].mxu1  ;;  %v5795_v35 = vpop.f32.mrb[135].mxu0 }
 0x250   : > { %v6088_v1 = vadd.f32 %v5488_v37, %v7520_v42  ;;  %v5491_v8 = vadd.f32 %v5490_v52, %v5489_v10  ;;  %v7715_v50 = vadd.f32 %v5795_v35, %v5794_v18  ;;  %v8021_v52 = vld [vmem:[#allocation17_spill] sm:$0xff] }
 0x252   : > { %v6096_v13 = vadd.f32 %v5491_v8, %v7526_v0  ;;  %v7719_v54 = vadd.f32 %v6088_v1, %v8017_v36  ;;  %v8022_v1 = vld [vmem:[#allocation15_spill] sm:$0xff] }
 0x254   : > { %8018 = vst [vmem:[#allocation2_spill] sm:$0xff] %v7719_v54  ;;  %v5492_v62 = vpop.f32.mrb[168].mxu1  ;;  %v5797_v24 = vpop.f32.mrb[136].mxu0  ;;  %v7722_v17 = vadd.f32 %v6096_v13, %v8019_v16  ;;  %v8023_v16 = vld [vmem:[#allocation16_spill] sm:$0xff] }
 0x255   : > { %v5493_v20 = vpop.f32.mrb[169].mxu1  ;;  %v5798_v40 = vpop.f32.mrb[137].mxu0 }
 0x256   : > { %8020 = vst [vmem:[#allocation3_spill] sm:$0xff] %v7722_v17  ;;  %v5494_v48 = vadd.f32 %v5493_v20, %v5492_v62  ;;  %v5495_v56 = vpop.f32.mrb[170].mxu1  ;;  %v7724_v58 = vadd.f32 %v5798_v40, %v5797_v24  ;;  %v5800_v42 = vpop.f32.mrb[138].mxu0 }
 0x257   : > { %v5496_v7 = vpop.f32.mrb[171].mxu1  ;;  %v5801_v37 = vpop.f32.mrb[139].mxu0 }
 0x258   : > { %v6108_v10 = vadd.f32 %v5494_v48, %v7536_v22  ;;  %v5497_v0 = vadd.f32 %v5496_v7, %v5495_v56  ;;  %v7727_v18 = vadd.f32 %v5801_v37, %v5800_v42 }
 0x25a   : > { %v6116_v35 = vadd.f32 %v5497_v0, %v8021_v52  ;;  %v7731_v8 = vadd.f32 %v6108_v10, %v8022_v1  ;;  %v8025_v10 = vld [vmem:[#allocation18_spill] sm:$0xff] }
 0x25c   : > { %v5498_v13 = vpop.f32.mrb[172].mxu1  ;;  %v5803_v36 = vpop.f32.mrb[140].mxu0  ;;  %v7734_v62 = vadd.f32 %v6116_v35, %v8023_v16 }
 0x25d   : > { %v5499_v24 = vpop.f32.mrb[173].mxu1  ;;  %v5804_v20 = vpop.f32.mrb[141].mxu0 }
 0x25e   : > { %8024 = vst [vmem:[#allocation4_spill] sm:$0xff] %v7734_v62  ;;  %v5500_v40 = vadd.f32 %v5499_v24, %v5498_v13  ;;  %v5501_v17 = vpop.f32.mrb[174].mxu1  ;;  %v7736_v54 = vadd.f32 %v5804_v20, %v5803_v36  ;;  %v5806_v22 = vpop.f32.mrb[142].mxu0 }
 0x25f   : > { %v5502_v48 = vpop.f32.mrb[175].mxu1  ;;  %v5807_v56 = vpop.f32.mrb[143].mxu0 }
 0x260   : > { %v6104_v42 = vadd.f32 %v5500_v40, %v7552_v21  ;;  %v5503_v7 = vadd.f32 %v5502_v48, %v5501_v17  ;;  %v7739_v37 = vadd.f32 %v5807_v56, %v5806_v22 }
 0x262   : > { %v7742_v0 = vadd.f32 %v6104_v42, %v8025_v10  ;;  %v6112_v52 = vadd.f32 %v5503_v7, %v7558_v27 }
 0x264   : > { %v7746_v35 = vadd.f32 %v6112_v52, %v7554_v32  ;;  %v5649_v1 = vpop.f32.mrb[176].mxu1  ;;  %v5809_v13 = vpop.f32.mrb[144].mxu0 }
 0x265   : > { %v5650_v36 = vpop.f32.mrb[177].mxu1  ;;  %v5810_v16 = vpop.f32.mrb[145].mxu0 }
 0x266   : > { %v5651_v24 = vadd.f32 %v5650_v36, %v5649_v1  ;;  %v5652_v20 = vpop.f32.mrb[178].mxu1  ;;  %v7748_v62 = vadd.f32 %v5810_v16, %v5809_v13  ;;  %v5812_v21 = vpop.f32.mrb[146].mxu0 }
 0x267   : > { %v5653_v17 = vpop.f32.mrb[179].mxu1  ;;  %v5813_v40 = vpop.f32.mrb[147].mxu0 }
 0x268   : > { %v3805_v22 = vadd.f32 %v7652_v46, %v5651_v24  ;;  %v5654_v48 = vadd.f32 %v5653_v17, %v5652_v20  ;;  %v7751_v56 = vadd.f32 %v5813_v40, %v5812_v21 }
 0x26a   : > { %v3808_v27 = vadd.f32 %v7655_v45, %v5654_v48  ;;  %v7755_v32 = vadd.f32 %v7570_v5, %v3805_v22 }
 0x26c   : > { %v5655_v42 = vpop.f32.mrb[180].mxu1  ;;  %v5815_v7 = vpop.f32.mrb[148].mxu0  ;;  %v7758_v10 = vadd.f32 %v7573_v59, %v3808_v27 }
 0x26d   : > { %v5656_v52 = vpop.f32.mrb[181].mxu1  ;;  %v5816_v1 = vpop.f32.mrb[149].mxu0 }
 0x26e   : > { %v5657_v13 = vadd.f32 %v5656_v52, %v5655_v42  ;;  %v5658_v36 = vpop.f32.mrb[182].mxu1  ;;  %v7760_v16 = vadd.f32 %v5816_v1, %v5815_v7  ;;  %v5818_v46 = vpop.f32.mrb[150].mxu0 }
 0x26f   : > { %v5659_v24 = vpop.f32.mrb[183].mxu1  ;;  %v5819_v20 = vpop.f32.mrb[151].mxu0 }
 0x270   : > { %v3813_v21 = vadd.f32 %v7664_v23, %v5657_v13  ;;  %v5660_v45 = vadd.f32 %v5659_v24, %v5658_v36  ;;  %v7763_v17 = vadd.f32 %v5819_v20, %v5818_v46 }
 0x272   : > { %v3816_v5 = vadd.f32 %v7667_v33, %v5660_v45  ;;  %v7767_v40 = vadd.f32 %v7584_v3, %v3813_v21 }
 0x274   : > { %v5661_v59 = vpop.f32.mrb[184].mxu1  ;;  %v5821_v22 = vpop.f32.mrb[152].mxu0  ;;  %v7770_v48 = vadd.f32 %v7587_v41, %v3816_v5 }
 0x275   : > { %v5662_v27 = vpop.f32.mrb[185].mxu1  ;;  %v5822_v42 = vpop.f32.mrb[153].mxu0 }
 0x276   : > { %v5663_v7 = vadd.f32 %v5662_v27, %v5661_v59  ;;  %v5664_v52 = vpop.f32.mrb[186].mxu1  ;;  %v7772_v1 = vadd.f32 %v5822_v42, %v5821_v22  ;;  %v5824_v23 = vpop.f32.mrb[154].mxu0 }
 0x277   : > { %v5665_v13 = vpop.f32.mrb[187].mxu1  ;;  %v5825_v36 = vpop.f32.mrb[155].mxu0 }
 0x278   : > { %v3821_v46 = vadd.f32 %v7676_v38, %v5663_v7  ;;  %v5666_v33 = vadd.f32 %v5665_v13, %v5664_v52  ;;  %v7775_v24 = vadd.f32 %v5825_v36, %v5824_v23 }
 0x27a   : > { %v3824_v3 = vadd.f32 %v7679_v31, %v5666_v33  ;;  %v7779_v20 = vadd.f32 %v7598_v39, %v3821_v46 }
 0x27c   : > { %v5667_v41 = vpop.f32.mrb[188].mxu1  ;;  %v5827_v21 = vpop.f32.mrb[156].mxu0  ;;  %v7782_v45 = vadd.f32 %v7601_v19, %v3824_v3 }
 0x27d   : > { %v5668_v5 = vpop.f32.mrb[189].mxu1  ;;  %v5828_v59 = vpop.f32.mrb[157].mxu0 }
 0x27e   : > { %v5669_v22 = vadd.f32 %v5668_v5, %v5667_v41  ;;  %v5670_v27 = vpop.f32.mrb[190].mxu1  ;;  %v7784_v42 = vadd.f32 %v5828_v59, %v5827_v21  ;;  %v5830_v38 = vpop.f32.mrb[158].mxu0 }
 0x27f   : > { %v5671_v7 = vpop.f32.mrb[191].mxu1  ;;  %v5831_v52 = vpop.f32.mrb[159].mxu0 }
 0x280   : > { %v3829_v23 = vadd.f32 %v7688_v26, %v5669_v22  ;;  %v5672_v31 = vadd.f32 %v5671_v7, %v5670_v27  ;;  %v7787_v13 = vadd.f32 %v5831_v52, %v5830_v38 }
 0x282   : > { %v3832_v39 = vadd.f32 %v7691_v63, %v5672_v31  ;;  %v7791_v36 = vadd.f32 %v7612_v51, %v3829_v23 }
 0x284   : > { %v5673_v19 = vpop.f32.mrb[192].mxu1  ;;  %v5833_v46 = vpop.f32.mrb[160].mxu0  ;;  %v7794_v33 = vadd.f32 %v7615_v11, %v3832_v39 }
 0x285   : > { %v5674_v3 = vpop.f32.mrb[193].mxu1  ;;  %v5834_v41 = vpop.f32.mrb[161].mxu0 }
 0x286   : > { %v5675_v21 = vadd.f32 %v5674_v3, %v5673_v19  ;;  %v5676_v5 = vpop.f32.mrb[194].mxu1  ;;  %v7796_v59 = vadd.f32 %v5834_v41, %v5833_v46  ;;  %v5836_v26 = vpop.f32.mrb[162].mxu0 }
 0x287   : > { %v5677_v22 = vpop.f32.mrb[195].mxu1  ;;  %v5837_v27 = vpop.f32.mrb[163].mxu0 }
 0x288   : > { %v3837_v38 = vadd.f32 %v7700_v57, %v5675_v21  ;;  %v5678_v63 = vadd.f32 %v5677_v22, %v5676_v5  ;;  %v7799_v7 = vadd.f32 %v5837_v27, %v5836_v26 }
 0x28a   : > { %v3840_v51 = vadd.f32 %v7703_v29, %v5678_v63  ;;  %v7803_v52 = vadd.f32 %v7623_v9, %v3837_v38 }
 0x28c   : > { %v5679_v11 = vpop.f32.mrb[196].mxu1  ;;  %v5839_v23 = vpop.f32.mrb[164].mxu0  ;;  %v7806_v31 = vadd.f32 %v7626_v25, %v3840_v51 }
 0x28d   : > { %v5680_v39 = vpop.f32.mrb[197].mxu1  ;;  %v5840_v19 = vpop.f32.mrb[165].mxu0 }
 0x28e   : > { %v5681_v46 = vadd.f32 %v5680_v39, %v5679_v11  ;;  %v5682_v3 = vpop.f32.mrb[198].mxu1  ;;  %v7808_v41 = vadd.f32 %v5840_v19, %v5839_v23  ;;  %v5842_v57 = vpop.f32.mrb[166].mxu0 }
 0x28f   : > { %v5683_v21 = vpop.f32.mrb[199].mxu1  ;;  %v5843_v5 = vpop.f32.mrb[167].mxu0 }
 0x290   : > { %v3845_v26 = vadd.f32 %v7712_v12, %v5681_v46  ;;  %v5684_v29 = vadd.f32 %v5683_v21, %v5682_v3  ;;  %v7811_v22 = vadd.f32 %v5843_v5, %v5842_v57 }
 0x292   : > { %v3848_v9 = vadd.f32 %v7715_v50, %v5684_v29  ;;  %v7815_v27 = vadd.f32 %v7631_v28, %v3845_v26 }
 0x294   : > { %v5685_v25 = vpop.f32.mrb[200].mxu1  ;;  %v5845_v38 = vpop.f32.mrb[168].mxu0  ;;  %v7818_v63 = vadd.f32 %v7634_v49, %v3848_v9 }
 0x295   : > { %v5686_v51 = vpop.f32.mrb[201].mxu1  ;;  %v5846_v11 = vpop.f32.mrb[169].mxu0 }
 0x296   : > { %v5687_v23 = vadd.f32 %v5686_v51, %v5685_v25  ;;  %v5688_v39 = vpop.f32.mrb[202].mxu1  ;;  %v7820_v19 = vadd.f32 %v5846_v11, %v5845_v38  ;;  %v5848_v12 = vpop.f32.mrb[170].mxu0 }
 0x297   : > { %v5689_v46 = vpop.f32.mrb[203].mxu1  ;;  %v5849_v3 = vpop.f32.mrb[171].mxu0 }
 0x298   : > { %v3853_v50 = vadd.f32 %v7724_v58, %v5687_v23  ;;  %v5690_v57 = vadd.f32 %v5689_v46, %v5688_v39  ;;  %v7823_v28 = vadd.f32 %v5849_v3, %v5848_v12 }
 0x29a   : > { %v3856_v21 = vadd.f32 %v7727_v18, %v5690_v57  ;;  %v7827_v5 = vadd.f32 %v7639_v60, %v3853_v50  ;;  %v7846_v57 = vld [vmem:[%s7987_s2] ss:$0 sm:$0xff] }
 0x29c   : > { %v5691_v49 = vpop.f32.mrb[204].mxu1  ;;  %v5851_v26 = vpop.f32.mrb[172].mxu0  ;;  %v7831_v29 = vadd.f32 %v7642_v30, %v3856_v21 }
 0x29d   : > { %v5692_v9 = vpop.f32.mrb[205].mxu1  ;;  %v5852_v25 = vpop.f32.mrb[173].mxu0 }
 0x29e   : > { %v5693_v38 = vadd.f32 %v5692_v9, %v5691_v49  ;;  %v5694_v51 = vpop.f32.mrb[206].mxu1  ;;  %v7833_v58 = vadd.f32 %v5852_v25, %v5851_v26  ;;  %v5854_v11 = vpop.f32.mrb[174].mxu0 }
 0x29f   : > { %v5695_v23 = vpop.f32.mrb[207].mxu1  ;;  %v5855_v18 = vpop.f32.mrb[175].mxu0 }
 0x2a0   : > { %v3861_v60 = vadd.f32 %v7736_v54, %v5693_v38  ;;  %v5696_v39 = vadd.f32 %v5695_v23, %v5694_v51  ;;  %v7836_v12 = vadd.f32 %v5855_v18, %v5854_v11 }
 0x2a2   : > { %v3864_v46 = vadd.f32 %v7739_v37, %v5696_v39  ;;  %v7840_v30 = vadd.f32 %v7647_v61, %v3861_v60 }
 0x2a4   : > { %v5697_v3 = vpop.f32.mrb[208].mxu1  ;;  %v5946_v50 = vpop.f32.mrb[16].mxu0  ;;  %v7849_v21 = vadd.f32 %v7650_v15, %v3864_v46 }
 0x2a5   : > { %v5995_v54 = vadd.f32 %v7767_v40, %v5946_v50  ;;  %v5698_v49 = vpop.f32.mrb[209].mxu1  ;;  %v3965_v26 = vpop.f32.mrb[17].mxu0 }
 0x2a6   : > { %v5699_v37 = vadd.f32 %v5698_v49, %v5697_v3  ;;  %v5999_v9 = vadd.f32 %v7755_v32, %v3965_v26  ;;  %v5700_v61 = vpop.f32.mrb[210].mxu1  ;;  %v5947_v25 = vpop.f32.mrb[18].mxu0 }
 0x2a7   : > { %v4133_v38 = vadd.f32 %v5995_v54, %v7846_v57  ;;  %v6003_v51 = vadd.f32 %v7770_v48, %v5947_v25  ;;  %v5701_v11 = vpop.f32.mrb[211].mxu1  ;;  %v3968_v23 = vpop.f32.mrb[19].mxu0 }
 0x2a8   : > { %v3869_v18 = vadd.f32 %v7748_v62, %v5699_v37  ;;  %v4131_v15 = vadd.f32 %v5999_v9, %v7846_v57  ;;  %v5702_v60 = vadd.f32 %v5701_v11, %v5700_v61  ;;  %v6007_v40 = vadd.f32 %v7758_v10, %v3968_v23 }
 0x2a9   : > { %v4134_v39 = vadd.f32 %v6003_v51, %v7846_v57  ;;  %v4165_v48 = vmax.f32 %v4133_v38, 0.0 }
 0x2aa   : > { %v3872_v32 = vadd.f32 %v7751_v56, %v5702_v60  ;;  %v4132_v46 = vadd.f32 %v6007_v40, %v7846_v57  ;;  %v7862_v3 = vadd.f32 %v7659_v6, %v3869_v18  ;;  %v4163_v54 = vmax.f32 %v4131_v15, 0.0 }
 0x2ab   : > { %v4166_v50 = vmax.f32 %v4134_v39, 0.0 }
 0x2ac   : > { %v4164_v62 = vmax.f32 %v4132_v46, 0.0  ;;  %v5703_v10 = vpop.f32.mrb[212].mxu1  ;;  %v5950_v49 = vpop.f32.mrb[20].mxu0  ;;  %v7870_v56 = vadd.f32 %v7662_v55, %v3872_v32 }
 0x2ad   : > { %v5062_v26 = vpack.c.bf16 %v4166_v50, %v4165_v48  ;;  %v6011_v6 = vadd.f32 %v7791_v36, %v5950_v49  ;;  %v5704_v37 = vpop.f32.mrb[213].mxu1  ;;  %v3981_v9 = vpop.f32.mrb[21].mxu0 }
 0x2ae   : > { %v5057_v61 = vpack.c.bf16 %v4164_v62, %v4163_v54  ;;  %v5705_v25 = vadd.f32 %v5704_v37, %v5703_v10  ;;  %v6015_v38 = vadd.f32 %v7779_v20, %v3981_v9  ;;  %v5706_v51 = vpop.f32.mrb[214].mxu1  ;;  %v5951_v11 = vpop.f32.mrb[22].mxu0 }
 0x2af   : > { %5136 = vst [vmem:[%s7867_s28 + $0x8] sm:$0xff] %v5062_v26   ;;  %v4137_v23 = vadd.f32 %v6011_v6, %v7846_v57  ;;  %v6019_v18 = vadd.f32 %v7794_v33, %v5951_v11  ;;  %v5707_v15 = vpop.f32.mrb[215].mxu1  ;;  %v3984_v60 = vpop.f32.mrb[23].mxu0 }
 0x2b0   : > { %5058 = vst [vmem:[%s7867_s28] sm:$0xff] %v5057_v61   ;;  %v3877_v55 = vadd.f32 %v7760_v16, %v5705_v25  ;;  %v4135_v36 = vadd.f32 %v6015_v38, %v7846_v57  ;;  %v5708_v40 = vadd.f32 %v5707_v15, %v5706_v51  ;;  %v6023_v39 = vadd.f32 %v7782_v45, %v3984_v60 }
 0x2b1   : > { %v4138_v32 = vadd.f32 %v6019_v18, %v7846_v57  ;;  %v4169_v33 = vmax.f32 %v4137_v23, 0.0 }
 0x2b2   : > { %v3880_v20 = vadd.f32 %v7763_v17, %v5708_v40  ;;  %v4136_v46 = vadd.f32 %v6023_v39, %v7846_v57  ;;  %v7885_v48 = vadd.f32 %v7671_v43, %v3877_v55  ;;  %v4167_v54 = vmax.f32 %v4135_v36, 0.0 }
 0x2b3   : > { %v4170_v50 = vmax.f32 %v4138_v32, 0.0 }
 0x2b4   : > { %v4168_v62 = vmax.f32 %v4136_v46, 0.0  ;;  %v5709_v16 = vpop.f32.mrb[216].mxu1  ;;  %v5954_v10 = vpop.f32.mrb[24].mxu0  ;;  %v7888_v49 = vadd.f32 %v7674_v47, %v3880_v20 }
 0x2b5   : > { %v5072_v45 = vpack.c.bf16 %v4170_v50, %v4169_v33  ;;  %v6027_v26 = vadd.f32 %v7815_v27, %v5954_v10  ;;  %v5710_v17 = vpop.f32.mrb[217].mxu1  ;;  %v3997_v6 = vpop.f32.mrb[25].mxu0 }
 0x2b6   : > { %v5067_v37 = vpack.c.bf16 %v4168_v62, %v4167_v54  ;;  %v5711_v9 = vadd.f32 %v5710_v17, %v5709_v16  ;;  %v6031_v43 = vadd.f32 %v7803_v52, %v3997_v6  ;;  %v5712_v61 = vpop.f32.mrb[218].mxu1  ;;  %v5955_v25 = vpop.f32.mrb[26].mxu0 }
 0x2b7   : > { %5138 = vst [vmem:[%s7867_s28 + $0x18] sm:$0xff] %v5072_v45   ;;  %v4141_v38 = vadd.f32 %v6027_v26, %v7846_v57  ;;  %v6035_v51 = vadd.f32 %v7818_v63, %v5955_v25  ;;  %v5713_v11 = vpop.f32.mrb[219].mxu1  ;;  %v4000_v23 = vpop.f32.mrb[27].mxu0 }
 0x2b8   : > { %5137 = vst [vmem:[%s7867_s28 + $0x10] sm:$0xff] %v5067_v37   ;;  %v3885_v47 = vadd.f32 %v7772_v1, %v5711_v9  ;;  %v4139_v27 = vadd.f32 %v6031_v43, %v7846_v57  ;;  %v5714_v18 = vadd.f32 %v5713_v11, %v5712_v61  ;;  %v6039_v15 = vadd.f32 %v7806_v31, %v4000_v23 }
 0x2b9   : > { %v4142_v60 = vadd.f32 %v6035_v51, %v7846_v57  ;;  %v4173_v63 = vmax.f32 %v4141_v38, 0.0 }
 0x2ba   : > { %v3888_v52 = vadd.f32 %v7775_v24, %v5714_v18  ;;  %v4140_v55 = vadd.f32 %v6039_v15, %v7846_v57  ;;  %v7903_v36 = vadd.f32 %v7683_v53, %v3885_v47  ;;  %v4171_v39 = vmax.f32 %v4139_v27, 0.0 }
 0x2bb   : > { %v4174_v40 = vmax.f32 %v4142_v60, 0.0 }
 0x2bc   : > { %v4172_v32 = vmax.f32 %v4140_v55, 0.0  ;;  %v5715_v1 = vpop.f32.mrb[220].mxu1  ;;  %v5958_v20 = vpop.f32.mrb[28].mxu0  ;;  %v7906_v46 = vadd.f32 %v7686_v14, %v3888_v52 }
 0x2bd   : > { %v5082_v31 = vpack.c.bf16 %v4174_v40, %v4173_v63  ;;  %v6043_v33 = vadd.f32 %v7840_v30, %v5958_v20  ;;  %v5716_v24 = vpop.f32.mrb[221].mxu1  ;;  %v4013_v50 = vpop.f32.mrb[29].mxu0 }
 0x2be   : > { %v5077_v54 = vpack.c.bf16 %v4172_v32, %v4171_v39  ;;  %v5717_v62 = vadd.f32 %v5716_v24, %v5715_v1  ;;  %v6047_v53 = vadd.f32 %v7827_v5, %v4013_v50  ;;  %v5718_v16 = vpop.f32.mrb[222].mxu1  ;;  %v5959_v10 = vpop.f32.mrb[30].mxu0 }
 0x2bf   : > { %5140 = vst [vmem:[%s7867_s28 + $0x28] sm:$0xff] %v5082_v31   ;;  %v4145_v45 = vadd.f32 %v6043_v33, %v7846_v57  ;;  %v6051_v26 = vadd.f32 %v7849_v21, %v5959_v10  ;;  %v5719_v17 = vpop.f32.mrb[223].mxu1  ;;  %v4016_v6 = vpop.f32.mrb[31].mxu0 }
 0x2c0   : > { %5139 = vst [vmem:[%s7867_s28 + $0x20] sm:$0xff] %v5077_v54   ;;  %v3893_v14 = vadd.f32 %v7784_v42, %v5717_v62  ;;  %v4143_v30 = vadd.f32 %v6047_v53, %v7846_v57  ;;  %v5720_v37 = vadd.f32 %v5719_v17, %v5718_v16  ;;  %v6055_v9 = vadd.f32 %v7831_v29, %v4016_v6 }
 0x2c1   : > { %v4146_v43 = vadd.f32 %v6051_v26, %v7846_v57  ;;  %v4177_v38 = vmax.f32 %v4145_v45, 0.0 }
 0x2c2   : > { %v3896_v5 = vadd.f32 %v7787_v13, %v5720_v37  ;;  %v4144_v61 = vadd.f32 %v6055_v9, %v7846_v57  ;;  %v6074_v25 = vadd.f32 %v7695_v4, %v3893_v14  ;;  %v4175_v51 = vmax.f32 %v4143_v30, 0.0 }
 0x2c3   : > { %v4178_v21 = vmax.f32 %v4146_v43, 0.0 }
 0x2c4   : > { %v4176_v11 = vmax.f32 %v4144_v61, 0.0  ;;  %v5721_v23 = vpop.f32.mrb[224].mxu1  ;;  %v5962_v42 = vpop.f32.mrb[32].mxu0  ;;  %v6082_v47 = vadd.f32 %v7698_v34, %v3896_v5 }
 0x2c5   : > { %v5092_v27 = vpack.c.bf16 %v4178_v21, %v4177_v38  ;;  %v6059_v29 = vadd.f32 %v7885_v48, %v5962_v42  ;;  %v5722_v18 = vpop.f32.mrb[225].mxu1  ;;  %v4029_v15 = vpop.f32.mrb[33].mxu0 }
 0x2c6   : > { %v5087_v13 = vpack.c.bf16 %v4176_v11, %v4175_v51  ;;  %v5723_v60 = vadd.f32 %v5722_v18, %v5721_v23  ;;  %v6063_v52 = vadd.f32 %v7862_v3, %v4029_v15  ;;  %v5724_v4 = vpop.f32.mrb[226].mxu1  ;;  %v5963_v55 = vpop.f32.mrb[34].mxu0  ;;  %v8026_v51 = vld [vmem:[#allocation2_spill] sm:$0xff]  ;;  %v8027_v18 = vld [vmem:[#allocation3_spill] sm:$0xff] }
 0x2c7   : > { %5142 = vst [vmem:[%s7867_s28 + $0x38] sm:$0xff] %v5092_v27   ;;  %v4149_v63 = vadd.f32 %v6059_v29, %v7846_v57  ;;  %v6067_v40 = vadd.f32 %v7888_v49, %v5963_v55  ;;  %v5725_v39 = vpop.f32.mrb[227].mxu1  ;;  %v4032_v32 = vpop.f32.mrb[35].mxu0 }
 0x2c8   : > { %5141 = vst [vmem:[%s7867_s28 + $0x30] sm:$0xff] %v5087_v13   ;;  %v3901_v34 = vadd.f32 %v7796_v59, %v5723_v60  ;;  %v4147_v48 = vadd.f32 %v6063_v52, %v7846_v57  ;;  %v5726_v1 = vadd.f32 %v5725_v39, %v5724_v4  ;;  %v6071_v20 = vadd.f32 %v7870_v56, %v4032_v32 }
 0x2c9   : > { %v4150_v31 = vadd.f32 %v6067_v40, %v7846_v57  ;;  %v4181_v50 = vmax.f32 %v4149_v63, 0.0 }
 0x2ca   : > { %v3904_v3 = vadd.f32 %v7799_v7, %v5726_v1  ;;  %v4148_v33 = vadd.f32 %v6071_v20, %v7846_v57  ;;  %v6094_v24 = vadd.f32 %v7707_v2, %v3901_v34  ;;  %v4179_v54 = vmax.f32 %v4147_v48, 0.0 }
 0x2cb   : > { %v4182_v49 = vmax.f32 %v4150_v31, 0.0 }
 0x2cc   : > { %v4180_v62 = vmax.f32 %v4148_v33, 0.0  ;;  %v5727_v53 = vpop.f32.mrb[228].mxu1  ;;  %v5966_v59 = vpop.f32.mrb[36].mxu0  ;;  %v6102_v16 = vadd.f32 %v7710_v44, %v3904_v3 }
 0x2cd   : > { %v5102_v10 = vpack.c.bf16 %v4182_v49, %v4181_v50  ;;  %v6075_v56 = vadd.f32 %v6074_v25, %v5966_v59  ;;  %v5728_v45 = vpop.f32.mrb[229].mxu1  ;;  %v4045_v26 = vpop.f32.mrb[37].mxu0 }
 0x2ce   : > { %v5097_v17 = vpack.c.bf16 %v4180_v62, %v4179_v54  ;;  %v5729_v7 = vadd.f32 %v5728_v45, %v5727_v53  ;;  %v6079_v6 = vadd.f32 %v7903_v36, %v4045_v26  ;;  %v5730_v14 = vpop.f32.mrb[230].mxu1  ;;  %v5967_v2 = vpop.f32.mrb[38].mxu0 }
 0x2cf   : > { %5144 = vst [vmem:[%s7867_s28 + $0x48] sm:$0xff] %v5102_v10   ;;  %v4153_v30 = vadd.f32 %v6075_v56, %v7846_v57  ;;  %v6083_v37 = vadd.f32 %v6082_v47, %v5967_v2  ;;  %v5731_v9 = vpop.f32.mrb[231].mxu1  ;;  %v4048_v43 = vpop.f32.mrb[39].mxu0  ;;  %v8028_v56 = vld [vmem:[#allocation4_spill] sm:$0xff] }
 0x2d0   : > { %5143 = vst [vmem:[%s7867_s28 + $0x40] sm:$0xff] %v5097_v17   ;;  %v3909_v5 = vadd.f32 %v7808_v41, %v5729_v7  ;;  %v4151_v44 = vadd.f32 %v6079_v6, %v7846_v57  ;;  %v5732_v61 = vadd.f32 %v5731_v9, %v5730_v14  ;;  %v6087_v25 = vadd.f32 %v7906_v46, %v4048_v43 }
 0x2d1   : > { %v4154_v38 = vadd.f32 %v6083_v37, %v7846_v57  ;;  %v4185_v23 = vmax.f32 %v4153_v30, 0.0 }
 0x2d2   : > { %v3912_v36 = vadd.f32 %v7811_v22, %v5732_v61  ;;  %v4152_v21 = vadd.f32 %v6087_v25, %v7846_v57  ;;  %v6090_v11 = vadd.f32 %v8026_v51, %v3909_v5  ;;  %v4183_v47 = vmax.f32 %v4151_v44, 0.0 }
 0x2d3   : > { %v4186_v42 = vmax.f32 %v4154_v38, 0.0 }
 0x2d4   : > { %v4184_v27 = vmax.f32 %v4152_v21, 0.0  ;;  %v5733_v29 = vpop.f32.mrb[232].mxu1  ;;  %v5970_v41 = vpop.f32.mrb[40].mxu0  ;;  %v6098_v15 = vadd.f32 %v8027_v18, %v3912_v36 }
 0x2d5   : > { %v5112_v13 = vpack.c.bf16 %v4186_v42, %v4185_v23  ;;  %v6091_v46 = vadd.f32 %v6090_v11, %v5970_v41  ;;  %v5734_v60 = vpop.f32.mrb[233].mxu1  ;;  %v4061_v52 = vpop.f32.mrb[41].mxu0 }
 0x2d6   : > { %v5107_v4 = vpack.c.bf16 %v4184_v27, %v4183_v47  ;;  %v5735_v22 = vadd.f32 %v5734_v60, %v5733_v29  ;;  %v6095_v55 = vadd.f32 %v6094_v24, %v4061_v52  ;;  %v5736_v63 = vpop.f32.mrb[234].mxu1  ;;  %v5971_v40 = vpop.f32.mrb[42].mxu0 }
 0x2d7   : > { %5146 = vst [vmem:[%s7867_s28 + $0x58] sm:$0xff] %v5112_v13   ;;  %v4157_v39 = vadd.f32 %v6091_v46, %v7846_v57  ;;  %v6099_v32 = vadd.f32 %v6098_v15, %v5971_v40  ;;  %v5737_v34 = vpop.f32.mrb[235].mxu1  ;;  %v4064_v48 = vpop.f32.mrb[43].mxu0 }
 0x2d8   : > { %5145 = vst [vmem:[%s7867_s28 + $0x50] sm:$0xff] %v5107_v4   ;;  %v3917_v1 = vadd.f32 %v7820_v19, %v5735_v22  ;;  %v4155_v20 = vadd.f32 %v6095_v55, %v7846_v57  ;;  %v5738_v31 = vadd.f32 %v5737_v34, %v5736_v63  ;;  %v6103_v3 = vadd.f32 %v6102_v16, %v4064_v48 }
 0x2d9   : > { %v4158_v33 = vadd.f32 %v6099_v32, %v7846_v57  ;;  %v4189_v54 = vmax.f32 %v4157_v39, 0.0 }
 0x2da   : > { %v3920_v50 = vadd.f32 %v7823_v28, %v5738_v31  ;;  %v4156_v24 = vadd.f32 %v6103_v3, %v7846_v57  ;;  %v6110_v49 = vadd.f32 %v7731_v8, %v3917_v1  ;;  %v4187_v53 = vmax.f32 %v4155_v20, 0.0 }
 0x2db   : > { %v4190_v62 = vmax.f32 %v4158_v33, 0.0 }
 0x2dc   : > { %v4188_v59 = vmax.f32 %v4156_v24, 0.0  ;;  %v5739_v10 = vpop.f32.mrb[236].mxu1  ;;  %v5974_v19 = vpop.f32.mrb[44].mxu0  ;;  %v6118_v45 = vadd.f32 %v8028_v56, %v3920_v50 }
 0x2dd   : > { %v5122_v26 = vpack.c.bf16 %v4190_v62, %v4189_v54  ;;  %v5740_v16 = vpop.f32.mrb[237].mxu1  ;;  %v4077_v17 = vpop.f32.mrb[45].mxu0 }
 0x2de   : > { %v5117_v7 = vpack.c.bf16 %v4188_v59, %v4187_v53  ;;  %v5741_v6 = vadd.f32 %v5740_v16, %v5739_v10  ;;  %v6111_v28 = vadd.f32 %v6110_v49, %v4077_v17  ;;  %v5742_v14 = vpop.f32.mrb[238].mxu1  ;;  %v5975_v2 = vpop.f32.mrb[46].mxu0 }
 0x2df   : > { %5148 = vst [vmem:[%s7867_s28 + $0x68] sm:$0xff] %v5122_v26   ;;  %v5743_v8 = vpop.f32.mrb[239].mxu1  ;;  %v4080_v30 = vpop.f32.mrb[47].mxu0 }
 0x2e0   : > { %5147 = vst [vmem:[%s7867_s28 + $0x60] sm:$0xff] %v5117_v7   ;;  %v3925_v37 = vadd.f32 %v7833_v58, %v5741_v6  ;;  %v4159_v9 = vadd.f32 %v6111_v28, %v7846_v57  ;;  %v5744_v43 = vadd.f32 %v5743_v8, %v5742_v14  ;;  %v6119_v5 = vadd.f32 %v6118_v45, %v4080_v30 }
 0x2e2   : > { %v6106_v44 = vadd.f32 %v7742_v0, %v3925_v37  ;;  %v3928_v61 = vadd.f32 %v7836_v12, %v5744_v43  ;;  %v4160_v25 = vadd.f32 %v6119_v5, %v7846_v57  ;;  %v4191_v36 = vmax.f32 %v4159_v9, 0.0 }
 0x2e4   : > { %v6107_v38 = vadd.f32 %v6106_v44, %v5974_v19  ;;  %v6114_v21 = vadd.f32 %v7746_v35, %v3928_v61  ;;  %v4192_v51 = vmax.f32 %v4160_v25, 0.0 }
 0x2e6   : > { %v4161_v11 = vadd.f32 %v6107_v38, %v7846_v57  ;;  %v6115_v23 = vadd.f32 %v6114_v21, %v5975_v2  ;;  %v5127_v58 = vpack.c.bf16 %v4192_v51, %v4191_v36 }
 0x2e8   : > { %v4162_v42 = vadd.f32 %v6115_v23, %v7846_v57  ;;  %5149 = vst [vmem:[%s7867_s28 + $0x70] sm:$0xff] %v5127_v58   ;;  %v4193_v47 = vmax.f32 %v4161_v11, 0.0 }
 0x2ea   : > { %v4194_v27 = vmax.f32 %v4162_v42, 0.0 }
 0x2ec   : > { %v5132_v29 = vpack.c.bf16 %v4194_v27, %v4193_v47 }
 0x2ee   : > { %5150 = vst [vmem:[%s7867_s28 + $0x78] sm:$0xff] %v5132_v29  }
 0x2ef PF: > { %s13_s16 = sadd.s32 1, %s6698_s16   ;;  %s8029_s12 = smov %s6690_s14 }
 0x2f0   : > { %p10_p7 = scmp.ge.s32.totalorder %s13_s16, 10   ;;  %s8030_s13 = smov %s6694_s15 }
 0x2f1   : > { %s8031_s14 = smov %s8034_s17  ;;  %s8032_s15 = smov %s8038_s18 }
 0x2f2   :  { %12 = sbr.rel (!%p10_p7) target bundleno = 3 (0x3), region = 67 }

// kernel: _lambda_.11
= control target key start
LH: loop header
LB: loop body
LE: loop exit
PB: predicated region body
PF: predicated region fallthrough
CT: control target
= control target key end

     0   :  { %s4763_s18 = smov 0   ;;  %s4765_s19 = smov 0   ;;  %s5626_s0 = inlined_call_operand.vmem [shape: bf16[2,1088,384], index: 0, kind: input, shape index: {}]   ;;  %s5627_s1 = inlined_call_operand.vmem [shape: bf16[3,384,128], index: 1, kind: input, shape index: {}]   ;;  %s5628_s2 = inlined_call_operand.vmem [shape: f32[1,128], index: 2, kind: input, shape index: {}]   ;;  %s5629_s3 = inlined_call_operand.vmem [shape: bf16[128,128], index: 3, kind: input, shape index: {}]   ;;  %s5630_s4 = inlined_call_operand.vmem [shape: f32[1,128], index: 4, kind: input, shape index: {}]   ;;  %s5631_s5 = inlined_call_operand.vmem [shape: f32[2,1024,128], index: 5, kind: output, shape index: {}]  }
   0x1   :  { %s4767_s20 = smov 0   ;;  %s4769_s21 = smov 0  }
   0x2   :  { %s4771_s22 = smov 0  }
   0x3 LB: > { %s24_s23 = sadd.s32 1, %s4723_s20  ;;  %s27_s24 = sadd.s32 1, %s4727_s21  ;;  %s4731_s22 = sphi %s4771_s22, %s15_s22   ;;  %s4727_s21 = sphi %s4769_s21, %s5635_s21   ;;  %s4723_s20 = sphi %s4767_s20, %s5634_s20   ;;  %s4719_s19 = sphi %s4765_s19, %s5633_s19   ;;  %s4715_s18 = sphi %s4763_s18, %s5632_s18  }
   0x4   : > { %p25_p0 = scmp.ge.s32.totalorder %s24_s23, 4  ;;  %p3251_p1 = scmp.ge.s32.totalorder %s4731_s22, 1 }
   0x5   : > { %p201_p2 = scmp.lt.s32.totalorder %s4731_s22, 9 }
   0x6   : > { %s5637_s23 = smov (%p25_p0, %s24_s23), 0  ;;  %s5639_s24 = smov (!%p25_p0, %s27_s24), %s4727_s21 }
   0x7   : > { %p202_p3 = pnand %p3251_p1, %p201_p2  ;;  %p29_p4 = scmp.ge.s32.totalorder %s5639_s24, 2 }
   0x8   : > { %v4421_v0 = vld [vmem:[%s5627_s1 + $0x100] sm:$0xff] (!%p202_p3)   ;;  %v4424_v3 = vld [vmem:[%s5627_s1 + $0x108] sm:$0xff] (!%p202_p3)   ;;  %v4427_v6 = vld [vmem:[%s5627_s1 + $0x110] sm:$0xff] (!%p202_p3)   ;;  %p233_p5 = scmp.lt.s32.totalorder (!%p202_p3), %s4719_s19, 1  ;;  %s4829_s27 = sshll.u32 (!%p202_p3), %s4715_s18, 8 }
   0x9   : > { %s5641_s24 = smov (%p29_p4, %s5639_s24), 0  ;;  %205 = sbr.rel (%p202_p3) target bundleno = 797 (0x31d), region = 40 }
   0xa   : > { %v4422_v1 = vld [vmem:[%s5627_s1 + $0x140] sm:$0xff] (!%p202_p3)   ;;  %3596 = vmatprep.subr.bf16.mxu0 (!%p202_p3), %v4421_v0  ;;  %v4425_v4 = vld [vmem:[%s5627_s1 + $0x148] sm:$0xff] (!%p202_p3)   ;;  %v4428_v7 = vld [vmem:[%s5627_s1 + $0x150] sm:$0xff] (!%p202_p3)   ;;  %s3589_s9 = sadd.s32 (!%p202_p3), 32, %s4829_s27  ;;  %s3592_s30 = sadd.s32 (!%p202_p3), 64, %s4829_s27 }
   0xb   : > { %v4423_v2 = vld [vmem:[%s5627_s1 + $0xc0] sm:$0xff] (!%p202_p3)   ;;  %4028 = vmatprep.subr.bf16.mxu1 (!%p202_p3), %v4422_v1  ;;  %v4426_v5 = vld [vmem:[%s5627_s1 + $0xc8] sm:$0xff] (!%p202_p3)   ;;  %v4429_v8 = vld [vmem:[%s5627_s1 + $0xd0] sm:$0xff] (!%p202_p3)   ;;  %s370_s15 = sshra.s32 (!%p202_p3), %s3589_s9, 3  ;;  %s1934_s9 = sshra.s32 (!%p202_p3), %s3592_s30, 3 }
   0xc   : > { %3597 = vmatpush3.bf16.msra.mxu0 (!%p202_p3), %v4423_v2  ;;  %4029 = vmatpush3.bf16.msra.mxu1 (!%p202_p3), %v4422_v1  ;;  %v4430_v9 = vld [vmem:[%s5627_s1 + $0x118] sm:$0xff] (!%p202_p3)   ;;  %v4433_v12 = vld [vmem:[%s5627_s1 + $0x120] sm:$0xff] (!%p202_p3)   ;;  %v4436_v15 = vld [vmem:[%s5627_s1 + $0x128] sm:$0xff] (!%p202_p3)   ;;  %s3590_s28 = smul.u32 (!%p202_p3), 12, %s370_s15  ;;  %s250_s29 = sshra.s32 (!%p202_p3), %s4829_s27, 3 }
   0xd   : > { %3598 = vmatprep.subr.bf16.mxu0 (!%p202_p3), %v4424_v3  ;;  %4030 = vmatprep.subr.bf16.mxu1 (!%p202_p3), %v4425_v4  ;;  %v4431_v10 = vld [vmem:[%s5627_s1 + $0x158] sm:$0xff] (!%p202_p3)   ;;  %v4434_v13 = vld [vmem:[%s5627_s1 + $0x160] sm:$0xff] (!%p202_p3)   ;;  %v4437_v16 = vld [vmem:[%s5627_s1 + $0x168] sm:$0xff] (!%p202_p3)   ;;  %s3593_s15 = smul.u32 (!%p202_p3), 12, %s1934_s9  ;;  %s3253_s26 = sshll.u32 (!%p202_p3), %s4715_s18, 5 }
   0xe   : > { %v4432_v11 = vld [vmem:[%s5627_s1 + $0xd8] sm:$0xff] (!%p202_p3)   ;;  %v4435_v14 = vld [vmem:[%s5627_s1 + $0xe0] sm:$0xff] (!%p202_p3)   ;;  %v4438_v17 = vld [vmem:[%s5627_s1 + $0xe8] sm:$0xff] (!%p202_p3)   ;;  %s3587_s10 = smul.u32 (!%p202_p3), 12, %s250_s29  ;;  %p241_p6 = scmp.lt.s32.totalorder (!%p202_p3), %s3253_s26, 127 }
   0xf   : > { %v4439_v18 = vld [vmem:[%s5627_s1 + $0x130] sm:$0xff] (!%p202_p3)   ;;  %v4442_v21 = vld [vmem:[%s5627_s1 + $0x138] sm:$0xff] (!%p202_p3)   ;;  %v4450_v28 = vld [vmem:[%s5627_s1 + $0x40] sm:$0xff] (!%p202_p3)  }
  0x10   : > { %3599 = vmatpush3.bf16.msra.mxu0 %v4426_v5  ;;  %4031 = vmatpush3.bf16.msra.mxu1 %v4425_v4  ;;  %s5643_s19 = smov (!%p233_p5, %s4719_s19), 1  ;;  %v4440_v19 = vld [vmem:[%s5627_s1 + $0x170] sm:$0xff]   ;;  %v4443_v22 = vld [vmem:[%s5627_s1 + $0x178] sm:$0xff]   ;;  %v4451_v29 = vld [vmem:[%s5627_s1] sm:$0xff]   ;;  %s5645_s26 = smov (!%p241_p6, %s3253_s26), 127 }
  0x11   : > { %3600 = vmatprep.subr.bf16.mxu0 %v4427_v6  ;;  %4032 = vmatprep.subr.bf16.mxu1 %v4428_v7  ;;  %s4380_s12 = smul.u32 1632, %s5643_s19  ;;  %v4441_v20 = vld [vmem:[%s5627_s1 + $0xf0] sm:$0xff]   ;;  %v4444_v25 = vld [vmem:[%s5627_s1 + $0xf8] sm:$0xff]   ;;  %v4457_v32 = vld [vmem:[%s5627_s1 + $0x48] sm:$0xff]   ;;  %s3254_s29 = sshll.u32 %s5643_s19, 7 }
  0x12   : > { %v4458_v33 = vld [vmem:[%s5627_s1 + $0x8] sm:$0xff]   ;;  %v4464_v36 = vld [vmem:[%s5627_s1 + $0x50] sm:$0xff]   ;;  %v4471_v40 = vld [vmem:[%s5627_s1 + $0x58] sm:$0xff]  }
  0x13   : > { %s4863_s8 = scalar_lea.vmem %s5626_s0, %s4380_s12  ;;  %v4465_v39 = vld [vmem:[%s5627_s1 + $0x10] sm:$0xff]   ;;  %v4472_v41 = vld [vmem:[%s5627_s1 + $0x18] sm:$0xff]   ;;  %v4478_v46 = vld [vmem:[%s5627_s1 + $0x60] sm:$0xff]  }
  0x14   : > { %3601 = vmatpush3.bf16.msra.mxu0 %v4429_v8  ;;  %4033 = vmatpush3.bf16.msra.mxu1 %v4428_v7  ;;  %s4875_s12 = scalar_lea.vmem %s4863_s8, %s3590_s28  ;;  %s4903_s16 = scalar_lea.vmem %s4863_s8, %s3593_s15  ;;  %v4479_v47 = vld [vmem:[%s5627_s1 + $0x20] sm:$0xff]   ;;  %v4485_v51 = vld [vmem:[%s5627_s1 + $0x68] sm:$0xff]   ;;  %v4492_v54 = vld [vmem:[%s5627_s1 + $0x70] sm:$0xff]  }
  0x15   : > { %3602 = vmatprep.subr.bf16.mxu0 %v4430_v9  ;;  %4034 = vmatprep.subr.bf16.mxu1 %v4431_v10  ;;  %v4447_v23 = vld [vmem:[%s4875_s12 + $0x4] ss:$12 sps:$4 sm:$0xff]   ;;  %v4448_v24 = vld [vmem:[%s4875_s12 + $0x8] ss:$12 sps:$4 sm:$0xff]   ;;  %v4445_v26 = vld [vmem:[%s4875_s12] ss:$12 sps:$4 sm:$0xff]   ;;  %s4968_s28 = scalar_lea.vmem %s4863_s8, %s3587_s10 }
  0x16   : > { %920 = vmatprep.mubr.bf16.mxu0 %v4447_v23  ;;  %v4449_v27 = vld [vmem:[%s4875_s12 + $0x20] ss:$12 sps:$4 sm:$0xff]   ;;  %4044 = vmatprep.mubr.bf16.mxu1 %v4448_v24  ;;  %v4452_v30 = vld [vmem:[%s4875_s12 + $0x1c] ss:$12 sps:$4 sm:$0xff]   ;;  %v4454_v31 = vld [vmem:[%s4875_s12 + $0x38] ss:$12 sps:$4 sm:$0xff]  }
  0x17   : > { %v4455_v34 = vld [vmem:[%s4875_s12 + $0x18] ss:$12 sps:$4 sm:$0xff]   ;;  %v4456_v35 = vld [vmem:[%s4875_s12 + $0x50] ss:$12 sps:$4 sm:$0xff]   ;;  %v4459_v37 = vld [vmem:[%s4875_s12 + $0x34] ss:$12 sps:$4 sm:$0xff]  }
  0x18   : > { %3603 = vmatpush3.bf16.msra.mxu0 %v4432_v11  ;;  %4035 = vmatpush3.bf16.msra.mxu1 %v4431_v10  ;;  %v4461_v38 = vld [vmem:[%s4875_s12 + $0x68] ss:$12 sps:$4 sm:$0xff]   ;;  %v4462_v42 = vld [vmem:[%s4875_s12 + $0x30] ss:$12 sps:$4 sm:$0xff]   ;;  %v4463_v43 = vld [vmem:[%s4875_s12 + $0x80] ss:$12 sps:$4 sm:$0xff]  }
  0x19   : > { %3604 = vmatprep.subr.bf16.mxu0 %v4433_v12  ;;  %4036 = vmatprep.subr.bf16.mxu1 %v4434_v13  ;;  %v4466_v44 = vld [vmem:[%s4875_s12 + $0x4c] ss:$12 sps:$4 sm:$0xff]   ;;  %v4469_v48 = vld [vmem:[%s4875_s12 + $0x48] ss:$12 sps:$4 sm:$0xff]   ;;  %v4470_v49 = vld [vmem:[%s4875_s12 + $0xb0] ss:$12 sps:$4 sm:$0xff]  }
  0x1a   : > { %v4468_v45 = vld [vmem:[%s4875_s12 + $0x98] ss:$12 sps:$4 sm:$0xff]   ;;  %v4486_v52 = vld [vmem:[%s5627_s1 + $0x28] sm:$0xff]   ;;  %v4493_v55 = vld [vmem:[%s5627_s1 + $0x30] sm:$0xff]  }
  0x1b   : > { %v4473_v50 = vld [vmem:[%s4875_s12 + $0x64] ss:$12 sps:$4 sm:$0xff]   ;;  %v4475_v53 = vld [vmem:[%s4875_s12 + $0xc8] ss:$12 sps:$4 sm:$0xff]   ;;  %v4476_v56 = vld [vmem:[%s4875_s12 + $0x60] ss:$12 sps:$4 sm:$0xff]  }
  0x1c   : > { %3605 = vmatpush3.bf16.msra.mxu0 %v4435_v14  ;;  %4037 = vmatpush3.bf16.msra.mxu1 %v4434_v13  ;;  %v4477_v57 = vld [vmem:[%s4875_s12 + $0xe0] ss:$12 sps:$4 sm:$0xff]   ;;  %v4480_v58 = vld [vmem:[%s4875_s12 + $0x7c] ss:$12 sps:$4 sm:$0xff]   ;;  %v4482_v59 = vld [vmem:[%s4875_s12 + $0xf8] ss:$12 sps:$4 sm:$0xff]  }
  0x1d   : > { %3606 = vmatprep.subr.bf16.mxu0 %v4436_v15  ;;  %4038 = vmatprep.subr.bf16.mxu1 %v4437_v16  ;;  %v4499_v60 = vld [vmem:[%s5627_s1 + $0x78] sm:$0xff]   ;;  %v4501_v62 = vld [vmem:[%s5627_s1 + $0x1c0] sm:$0xff]   ;;  %v4489_v3 = vld [vmem:[%s4875_s12 + $0x128] ss:$12 sps:$4 sm:$0xff]  }
  0x1e   : > { %v4500_v61 = vld [vmem:[%s5627_s1 + $0x38] sm:$0xff]   ;;  %v4502_v63 = vld [vmem:[%s5627_s1 + $0x180] sm:$0xff]   ;;  %v4516_v5 = vld [vmem:[%s5627_s1 + $0x1c8] sm:$0xff]  }
  0x1f   : > { %v4483_v0 = vld [vmem:[%s4875_s12 + $0x78] ss:$12 sps:$4 sm:$0xff]   ;;  %v4484_v1 = vld [vmem:[%s4875_s12 + $0x110] ss:$12 sps:$4 sm:$0xff]   ;;  %v4487_v2 = vld [vmem:[%s4875_s12 + $0x94] ss:$12 sps:$4 sm:$0xff]  }
  0x20   : > { %3607 = vmatpush3.bf16.msra.mxu0 %v4438_v17  ;;  %4039 = vmatpush3.bf16.msra.mxu1 %v4437_v16  ;;  %v4509_v4 = vld [vmem:[%s5627_s1 + $0x80] sm:$0xff]   ;;  %v4517_v6 = vld [vmem:[%s5627_s1 + $0x188] sm:$0xff]   ;;  %v4490_v7 = vld [vmem:[%s4875_s12 + $0x90] ss:$12 sps:$4 sm:$0xff]  }
  0x21   : > { %3608 = vmatprep.subr.bf16.mxu0 %v4439_v18  ;;  %4040 = vmatprep.subr.bf16.mxu1 %v4440_v19  ;;  %v4491_v8 = vld [vmem:[%s4875_s12 + $0x140] ss:$12 sps:$4 sm:$0xff]   ;;  %v4496_v10 = vld [vmem:[%s4875_s12 + $0x158] ss:$12 sps:$4 sm:$0xff]   ;;  %v4531_v11 = vld [vmem:[%s5627_s1 + $0x1d0] sm:$0xff]  }
  0x22   : > { %v4494_v9 = vld [vmem:[%s4875_s12 + $0xac] ss:$12 sps:$4 sm:$0xff]   ;;  %v4532_v12 = vld [vmem:[%s5627_s1 + $0x190] sm:$0xff]   ;;  %v4555_v24 = vld [vmem:[%s5627_s1 + $0x1e0] sm:$0xff]  }
  0x23   : > { %v4497_v13 = vld [vmem:[%s4875_s12 + $0xa8] ss:$12 sps:$4 sm:$0xff]   ;;  %v4498_v14 = vld [vmem:[%s4875_s12 + $0x170] ss:$12 sps:$4 sm:$0xff]  }
  0x24   : > { %3609 = vmatpush3.bf16.msra.mxu0 %v4441_v20  ;;  %4041 = vmatpush3.bf16.msra.mxu1 %v4440_v19  ;;  %v4503_v15 = vld [vmem:[%s4875_s12 + $0xc4] ss:$12 sps:$4 sm:$0xff]   ;;  %v4546_v17 = vld [vmem:[%s5627_s1 + $0x1d8] sm:$0xff]   ;;  %v4505_v19 = vld [vmem:[%s4968_s28] ss:$12 sps:$4 sm:$0xff]  }
  0x25   : > { %3610 = vmatprep.subr.bf16.mxu0 %v4442_v21  ;;  %4042 = vmatprep.subr.bf16.mxu1 %v4443_v22  ;;  %v4507_v16 = vld [vmem:[%s4968_s28 + $0x4] ss:$12 sps:$4 sm:$0xff]   ;;  %v4547_v18 = vld [vmem:[%s5627_s1 + $0x198] sm:$0xff]   ;;  %v4508_v20 = vld [vmem:[%s4875_s12 + $0xc0] ss:$12 sps:$4 sm:$0xff]  }
  0x26   : > { %v4510_v21 = vld [vmem:[%s4875_s12 + $0xdc] ss:$12 sps:$4 sm:$0xff]  }
  0x27   : > { %v4524_v23 = vld [vmem:[%s5627_s1 + $0x88] sm:$0xff]  }
  0x28   : > { %3611 = vmatpush3.bf16.msra.mxu0 %v4444_v25  ;;  %4043 = vmatpush3.bf16.msra.mxu1 %v4443_v22  ;;  %v4512_v22 = vld [vmem:[%s4968_s28 + $0x1c] ss:$12 sps:$4 sm:$0xff]   ;;  %v4556_v25 = vld [vmem:[%s5627_s1 + $0x1a0] sm:$0xff]  }
  0x29   : > { %3732 = vmatprep.subr.bf16.mxu1 %v4450_v28  ;;  %3868 = vmatprep.subr.bf16.mxu0 %v4501_v62  ;;  %v4514_v28 = vld [vmem:[%s4875_s12 + $0xd8] ss:$12 sps:$4 sm:$0xff]  }
  0x2a   : > { %v4561_v62 = vld [vmem:[%s4968_s28 + $0xac] ss:$12 sps:$4 sm:$0xff]  }
  0x2b   : > { %921 = vmatmul.mubr.bf16.vlgmr.msra.gmra.mrb[0].mxu0 %v4445_v26  ;;  %4045 = vmatmul.mubr.bf16.vlgmr.msra.gmra.mrb[0].mxu1 %v4449_v27  ;;  %v4557_v26 = vld [vmem:[%s5627_s1 + $0x1e8] sm:$0xff]   ;;  %v4539_v27 = vld [vmem:[%s5627_s1 + $0x90] sm:$0xff]  }
  0x2c   : > { %3733 = vmatpush3.bf16.msra.mxu1 %v4451_v29  ;;  %928 = vmatprep.mubr.bf16.mxu0 %v4452_v30  ;;  %v4515_v29 = vld [vmem:[%s4968_s28 + $0x18] ss:$12 sps:$4 sm:$0xff]   ;;  %v4518_v30 = vld [vmem:[%s4875_s12 + $0xf4] ss:$12 sps:$4 sm:$0xff]  }
  0x2d   : > { %4048 = vmatprep.mubr.bf16.mxu1 %v4454_v31  ;;  %3734 = vmatprep.subr.bf16.mxu1 %v4457_v32  ;;  %v4520_v31 = vld [vmem:[%s4968_s28 + $0x34] ss:$12 sps:$4 sm:$0xff]   ;;  %v4554_v32 = vld [vmem:[%s5627_s1 + $0x98] sm:$0xff]  }
  0x2e   : > { %3869 = vmatpush3.bf16.msra.mxu0 %v4502_v63  ;;  %v4563_v63 = vld [vmem:[%s4875_s12 + $0x168] ss:$12 sps:$4 sm:$0xff]  }
  0x2f   : > { %3870 = vmatprep.subr.bf16.mxu0 %v4516_v5  ;;  %v4576_v5 = vld [vmem:[%s4968_s28 + $0xdc] ss:$12 sps:$4 sm:$0xff]  }
  0x30   : > { %3735 = vmatpush3.bf16.msra.mxu1 %v4458_v33  ;;  %v4558_v33 = vld [vmem:[%s5627_s1 + $0x1a8] sm:$0xff]  }
  0x31   : > { %3736 = vmatprep.subr.bf16.mxu1 %v4464_v36  ;;  %v4523_v36 = vld [vmem:[%s4968_s28 + $0x30] ss:$12 sps:$4 sm:$0xff]  }
  0x32   : > { %3871 = vmatpush3.bf16.msra.mxu0 %v4517_v6  ;;  %v4578_v6 = vld [vmem:[%s4903_s16 + $0x1c] ss:$12 sps:$4 sm:$0xff]  }
  0x33   : > { %929 = vmatmul.mubr.bf16.gmra.mrb[4].mxu0 %v4455_v34  ;;  %4049 = vmatmul.mubr.bf16.gmra.mrb[4].mxu1 %v4456_v35  ;;  %v4565_v34 = vld [vmem:[%s5627_s1 + $0x1f0] sm:$0xff]  }
  0x34   : > { %936 = vmatprep.mubr.bf16.mxu0 %v4459_v37  ;;  %4052 = vmatprep.mubr.bf16.mxu1 %v4461_v38  ;;  %v4522_v35 = vld [vmem:[%s4875_s12 + $0xf0] ss:$12 sps:$4 sm:$0xff]   ;;  %v4525_v38 = vld [vmem:[%s4875_s12 + $0x10c] ss:$12 sps:$4 sm:$0xff]  }
  0x35   : > { %3737 = vmatpush3.bf16.msra.mxu1 %v4465_v39  ;;  %3872 = vmatprep.subr.bf16.mxu0 %v4531_v11  ;;  %v4566_v37 = vld [vmem:[%s5627_s1 + $0x1b0] sm:$0xff]   ;;  %v4567_v39 = vld [vmem:[%s5627_s1 + $0x1f8] sm:$0xff]  }
  0x36   : > { %3738 = vmatprep.subr.bf16.mxu1 %v4471_v40  ;;  %3873 = vmatpush3.bf16.msra.mxu0 %v4532_v12  ;;  %v4575_v40 = vld [vmem:[%s5627_s1 + $0xa0] sm:$0xff]   ;;  %v4586_v11 = vld [vmem:[%s4968_s28 + $0xf0] ss:$12 sps:$4 sm:$0xff]  }
  0x37   : > { %3874 = vmatprep.subr.bf16.mxu0 %v4546_v17  ;;  %v4588_v12 = vld [vmem:[%s4903_s16 + $0x30] ss:$12 sps:$4 sm:$0xff]  }
  0x38   : > { %v4595_v17 = vld [vmem:[%s4968_s28 + $0x124] ss:$12 sps:$4 sm:$0xff]  }
  0x39   : > { %3739 = vmatpush3.bf16.msra.mxu1 %v4472_v41  ;;  %v4527_v41 = vld [vmem:[%s4968_s28 + $0x4c] ss:$12 sps:$4 sm:$0xff]  }
  0x3a   : > { %3740 = vmatprep.subr.bf16.mxu1 %v4478_v46  ;;  %3875 = vmatpush3.bf16.msra.mxu0 %v4547_v18  ;;  %v4533_v46 = vld [vmem:[%s4875_s12 + $0x124] ss:$12 sps:$4 sm:$0xff]  }
  0x3b   : > { %937 = vmatmul.mubr.bf16.gmra.mrb[8].mxu0 %v4462_v42  ;;  %4053 = vmatmul.mubr.bf16.gmra.mrb[8].mxu1 %v4463_v43  ;;  %v4568_v42 = vld [vmem:[%s5627_s1 + $0x1b8] sm:$0xff]   ;;  %v4587_v43 = vld [vmem:[%s5627_s1 + $0xa8] sm:$0xff]   ;;  %v4597_v18 = vld [vmem:[%s4903_s16 + $0x64] ss:$12 sps:$4 sm:$0xff]  }
  0x3c   : > { %944 = vmatprep.mubr.bf16.mxu0 %v4466_v44  ;;  %4056 = vmatprep.mubr.bf16.mxu1 %v4468_v45  ;;  %v4529_v44 = vld [vmem:[%s4875_s12 + $0x108] ss:$12 sps:$4 sm:$0xff]  }
  0x3d   : > { %3741 = vmatpush3.bf16.msra.mxu1 %v4479_v47  ;;  %3876 = vmatprep.subr.bf16.mxu0 %v4555_v24  ;;  %v4530_v45 = vld [vmem:[%s4968_s28 + $0x48] ss:$12 sps:$4 sm:$0xff]   ;;  %v4535_v47 = vld [vmem:[%s4968_s28 + $0x64] ss:$12 sps:$4 sm:$0xff]  }
  0x3e   : > { %3742 = vmatprep.subr.bf16.mxu1 %v4485_v51  ;;  %3877 = vmatpush3.bf16.msra.mxu0 %v4556_v25  ;;  %v4540_v51 = vld [vmem:[%s4875_s12 + $0x13c] ss:$12 sps:$4 sm:$0xff]   ;;  %v4607_v24 = vld [vmem:[%s4903_s16 + $0x78] ss:$12 sps:$4 sm:$0xff]   ;;  %v4608_v25 = vld [vmem:[%s4968_s28 + $0x154] ss:$12 sps:$4 sm:$0xff]  }
  0x3f   : > { %3878 = vmatprep.subr.bf16.mxu0 %v4557_v26  ;;  %v4610_v26 = vld [vmem:[%s4903_s16 + $0x94] ss:$12 sps:$4 sm:$0xff]  }
  0x41   : > { %3743 = vmatpush3.bf16.msra.mxu1 %v4486_v52  ;;  %v4542_v52 = vld [vmem:[%s4968_s28 + $0x7c] ss:$12 sps:$4 sm:$0xff]  }
  0x42   : > { %3744 = vmatprep.subr.bf16.mxu1 %v4492_v54  ;;  %3879 = vmatpush3.bf16.msra.mxu0 %v4558_v33  ;;  %v4544_v54 = vld [vmem:[%s4875_s12 + $0x138] ss:$12 sps:$4 sm:$0xff]   ;;  %v4621_v33 = vld [vmem:[%s4968_s28 + $0x8] ss:$12 sps:$4 sm:$0xff]  }
  0x43   : > { %945 = vmatmul.mubr.bf16.gmra.mrb[12].mxu0 %v4469_v48  ;;  %4057 = vmatmul.mubr.bf16.gmra.mrb[12].mxu1 %v4470_v49  ;;  %v4600_v48 = vld [vmem:[%s5627_s1 + $0xb0] sm:$0xff]   ;;  %v4537_v49 = vld [vmem:[%s4875_s12 + $0x120] ss:$12 sps:$4 sm:$0xff]  }
  0x44   : > { %952 = vmatprep.mubr.bf16.mxu0 %v4473_v50  ;;  %4060 = vmatprep.mubr.bf16.mxu1 %v4475_v53  ;;  %v4538_v50 = vld [vmem:[%s4968_s28 + $0x60] ss:$12 sps:$4 sm:$0xff]   ;;  %v4613_v53 = vld [vmem:[%s5627_s1 + $0xb8] sm:$0xff]  }
  0x45   : > { %3745 = vmatpush3.bf16.msra.mxu1 %v4493_v55  ;;  %3880 = vmatprep.subr.bf16.mxu0 %v4565_v34  ;;  %v4545_v55 = vld [vmem:[%s4968_s28 + $0x78] ss:$12 sps:$4 sm:$0xff]  }
  0x46   : > { %3746 = vmatprep.subr.bf16.mxu1 %v4499_v60  ;;  %3881 = vmatpush3.bf16.msra.mxu0 %v4566_v37  ;;  %v4553_v60 = vld [vmem:[%s4968_s28 + $0x90] ss:$12 sps:$4 sm:$0xff]   ;;  %v4627_v37 = vld [vmem:[%s4968_s28 + $0x38] ss:$12 sps:$4 sm:$0xff]  }
  0x47   : > { %3882 = vmatprep.subr.bf16.mxu0 %v4567_v39  ;;  %v4622_v34 = vld [vmem:[%s4903_s16 + $0xc4] ss:$12 sps:$4 sm:$0xff]   ;;  %v4632_v39 = vld [vmem:[%s5627_s1 + $0x208] sm:$0xff]  }
  0x49   : > { %3747 = vmatpush3.bf16.msra.mxu1 %v4500_v61  ;;  %v4559_v61 = vld [vmem:[%s4875_s12 + $0x16c] ss:$12 sps:$4 sm:$0xff]  }
  0x4a   : > { %4076 = vmatprep.subr.bf16.mxu1 %v4509_v4  ;;  %3883 = vmatpush3.bf16.msra.mxu0 %v4568_v42  ;;  %v4631_v42 = vld [vmem:[%s4903_s16 + $0xd8] ss:$12 sps:$4 sm:$0xff]  }
  0x4b   : > { %953 = vmatmul.mubr.bf16.gmra.mrb[16].mxu0 %v4476_v56  ;;  %4061 = vmatmul.mubr.bf16.gmra.mrb[16].mxu1 %v4477_v57  ;;  %v4548_v56 = vld [vmem:[%s4875_s12 + $0x154] ss:$12 sps:$4 sm:$0xff]  }
  0x4c   : > { %960 = vmatprep.mubr.bf16.mxu0 %v4480_v58  ;;  %4064 = vmatprep.mubr.bf16.mxu1 %v4482_v59  ;;  %v4550_v57 = vld [vmem:[%s4968_s28 + $0x94] ss:$12 sps:$4 sm:$0xff]   ;;  %v4552_v59 = vld [vmem:[%s4875_s12 + $0x150] ss:$12 sps:$4 sm:$0xff]   ;;  %s244_s12 = sadd.s32 %s3254_s29, %s5645_s26 }
  0x4d   : > { %v5075_v58 = vld [vmem:[%s5627_s1 + $0x200] sm:$0xff]   ;;  %s3255_s30 = sshll.u32 %s244_s12, 3 }
  0x4e   : > { %s5545_s9 = scalar_lea.vmem %s5631_s5, %s3255_s30 }
  0x53   : > { %961 = vmatmul.mubr.bf16.gmra.mrb[20].mxu0 %v4483_v0  ;;  %4065 = vmatmul.mubr.bf16.gmra.mrb[20].mxu1 %v4484_v1  ;;  %v4564_v0 = vld [vmem:[%s4968_s28 + $0xa8] ss:$12 sps:$4 sm:$0xff]   ;;  %v4569_v1 = vld [vmem:[%s4968_s28 + $0xc4] ss:$12 sps:$4 sm:$0xff]  }
  0x54   : > { %968 = vmatprep.mubr.bf16.mxu0 %v4487_v2  ;;  %4068 = vmatprep.mubr.bf16.mxu1 %v4489_v3  ;;  %v4573_v2 = vld [vmem:[%s4903_s16 + $0x4] ss:$12 sps:$4 sm:$0xff]   ;;  %v4571_v3 = vld [vmem:[%s4903_s16] ss:$12 sps:$4 sm:$0xff]  }
  0x5b   : > { %969 = vmatmul.mubr.bf16.gmra.mrb[24].mxu0 %v4490_v7  ;;  %4069 = vmatmul.mubr.bf16.gmra.mrb[24].mxu1 %v4491_v8  ;;  %v4580_v7 = vld [vmem:[%s4968_s28 + $0xd8] ss:$12 sps:$4 sm:$0xff]  }
  0x5c   : > { %976 = vmatprep.mubr.bf16.mxu0 %v4494_v9  ;;  %4072 = vmatprep.mubr.bf16.mxu1 %v4496_v10  ;;  %v4581_v8 = vld [vmem:[%s4903_s16 + $0x18] ss:$12 sps:$4 sm:$0xff]   ;;  %v4582_v9 = vld [vmem:[%s4968_s28 + $0xf4] ss:$12 sps:$4 sm:$0xff]  }
  0x5d   : > { %v4584_v10 = vld [vmem:[%s4903_s16 + $0x34] ss:$12 sps:$4 sm:$0xff]  }
  0x63   : > { %977 = vmatmul.mubr.bf16.gmra.mrb[28].mxu0 %v4497_v13  ;;  %4073 = vmatmul.mubr.bf16.gmra.mrb[28].mxu1 %v4498_v14  ;;  %v4589_v13 = vld [vmem:[%s4968_s28 + $0x10c] ss:$12 sps:$4 sm:$0xff]  }
  0x64   : > { %984 = vmatprep.mubr.bf16.mxu0 %v4503_v15  ;;  %1642 = vmatprep.mubr.bf16.mxu1 %v4507_v16  ;;  %v4591_v14 = vld [vmem:[%s4903_s16 + $0x4c] ss:$12 sps:$4 sm:$0xff]   ;;  %v4593_v15 = vld [vmem:[%s4968_s28 + $0x108] ss:$12 sps:$4 sm:$0xff]  }
  0x65   : > { %v4594_v16 = vld [vmem:[%s4903_s16 + $0x48] ss:$12 sps:$4 sm:$0xff]  }
  0x6b   : > { %985 = vmatmul.mubr.bf16.gmra.mrb[32].mxu0 %v4508_v20  ;;  %1643 = vmatmul.mubr.bf16.vlgmr.msra.gmra.mrb[32].mxu1 %v4505_v19  ;;  %v4599_v19 = vld [vmem:[%s4968_s28 + $0x120] ss:$12 sps:$4 sm:$0xff]  }
  0x6c   : > { %4077 = vmatpush3.bf16.msra.mxu1 %v4509_v4  ;;  %992 = vmatprep.mubr.bf16.mxu0 %v4510_v21  ;;  %v4574_v4 = vld [vmem:[%s4968_s28 + $0xc0] ss:$12 sps:$4 sm:$0xff]   ;;  %v4602_v21 = vld [vmem:[%s4968_s28 + $0x13c] ss:$12 sps:$4 sm:$0xff]  }
  0x6d   : > { %1650 = vmatprep.mubr.bf16.mxu1 %v4512_v22  ;;  %4078 = vmatprep.subr.bf16.mxu1 %v4524_v23  ;;  %v4601_v20 = vld [vmem:[%s4903_s16 + $0x60] ss:$12 sps:$4 sm:$0xff]   ;;  %v4604_v22 = vld [vmem:[%s4903_s16 + $0x7c] ss:$12 sps:$4 sm:$0xff]  }
  0x70   : > { %4079 = vmatpush3.bf16.msra.mxu1 %v4524_v23  ;;  %v4606_v23 = vld [vmem:[%s4968_s28 + $0x138] ss:$12 sps:$4 sm:$0xff]  }
  0x71   : > { %4080 = vmatprep.subr.bf16.mxu1 %v4539_v27 }
  0x73   : > { %993 = vmatmul.mubr.bf16.gmra.mrb[36].mxu0 %v4514_v28  ;;  %1651 = vmatmul.mubr.bf16.gmra.mrb[36].mxu1 %v4515_v29  ;;  %v4614_v28 = vld [vmem:[%s4903_s16 + $0x90] ss:$12 sps:$4 sm:$0xff]   ;;  %v4615_v29 = vld [vmem:[%s4968_s28 + $0x16c] ss:$12 sps:$4 sm:$0xff]  }
  0x74   : > { %1000 = vmatprep.mubr.bf16.mxu0 %v4518_v30  ;;  %1658 = vmatprep.mubr.bf16.mxu1 %v4520_v31  ;;  %v4617_v30 = vld [vmem:[%s4903_s16 + $0xac] ss:$12 sps:$4 sm:$0xff]   ;;  %v4619_v31 = vld [vmem:[%s4968_s28 + $0x168] ss:$12 sps:$4 sm:$0xff]  }
  0x75   : > { %4081 = vmatpush3.bf16.msra.mxu1 %v4539_v27  ;;  %v4612_v27 = vld [vmem:[%s4968_s28 + $0x150] ss:$12 sps:$4 sm:$0xff]  }
  0x76   : > { %4082 = vmatprep.subr.bf16.mxu1 %v4554_v32 }
  0x79   : > { %4083 = vmatpush3.bf16.msra.mxu1 %v4554_v32  ;;  %v4620_v32 = vld [vmem:[%s4903_s16 + $0xa8] ss:$12 sps:$4 sm:$0xff]  }
  0x7a   : > { %4084 = vmatprep.subr.bf16.mxu1 %v4575_v40 }
  0x7b   : > { %1001 = vmatmul.mubr.bf16.gmra.mrb[40].mxu0 %v4522_v35  ;;  %1659 = vmatmul.mubr.bf16.gmra.mrb[40].mxu1 %v4523_v36  ;;  %v4624_v35 = vld [vmem:[%s4968_s28 + $0x20] ss:$12 sps:$4 sm:$0xff]  }
  0x7c   : > { %1008 = vmatprep.mubr.bf16.mxu0 %v4525_v38  ;;  %1666 = vmatprep.mubr.bf16.mxu1 %v4527_v41  ;;  %v4625_v36 = vld [vmem:[%s4903_s16 + $0xc0] ss:$12 sps:$4 sm:$0xff]   ;;  %v4628_v38 = vld [vmem:[%s4903_s16 + $0xdc] ss:$12 sps:$4 sm:$0xff]  }
  0x7d   : > { %4085 = vmatpush3.bf16.msra.mxu1 %v4575_v40  ;;  %v4638_v40 = vld [vmem:[%s5627_s1 + $0x210] sm:$0xff]  }
  0x7e   : > { %4086 = vmatprep.subr.bf16.mxu1 %v4587_v43  ;;  %v4630_v41 = vld [vmem:[%s4968_s28 + $0x50] ss:$12 sps:$4 sm:$0xff]  }
  0x81   : > { %4087 = vmatpush3.bf16.msra.mxu1 %v4587_v43  ;;  %v4633_v43 = vld [vmem:[%s4968_s28 + $0x68] ss:$12 sps:$4 sm:$0xff]  }
  0x82   : > { %4088 = vmatprep.subr.bf16.mxu1 %v4600_v48 }
  0x83   : > { %1009 = vmatmul.mubr.bf16.gmra.mrb[44].mxu0 %v4529_v44  ;;  %1667 = vmatmul.mubr.bf16.gmra.mrb[44].mxu1 %v4530_v45  ;;  %v4634_v44 = vld [vmem:[%s4903_s16 + $0xf4] ss:$12 sps:$4 sm:$0xff]   ;;  %v4644_v45 = vld [vmem:[%s5627_s1 + $0x218] sm:$0xff]  }
  0x84   : > { %1016 = vmatprep.mubr.bf16.mxu0 %v4533_v46  ;;  %1674 = vmatprep.mubr.bf16.mxu1 %v4535_v47  ;;  %v4650_v46 = vld [vmem:[%s5627_s1 + $0x220] sm:$0xff]  }
  0x85   : > { %4089 = vmatpush3.bf16.msra.mxu1 %v4600_v48  ;;  %v4636_v47 = vld [vmem:[%s4968_s28 + $0x80] ss:$12 sps:$4 sm:$0xff]   ;;  %v4637_v48 = vld [vmem:[%s4903_s16 + $0xf0] ss:$12 sps:$4 sm:$0xff]  }
  0x86   : > { %4090 = vmatprep.subr.bf16.mxu1 %v4613_v53 }
  0x89   : > { %4091 = vmatpush3.bf16.msra.mxu1 %v4613_v53 }
  0x8a   : > { %4124 = vmatprep.subr.bf16.mxu1 %v5075_v58 }
  0x8b   : > { %1017 = vmatmul.mubr.bf16.gmra.mrb[48].mxu0 %v4537_v49  ;;  %1675 = vmatmul.mubr.bf16.gmra.mrb[48].mxu1 %v4538_v50  ;;  %v4639_v49 = vld [vmem:[%s4968_s28 + $0x98] ss:$12 sps:$4 sm:$0xff]  }
  0x8c   : > { %1024 = vmatprep.mubr.bf16.mxu0 %v4540_v51  ;;  %1682 = vmatprep.mubr.bf16.mxu1 %v4542_v52  ;;  %v4640_v50 = vld [vmem:[%s4903_s16 + $0x10c] ss:$12 sps:$4 sm:$0xff]   ;;  %v4662_v52 = vld [vmem:[%s5627_s1 + $0x230] sm:$0xff]  }
  0x8d   : > { %v4656_v51 = vld [vmem:[%s5627_s1 + $0x228] sm:$0xff]  }
  0x93   : > { %1025 = vmatmul.mubr.bf16.gmra.mrb[52].mxu0 %v4544_v54  ;;  %1683 = vmatmul.mubr.bf16.gmra.mrb[52].mxu1 %v4545_v55  ;;  %v4642_v54 = vld [vmem:[%s4968_s28 + $0xb0] ss:$12 sps:$4 sm:$0xff]   ;;  %v4643_v55 = vld [vmem:[%s4903_s16 + $0x108] ss:$12 sps:$4 sm:$0xff]  }
  0x94   : > { %1032 = vmatprep.mubr.bf16.mxu0 %v4548_v56  ;;  %1690 = vmatprep.mubr.bf16.mxu1 %v4550_v57  ;;  %v4645_v57 = vld [vmem:[%s4968_s28 + $0xc8] ss:$12 sps:$4 sm:$0xff]  }
  0x9b   : > { %1033 = vmatmul.mubr.bf16.gmra.mrb[56].mxu0 %v4552_v59  ;;  %1691 = vmatmul.mubr.bf16.gmra.mrb[56].mxu1 %v4553_v60 }
  0x9c   : > { %1040 = vmatprep.mubr.bf16.mxu0 %v4559_v61  ;;  %1698 = vmatprep.mubr.bf16.mxu1 %v4561_v62  ;;  %v4668_v62 = vld [vmem:[%s5627_s1 + $0x238] sm:$0xff]  }
  0xa3   : > { %1041 = vmatmul.mubr.bf16.gmra.mrb[60].mxu0 %v4563_v63  ;;  %1699 = vmatmul.mubr.bf16.gmra.mrb[60].mxu1 %v4564_v0 }
  0xa4   : > { %1706 = vmatprep.mubr.bf16.mxu1 %v4569_v1  ;;  %2484 = vmatprep.mubr.bf16.mxu0 %v4573_v2  ;;  %v4648_v1 = vld [vmem:[%s4968_s28 + $0xe0] ss:$12 sps:$4 sm:$0xff]  }
  0xa5   : > { %v4649_v2 = vld [vmem:[%s4903_s16 + $0x120] ss:$12 sps:$4 sm:$0xff]  }
  0xab   : > { %1707 = vmatmul.mubr.bf16.gmra.mrb[64].mxu1 %v4574_v4  ;;  %2485 = vmatmul.mubr.bf16.vlgmr.msra.gmra.mrb[64].mxu0 %v4571_v3  ;;  %v4651_v4 = vld [vmem:[%s4968_s28 + $0xf8] ss:$12 sps:$4 sm:$0xff]  }
  0xac   : > { %1714 = vmatprep.mubr.bf16.mxu1 %v4576_v5  ;;  %2492 = vmatprep.mubr.bf16.mxu0 %v4578_v6  ;;  %v4652_v5 = vld [vmem:[%s4903_s16 + $0x13c] ss:$12 sps:$4 sm:$0xff]  }
  0xb3   : > { %1715 = vmatmul.mubr.bf16.gmra.mrb[68].mxu1 %v4580_v7  ;;  %2493 = vmatmul.mubr.bf16.gmra.mrb[68].mxu0 %v4581_v8 }
  0xb4   : > { %1722 = vmatprep.mubr.bf16.mxu1 %v4582_v9  ;;  %2500 = vmatprep.mubr.bf16.mxu0 %v4584_v10  ;;  %v4685_v10 = vld [vmem:[%s5629_s3] sm:$0xff]  }
  0xb5   : > { %4172 = vmatprep.subr.bf16.mxu0 %v4685_v10 }
  0xb6   : > { %4173 = vmatpush3.bf16.msra.mxu0 %v4685_v10  ;;  %v4676_v10 = vld [vmem:[%s4903_s16 + $0xb0] ss:$12 sps:$4 sm:$0xff]  }
  0xbb   : > { %1723 = vmatmul.mubr.bf16.gmra.mrb[72].mxu1 %v4586_v11  ;;  %2501 = vmatmul.mubr.bf16.gmra.mrb[72].mxu0 %v4588_v12  ;;  %v4654_v12 = vld [vmem:[%s4968_s28 + $0x110] ss:$12 sps:$4 sm:$0xff]  }
  0xbc   : > { %1730 = vmatprep.mubr.bf16.mxu1 %v4589_v13  ;;  %2508 = vmatprep.mubr.bf16.mxu0 %v4591_v14  ;;  %v4655_v13 = vld [vmem:[%s4903_s16 + $0x138] ss:$12 sps:$4 sm:$0xff]  }
  0xc3   : > { %1731 = vmatmul.mubr.bf16.gmra.mrb[76].mxu1 %v4593_v15  ;;  %2509 = vmatmul.mubr.bf16.gmra.mrb[76].mxu0 %v4594_v16  ;;  %v4657_v15 = vld [vmem:[%s4968_s28 + $0x128] ss:$12 sps:$4 sm:$0xff]  }
  0xc4   : > { %1738 = vmatprep.mubr.bf16.mxu1 %v4595_v17  ;;  %2516 = vmatprep.mubr.bf16.mxu0 %v4597_v18  ;;  %v4658_v16 = vld [vmem:[%s4903_s16 + $0x154] ss:$12 sps:$4 sm:$0xff]  }
  0xcb   : > { %1739 = vmatmul.mubr.bf16.gmra.mrb[80].mxu1 %v4599_v19  ;;  %2517 = vmatmul.mubr.bf16.gmra.mrb[80].mxu0 %v4601_v20 }
  0xcc   : > { %1746 = vmatprep.mubr.bf16.mxu1 %v4602_v21  ;;  %2524 = vmatprep.mubr.bf16.mxu0 %v4604_v22  ;;  %v4660_v22 = vld [vmem:[%s4968_s28 + $0x140] ss:$12 sps:$4 sm:$0xff]  }
  0xd3   : > { %1747 = vmatmul.mubr.bf16.gmra.mrb[84].mxu1 %v4606_v23  ;;  %2525 = vmatmul.mubr.bf16.gmra.mrb[84].mxu0 %v4607_v24  ;;  %v4661_v23 = vld [vmem:[%s4903_s16 + $0x150] ss:$12 sps:$4 sm:$0xff]  }
  0xd4   : > { %1754 = vmatprep.mubr.bf16.mxu1 %v4608_v25  ;;  %2532 = vmatprep.mubr.bf16.mxu0 %v4610_v26  ;;  %v4663_v25 = vld [vmem:[%s4968_s28 + $0x158] ss:$12 sps:$4 sm:$0xff]  }
  0xd5   : > { %v4664_v26 = vld [vmem:[%s4903_s16 + $0x16c] ss:$12 sps:$4 sm:$0xff]  }
  0xdb   : > { %1755 = vmatmul.mubr.bf16.gmra.mrb[88].mxu1 %v4612_v27  ;;  %2533 = vmatmul.mubr.bf16.gmra.mrb[88].mxu0 %v4614_v28 }
  0xdc   : > { %1762 = vmatprep.mubr.bf16.mxu1 %v4615_v29  ;;  %2540 = vmatprep.mubr.bf16.mxu0 %v4617_v30 }
  0xe3   : > { %1763 = vmatmul.mubr.bf16.gmra.mrb[92].mxu1 %v4619_v31  ;;  %2541 = vmatmul.mubr.bf16.gmra.mrb[92].mxu0 %v4620_v32  ;;  %v4686_v31 = vld [vmem:[%s5629_s3 + $0x8] sm:$0xff]  }
  0xe4   : > { %4092 = vmatprep.mubr.bf16.mxu1 %v4621_v33  ;;  %2548 = vmatprep.mubr.bf16.mxu0 %v4622_v34  ;;  %v4666_v33 = vld [vmem:[%s4968_s28 + $0x170] ss:$12 sps:$4 sm:$0xff]   ;;  %v4667_v34 = vld [vmem:[%s4903_s16 + $0x168] ss:$12 sps:$4 sm:$0xff]  }
  0xe5   : > { %4174 = vmatprep.subr.bf16.mxu0 %v4686_v31 }
  0xe6   : > { %4175 = vmatpush3.bf16.msra.mxu0 %v4686_v31 }
  0xeb   : > { %4093 = vmatmul.mubr.bf16.vlgmr.msra.gmra.mrb[0].mxu1 %v4624_v35  ;;  %2549 = vmatmul.mubr.bf16.gmra.mrb[96].mxu0 %v4625_v36  ;;  %v4669_v36 = vld [vmem:[%s4903_s16 + $0x8] ss:$12 sps:$4 sm:$0xff]  }
  0xec   : > { %4125 = vmatpush3.bf16.msra.mxu1 %v5075_v58  ;;  %4096 = vmatprep.mubr.bf16.mxu1 %v4627_v37  ;;  %v4646_v58 = vld [vmem:[%s4903_s16 + $0x124] ss:$12 sps:$4 sm:$0xff]  }
  0xed   : > { %2556 = vmatprep.mubr.bf16.mxu0 %v4628_v38  ;;  %4126 = vmatprep.subr.bf16.mxu1 %v4632_v39 }
  0xf0   : > { %4127 = vmatpush3.bf16.msra.mxu1 %v4632_v39 }
  0xf1   : > { %4128 = vmatprep.subr.bf16.mxu1 %v4638_v40 }
  0xf3   : > { %4097 = vmatmul.mubr.bf16.gmra.mrb[4].mxu1 %v4630_v41  ;;  %2557 = vmatmul.mubr.bf16.gmra.mrb[100].mxu0 %v4631_v42  ;;  %v4670_v42 = vld [vmem:[%s4903_s16 + $0x20] ss:$12 sps:$4 sm:$0xff]  }
  0xf4   : > { %4100 = vmatprep.mubr.bf16.mxu1 %v4633_v43  ;;  %2564 = vmatprep.mubr.bf16.mxu0 %v4634_v44  ;;  %v4671_v44 = vld [vmem:[%s4903_s16 + $0x38] ss:$12 sps:$4 sm:$0xff]  }
  0xf5   : > { %4129 = vmatpush3.bf16.msra.mxu1 %v4638_v40 }
  0xf6   : > { %4130 = vmatprep.subr.bf16.mxu1 %v4644_v45 }
  0xf9   : > { %4131 = vmatpush3.bf16.msra.mxu1 %v4644_v45 }
  0xfa   : > { %4132 = vmatprep.subr.bf16.mxu1 %v4650_v46 }
  0xfb   : > { %4101 = vmatmul.mubr.bf16.gmra.mrb[8].mxu1 %v4636_v47  ;;  %2565 = vmatmul.mubr.bf16.gmra.mrb[104].mxu0 %v4637_v48 }
  0xfc   : > { %4104 = vmatprep.mubr.bf16.mxu1 %v4639_v49  ;;  %2572 = vmatprep.mubr.bf16.mxu0 %v4640_v50  ;;  %v4687_v49 = vld [vmem:[%s5629_s3 + $0x10] sm:$0xff]  }
  0xfd   : > { %4133 = vmatpush3.bf16.msra.mxu1 %v4650_v46  ;;  %4176 = vmatprep.subr.bf16.mxu0 %v4687_v49 }
  0xfe   : > { %4134 = vmatprep.subr.bf16.mxu1 %v4656_v51  ;;  %v3612_v53 = vpop.f32.mrb[0].mxu0  ;;  %4177 = vmatpush3.bf16.msra.mxu0 %v4687_v49 }
  0xff   : > { %v3613_v56 = vpop.f32.mrb[1].mxu0 }
 0x100   : > { %v5153_v59 = vadd.f32 %v3613_v56, %v3612_v53  ;;  %v3615_v60 = vpop.f32.mrb[2].mxu0  ;;  %v4673_v53 = vld [vmem:[%s4903_s16 + $0x68] ss:$12 sps:$4 sm:$0xff]  }
 0x101   : > { %4135 = vmatpush3.bf16.msra.mxu1 %v4656_v51  ;;  %v3616_v61 = vpop.f32.mrb[3].mxu0  ;;  %v4672_v51 = vld [vmem:[%s4903_s16 + $0x50] ss:$12 sps:$4 sm:$0xff]  }
 0x102   : > { %4136 = vmatprep.subr.bf16.mxu1 %v4662_v52  ;;  %v5158_v63 = vadd.f32 %v3616_v61, %v3615_v60  ;;  %v4674_v60 = vld [vmem:[%s4903_s16 + $0x80] ss:$12 sps:$4 sm:$0xff]  }
 0x103   : > { %4105 = vmatmul.mubr.bf16.gmra.mrb[12].mxu1 %v4642_v54  ;;  %2573 = vmatmul.mubr.bf16.gmra.mrb[108].mxu0 %v4643_v55 }
 0x104   : > { %4108 = vmatprep.mubr.bf16.mxu1 %v4645_v57  ;;  %2580 = vmatprep.mubr.bf16.mxu0 %v4646_v58 }
 0x105   : > { %4137 = vmatpush3.bf16.msra.mxu1 %v4662_v52 }
 0x106   : > { %4138 = vmatprep.subr.bf16.mxu1 %v4668_v62  ;;  %v3618_v0 = vpop.f32.mrb[4].mxu0 }
 0x107   : > { %v3619_v3 = vpop.f32.mrb[5].mxu0 }
 0x108   : > { %v5164_v6 = vadd.f32 %v3619_v3, %v3618_v0  ;;  %v3621_v7 = vpop.f32.mrb[6].mxu0 }
 0x109   : > { %4139 = vmatpush3.bf16.msra.mxu1 %v4668_v62  ;;  %v3622_v8 = vpop.f32.mrb[7].mxu0  ;;  %v4675_v62 = vld [vmem:[%s4903_s16 + $0x98] ss:$12 sps:$4 sm:$0xff]  }
 0x10a   : > { %v5166_v9 = vadd.f32 %v3622_v8, %v3621_v7 }
 0x10b   : > { %4109 = vmatmul.mubr.bf16.gmra.mrb[16].mxu1 %v4648_v1  ;;  %2581 = vmatmul.mubr.bf16.gmra.mrb[112].mxu0 %v4649_v2 }
 0x10c   : > { %4112 = vmatprep.mubr.bf16.mxu1 %v4651_v4  ;;  %2588 = vmatprep.mubr.bf16.mxu0 %v4652_v5  ;;  %v4688_v4 = vld [vmem:[%s5629_s3 + $0x18] sm:$0xff]  }
 0x10d   : > { %4178 = vmatprep.subr.bf16.mxu0 %v4688_v4 }
 0x10e   : > { %v3624_v11 = vpop.f32.mrb[8].mxu0  ;;  %4179 = vmatpush3.bf16.msra.mxu0 %v4688_v4 }
 0x10f   : > { %v3625_v14 = vpop.f32.mrb[9].mxu0 }
 0x110   : > { %v5175_v17 = vadd.f32 %v3625_v14, %v3624_v11  ;;  %v3627_v18 = vpop.f32.mrb[10].mxu0  ;;  %v4677_v14 = vld [vmem:[%s4903_s16 + $0xc8] ss:$12 sps:$4 sm:$0xff]  }
 0x111   : > { %v3628_v19 = vpop.f32.mrb[11].mxu0 }
 0x112   : > { %v5177_v20 = vadd.f32 %v3628_v19, %v3627_v18 }
 0x113   : > { %4113 = vmatmul.mubr.bf16.gmra.mrb[20].mxu1 %v4654_v12  ;;  %2589 = vmatmul.mubr.bf16.gmra.mrb[116].mxu0 %v4655_v13 }
 0x114   : > { %4116 = vmatprep.mubr.bf16.mxu1 %v4657_v15  ;;  %2596 = vmatprep.mubr.bf16.mxu0 %v4658_v16 }
 0x116   : > { %v3630_v21 = vpop.f32.mrb[12].mxu0 }
 0x117   : > { %v3631_v24 = vpop.f32.mrb[13].mxu0 }
 0x118   : > { %v5183_v27 = vadd.f32 %v3631_v24, %v3630_v21  ;;  %v3633_v28 = vpop.f32.mrb[14].mxu0 }
 0x119   : > { %v3634_v29 = vpop.f32.mrb[15].mxu0 }
 0x11a   : > { %v5185_v30 = vadd.f32 %v3634_v29, %v3633_v28  ;;  %v4678_v29 = vld [vmem:[%s4903_s16 + $0xe0] ss:$12 sps:$4 sm:$0xff]  }
 0x11b   : > { %4117 = vmatmul.mubr.bf16.gmra.mrb[24].mxu1 %v4660_v22  ;;  %2597 = vmatmul.mubr.bf16.gmra.mrb[120].mxu0 %v4661_v23 }
 0x11c   : > { %4120 = vmatprep.mubr.bf16.mxu1 %v4663_v25  ;;  %2604 = vmatprep.mubr.bf16.mxu0 %v4664_v26 }
 0x11e   : > { %v3636_v32 = vpop.f32.mrb[16].mxu0 }
 0x11f   : > { %v3637_v35 = vpop.f32.mrb[17].mxu0 }
 0x120   : > { %v5193_v37 = vadd.f32 %v3637_v35, %v3636_v32  ;;  %v3639_v38 = vpop.f32.mrb[18].mxu0 }
 0x121   : > { %v3640_v39 = vpop.f32.mrb[19].mxu0 }
 0x122   : > { %v5195_v40 = vadd.f32 %v3640_v39, %v3639_v38 }
 0x123   : > { %4121 = vmatmul.mubr.bf16.gmra.mrb[28].mxu1 %v4666_v33  ;;  %2605 = vmatmul.mubr.bf16.gmra.mrb[124].mxu0 %v4667_v34  ;;  %v4679_v34 = vld [vmem:[%s4903_s16 + $0xf8] ss:$12 sps:$4 sm:$0xff]  }
 0x124   : > { %4140 = vmatprep.mubr.bf16.mxu1 %v4669_v36 }
 0x126   : > { %v3642_v41 = vpop.f32.mrb[20].mxu0 }
 0x127   : > { %v3643_v43 = vpop.f32.mrb[21].mxu0 }
 0x128   : > { %v5199_v45 = vadd.f32 %v3643_v43, %v3642_v41  ;;  %v3645_v46 = vpop.f32.mrb[22].mxu0 }
 0x129   : > { %v3646_v47 = vpop.f32.mrb[23].mxu0 }
 0x12a   : > { %v5201_v48 = vadd.f32 %v3646_v47, %v3645_v46 }
 0x12b   : > { %4141 = vmatmul.mubr.bf16.vlgmr.msra.gmra.mrb[0].mxu1 %v4670_v42  ;;  %v4689_v42 = vld [vmem:[%s5629_s3 + $0x20] sm:$0xff]  }
 0x12c   : > { %4144 = vmatprep.mubr.bf16.mxu1 %v4671_v44  ;;  %4180 = vmatprep.subr.bf16.mxu0 %v4689_v42 }
 0x12d   : > { %4181 = vmatpush3.bf16.msra.mxu0 %v4689_v42 }
 0x12e   : > { %v3648_v50 = vpop.f32.mrb[24].mxu0 }
 0x12f   : > { %v3649_v52 = vpop.f32.mrb[25].mxu0 }
 0x130   : > { %v5208_v54 = vadd.f32 %v3649_v52, %v3648_v50  ;;  %v3651_v55 = vpop.f32.mrb[26].mxu0  ;;  %v4681_v52 = vld [vmem:[%s4903_s16 + $0x128] ss:$12 sps:$4 sm:$0xff]  }
 0x131   : > { %v3652_v56 = vpop.f32.mrb[27].mxu0 }
 0x132   : > { %v5210_v57 = vadd.f32 %v3652_v56, %v3651_v55 }
 0x133   : > { %4145 = vmatmul.mubr.bf16.gmra.mrb[4].mxu1 %v4672_v51 }
 0x134   : > { %4148 = vmatprep.mubr.bf16.mxu1 %v4673_v53 }
 0x136   : > { %v3654_v58 = vpop.f32.mrb[28].mxu0 }
 0x137   : > { %v3655_v61 = vpop.f32.mrb[29].mxu0 }
 0x138   : > { %v5214_v0 = vadd.f32 %v3655_v61, %v3654_v58  ;;  %v3657_v1 = vpop.f32.mrb[30].mxu0 }
 0x139   : > { %v3658_v2 = vpop.f32.mrb[31].mxu0 }
 0x13a   : > { %v5216_v3 = vadd.f32 %v3658_v2, %v3657_v1 }
 0x13b   : > { %4149 = vmatmul.mubr.bf16.gmra.mrb[8].mxu1 %v4674_v60 }
 0x13c   : > { %4152 = vmatprep.mubr.bf16.mxu1 %v4675_v62 }
 0x13e   : > { %v3748_v5 = vpop.f32.mrb[32].mxu1  ;;  %v3660_v7 = vpop.f32.mrb[32].mxu0 }
 0x13f   : > { %v3749_v8 = vpop.f32.mrb[33].mxu1  ;;  %v3661_v11 = vpop.f32.mrb[33].mxu0 }
 0x140   : > { %v3750_v12 = vadd.f32 %v3749_v8, %v3748_v5  ;;  %v3751_v13 = vpop.f32.mrb[34].mxu1  ;;  %v5223_v15 = vadd.f32 %v3661_v11, %v3660_v7  ;;  %v3663_v16 = vpop.f32.mrb[34].mxu0  ;;  %v4682_v5 = vld [vmem:[%s4903_s16 + $0x140] ss:$12 sps:$4 sm:$0xff]   ;;  %v4683_v11 = vld [vmem:[%s4903_s16 + $0x158] ss:$12 sps:$4 sm:$0xff]  }
 0x141   : > { %v3752_v18 = vpop.f32.mrb[35].mxu1  ;;  %v3664_v19 = vpop.f32.mrb[35].mxu0 }
 0x142   : > { %v5226_v21 = vadd.f32 %v3750_v12, %v5153_v59  ;;  %v3753_v22 = vadd.f32 %v3752_v18, %v3751_v13  ;;  %v5228_v23 = vadd.f32 %v3664_v19, %v3663_v16  ;;  %v4690_v19 = vld [vmem:[%s5629_s3 + $0x28] sm:$0xff]  }
 0x143   : > { %4153 = vmatmul.mubr.bf16.gmra.mrb[12].mxu1 %v4676_v10  ;;  %4182 = vmatprep.subr.bf16.mxu0 %v4690_v19 }
 0x144   : > { %v5231_v24 = vadd.f32 %v3753_v22, %v5158_v63  ;;  %4156 = vmatprep.mubr.bf16.mxu1 %v4677_v14  ;;  %4183 = vmatpush3.bf16.msra.mxu0 %v4690_v19 }
 0x146   : > { %v3754_v25 = vpop.f32.mrb[36].mxu1  ;;  %v3666_v26 = vpop.f32.mrb[36].mxu0 }
 0x147   : > { %v3755_v28 = vpop.f32.mrb[37].mxu1  ;;  %v3667_v31 = vpop.f32.mrb[37].mxu0 }
 0x148   : > { %v3756_v32 = vadd.f32 %v3755_v28, %v3754_v25  ;;  %v3757_v33 = vpop.f32.mrb[38].mxu1  ;;  %v5235_v35 = vadd.f32 %v3667_v31, %v3666_v26  ;;  %v3669_v59 = vpop.f32.mrb[38].mxu0 }
 0x149   : > { %v3758_v36 = vpop.f32.mrb[39].mxu1  ;;  %v3670_v38 = vpop.f32.mrb[39].mxu0 }
 0x14a   : > { %v5238_v39 = vadd.f32 %v3756_v32, %v5164_v6  ;;  %v3759_v63 = vadd.f32 %v3758_v36, %v3757_v33  ;;  %v5240_v41 = vadd.f32 %v3670_v38, %v3669_v59  ;;  %v4680_v6 = vld [vmem:[%s4903_s16 + $0x110] ss:$12 sps:$4 sm:$0xff]  }
 0x14b   : > { %4157 = vmatmul.mubr.bf16.gmra.mrb[16].mxu1 %v4678_v29  ;;  %v4684_v29 = vld [vmem:[%s4903_s16 + $0x170] ss:$12 sps:$4 sm:$0xff]  }
 0x14c   : > { %v5246_v43 = vadd.f32 %v3759_v63, %v5166_v9  ;;  %4160 = vmatprep.mubr.bf16.mxu1 %v4679_v34 }
 0x14e   : > { %v3760_v44 = vpop.f32.mrb[40].mxu1  ;;  %v3672_v46 = vpop.f32.mrb[40].mxu0 }
 0x14f   : > { %v3761_v47 = vpop.f32.mrb[41].mxu1  ;;  %v3673_v49 = vpop.f32.mrb[41].mxu0 }
 0x150   : > { %v3762_v50 = vadd.f32 %v3761_v47, %v3760_v44  ;;  %v3763_v51 = vpop.f32.mrb[42].mxu1  ;;  %v5250_v53 = vadd.f32 %v3673_v49, %v3672_v46  ;;  %v3675_v55 = vpop.f32.mrb[42].mxu0 }
 0x151   : > { %v3764_v56 = vpop.f32.mrb[43].mxu1  ;;  %v3676_v58 = vpop.f32.mrb[43].mxu0 }
 0x152   : > { %v5253_v9 = vadd.f32 %v3762_v50, %v5175_v17  ;;  %v3765_v60 = vadd.f32 %v3764_v56, %v3763_v51  ;;  %v5255_v61 = vadd.f32 %v3676_v58, %v3675_v55 }
 0x153   : > { %4161 = vmatmul.mubr.bf16.gmra.mrb[20].mxu1 %v4680_v6 }
 0x154   : > { %v5258_v62 = vadd.f32 %v3765_v60, %v5177_v20  ;;  %4164 = vmatprep.mubr.bf16.mxu1 %v4681_v52 }
 0x156   : > { %v3766_v1 = vpop.f32.mrb[44].mxu1  ;;  %v3678_v2 = vpop.f32.mrb[44].mxu0 }
 0x157   : > { %v3767_v4 = vpop.f32.mrb[45].mxu1  ;;  %v3679_v7 = vpop.f32.mrb[45].mxu0 }
 0x158   : > { %v3768_v8 = vadd.f32 %v3767_v4, %v3766_v1  ;;  %v3769_v10 = vpop.f32.mrb[46].mxu1  ;;  %v5262_v12 = vadd.f32 %v3679_v7, %v3678_v2  ;;  %v3681_v17 = vpop.f32.mrb[46].mxu0 }
 0x159   : > { %v3770_v13 = vpop.f32.mrb[47].mxu1  ;;  %v3682_v14 = vpop.f32.mrb[47].mxu0 }
 0x15a   : > { %v5265_v16 = vadd.f32 %v3768_v8, %v5183_v27  ;;  %v3771_v20 = vadd.f32 %v3770_v13, %v3769_v10  ;;  %v5267_v18 = vadd.f32 %v3682_v14, %v3681_v17 }
 0x15b   : > { %4165 = vmatmul.mubr.bf16.gmra.mrb[24].mxu1 %v4682_v5 }
 0x15c   : > { %v5273_v22 = vadd.f32 %v3771_v20, %v5185_v30  ;;  %4168 = vmatprep.mubr.bf16.mxu1 %v4683_v11 }
 0x15e   : > { %v3772_v25 = vpop.f32.mrb[48].mxu1  ;;  %v3684_v26 = vpop.f32.mrb[48].mxu0 }
 0x15f   : > { %v3773_v28 = vpop.f32.mrb[49].mxu1  ;;  %v3685_v27 = vpop.f32.mrb[49].mxu0 }
 0x160   : > { %v3774_v31 = vadd.f32 %v3773_v28, %v3772_v25  ;;  %v3775_v32 = vpop.f32.mrb[50].mxu1  ;;  %v5276_v33 = vadd.f32 %v3685_v27, %v3684_v26  ;;  %v3687_v34 = vpop.f32.mrb[50].mxu0 }
 0x161   : > { %v3776_v59 = vpop.f32.mrb[51].mxu1  ;;  %v3688_v36 = vpop.f32.mrb[51].mxu0 }
 0x162   : > { %v5279_v38 = vadd.f32 %v3774_v31, %v5193_v37  ;;  %v3777_v30 = vadd.f32 %v3776_v59, %v3775_v32  ;;  %v5281_v63 = vadd.f32 %v3688_v36, %v3687_v34 }
 0x163   : > { %4169 = vmatmul.mubr.bf16.gmra.mrb[28].mxu1 %v4684_v29 }
 0x164   : > { %v5284_v42 = vadd.f32 %v3777_v30, %v5195_v40  ;;  %v4691_v40 = vld [vmem:[%s5629_s3 + $0x30] sm:$0xff]  }
 0x165   : > { %4184 = vmatprep.subr.bf16.mxu0 %v4691_v40 }
 0x166   : > { %v3778_v44 = vpop.f32.mrb[52].mxu1  ;;  %v3690_v46 = vpop.f32.mrb[52].mxu0  ;;  %4185 = vmatpush3.bf16.msra.mxu0 %v4691_v40 }
 0x167   : > { %v3779_v47 = vpop.f32.mrb[53].mxu1  ;;  %v3691_v6 = vpop.f32.mrb[53].mxu0 }
 0x168   : > { %v3780_v49 = vadd.f32 %v3779_v47, %v3778_v44  ;;  %v3781_v50 = vpop.f32.mrb[54].mxu1  ;;  %v5286_v51 = vadd.f32 %v3691_v6, %v3690_v46  ;;  %v3693_v52 = vpop.f32.mrb[54].mxu0 }
 0x169   : > { %v3782_v55 = vpop.f32.mrb[55].mxu1  ;;  %v3694_v56 = vpop.f32.mrb[55].mxu0 }
 0x16a   : > { %v5289_v37 = vadd.f32 %v3780_v49, %v5199_v45  ;;  %v3783_v58 = vadd.f32 %v3782_v55, %v3781_v50  ;;  %v5291_v60 = vadd.f32 %v3694_v56, %v3693_v52 }
 0x16c   : > { %v5297_v1 = vadd.f32 %v3783_v58, %v5201_v48 }
 0x16e   : > { %v3784_v2 = vpop.f32.mrb[56].mxu1  ;;  %v3696_v4 = vpop.f32.mrb[56].mxu0 }
 0x16f   : > { %v3785_v5 = vpop.f32.mrb[57].mxu1  ;;  %v3697_v7 = vpop.f32.mrb[57].mxu0 }
 0x170   : > { %v3786_v8 = vadd.f32 %v3785_v5, %v3784_v2  ;;  %v3787_v10 = vpop.f32.mrb[58].mxu1  ;;  %v5299_v45 = vadd.f32 %v3697_v7, %v3696_v4  ;;  %v3699_v11 = vpop.f32.mrb[58].mxu0 }
 0x171   : > { %v3788_v17 = vpop.f32.mrb[59].mxu1  ;;  %v3700_v13 = vpop.f32.mrb[59].mxu0 }
 0x172   : > { %v5302_v14 = vadd.f32 %v3786_v8, %v5208_v54  ;;  %v3789_v20 = vadd.f32 %v3788_v17, %v3787_v10  ;;  %v5304_v19 = vadd.f32 %v3700_v13, %v3699_v11 }
 0x174   : > { %v5307_v48 = vadd.f32 %v3789_v20, %v5210_v57  ;;  %v4692_v57 = vld [vmem:[%s5629_s3 + $0x38] sm:$0xff]  }
 0x175   : > { %4186 = vmatprep.subr.bf16.mxu0 %v4692_v57 }
 0x176   : > { %v3790_v25 = vpop.f32.mrb[60].mxu1  ;;  %v3702_v26 = vpop.f32.mrb[60].mxu0  ;;  %4187 = vmatpush3.bf16.msra.mxu0 %v4692_v57 }
 0x177   : > { %v3791_v28 = vpop.f32.mrb[61].mxu1  ;;  %v3703_v29 = vpop.f32.mrb[61].mxu0 }
 0x178   : > { %v3792_v27 = vadd.f32 %v3791_v28, %v3790_v25  ;;  %v3793_v31 = vpop.f32.mrb[62].mxu1  ;;  %v5309_v32 = vadd.f32 %v3703_v29, %v3702_v26  ;;  %v3705_v34 = vpop.f32.mrb[62].mxu0 }
 0x179   : > { %v3794_v59 = vpop.f32.mrb[63].mxu1  ;;  %v3706_v36 = vpop.f32.mrb[63].mxu0 }
 0x17a   : > { %v5312_v54 = vadd.f32 %v3792_v27, %v5214_v0  ;;  %v3795_v30 = vadd.f32 %v3794_v59, %v3793_v31  ;;  %v5314_v44 = vadd.f32 %v3706_v36, %v3705_v34 }
 0x17c   : > { %v5320_v46 = vadd.f32 %v3795_v30, %v5216_v3 }
 0x17e   : > { %v3796_v47 = vpop.f32.mrb[64].mxu1  ;;  %v3884_v6 = vpop.f32.mrb[64].mxu0 }
 0x17f   : > { %v3797_v49 = vpop.f32.mrb[65].mxu1  ;;  %v3885_v50 = vpop.f32.mrb[65].mxu0 }
 0x180   : > { %v3798_v52 = vadd.f32 %v3797_v49, %v3796_v47  ;;  %v3886_v55 = vadd.f32 %v3885_v50, %v3884_v6  ;;  %v3799_v0 = vpop.f32.mrb[66].mxu1  ;;  %v3887_v56 = vpop.f32.mrb[66].mxu0 }
 0x181   : > { %v3800_v58 = vpop.f32.mrb[67].mxu1  ;;  %v3888_v40 = vpop.f32.mrb[67].mxu0 }
 0x182   : > { %v5323_v2 = vadd.f32 %v3798_v52, %v5223_v15  ;;  %v3801_v4 = vadd.f32 %v3800_v58, %v3799_v0  ;;  %v3889_v5 = vadd.f32 %v3888_v40, %v3887_v56  ;;  %v5326_v3 = vadd.f32 %v5226_v21, %v3886_v55 }
 0x184   : > { %v5329_v7 = vadd.f32 %v3801_v4, %v5228_v23  ;;  %v5332_v8 = vadd.f32 %v5231_v24, %v3889_v5 }
 0x186   : > { %v3802_v10 = vpop.f32.mrb[68].mxu1  ;;  %v3890_v11 = vpop.f32.mrb[68].mxu0 }
 0x187   : > { %v3803_v17 = vpop.f32.mrb[69].mxu1  ;;  %v3891_v13 = vpop.f32.mrb[69].mxu0 }
 0x188   : > { %v3804_v20 = vadd.f32 %v3803_v17, %v3802_v10  ;;  %v3892_v25 = vadd.f32 %v3891_v13, %v3890_v11  ;;  %v3805_v26 = vpop.f32.mrb[70].mxu1  ;;  %v3893_v15 = vpop.f32.mrb[70].mxu0 }
 0x189   : > { %v3806_v28 = vpop.f32.mrb[71].mxu1  ;;  %v3894_v29 = vpop.f32.mrb[71].mxu0 }
 0x18a   : > { %v5335_v27 = vadd.f32 %v3804_v20, %v5235_v35  ;;  %v3807_v21 = vadd.f32 %v3806_v28, %v3805_v26  ;;  %v3895_v31 = vadd.f32 %v3894_v29, %v3893_v15  ;;  %v5338_v23 = vadd.f32 %v5238_v39, %v3892_v25 }
 0x18c   : > { %v5341_v24 = vadd.f32 %v3807_v21, %v5240_v41  ;;  %v5344_v34 = vadd.f32 %v5246_v43, %v3895_v31 }
 0x18e   : > { %v3808_v59 = vpop.f32.mrb[72].mxu1  ;;  %v3896_v36 = vpop.f32.mrb[72].mxu0 }
 0x18f   : > { %v3809_v30 = vpop.f32.mrb[73].mxu1  ;;  %v3897_v57 = vpop.f32.mrb[73].mxu0 }
 0x190   : > { %v3810_v47 = vadd.f32 %v3809_v30, %v3808_v59  ;;  %v3898_v6 = vadd.f32 %v3897_v57, %v3896_v36  ;;  %v3811_v49 = vpop.f32.mrb[74].mxu1  ;;  %v3899_v35 = vpop.f32.mrb[74].mxu0 }
 0x191   : > { %v3812_v50 = vpop.f32.mrb[75].mxu1  ;;  %v3900_v52 = vpop.f32.mrb[75].mxu0 }
 0x192   : > { %v5347_v55 = vadd.f32 %v3810_v47, %v5250_v53  ;;  %v3813_v39 = vadd.f32 %v3812_v50, %v3811_v49  ;;  %v3901_v0 = vadd.f32 %v3900_v52, %v3899_v35  ;;  %v5350_v41 = vadd.f32 %v5253_v9, %v3898_v6 }
 0x194   : > { %v5353_v43 = vadd.f32 %v3813_v39, %v5255_v61  ;;  %v5356_v56 = vadd.f32 %v5258_v62, %v3901_v0 }
 0x196   : > { %v3814_v58 = vpop.f32.mrb[76].mxu1  ;;  %v3902_v40 = vpop.f32.mrb[76].mxu0 }
 0x197   : > { %v3815_v4 = vpop.f32.mrb[77].mxu1  ;;  %v3903_v5 = vpop.f32.mrb[77].mxu0 }
 0x198   : > { %v3816_v10 = vadd.f32 %v3815_v4, %v3814_v58  ;;  %v3904_v11 = vadd.f32 %v3903_v5, %v3902_v40  ;;  %v3817_v17 = vpop.f32.mrb[78].mxu1  ;;  %v3905_v53 = vpop.f32.mrb[78].mxu0 }
 0x199   : > { %v3818_v13 = vpop.f32.mrb[79].mxu1  ;;  %v3906_v20 = vpop.f32.mrb[79].mxu0 }
 0x19a   : > { %v5359_v25 = vadd.f32 %v3816_v10, %v5262_v12  ;;  %v3819_v9 = vadd.f32 %v3818_v13, %v3817_v17  ;;  %v3907_v26 = vadd.f32 %v3906_v20, %v3905_v53  ;;  %v5362_v61 = vadd.f32 %v5265_v16, %v3904_v11 }
 0x19c   : > { %v5365_v62 = vadd.f32 %v3819_v9, %v5267_v18  ;;  %v5368_v15 = vadd.f32 %v5273_v22, %v3907_v26 }
 0x19e   : > { %v3820_v28 = vpop.f32.mrb[80].mxu1  ;;  %v3908_v29 = vpop.f32.mrb[80].mxu0 }
 0x19f   : > { %v3821_v21 = vpop.f32.mrb[81].mxu1  ;;  %v3909_v31 = vpop.f32.mrb[81].mxu0 }
 0x1a0   : > { %v3822_v59 = vadd.f32 %v3821_v21, %v3820_v28  ;;  %v3910_v36 = vadd.f32 %v3909_v31, %v3908_v29  ;;  %v3823_v30 = vpop.f32.mrb[82].mxu1  ;;  %v3911_v12 = vpop.f32.mrb[82].mxu0 }
 0x1a1   : > { %v3824_v57 = vpop.f32.mrb[83].mxu1  ;;  %v3912_v47 = vpop.f32.mrb[83].mxu0 }
 0x1a2   : > { %v5371_v6 = vadd.f32 %v3822_v59, %v5276_v33  ;;  %v3825_v16 = vadd.f32 %v3824_v57, %v3823_v30  ;;  %v3913_v49 = vadd.f32 %v3912_v47, %v3911_v12  ;;  %v5374_v18 = vadd.f32 %v5279_v38, %v3910_v36 }
 0x1a4   : > { %v5377_v22 = vadd.f32 %v3825_v16, %v5281_v63  ;;  %v5380_v35 = vadd.f32 %v5284_v42, %v3913_v49 }
 0x1a6   : > { %v3826_v50 = vpop.f32.mrb[84].mxu1  ;;  %v3914_v52 = vpop.f32.mrb[84].mxu0 }
 0x1a7   : > { %v3827_v39 = vpop.f32.mrb[85].mxu1  ;;  %v3915_v0 = vpop.f32.mrb[85].mxu0 }
 0x1a8   : > { %v3828_v58 = vadd.f32 %v3827_v39, %v3826_v50  ;;  %v3916_v40 = vadd.f32 %v3915_v0, %v3914_v52  ;;  %v3829_v4 = vpop.f32.mrb[86].mxu1  ;;  %v3917_v33 = vpop.f32.mrb[86].mxu0 }
 0x1a9   : > { %v3830_v5 = vpop.f32.mrb[87].mxu1  ;;  %v3918_v10 = vpop.f32.mrb[87].mxu0 }
 0x1aa   : > { %v5383_v11 = vadd.f32 %v3828_v58, %v5286_v51  ;;  %v3831_v38 = vadd.f32 %v3830_v5, %v3829_v4  ;;  %v3919_v17 = vadd.f32 %v3918_v10, %v3917_v33  ;;  %v5386_v63 = vadd.f32 %v5289_v37, %v3916_v40 }
 0x1ac   : > { %v5389_v42 = vadd.f32 %v3831_v38, %v5291_v60  ;;  %v5392_v53 = vadd.f32 %v5297_v1, %v3919_v17 }
 0x1ae   : > { %v3832_v13 = vpop.f32.mrb[88].mxu1  ;;  %v3920_v20 = vpop.f32.mrb[88].mxu0 }
 0x1af   : > { %v3833_v9 = vpop.f32.mrb[89].mxu1  ;;  %v3921_v26 = vpop.f32.mrb[89].mxu0 }
 0x1b0   : > { %v3834_v28 = vadd.f32 %v3833_v9, %v3832_v13  ;;  %v3922_v29 = vadd.f32 %v3921_v26, %v3920_v20  ;;  %v3835_v21 = vpop.f32.mrb[90].mxu1  ;;  %v3923_v51 = vpop.f32.mrb[90].mxu0 }
 0x1b1   : > { %v3836_v31 = vpop.f32.mrb[91].mxu1  ;;  %v3924_v59 = vpop.f32.mrb[91].mxu0 }
 0x1b2   : > { %v5395_v36 = vadd.f32 %v3834_v28, %v5299_v45  ;;  %v3837_v37 = vadd.f32 %v3836_v31, %v3835_v21  ;;  %v3925_v30 = vadd.f32 %v3924_v59, %v3923_v51  ;;  %v5398_v60 = vadd.f32 %v5302_v14, %v3922_v29 }
 0x1b4   : > { %v5401_v1 = vadd.f32 %v3837_v37, %v5304_v19  ;;  %v5404_v12 = vadd.f32 %v5307_v48, %v3925_v30 }
 0x1b6   : > { %v3838_v57 = vpop.f32.mrb[92].mxu1  ;;  %v3926_v47 = vpop.f32.mrb[92].mxu0 }
 0x1b7   : > { %v3839_v16 = vpop.f32.mrb[93].mxu1  ;;  %v3927_v49 = vpop.f32.mrb[93].mxu0 }
 0x1b8   : > { %v3840_v50 = vadd.f32 %v3839_v16, %v3838_v57  ;;  %v3928_v52 = vadd.f32 %v3927_v49, %v3926_v47  ;;  %v3841_v39 = vpop.f32.mrb[94].mxu1  ;;  %v3929_v45 = vpop.f32.mrb[94].mxu0 }
 0x1b9   : > { %v3842_v0 = vpop.f32.mrb[95].mxu1  ;;  %v3930_v58 = vpop.f32.mrb[95].mxu0 }
 0x1ba   : > { %v5407_v40 = vadd.f32 %v3840_v50, %v5309_v32  ;;  %v3843_v14 = vadd.f32 %v3842_v0, %v3841_v39  ;;  %v3931_v4 = vadd.f32 %v3930_v58, %v3929_v45  ;;  %v5410_v19 = vadd.f32 %v5312_v54, %v3928_v52 }
 0x1bc   : > { %v5413_v48 = vadd.f32 %v3843_v14, %v5314_v44  ;;  %v5416_v33 = vadd.f32 %v5320_v46, %v3931_v4 }
 0x1be   : > { %v3932_v5 = vpop.f32.mrb[96].mxu0 }
 0x1bf   : > { %v3933_v10 = vpop.f32.mrb[97].mxu0 }
 0x1c0   : > { %v3934_v38 = vadd.f32 %v3933_v10, %v3932_v5  ;;  %v3935_v17 = vpop.f32.mrb[98].mxu0 }
 0x1c1   : > { %v3936_v13 = vpop.f32.mrb[99].mxu0 }
 0x1c2   : > { %v3937_v20 = vadd.f32 %v3936_v13, %v3935_v17  ;;  %v5419_v32 = vadd.f32 %v5323_v2, %v3934_v38 }
 0x1c4   : > { %v5422_v9 = vadd.f32 %v5329_v7, %v3937_v20 }
 0x1c6   : > { %v3938_v54 = vpop.f32.mrb[100].mxu0 }
 0x1c7   : > { %v3939_v26 = vpop.f32.mrb[101].mxu0 }
 0x1c8   : > { %v3940_v28 = vadd.f32 %v3939_v26, %v3938_v54  ;;  %v3941_v44 = vpop.f32.mrb[102].mxu0 }
 0x1c9   : > { %v3942_v29 = vpop.f32.mrb[103].mxu0 }
 0x1ca   : > { %v3943_v21 = vadd.f32 %v3942_v29, %v3941_v44  ;;  %v5425_v46 = vadd.f32 %v5335_v27, %v3940_v28 }
 0x1cc   : > { %v5428_v51 = vadd.f32 %v5341_v24, %v3943_v21 }
 0x1ce   : > { %v3944_v31 = vpop.f32.mrb[104].mxu0 }
 0x1cf   : > { %v3945_v59 = vpop.f32.mrb[105].mxu0 }
 0x1d0   : > { %v3946_v37 = vadd.f32 %v3945_v59, %v3944_v31  ;;  %v3947_v2 = vpop.f32.mrb[106].mxu0 }
 0x1d1   : > { %v3948_v30 = vpop.f32.mrb[107].mxu0 }
 0x1d2   : > { %v3949_v57 = vadd.f32 %v3948_v30, %v3947_v2  ;;  %v5431_v7 = vadd.f32 %v5347_v55, %v3946_v37 }
 0x1d4   : > { %v5434_v47 = vadd.f32 %v5353_v43, %v3949_v57 }
 0x1d6   : > { %v3950_v16 = vpop.f32.mrb[108].mxu0 }
 0x1d7   : > { %v3951_v49 = vpop.f32.mrb[109].mxu0 }
 0x1d8   : > { %v3952_v50 = vadd.f32 %v3951_v49, %v3950_v16  ;;  %v3953_v27 = vpop.f32.mrb[110].mxu0 }
 0x1d9   : > { %v3954_v52 = vpop.f32.mrb[111].mxu0 }
 0x1da   : > { %v3955_v39 = vadd.f32 %v3954_v52, %v3953_v27  ;;  %v5437_v24 = vadd.f32 %v5359_v25, %v3952_v50 }
 0x1dc   : > { %v5440_v45 = vadd.f32 %v5365_v62, %v3955_v39 }
 0x1de   : > { %v3956_v0 = vpop.f32.mrb[112].mxu0 }
 0x1df   : > { %v3957_v58 = vpop.f32.mrb[113].mxu0 }
 0x1e0   : > { %v3958_v14 = vadd.f32 %v3957_v58, %v3956_v0  ;;  %v3959_v55 = vpop.f32.mrb[114].mxu0 }
 0x1e1   : > { %v3960_v4 = vpop.f32.mrb[115].mxu0 }
 0x1e2   : > { %v3961_v5 = vadd.f32 %v3960_v4, %v3959_v55  ;;  %v5443_v43 = vadd.f32 %v5371_v6, %v3958_v14 }
 0x1e4   : > { %v5446_v10 = vadd.f32 %v5377_v22, %v3961_v5 }
 0x1e6   : > { %v3962_v38 = vpop.f32.mrb[116].mxu0 }
 0x1e7   : > { %v3963_v17 = vpop.f32.mrb[117].mxu0 }
 0x1e8   : > { %v3964_v13 = vadd.f32 %v3963_v17, %v3962_v38  ;;  %v3965_v25 = vpop.f32.mrb[118].mxu0 }
 0x1e9   : > { %v3966_v20 = vpop.f32.mrb[119].mxu0 }
 0x1ea   : > { %v3967_v54 = vadd.f32 %v3966_v20, %v3965_v25  ;;  %v5449_v62 = vadd.f32 %v5383_v11, %v3964_v13 }
 0x1ec   : > { %v5452_v26 = vadd.f32 %v5389_v42, %v3967_v54 }
 0x1ee   : > { %v3968_v28 = vpop.f32.mrb[120].mxu0 }
 0x1ef   : > { %v3969_v44 = vpop.f32.mrb[121].mxu0 }
 0x1f0   : > { %v3970_v29 = vadd.f32 %v3969_v44, %v3968_v28  ;;  %v3971_v6 = vpop.f32.mrb[122].mxu0 }
 0x1f1   : > { %v3972_v21 = vpop.f32.mrb[123].mxu0 }
 0x1f2   : > { %v3973_v31 = vadd.f32 %v3972_v21, %v3971_v6  ;;  %v5455_v22 = vadd.f32 %v5395_v36, %v3970_v29  ;;  %v5469_v36 = vld [vmem:[%s5628_s2] ss:$0 sm:$0xff] }
 0x1f4   : > { %v5458_v59 = vadd.f32 %v5401_v1, %v3973_v31 }
 0x1f6   : > { %v3974_v37 = vpop.f32.mrb[124].mxu0 }
 0x1f7   : > { %v3975_v2 = vpop.f32.mrb[125].mxu0 }
 0x1f8   : > { %v3976_v30 = vadd.f32 %v3975_v2, %v3974_v37  ;;  %v3977_v11 = vpop.f32.mrb[126].mxu0 }
 0x1f9   : > { %v3978_v57 = vpop.f32.mrb[127].mxu0 }
 0x1fa   : > { %v3979_v16 = vadd.f32 %v3978_v57, %v3977_v11  ;;  %v5461_v42 = vadd.f32 %v5407_v40, %v3976_v30 }
 0x1fc   : > { %v5464_v49 = vadd.f32 %v5413_v48, %v3979_v16 }
 0x1fe   : > { %v4142_v50 = vpop.f32.mrb[0].mxu1 }
 0x1ff   : > { %v4222_v1 = vadd.f32 %v5338_v23, %v4142_v50  ;;  %v2647_v27 = vpop.f32.mrb[1].mxu1 }
 0x200   : > { %v4225_v52 = vadd.f32 %v5326_v3, %v2647_v27  ;;  %v4143_v39 = vpop.f32.mrb[2].mxu1 }
 0x201   : > { %v2815_v0 = vadd.f32 %v4222_v1, %v5469_v36  ;;  %v4228_v40 = vadd.f32 %v5344_v34, %v4143_v39  ;;  %v2650_v58 = vpop.f32.mrb[3].mxu1 }
 0x202   : > { %v2813_v48 = vadd.f32 %v4225_v52, %v5469_v36  ;;  %v4231_v14 = vadd.f32 %v5332_v8, %v2650_v58 }
 0x203   : > { %v2816_v55 = vadd.f32 %v4228_v40, %v5469_v36  ;;  %v2847_v5 = vmax.f32 %v2815_v0, 0.0 }
 0x204   : > { %v2814_v4 = vadd.f32 %v4231_v14, %v5469_v36  ;;  %v2845_v23 = vmax.f32 %v2813_v48, 0.0 }
 0x205   : > { %v2848_v38 = vmax.f32 %v2816_v55, 0.0 }
 0x206   : > { %v2846_v17 = vmax.f32 %v2814_v4, 0.0  ;;  %v4146_v13 = vpop.f32.mrb[4].mxu1 }
 0x207   : > { %v2878_v3 = vpack.c.bf16 %v2848_v38, %v2847_v5  ;;  %v4234_v25 = vadd.f32 %v5362_v61, %v4146_v13  ;;  %v2663_v20 = vpop.f32.mrb[5].mxu1 }
 0x208   : > { %v4237_v34 = vadd.f32 %v5350_v41, %v2663_v20  ;;  %v4147_v54 = vpop.f32.mrb[6].mxu1  ;;  %v2877_v28 = vpack.c.bf16 %v2846_v17, %v2845_v23 }
 0x209   : > { %v2819_v44 = vadd.f32 %v4234_v25, %v5469_v36  ;;  %v4240_v8 = vadd.f32 %v5368_v15, %v4147_v54  ;;  %v2666_v29 = vpop.f32.mrb[7].mxu1 }
 0x20a   : > { %v2817_v6 = vadd.f32 %v4237_v34, %v5469_v36  ;;  %v4243_v21 = vadd.f32 %v5356_v56, %v2666_v29  ;;  %4188 = vmatprep.mubr.bf16.mxu0 %v2877_v28 }
 0x20b   : > { %v2820_v31 = vadd.f32 %v4240_v8, %v5469_v36  ;;  %4189 = vmatmul.mubr.bf16.vlgmr.msra.gmra.mrb[128].mxu0 %v2878_v3  ;;  %v2851_v37 = vmax.f32 %v2819_v44, 0.0 }
 0x20c   : > { %v2818_v61 = vadd.f32 %v4243_v21, %v5469_v36  ;;  %v2849_v41 = vmax.f32 %v2817_v6, 0.0 }
 0x20d   : > { %v2852_v2 = vmax.f32 %v2820_v31, 0.0 }
 0x20e   : > { %v2850_v30 = vmax.f32 %v2818_v61, 0.0  ;;  %v4150_v11 = vpop.f32.mrb[8].mxu1 }
 0x20f   : > { %v4246_v57 = vadd.f32 %v5386_v63, %v4150_v11  ;;  %v2679_v16 = vpop.f32.mrb[9].mxu1  ;;  %v2880_v15 = vpack.c.bf16 %v2852_v2, %v2851_v37 }
 0x210   : > { %v4249_v50 = vadd.f32 %v5374_v18, %v2679_v16  ;;  %v4151_v1 = vpop.f32.mrb[10].mxu1  ;;  %v2879_v27 = vpack.c.bf16 %v2850_v30, %v2849_v41 }
 0x211   : > { %v2823_v56 = vadd.f32 %v4246_v57, %v5469_v36  ;;  %v4252_v52 = vadd.f32 %v5392_v53, %v4151_v1  ;;  %v2682_v39 = vpop.f32.mrb[11].mxu1 }
 0x212   : > { %v2821_v0 = vadd.f32 %v4249_v50, %v5469_v36  ;;  %v4255_v40 = vadd.f32 %v5380_v35, %v2682_v39  ;;  %4192 = vmatprep.mubr.bf16.mxu0 %v2879_v27 }
 0x213   : > { %v2824_v58 = vadd.f32 %v4252_v52, %v5469_v36  ;;  %4193 = vmatmul.mubr.bf16.gmra.mrb[132].mxu0 %v2880_v15  ;;  %v2855_v48 = vmax.f32 %v2823_v56, 0.0 }
 0x214   : > { %v2822_v63 = vadd.f32 %v4255_v40, %v5469_v36  ;;  %v2853_v18 = vmax.f32 %v2821_v0, 0.0 }
 0x215   : > { %v2856_v14 = vmax.f32 %v2824_v58, 0.0 }
 0x216   : > { %v2854_v55 = vmax.f32 %v2822_v63, 0.0  ;;  %v4154_v4 = vpop.f32.mrb[12].mxu1 }
 0x217   : > { %v4258_v5 = vadd.f32 %v5410_v19, %v4154_v4  ;;  %v2695_v38 = vpop.f32.mrb[13].mxu1  ;;  %v2882_v53 = vpack.c.bf16 %v2856_v14, %v2855_v48 }
 0x218   : > { %v4261_v23 = vadd.f32 %v5398_v60, %v2695_v38  ;;  %v4155_v17 = vpop.f32.mrb[14].mxu1  ;;  %v2881_v13 = vpack.c.bf16 %v2854_v55, %v2853_v18 }
 0x219   : > { %v2827_v35 = vadd.f32 %v4258_v5, %v5469_v36  ;;  %v4264_v3 = vadd.f32 %v5416_v33, %v4155_v17  ;;  %v2698_v25 = vpop.f32.mrb[15].mxu1 }
 0x21a   : > { %v2825_v20 = vadd.f32 %v4261_v23, %v5469_v36  ;;  %v4267_v34 = vadd.f32 %v5404_v12, %v2698_v25  ;;  %4196 = vmatprep.mubr.bf16.mxu0 %v2881_v13 }
 0x21b   : > { %v2828_v54 = vadd.f32 %v4264_v3, %v5469_v36  ;;  %4197 = vmatmul.mubr.bf16.gmra.mrb[136].mxu0 %v2882_v53  ;;  %v2859_v28 = vmax.f32 %v2827_v35, 0.0 }
 0x21c   : > { %v2826_v19 = vadd.f32 %v4267_v34, %v5469_v36  ;;  %v2857_v60 = vmax.f32 %v2825_v20, 0.0 }
 0x21d   : > { %v2860_v44 = vmax.f32 %v2828_v54, 0.0 }
 0x21e   : > { %v2858_v8 = vmax.f32 %v2826_v19, 0.0  ;;  %v4158_v29 = vpop.f32.mrb[16].mxu1 }
 0x21f   : > { %v4270_v6 = vadd.f32 %v5425_v46, %v4158_v29  ;;  %v2711_v21 = vpop.f32.mrb[17].mxu1  ;;  %v2884_v33 = vpack.c.bf16 %v2860_v44, %v2859_v28 }
 0x220   : > { %v4273_v31 = vadd.f32 %v5419_v32, %v2711_v21  ;;  %v4159_v61 = vpop.f32.mrb[18].mxu1  ;;  %v2883_v37 = vpack.c.bf16 %v2858_v8, %v2857_v60 }
 0x221   : > { %v2831_v12 = vadd.f32 %v4270_v6, %v5469_v36  ;;  %v4276_v2 = vadd.f32 %v5428_v51, %v4159_v61  ;;  %v2714_v41 = vpop.f32.mrb[19].mxu1 }
 0x222   : > { %v2829_v30 = vadd.f32 %v4273_v31, %v5469_v36  ;;  %v4279_v11 = vadd.f32 %v5422_v9, %v2714_v41  ;;  %4200 = vmatprep.mubr.bf16.mxu0 %v2883_v37 }
 0x223   : > { %v2832_v57 = vadd.f32 %v4276_v2, %v5469_v36  ;;  %4201 = vmatmul.mubr.bf16.gmra.mrb[140].mxu0 %v2884_v33  ;;  %v2863_v16 = vmax.f32 %v2831_v12, 0.0 }
 0x224   : > { %v2830_v46 = vadd.f32 %v4279_v11, %v5469_v36  ;;  %v2861_v32 = vmax.f32 %v2829_v30, 0.0 }
 0x225   : > { %v2864_v15 = vmax.f32 %v2832_v57, 0.0 }
 0x226   : > { %v2862_v50 = vmax.f32 %v2830_v46, 0.0  ;;  %v4162_v1 = vpop.f32.mrb[20].mxu1 }
 0x227   : > { %v4282_v27 = vadd.f32 %v5437_v24, %v4162_v1  ;;  %v2727_v56 = vpop.f32.mrb[21].mxu1  ;;  %v2886_v51 = vpack.c.bf16 %v2864_v15, %v2863_v16 }
 0x228   : > { %v4285_v52 = vadd.f32 %v5431_v7, %v2727_v56  ;;  %v4163_v39 = vpop.f32.mrb[22].mxu1  ;;  %v2885_v0 = vpack.c.bf16 %v2862_v50, %v2861_v32 }
 0x229   : > { %v2835_v9 = vadd.f32 %v4282_v27, %v5469_v36  ;;  %v4288_v40 = vadd.f32 %v5440_v45, %v4163_v39  ;;  %v2730_v58 = vpop.f32.mrb[23].mxu1 }
 0x22a   : > { %v2833_v63 = vadd.f32 %v4285_v52, %v5469_v36  ;;  %v4291_v48 = vadd.f32 %v5434_v47, %v2730_v58  ;;  %4204 = vmatprep.mubr.bf16.mxu0 %v2885_v0 }
 0x22b   : > { %v2836_v14 = vadd.f32 %v4288_v40, %v5469_v36  ;;  %4205 = vmatmul.mubr.bf16.gmra.mrb[144].mxu0 %v2886_v51  ;;  %v2867_v18 = vmax.f32 %v2835_v9, 0.0 }
 0x22c   : > { %v2834_v24 = vadd.f32 %v4291_v48, %v5469_v36  ;;  %v2865_v7 = vmax.f32 %v2833_v63, 0.0 }
 0x22d   : > { %v2868_v55 = vmax.f32 %v2836_v14, 0.0 }
 0x22e   : > { %v2866_v4 = vmax.f32 %v2834_v24, 0.0  ;;  %v4166_v5 = vpop.f32.mrb[24].mxu1 }
 0x22f   : > { %v4294_v38 = vadd.f32 %v5449_v62, %v4166_v5  ;;  %v2743_v53 = vpop.f32.mrb[25].mxu1  ;;  %v2888_v45 = vpack.c.bf16 %v2868_v55, %v2867_v18 }
 0x230   : > { %v4297_v23 = vadd.f32 %v5443_v43, %v2743_v53  ;;  %v4167_v17 = vpop.f32.mrb[26].mxu1  ;;  %v2887_v13 = vpack.c.bf16 %v2866_v4, %v2865_v7 }
 0x231   : > { %v2839_v47 = vadd.f32 %v4294_v38, %v5469_v36  ;;  %v4300_v35 = vadd.f32 %v5452_v26, %v4167_v17  ;;  %v2746_v3 = vpop.f32.mrb[27].mxu1 }
 0x232   : > { %v2837_v25 = vadd.f32 %v4297_v23, %v5469_v36  ;;  %v4303_v20 = vadd.f32 %v5446_v10, %v2746_v3  ;;  %4208 = vmatprep.mubr.bf16.mxu0 %v2887_v13 }
 0x233   : > { %v2840_v34 = vadd.f32 %v4300_v35, %v5469_v36  ;;  %4209 = vmatmul.mubr.bf16.gmra.mrb[148].mxu0 %v2888_v45  ;;  %v2871_v54 = vmax.f32 %v2839_v47, 0.0 }
 0x234   : > { %v2838_v62 = vadd.f32 %v4303_v20, %v5469_v36  ;;  %v2869_v43 = vmax.f32 %v2837_v25, 0.0 }
 0x235   : > { %v2872_v19 = vmax.f32 %v2840_v34, 0.0 }
 0x236   : > { %v2870_v28 = vmax.f32 %v2838_v62, 0.0  ;;  %v4170_v44 = vpop.f32.mrb[28].mxu1 }
 0x237   : > { %v4306_v60 = vadd.f32 %v5461_v42, %v4170_v44  ;;  %v2759_v8 = vpop.f32.mrb[29].mxu1  ;;  %v2890_v26 = vpack.c.bf16 %v2872_v19, %v2871_v54 }
 0x238   : > { %v4309_v29 = vadd.f32 %v5455_v22, %v2759_v8  ;;  %v4171_v6 = vpop.f32.mrb[30].mxu1  ;;  %v2889_v21 = vpack.c.bf16 %v2870_v28, %v2869_v43 }
 0x239   : > { %v2843_v10 = vadd.f32 %v4306_v60, %v5469_v36  ;;  %v4312_v33 = vadd.f32 %v5464_v49, %v4171_v6  ;;  %v2762_v31 = vpop.f32.mrb[31].mxu1 }
 0x23a   : > { %v2841_v61 = vadd.f32 %v4309_v29, %v5469_v36  ;;  %v4315_v37 = vadd.f32 %v5458_v59, %v2762_v31  ;;  %4212 = vmatprep.mubr.bf16.mxu0 %v2889_v21  ;;  %v5540_v59 = vld [vmem:[%s5630_s4] ss:$0 sm:$0xff] }
 0x23b   : > { %v2844_v42 = vadd.f32 %v4312_v33, %v5469_v36  ;;  %4213 = vmatmul.mubr.bf16.gmra.mrb[152].mxu0 %v2890_v26  ;;  %v2875_v22 = vmax.f32 %v2843_v10, 0.0 }
 0x23c   : > { %v2842_v12 = vadd.f32 %v4315_v37, %v5469_v36  ;;  %v2873_v41 = vmax.f32 %v2841_v61, 0.0 }
 0x23d   : > { %v2876_v2 = vmax.f32 %v2844_v42, 0.0 }
 0x23e   : > { %v2874_v30 = vmax.f32 %v2842_v12, 0.0 }
 0x23f   : > { %v2892_v11 = vpack.c.bf16 %v2876_v2, %v2875_v22 }
 0x240   : > { %v2891_v57 = vpack.c.bf16 %v2874_v30, %v2873_v41 }
 0x242   : > { %4216 = vmatprep.mubr.bf16.mxu0 %v2891_v57 }
 0x243   : > { %4217 = vmatmul.mubr.bf16.gmra.mrb[156].mxu0 %v2892_v11 }
 0x2de   : > { %v4190_v49 = vpop.f32.mrb[128].mxu0 }
 0x2df   : > { %v3007_v36 = vadd.f32 %v4190_v49, %v5540_v59  ;;  %v2998_v46 = vpop.f32.mrb[129].mxu0 }
 0x2e0   : > { %v2999_v16 = vadd.f32 %v5540_v59, %v2998_v46  ;;  %v4191_v15 = vpop.f32.mrb[130].mxu0 }
 0x2e1   : > { %3127 = vst [vmem:[%s5545_s9 + $0x10] sm:$0xff] %v3007_v36  ;;  %v3010_v32 = vadd.f32 %v4191_v15, %v5540_v59  ;;  %v3001_v50 = vpop.f32.mrb[131].mxu0 }
 0x2e2   : > { %3125 = vst [vmem:[%s5545_s9] sm:$0xff] %v2999_v16  ;;  %v3002_v1 = vadd.f32 %v5540_v59, %v3001_v50 }
 0x2e3   : > { %3128 = vst [vmem:[%s5545_s9 + $0x18] sm:$0xff] %v3010_v32 }
 0x2e4   : > { %3126 = vst [vmem:[%s5545_s9 + $0x8] sm:$0xff] %v3002_v1 }
 0x2e6   : > { %v4194_v27 = vpop.f32.mrb[132].mxu0 }
 0x2e7   : > { %v3023_v56 = vadd.f32 %v4194_v27, %v5540_v59  ;;  %v3014_v51 = vpop.f32.mrb[133].mxu0 }
 0x2e8   : > { %v3015_v52 = vadd.f32 %v5540_v59, %v3014_v51  ;;  %v4195_v39 = vpop.f32.mrb[134].mxu0 }
 0x2e9   : > { %3131 = vst [vmem:[%s5545_s9 + $0x30] sm:$0xff] %v3023_v56  ;;  %v3026_v0 = vadd.f32 %v4195_v39, %v5540_v59  ;;  %v3017_v9 = vpop.f32.mrb[135].mxu0 }
 0x2ea   : > { %3129 = vst [vmem:[%s5545_s9 + $0x20] sm:$0xff] %v3015_v52  ;;  %v3018_v40 = vadd.f32 %v5540_v59, %v3017_v9 }
 0x2eb   : > { %3132 = vst [vmem:[%s5545_s9 + $0x38] sm:$0xff] %v3026_v0 }
 0x2ec   : > { %3130 = vst [vmem:[%s5545_s9 + $0x28] sm:$0xff] %v3018_v40 }
 0x2ee   : > { %v4198_v58 = vpop.f32.mrb[136].mxu0 }
 0x2ef   : > { %v3039_v63 = vadd.f32 %v4198_v58, %v5540_v59  ;;  %v3030_v48 = vpop.f32.mrb[137].mxu0 }
 0x2f0   : > { %v3031_v14 = vadd.f32 %v5540_v59, %v3030_v48  ;;  %v4199_v24 = vpop.f32.mrb[138].mxu0 }
 0x2f1   : > { %3135 = vst [vmem:[%s5545_s9 + $0x50] sm:$0xff] %v3039_v63  ;;  %v3042_v18 = vadd.f32 %v4199_v24, %v5540_v59  ;;  %v3033_v55 = vpop.f32.mrb[139].mxu0 }
 0x2f2   : > { %3133 = vst [vmem:[%s5545_s9 + $0x40] sm:$0xff] %v3031_v14  ;;  %v3034_v7 = vadd.f32 %v5540_v59, %v3033_v55 }
 0x2f3   : > { %3136 = vst [vmem:[%s5545_s9 + $0x58] sm:$0xff] %v3042_v18 }
 0x2f4   : > { %3134 = vst [vmem:[%s5545_s9 + $0x48] sm:$0xff] %v3034_v7 }
 0x2f6   : > { %v4202_v4 = vpop.f32.mrb[140].mxu0 }
 0x2f7   : > { %v3055_v5 = vadd.f32 %v4202_v4, %v5540_v59  ;;  %v3046_v38 = vpop.f32.mrb[141].mxu0 }
 0x2f8   : > { %v3047_v53 = vadd.f32 %v5540_v59, %v3046_v38  ;;  %v4203_v45 = vpop.f32.mrb[142].mxu0 }
 0x2f9   : > { %3139 = vst [vmem:[%s5545_s9 + $0x70] sm:$0xff] %v3055_v5  ;;  %v3058_v23 = vadd.f32 %v4203_v45, %v5540_v59  ;;  %v3049_v17 = vpop.f32.mrb[143].mxu0 }
 0x2fa   : > { %3137 = vst [vmem:[%s5545_s9 + $0x60] sm:$0xff] %v3047_v53  ;;  %v3050_v13 = vadd.f32 %v5540_v59, %v3049_v17 }
 0x2fb   : > { %3140 = vst [vmem:[%s5545_s9 + $0x78] sm:$0xff] %v3058_v23 }
 0x2fc   : > { %3138 = vst [vmem:[%s5545_s9 + $0x68] sm:$0xff] %v3050_v13 }
 0x2fe   : > { %v4206_v47 = vpop.f32.mrb[144].mxu0 }
 0x2ff   : > { %v3071_v35 = vadd.f32 %v4206_v47, %v5540_v59  ;;  %v3062_v3 = vpop.f32.mrb[145].mxu0 }
 0x300   : > { %v3063_v25 = vadd.f32 %v5540_v59, %v3062_v3  ;;  %v4207_v20 = vpop.f32.mrb[146].mxu0 }
 0x301   : > { %3143 = vst [vmem:[%s5545_s9 + $0x90] sm:$0xff] %v3071_v35  ;;  %v3074_v34 = vadd.f32 %v4207_v20, %v5540_v59  ;;  %v3065_v62 = vpop.f32.mrb[147].mxu0 }
 0x302   : > { %3141 = vst [vmem:[%s5545_s9 + $0x80] sm:$0xff] %v3063_v25  ;;  %v3066_v54 = vadd.f32 %v5540_v59, %v3065_v62 }
 0x303   : > { %3144 = vst [vmem:[%s5545_s9 + $0x98] sm:$0xff] %v3074_v34 }
 0x304   : > { %3142 = vst [vmem:[%s5545_s9 + $0x88] sm:$0xff] %v3066_v54 }
 0x306   : > { %v4210_v19 = vpop.f32.mrb[148].mxu0 }
 0x307   : > { %v3087_v43 = vadd.f32 %v4210_v19, %v5540_v59  ;;  %v3078_v28 = vpop.f32.mrb[149].mxu0 }
 0x308   : > { %v3079_v44 = vadd.f32 %v5540_v59, %v3078_v28  ;;  %v4211_v60 = vpop.f32.mrb[150].mxu0 }
 0x309   : > { %3147 = vst [vmem:[%s5545_s9 + $0xb0] sm:$0xff] %v3087_v43  ;;  %v3090_v8 = vadd.f32 %v4211_v60, %v5540_v59  ;;  %v3081_v26 = vpop.f32.mrb[151].mxu0 }
 0x30a   : > { %3145 = vst [vmem:[%s5545_s9 + $0xa0] sm:$0xff] %v3079_v44  ;;  %v3082_v29 = vadd.f32 %v5540_v59, %v3081_v26 }
 0x30b   : > { %3148 = vst [vmem:[%s5545_s9 + $0xb8] sm:$0xff] %v3090_v8 }
 0x30c   : > { %3146 = vst [vmem:[%s5545_s9 + $0xa8] sm:$0xff] %v3082_v29 }
 0x30e   : > { %v4214_v6 = vpop.f32.mrb[152].mxu0 }
 0x30f   : > { %v3103_v21 = vadd.f32 %v4214_v6, %v5540_v59  ;;  %v3094_v10 = vpop.f32.mrb[153].mxu0 }
 0x310   : > { %v3095_v33 = vadd.f32 %v5540_v59, %v3094_v10  ;;  %v4215_v31 = vpop.f32.mrb[154].mxu0 }
 0x311   : > { %3151 = vst [vmem:[%s5545_s9 + $0xd0] sm:$0xff] %v3103_v21  ;;  %v3106_v61 = vadd.f32 %v4215_v31, %v5540_v59  ;;  %v3097_v37 = vpop.f32.mrb[155].mxu0 }
 0x312   : > { %3149 = vst [vmem:[%s5545_s9 + $0xc0] sm:$0xff] %v3095_v33  ;;  %v3098_v42 = vadd.f32 %v5540_v59, %v3097_v37 }
 0x313   : > { %3152 = vst [vmem:[%s5545_s9 + $0xd8] sm:$0xff] %v3106_v61 }
 0x314   : > { %3150 = vst [vmem:[%s5545_s9 + $0xc8] sm:$0xff] %v3098_v42 }
 0x316   : > { %v4218_v12 = vpop.f32.mrb[156].mxu0 }
 0x317   : > { %v3119_v22 = vadd.f32 %v4218_v12, %v5540_v59  ;;  %v3110_v2 = vpop.f32.mrb[157].mxu0 }
 0x318   : > { %v3111_v41 = vadd.f32 %v5540_v59, %v3110_v2  ;;  %v4219_v30 = vpop.f32.mrb[158].mxu0 }
 0x319   : > { %3155 = vst [vmem:[%s5545_s9 + $0xf0] sm:$0xff] %v3119_v22  ;;  %v3122_v11 = vadd.f32 %v4219_v30, %v5540_v59  ;;  %v3113_v57 = vpop.f32.mrb[159].mxu0 }
 0x31a   : > { %3153 = vst [vmem:[%s5545_s9 + $0xe0] sm:$0xff] %v3111_v41  ;;  %v3114_v49 = vadd.f32 %v5540_v59, %v3113_v57 }
 0x31b   : > { %3156 = vst [vmem:[%s5545_s9 + $0xf8] sm:$0xff] %v3122_v11 }
 0x31c   : > { %3154 = vst [vmem:[%s5545_s9 + $0xe8] sm:$0xff] %v3114_v49 }
 0x31d PF: > { %s15_s22 = sadd.s32 1, %s4731_s22   ;;  %s5632_s18 = smov %s4723_s20 }
 0x31e   : > { %p12_p7 = scmp.ge.s32.totalorder %s15_s22, 10   ;;  %s5633_s19 = smov %s4727_s21 }
 0x31f   : > { %s5634_s20 = smov %s5637_s23  ;;  %s5635_s21 = smov %s5641_s24 }
 0x320   :  { %14 = sbr.rel (!%p12_p7) target bundleno = 3 (0x3), region = 75 }

</bundles_post_ra>
